<compile_context>
chip_gen: v6e
topology: v6e:2x2x1
jax: 0.10.0
libtpu: 0.0.40
codegen_flags: <defaults>
</compile_context>

<pallas_src>
import functools
import math

import jax
import jax.numpy as jnp
from jax.experimental import pallas as pl
from jax.experimental.pallas import tpu as pltpu


# ----------------------------------------------------------------------------
# Fused decoder Pallas kernel (one grid step == one batch element)
# ----------------------------------------------------------------------------
def _fused_decoder_kernel(
    x_ref, llf_ref,                                   # activations (f32, channels-last)
    wc1_ref, w0_ref, w1_ref, w2_ref,                  # weights (bf16)
    s_c1_ref, b_c1_ref, s_l0_ref, b_l0_ref,           # BN eval scale/shift (f32)
    s_l1_ref, b_l1_ref, bias2_ref,                    # (f32)
    out_ref,                                          # logits (f32)
    cc_buf, h1_buf,                                   # VMEM scratch (padded slabs)
    *, H, W, C_LLF, C_X, C_CAPS1_PAD, C_CAT, C_MID, N_OUT,
):
    M = H * W

    # ---- caps1 (1x1 capsule conv) + BN + ReLU --------------------------------
    a1 = llf_ref[...].reshape(M, C_LLF).astype(jnp.bfloat16)
    h_caps = jnp.dot(a1, wc1_ref[...], preferred_element_type=jnp.float32)
    h_caps = jnp.maximum(h_caps * s_c1_ref[...] + b_c1_ref[...], 0.0)   # (M, 256)

    # ---- build zero-padded channels-last concat slab (x | caps1) in VMEM -----
    cc_buf[...] = jnp.zeros_like(cc_buf)
    cc_buf[1:H + 1, 1:W + 1, 0:C_X] = x_ref[...]
    cc_buf[1:H + 1, 1:W + 1, C_X:C_CAT] = h_caps.reshape(H, W, C_CAPS1_PAD)

    # ---- last_caps[0]: 3x3 capsule conv (9 shifted MXU dots) + BN + ReLU ------
    acc = jnp.zeros((M, C_MID), jnp.float32)
    for ky in range(3):
        for kx in range(3):
            a = cc_buf[ky:ky + H, kx:kx + W, :].reshape(M, C_CAT).astype(jnp.bfloat16)
            acc = acc + jnp.dot(a, w0_ref[ky * 3 + kx],
                                preferred_element_type=jnp.float32)
    h0 = jnp.maximum(acc * s_l0_ref[...] + b_l0_ref[...], 0.0)           # (M, 256)

    # stage for the next 3x3 conv (Dropout is identity in eval mode)
    h1_buf[...] = jnp.zeros_like(h1_buf)
    h1_buf[1:H + 1, 1:W + 1, :] = h0.reshape(H, W, C_MID)

    # ---- last_caps[4]: 3x3 capsule conv + BN + ReLU ---------------------------
    acc = jnp.zeros((M, C_MID), jnp.float32)
    for ky in range(3):
        for kx in range(3):
            a = h1_buf[ky:ky + H, kx:kx + W, :].reshape(M, C_MID).astype(jnp.bfloat16)
            acc = acc + jnp.dot(a, w1_ref[ky * 3 + kx],
                                preferred_element_type=jnp.float32)
    h1 = jnp.maximum(acc * s_l1_ref[...] + b_l1_ref[...], 0.0)           # (M, 256)

    # ---- last_caps[8]: 1x1 conv to (num_classes, 1) capsules + bias -----------
    logits = jnp.dot(h1.astype(jnp.bfloat16), w2_ref[...],
                     preferred_element_type=jnp.float32) + bias2_ref[...]
    out_ref[...] = logits.reshape(H, W, N_OUT)


def fused_decoder_pallas(x_cl, llf_cl, kparams, *, H, W):
    """x_cl: (B,H,W,256) f32, llf_cl: (B,H,W,C_LLF) f32, kparams: prepared tuple."""
    B = x_cl.shape[0]
    C_X = x_cl.shape[-1]                 # 32 caps * 8 dims = 256
    C_LLF = llf_cl.shape[-1]             # low_ch_in * 8
    C_CAPS1_PAD = 256                    # 18*8 = 144 padded to lane-dense 256
    C_CAT = C_X + C_CAPS1_PAD            # 512
    C_MID = 256                          # 32*8
    N_OUT = 128                          # num_classes padded to lane-dense 128

    kern = functools.partial(
        _fused_decoder_kernel, H=H, W=W, C_LLF=C_LLF, C_X=C_X,
        C_CAPS1_PAD=C_CAPS1_PAD, C_CAT=C_CAT, C_MID=C_MID, N_OUT=N_OUT)

    return pl.pallas_call(
        kern,
        out_shape=jax.ShapeDtypeStruct((B, H, W, N_OUT), jnp.float32),
        grid=(B,),
        in_specs=[
            pl.BlockSpec((None, H, W, C_X), lambda b: (b, 0, 0, 0)),     # x
            pl.BlockSpec((None, H, W, C_LLF), lambda b: (b, 0, 0, 0)),   # low-level feat
            pl.BlockSpec((C_LLF, C_CAPS1_PAD), lambda b: (0, 0)),        # w_caps1
            pl.BlockSpec((9, C_CAT, C_MID), lambda b: (0, 0, 0)),        # w_lc0 (per-tap)
            pl.BlockSpec((9, C_MID, C_MID), lambda b: (0, 0, 0)),        # w_lc1 (per-tap)
            pl.BlockSpec((C_MID, N_OUT), lambda b: (0, 0)),              # w_lc2
            pl.BlockSpec((1, C_CAPS1_PAD), lambda b: (0, 0)),            # caps1 BN scale
            pl.BlockSpec((1, C_CAPS1_PAD), lambda b: (0, 0)),            # caps1 BN shift
            pl.BlockSpec((1, C_MID), lambda b: (0, 0)),                  # lc0 BN scale
            pl.BlockSpec((1, C_MID), lambda b: (0, 0)),                  # lc0 BN shift
            pl.BlockSpec((1, C_MID), lambda b: (0, 0)),                  # lc1 BN scale
            pl.BlockSpec((1, C_MID), lambda b: (0, 0)),                  # lc1 BN shift
            pl.BlockSpec((1, N_OUT), lambda b: (0, 0)),                  # lc2 bias
        ],
        out_specs=pl.BlockSpec((None, H, W, N_OUT), lambda b: (b, 0, 0, 0)),
        scratch_shapes=[
            pltpu.VMEM((H + 2, W + 2, C_CAT), jnp.float32),   # padded concat slab
            pltpu.VMEM((H + 2, W + 2, C_MID), jnp.float32),   # padded lc0-output slab
        ],
        compiler_params=pltpu.CompilerParams(
            dimension_semantics=("parallel",),       # batch across TCs on v7x
            vmem_limit_bytes=32 * 1024 * 1024,       # bf16 weights ~3.6MB; plenty of headroom
        ),
    )(x_cl, llf_cl, *kparams)


# ----------------------------------------------------------------------------
# Parameter init (deterministic, kaiming-normal like _init_weight) + kernel prep
# ----------------------------------------------------------------------------
def kaiming_normal(key, shape):
    fan_in = shape[1] * shape[2] * shape[3]
    std = math.sqrt(2.0) / math.sqrt(fan_in)
    return jax.random.normal(key, shape, dtype=jnp.float32) * std


def init_decoder_params(key, num_classes, low_ch_in=32):
    k0, k1, k2, k3 = jax.random.split(key, 4)
    return {
        # caps1: (low_ch_in,8) -> (18,8), k=1, bias=False
        "caps1_w": kaiming_normal(k0, (18 * 8, low_ch_in * 8, 1, 1)),
        # last_caps[0]: (50,8) -> (32,8), k=3, pad=1, bias=False
        "lc0_w": kaiming_normal(k1, (32 * 8, 50 * 8, 3, 3)),
        # last_caps[4]: (32,8) -> (32,8), k=3, pad=1, bias=False
        "lc1_w": kaiming_normal(k2, (32 * 8, 32 * 8, 3, 3)),
        # last_caps[8]: (32,8) -> (num_classes,1), k=1 (bias=True default)
        "lc2_w": kaiming_normal(k3, (num_classes * 1, 32 * 8, 1, 1)),
        "lc2_b": jnp.zeros((num_classes,), jnp.float32),
    }


def bn_eval_scale_shift(num_channels, d_caps, eps=1e-5):
    # BatchNorm3d eval with default running stats (mean=0, var=1), gamma=1, beta=0
    scale_c = jnp.full((num_channels,), 1.0 / math.sqrt(1.0 + eps), jnp.float32)
    shift_c = jnp.zeros((num_channels,), jnp.float32)
    return jnp.repeat(scale_c, d_caps), jnp.repeat(shift_c, d_caps)   # lane = c*8+d


def prepare_kernel_params(params, num_classes, low_ch_in):
    C_LLF = low_ch_in * 8
    C_CAPS1 = 18 * 8            # 144 real lanes
    C_CAPS1_PAD = 256
    C_X = 32 * 8                # 256
    C_CAT = C_X + C_CAPS1_PAD   # 512 (real concat channels = 400, rows 400..511 zero)
    C_MID = 32 * 8              # 256
    N_OUT = 128

    # caps1: (144, C_LLF, 1, 1) -> (K=C_LLF, N=144) -> pad N to 256, bf16
    wc1 = params["caps1_w"].reshape(C_CAPS1, C_LLF).T
    wc1 = jnp.pad(wc1, ((0, 0), (0, C_CAPS1_PAD - C_CAPS1))).astype(jnp.bfloat16)

    # lc0: (256, 400, 3, 3) -> per-tap (9, K_in, N_out) with K padded 400 -> 512
    w0 = params["lc0_w"].transpose(2, 3, 1, 0).reshape(9, 50 * 8, C_MID)
    w0 = jnp.pad(w0, ((0, 0), (0, C_CAT - 50 * 8), (0, 0))).astype(jnp.bfloat16)

    # lc1: (256, 256, 3, 3) -> (9, 256, 256)
    w1 = params["lc1_w"].transpose(2, 3, 1, 0).reshape(9, C_MID, C_MID).astype(jnp.bfloat16)

    # lc2: (num_classes, 256, 1, 1) -> (256, num_classes) -> pad N to 128
    w2 = params["lc2_w"].reshape(num_classes, C_MID).T
    w2 = jnp.pad(w2, ((0, 0), (0, N_OUT - num_classes))).astype(jnp.bfloat16)
    bias2 = jnp.pad(params["lc2_b"], (0, N_OUT - num_classes)).reshape(1, N_OUT)
    bias2 = bias2.astype(jnp.float32)

    # BN (eval) fused scale/shift per lane; padded lanes stay exactly zero.
    s_c1, b_c1 = bn_eval_scale_shift(18, 8)
    s_c1 = jnp.pad(s_c1, (0, C_CAPS1_PAD - C_CAPS1), constant_values=1.0).reshape(1, C_CAPS1_PAD)
    b_c1 = jnp.pad(b_c1, (0, C_CAPS1_PAD - C_CAPS1)).reshape(1, C_CAPS1_PAD)
    s_l0, b_l0 = bn_eval_scale_shift(32, 8)
    s_l0, b_l0 = s_l0.reshape(1, C_MID), b_l0.reshape(1, C_MID)
    s_l1, b_l1 = bn_eval_scale_shift(32, 8)
    s_l1, b_l1 = s_l1.reshape(1, C_MID), b_l1.reshape(1, C_MID)

    return (wc1, w0, w1, w2, s_c1, b_c1, s_l0, b_l0, s_l1, b_l1, bias2)


# ----------------------------------------------------------------------------
# Trilinear interpolation with align_corners=True (PyTorch semantics) — kept in XLA
# ----------------------------------------------------------------------------
# TODO(synk): gather-based resize has no clean BlockSpec expression at these tiny
#   sizes; it stays in plain XLA in channels-first layout and is converted to the
#   channels-last slab that feeds the fused kernel.
def _resize_axis_align_corners(x, axis, out_size):
    in_size = x.shape[axis]
    if in_size == out_size:
        return x
    if out_size == 1 or in_size == 1:
        idx = jnp.zeros((out_size,), jnp.int32)
        return jnp.take(x, idx, axis=axis)
    coords = jnp.arange(out_size, dtype=jnp.float32) * ((in_size - 1) / (out_size - 1))
    lo = jnp.floor(coords).astype(jnp.int32)
    hi = jnp.minimum(lo + 1, in_size - 1)
    frac = coords - lo.astype(jnp.float32)
    x_lo = jnp.take(x, lo, axis=axis)
    x_hi = jnp.take(x, hi, axis=axis)
    bshape = [1] * x.ndim
    bshape[axis] = out_size
    frac = frac.reshape(bshape)
    return x_lo * (1.0 - frac) + x_hi * frac


def trilinear_align_corners(x, size):
    for ax, s in zip((2, 3, 4), size):
        x = _resize_axis_align_corners(x, ax, s)
    return x


# ----------------------------------------------------------------------------
# Decoder forward (eval mode)
# ----------------------------------------------------------------------------
def decoder_forward(params, x, low_level_feat, *, num_classes, low_ch_in=32):
    B = low_level_feat.shape[0]
    H, W = low_level_feat.shape[-2:]

    # low_level_feat: (B, low_ch_in*8, H, W); its channel index is already c*8+d,
    # so channels-last transpose gives the (B,H,W,C*D) slab the kernel wants.
    llf_cl = low_level_feat.transpose(0, 2, 3, 1).astype(jnp.float32)

    # ASPP output x: (B, 32, Dx, Hx, Wx) -> trilinear (align_corners=True) to (8,H,W),
    # then channels-last flatten of the (C=32, D=8) capsule dims.
    xr = trilinear_align_corners(x, (8, H, W))                       # (B, 32, 8, H, W)
    x_cl = xr.transpose(0, 3, 4, 1, 2).reshape(B, H, W, 32 * 8).astype(jnp.float32)

    kparams = prepare_kernel_params(params, num_classes, low_ch_in)
    out = fused_decoder_pallas(x_cl, llf_cl, kparams, H=H, W=W)      # (B, H, W, 128)

    # unpad classes, squeeze the D_out=1 capsule dim, back to NCHW
    return out[..., :num_classes].transpose(0, 3, 1, 2)              # (B, nc, H, W)


if __name__ == "__main__":
    num_classes = 4
    low_ch_in = 32            # backbone == 'resnet'
    B, H, W = 2, 8, 8

    key = jax.random.PRNGKey(0)
    kp, kx, kl = jax.random.split(key, 3)
    params = init_decoder_params(kp, num_classes, low_ch_in)

    # ASPP output x (5D, 32 capsules x 8 dims, coarser grid) and low-level features
    x = jax.random.normal(kx, (B, 32, 4, 4, 4), dtype=jnp.float32)
    low_level_feat = jax.random.normal(kl, (B, low_ch_in * 8, H, W), dtype=jnp.float32)

    fwd = jax.jit(functools.partial(decoder_forward,
                                    num_classes=num_classes, low_ch_in=low_ch_in))
    out = jax.block_until_ready(fwd(params, x, low_level_feat))
    assert out.shape == (B, num_classes, H, W), out.shape
    assert bool(jnp.all(jnp.isfinite(out)))
    print("KERNEL_OK")
</pallas_src>

<mosaic_0001>
module attributes {stable_mosaic.version = 11 : i64} {
  func.func @_fused_decoder_kernel(%arg0: i32, %arg1: memref<1x8x8x256xf32, #tpu.memory_space<vmem>>, %arg2: memref<1x8x8x256xf32, #tpu.memory_space<vmem>>, %arg3: memref<256x256xbf16, #tpu.memory_space<vmem>>, %arg4: memref<9x512x256xbf16, #tpu.memory_space<vmem>>, %arg5: memref<9x256x256xbf16, #tpu.memory_space<vmem>>, %arg6: memref<256x128xbf16, #tpu.memory_space<vmem>>, %arg7: memref<1x256xf32, #tpu.memory_space<vmem>>, %arg8: memref<1x256xf32, #tpu.memory_space<vmem>>, %arg9: memref<1x256xf32, #tpu.memory_space<vmem>>, %arg10: memref<1x256xf32, #tpu.memory_space<vmem>>, %arg11: memref<1x256xf32, #tpu.memory_space<vmem>>, %arg12: memref<1x256xf32, #tpu.memory_space<vmem>>, %arg13: memref<1x128xf32, #tpu.memory_space<vmem>>, %arg14: memref<1x8x8x128xf32, #tpu.memory_space<vmem>>, %arg15: memref<10x10x512xf32, #tpu.memory_space<vmem>>, %arg16: memref<10x10x256xf32, #tpu.memory_space<vmem>>) attributes {dimension_semantics = [#tpu.dimension_semantics<parallel>], iteration_bounds = array<i64: 2>, scalar_prefetch = 0 : i64, scratch_operands = 2 : i64, tpu.core_type = #tpu.core_type<tc>, window_params = [{transform_indices = @transform_0, window_bounds = array<i64: 1, 8, 8, 256>}, {transform_indices = @transform_1, window_bounds = array<i64: 1, 8, 8, 256>}, {pipeline_mode = #tpu.pipeline_mode<synchronous>, transform_indices = @transform_2, window_bounds = array<i64: 256, 256>}, {pipeline_mode = #tpu.pipeline_mode<synchronous>, transform_indices = @transform_3, window_bounds = array<i64: 9, 512, 256>}, {pipeline_mode = #tpu.pipeline_mode<synchronous>, transform_indices = @transform_4, window_bounds = array<i64: 9, 256, 256>}, {pipeline_mode = #tpu.pipeline_mode<synchronous>, transform_indices = @transform_5, window_bounds = array<i64: 256, 128>}, {pipeline_mode = #tpu.pipeline_mode<synchronous>, transform_indices = @transform_6, window_bounds = array<i64: 1, 256>}, {pipeline_mode = #tpu.pipeline_mode<synchronous>, transform_indices = @transform_7, window_bounds = array<i64: 1, 256>}, {pipeline_mode = #tpu.pipeline_mode<synchronous>, transform_indices = @transform_8, window_bounds = array<i64: 1, 256>}, {pipeline_mode = #tpu.pipeline_mode<synchronous>, transform_indices = @transform_9, window_bounds = array<i64: 1, 256>}, {pipeline_mode = #tpu.pipeline_mode<synchronous>, transform_indices = @transform_10, window_bounds = array<i64: 1, 256>}, {pipeline_mode = #tpu.pipeline_mode<synchronous>, transform_indices = @transform_11, window_bounds = array<i64: 1, 256>}, {pipeline_mode = #tpu.pipeline_mode<synchronous>, transform_indices = @transform_12, window_bounds = array<i64: 1, 128>}, {transform_indices = @transform_13, window_bounds = array<i64: 1, 8, 8, 128>}]} {
    %c0 = arith.constant 0 : index
    %c0_0 = arith.constant 0 : index
    %c0_1 = arith.constant 0 : index
    %c0_2 = arith.constant 0 : index
    %0 = vector.load %arg2[%c0, %c0_0, %c0_1, %c0_2] : memref<1x8x8x256xf32, #tpu.memory_space<vmem>>, vector<1x8x8x256xf32>
    %1 = vector.shape_cast %0 : vector<1x8x8x256xf32> to vector<8x8x256xf32>
    %2 = vector.shape_cast %1 : vector<8x8x256xf32> to vector<64x256xf32>
    %3 = arith.truncf %2 : vector<64x256xf32> to vector<64x256xbf16>
    %c0_3 = arith.constant 0 : index
    %c0_4 = arith.constant 0 : index
    %4 = vector.load %arg3[%c0_3, %c0_4] : memref<256x256xbf16, #tpu.memory_space<vmem>>, vector<256x256xbf16>
    %cst = arith.constant dense<0.000000e+00> : vector<64x256xf32>
    %5 = tpu.matmul %3, %4, %cst {dimension_numbers = #tpu.dot_dimension_numbers<[1], [0], [0], [1], [0, 0, 1, 1], [], []>} : vector<64x256xbf16>, vector<256x256xbf16>, vector<64x256xf32> -> vector<64x256xf32>
    %c0_5 = arith.constant 0 : index
    %c0_6 = arith.constant 0 : index
    %6 = vector.load %arg7[%c0_5, %c0_6] : memref<1x256xf32, #tpu.memory_space<vmem>>, vector<1x256xf32>
    %7 = vector.broadcast %6 : vector<1x256xf32> to vector<64x256xf32>
    %8 = arith.mulf %5, %7 : vector<64x256xf32>
    %c0_7 = arith.constant 0 : index
    %c0_8 = arith.constant 0 : index
    %9 = vector.load %arg8[%c0_7, %c0_8] : memref<1x256xf32, #tpu.memory_space<vmem>>, vector<1x256xf32>
    %10 = vector.broadcast %9 : vector<1x256xf32> to vector<64x256xf32>
    %11 = arith.addf %8, %10 : vector<64x256xf32>
    %cst_9 = arith.constant 0.000000e+00 : f32
    %12 = vector.broadcast %cst_9 : f32 to vector<64x256xf32>
    %13 = arith.maximumf %11, %12 : vector<64x256xf32>
    %cst_10 = arith.constant 0.000000e+00 : f32
    %14 = vector.broadcast %cst_10 : f32 to vector<10x10x512xf32>
    %c0_11 = arith.constant 0 : index
    %c0_12 = arith.constant 0 : index
    %c0_13 = arith.constant 0 : index
    %15 = vector.load %arg15[%c0_11, %c0_12, %c0_13] : memref<10x10x512xf32, #tpu.memory_space<vmem>>, vector<10x10x512xf32>
    tpu.vector_store %arg15[%c0_11, %c0_12, %c0_13], %14 {strides = array<i32>} : memref<10x10x512xf32, #tpu.memory_space<vmem>>, vector<10x10x512xf32>,
    %c0_14 = arith.constant 0 : index
    %c0_15 = arith.constant 0 : index
    %c0_16 = arith.constant 0 : index
    %c0_17 = arith.constant 0 : index
    %16 = vector.load %arg1[%c0_14, %c0_15, %c0_16, %c0_17] : memref<1x8x8x256xf32, #tpu.memory_space<vmem>>, vector<1x8x8x256xf32>
    %17 = vector.shape_cast %16 : vector<1x8x8x256xf32> to vector<8x8x256xf32>
    %c1 = arith.constant 1 : index
    %c1_18 = arith.constant 1 : index
    %c0_19 = arith.constant 0 : index
    %18 = vector.load %arg15[%c1, %c1_18, %c0_19] : memref<10x10x512xf32, #tpu.memory_space<vmem>>, vector<8x8x256xf32>
    tpu.vector_store %arg15[%c1, %c1_18, %c0_19], %17 {strides = array<i32>} : memref<10x10x512xf32, #tpu.memory_space<vmem>>, vector<8x8x256xf32>,
    %19 = vector.shape_cast %13 : vector<64x256xf32> to vector<8x8x256xf32>
    %c1_20 = arith.constant 1 : index
    %c1_21 = arith.constant 1 : index
    %c256 = arith.constant 256 : index
    %20 = vector.load %arg15[%c1_20, %c1_21, %c256] : memref<10x10x512xf32, #tpu.memory_space<vmem>>, vector<8x8x256xf32>
    tpu.vector_store %arg15[%c1_20, %c1_21, %c256], %19 {strides = array<i32>} : memref<10x10x512xf32, #tpu.memory_space<vmem>>, vector<8x8x256xf32>,
    %cst_22 = arith.constant 0.000000e+00 : f32
    %21 = vector.broadcast %cst_22 : f32 to vector<64x256xf32>
    %c0_23 = arith.constant 0 : index
    %c0_24 = arith.constant 0 : index
    %c0_25 = arith.constant 0 : index
    %22 = vector.load %arg15[%c0_23, %c0_24, %c0_25] : memref<10x10x512xf32, #tpu.memory_space<vmem>>, vector<8x8x512xf32>
    %23 = vector.shape_cast %22 : vector<8x8x512xf32> to vector<64x512xf32>
    %24 = arith.truncf %23 : vector<64x512xf32> to vector<64x512xbf16>
    %c0_26 = arith.constant 0 : index
    %c0_27 = arith.constant 0 : index
    %c0_28 = arith.constant 0 : index
    %25 = vector.load %arg4[%c0_26, %c0_27, %c0_28] : memref<9x512x256xbf16, #tpu.memory_space<vmem>>, vector<1x512x256xbf16>
    %26 = vector.shape_cast %25 : vector<1x512x256xbf16> to vector<512x256xbf16>
    %cst_29 = arith.constant dense<0.000000e+00> : vector<64x256xf32>
    %27 = tpu.matmul %24, %26, %cst_29 {dimension_numbers = #tpu.dot_dimension_numbers<[1], [0], [0], [1], [0, 0, 1, 1], [], []>} : vector<64x512xbf16>, vector<512x256xbf16>, vector<64x256xf32> -> vector<64x256xf32>
    %28 = arith.addf %21, %27 : vector<64x256xf32>
    %c0_30 = arith.constant 0 : index
    %c1_31 = arith.constant 1 : index
    %c0_32 = arith.constant 0 : index
    %29 = vector.load %arg15[%c0_30, %c1_31, %c0_32] : memref<10x10x512xf32, #tpu.memory_space<vmem>>, vector<8x8x512xf32>
    %30 = vector.shape_cast %29 : vector<8x8x512xf32> to vector<64x512xf32>
    %31 = arith.truncf %30 : vector<64x512xf32> to vector<64x512xbf16>
    %c1_33 = arith.constant 1 : index
    %c0_34 = arith.constant 0 : index
    %c0_35 = arith.constant 0 : index
    %32 = vector.load %arg4[%c1_33, %c0_34, %c0_35] : memref<9x512x256xbf16, #tpu.memory_space<vmem>>, vector<1x512x256xbf16>
    %33 = vector.shape_cast %32 : vector<1x512x256xbf16> to vector<512x256xbf16>
    %cst_36 = arith.constant dense<0.000000e+00> : vector<64x256xf32>
    %34 = tpu.matmul %31, %33, %cst_36 {dimension_numbers = #tpu.dot_dimension_numbers<[1], [0], [0], [1], [0, 0, 1, 1], [], []>} : vector<64x512xbf16>, vector<512x256xbf16>, vector<64x256xf32> -> vector<64x256xf32>
    %35 = arith.addf %28, %34 : vector<64x256xf32>
    %c0_37 = arith.constant 0 : index
    %c2 = arith.constant 2 : index
    %c0_38 = arith.constant 0 : index
    %36 = vector.load %arg15[%c0_37, %c2, %c0_38] : memref<10x10x512xf32, #tpu.memory_space<vmem>>, vector<8x8x512xf32>
    %37 = vector.shape_cast %36 : vector<8x8x512xf32> to vector<64x512xf32>
    %38 = arith.truncf %37 : vector<64x512xf32> to vector<64x512xbf16>
    %c2_39 = arith.constant 2 : index
    %c0_40 = arith.constant 0 : index
    %c0_41 = arith.constant 0 : index
    %39 = vector.load %arg4[%c2_39, %c0_40, %c0_41] : memref<9x512x256xbf16, #tpu.memory_space<vmem>>, vector<1x512x256xbf16>
    %40 = vector.shape_cast %39 : vector<1x512x256xbf16> to vector<512x256xbf16>
    %cst_42 = arith.constant dense<0.000000e+00> : vector<64x256xf32>
    %41 = tpu.matmul %38, %40, %cst_42 {dimension_numbers = #tpu.dot_dimension_numbers<[1], [0], [0], [1], [0, 0, 1, 1], [], []>} : vector<64x512xbf16>, vector<512x256xbf16>, vector<64x256xf32> -> vector<64x256xf32>
    %42 = arith.addf %35, %41 : vector<64x256xf32>
    %c1_43 = arith.constant 1 : index
    %c0_44 = arith.constant 0 : index
    %c0_45 = arith.constant 0 : index
    %43 = vector.load %arg15[%c1_43, %c0_44, %c0_45] : memref<10x10x512xf32, #tpu.memory_space<vmem>>, vector<8x8x512xf32>
    %44 = vector.shape_cast %43 : vector<8x8x512xf32> to vector<64x512xf32>
    %45 = arith.truncf %44 : vector<64x512xf32> to vector<64x512xbf16>
    %c3 = arith.constant 3 : index
    %c0_46 = arith.constant 0 : index
    %c0_47 = arith.constant 0 : index
    %46 = vector.load %arg4[%c3, %c0_46, %c0_47] : memref<9x512x256xbf16, #tpu.memory_space<vmem>>, vector<1x512x256xbf16>
    %47 = vector.shape_cast %46 : vector<1x512x256xbf16> to vector<512x256xbf16>
    %cst_48 = arith.constant dense<0.000000e+00> : vector<64x256xf32>
    %48 = tpu.matmul %45, %47, %cst_48 {dimension_numbers = #tpu.dot_dimension_numbers<[1], [0], [0], [1], [0, 0, 1, 1], [], []>} : vector<64x512xbf16>, vector<512x256xbf16>, vector<64x256xf32> -> vector<64x256xf32>
    %49 = arith.addf %42, %48 : vector<64x256xf32>
    %c1_49 = arith.constant 1 : index
    %c1_50 = arith.constant 1 : index
    %c0_51 = arith.constant 0 : index
    %50 = vector.load %arg15[%c1_49, %c1_50, %c0_51] : memref<10x10x512xf32, #tpu.memory_space<vmem>>, vector<8x8x512xf32>
    %51 = vector.shape_cast %50 : vector<8x8x512xf32> to vector<64x512xf32>
    %52 = arith.truncf %51 : vector<64x512xf32> to vector<64x512xbf16>
    %c4 = arith.constant 4 : index
    %c0_52 = arith.constant 0 : index
    %c0_53 = arith.constant 0 : index
    %53 = vector.load %arg4[%c4, %c0_52, %c0_53] : memref<9x512x256xbf16, #tpu.memory_space<vmem>>, vector<1x512x256xbf16>
    %54 = vector.shape_cast %53 : vector<1x512x256xbf16> to vector<512x256xbf16>
    %cst_54 = arith.constant dense<0.000000e+00> : vector<64x256xf32>
    %55 = tpu.matmul %52, %54, %cst_54 {dimension_numbers = #tpu.dot_dimension_numbers<[1], [0], [0], [1], [0, 0, 1, 1], [], []>} : vector<64x512xbf16>, vector<512x256xbf16>, vector<64x256xf32> -> vector<64x256xf32>
    %56 = arith.addf %49, %55 : vector<64x256xf32>
    %c1_55 = arith.constant 1 : index
    %c2_56 = arith.constant 2 : index
    %c0_57 = arith.constant 0 : index
    %57 = vector.load %arg15[%c1_55, %c2_56, %c0_57] : memref<10x10x512xf32, #tpu.memory_space<vmem>>, vector<8x8x512xf32>
    %58 = vector.shape_cast %57 : vector<8x8x512xf32> to vector<64x512xf32>
    %59 = arith.truncf %58 : vector<64x512xf32> to vector<64x512xbf16>
    %c5 = arith.constant 5 : index
    %c0_58 = arith.constant 0 : index
    %c0_59 = arith.constant 0 : index
    %60 = vector.load %arg4[%c5, %c0_58, %c0_59] : memref<9x512x256xbf16, #tpu.memory_space<vmem>>, vector<1x512x256xbf16>
    %61 = vector.shape_cast %60 : vector<1x512x256xbf16> to vector<512x256xbf16>
    %cst_60 = arith.constant dense<0.000000e+00> : vector<64x256xf32>
    %62 = tpu.matmul %59, %61, %cst_60 {dimension_numbers = #tpu.dot_dimension_numbers<[1], [0], [0], [1], [0, 0, 1, 1], [], []>} : vector<64x512xbf16>, vector<512x256xbf16>, vector<64x256xf32> -> vector<64x256xf32>
    %63 = arith.addf %56, %62 : vector<64x256xf32>
    %c2_61 = arith.constant 2 : index
    %c0_62 = arith.constant 0 : index
    %c0_63 = arith.constant 0 : index
    %64 = vector.load %arg15[%c2_61, %c0_62, %c0_63] : memref<10x10x512xf32, #tpu.memory_space<vmem>>, vector<8x8x512xf32>
    %65 = vector.shape_cast %64 : vector<8x8x512xf32> to vector<64x512xf32>
    %66 = arith.truncf %65 : vector<64x512xf32> to vector<64x512xbf16>
    %c6 = arith.constant 6 : index
    %c0_64 = arith.constant 0 : index
    %c0_65 = arith.constant 0 : index
    %67 = vector.load %arg4[%c6, %c0_64, %c0_65] : memref<9x512x256xbf16, #tpu.memory_space<vmem>>, vector<1x512x256xbf16>
    %68 = vector.shape_cast %67 : vector<1x512x256xbf16> to vector<512x256xbf16>
    %cst_66 = arith.constant dense<0.000000e+00> : vector<64x256xf32>
    %69 = tpu.matmul %66, %68, %cst_66 {dimension_numbers = #tpu.dot_dimension_numbers<[1], [0], [0], [1], [0, 0, 1, 1], [], []>} : vector<64x512xbf16>, vector<512x256xbf16>, vector<64x256xf32> -> vector<64x256xf32>
    %70 = arith.addf %63, %69 : vector<64x256xf32>
    %c2_67 = arith.constant 2 : index
    %c1_68 = arith.constant 1 : index
    %c0_69 = arith.constant 0 : index
    %71 = vector.load %arg15[%c2_67, %c1_68, %c0_69] : memref<10x10x512xf32, #tpu.memory_space<vmem>>, vector<8x8x512xf32>
    %72 = vector.shape_cast %71 : vector<8x8x512xf32> to vector<64x512xf32>
    %73 = arith.truncf %72 : vector<64x512xf32> to vector<64x512xbf16>
    %c7 = arith.constant 7 : index
    %c0_70 = arith.constant 0 : index
    %c0_71 = arith.constant 0 : index
    %74 = vector.load %arg4[%c7, %c0_70, %c0_71] : memref<9x512x256xbf16, #tpu.memory_space<vmem>>, vector<1x512x256xbf16>
    %75 = vector.shape_cast %74 : vector<1x512x256xbf16> to vector<512x256xbf16>
    %cst_72 = arith.constant dense<0.000000e+00> : vector<64x256xf32>
    %76 = tpu.matmul %73, %75, %cst_72 {dimension_numbers = #tpu.dot_dimension_numbers<[1], [0], [0], [1], [0, 0, 1, 1], [], []>} : vector<64x512xbf16>, vector<512x256xbf16>, vector<64x256xf32> -> vector<64x256xf32>
    %77 = arith.addf %70, %76 : vector<64x256xf32>
    %c2_73 = arith.constant 2 : index
    %c2_74 = arith.constant 2 : index
    %c0_75 = arith.constant 0 : index
    %78 = vector.load %arg15[%c2_73, %c2_74, %c0_75] : memref<10x10x512xf32, #tpu.memory_space<vmem>>, vector<8x8x512xf32>
    %79 = vector.shape_cast %78 : vector<8x8x512xf32> to vector<64x512xf32>
    %80 = arith.truncf %79 : vector<64x512xf32> to vector<64x512xbf16>
    %c8 = arith.constant 8 : index
    %c0_76 = arith.constant 0 : index
    %c0_77 = arith.constant 0 : index
    %81 = vector.load %arg4[%c8, %c0_76, %c0_77] : memref<9x512x256xbf16, #tpu.memory_space<vmem>>, vector<1x512x256xbf16>
    %82 = vector.shape_cast %81 : vector<1x512x256xbf16> to vector<512x256xbf16>
    %cst_78 = arith.constant dense<0.000000e+00> : vector<64x256xf32>
    %83 = tpu.matmul %80, %82, %cst_78 {dimension_numbers = #tpu.dot_dimension_numbers<[1], [0], [0], [1], [0, 0, 1, 1], [], []>} : vector<64x512xbf16>, vector<512x256xbf16>, vector<64x256xf32> -> vector<64x256xf32>
    %84 = arith.addf %77, %83 : vector<64x256xf32>
    %c0_79 = arith.constant 0 : index
    %c0_80 = arith.constant 0 : index
    %85 = vector.load %arg9[%c0_79, %c0_80] : memref<1x256xf32, #tpu.memory_space<vmem>>, vector<1x256xf32>
    %86 = vector.broadcast %85 : vector<1x256xf32> to vector<64x256xf32>
    %87 = arith.mulf %84, %86 : vector<64x256xf32>
    %c0_81 = arith.constant 0 : index
    %c0_82 = arith.constant 0 : index
    %88 = vector.load %arg10[%c0_81, %c0_82] : memref<1x256xf32, #tpu.memory_space<vmem>>, vector<1x256xf32>
    %89 = vector.broadcast %88 : vector<1x256xf32> to vector<64x256xf32>
    %90 = arith.addf %87, %89 : vector<64x256xf32>
    %cst_83 = arith.constant 0.000000e+00 : f32
    %91 = vector.broadcast %cst_83 : f32 to vector<64x256xf32>
    %92 = arith.maximumf %90, %91 : vector<64x256xf32>
    %cst_84 = arith.constant 0.000000e+00 : f32
    %93 = vector.broadcast %cst_84 : f32 to vector<10x10x256xf32>
    %c0_85 = arith.constant 0 : index
    %c0_86 = arith.constant 0 : index
    %c0_87 = arith.constant 0 : index
    %94 = vector.load %arg16[%c0_85, %c0_86, %c0_87] : memref<10x10x256xf32, #tpu.memory_space<vmem>>, vector<10x10x256xf32>
    tpu.vector_store %arg16[%c0_85, %c0_86, %c0_87], %93 {strides = array<i32>} : memref<10x10x256xf32, #tpu.memory_space<vmem>>, vector<10x10x256xf32>,
    %95 = vector.shape_cast %92 : vector<64x256xf32> to vector<8x8x256xf32>
    %c1_88 = arith.constant 1 : index
    %c1_89 = arith.constant 1 : index
    %c0_90 = arith.constant 0 : index
    %96 = vector.load %arg16[%c1_88, %c1_89, %c0_90] : memref<10x10x256xf32, #tpu.memory_space<vmem>>, vector<8x8x256xf32>
    tpu.vector_store %arg16[%c1_88, %c1_89, %c0_90], %95 {strides = array<i32>} : memref<10x10x256xf32, #tpu.memory_space<vmem>>, vector<8x8x256xf32>,
    %cst_91 = arith.constant 0.000000e+00 : f32
    %97 = vector.broadcast %cst_91 : f32 to vector<64x256xf32>
    %c0_92 = arith.constant 0 : index
    %c0_93 = arith.constant 0 : index
    %c0_94 = arith.constant 0 : index
    %98 = vector.load %arg16[%c0_92, %c0_93, %c0_94] : memref<10x10x256xf32, #tpu.memory_space<vmem>>, vector<8x8x256xf32>
    %99 = vector.shape_cast %98 : vector<8x8x256xf32> to vector<64x256xf32>
    %100 = arith.truncf %99 : vector<64x256xf32> to vector<64x256xbf16>
    %c0_95 = arith.constant 0 : index
    %c0_96 = arith.constant 0 : index
    %c0_97 = arith.constant 0 : index
    %101 = vector.load %arg5[%c0_95, %c0_96, %c0_97] : memref<9x256x256xbf16, #tpu.memory_space<vmem>>, vector<1x256x256xbf16>
    %102 = vector.shape_cast %101 : vector<1x256x256xbf16> to vector<256x256xbf16>
    %cst_98 = arith.constant dense<0.000000e+00> : vector<64x256xf32>
    %103 = tpu.matmul %100, %102, %cst_98 {dimension_numbers = #tpu.dot_dimension_numbers<[1], [0], [0], [1], [0, 0, 1, 1], [], []>} : vector<64x256xbf16>, vector<256x256xbf16>, vector<64x256xf32> -> vector<64x256xf32>
    %104 = arith.addf %97, %103 : vector<64x256xf32>
    %c0_99 = arith.constant 0 : index
    %c1_100 = arith.constant 1 : index
    %c0_101 = arith.constant 0 : index
    %105 = vector.load %arg16[%c0_99, %c1_100, %c0_101] : memref<10x10x256xf32, #tpu.memory_space<vmem>>, vector<8x8x256xf32>
    %106 = vector.shape_cast %105 : vector<8x8x256xf32> to vector<64x256xf32>
    %107 = arith.truncf %106 : vector<64x256xf32> to vector<64x256xbf16>
    %c1_102 = arith.constant 1 : index
    %c0_103 = arith.constant 0 : index
    %c0_104 = arith.constant 0 : index
    %108 = vector.load %arg5[%c1_102, %c0_103, %c0_104] : memref<9x256x256xbf16, #tpu.memory_space<vmem>>, vector<1x256x256xbf16>
    %109 = vector.shape_cast %108 : vector<1x256x256xbf16> to vector<256x256xbf16>
    %cst_105 = arith.constant dense<0.000000e+00> : vector<64x256xf32>
    %110 = tpu.matmul %107, %109, %cst_105 {dimension_numbers = #tpu.dot_dimension_numbers<[1], [0], [0], [1], [0, 0, 1, 1], [], []>} : vector<64x256xbf16>, vector<256x256xbf16>, vector<64x256xf32> -> vector<64x256xf32>
    %111 = arith.addf %104, %110 : vector<64x256xf32>
    %c0_106 = arith.constant 0 : index
    %c2_107 = arith.constant 2 : index
    %c0_108 = arith.constant 0 : index
    %112 = vector.load %arg16[%c0_106, %c2_107, %c0_108] : memref<10x10x256xf32, #tpu.memory_space<vmem>>, vector<8x8x256xf32>
    %113 = vector.shape_cast %112 : vector<8x8x256xf32> to vector<64x256xf32>
    %114 = arith.truncf %113 : vector<64x256xf32> to vector<64x256xbf16>
    %c2_109 = arith.constant 2 : index
    %c0_110 = arith.constant 0 : index
    %c0_111 = arith.constant 0 : index
    %115 = vector.load %arg5[%c2_109, %c0_110, %c0_111] : memref<9x256x256xbf16, #tpu.memory_space<vmem>>, vector<1x256x256xbf16>
    %116 = vector.shape_cast %115 : vector<1x256x256xbf16> to vector<256x256xbf16>
    %cst_112 = arith.constant dense<0.000000e+00> : vector<64x256xf32>
    %117 = tpu.matmul %114, %116, %cst_112 {dimension_numbers = #tpu.dot_dimension_numbers<[1], [0], [0], [1], [0, 0, 1, 1], [], []>} : vector<64x256xbf16>, vector<256x256xbf16>, vector<64x256xf32> -> vector<64x256xf32>
    %118 = arith.addf %111, %117 : vector<64x256xf32>
    %c1_113 = arith.constant 1 : index
    %c0_114 = arith.constant 0 : index
    %c0_115 = arith.constant 0 : index
    %119 = vector.load %arg16[%c1_113, %c0_114, %c0_115] : memref<10x10x256xf32, #tpu.memory_space<vmem>>, vector<8x8x256xf32>
    %120 = vector.shape_cast %119 : vector<8x8x256xf32> to vector<64x256xf32>
    %121 = arith.truncf %120 : vector<64x256xf32> to vector<64x256xbf16>
    %c3_116 = arith.constant 3 : index
    %c0_117 = arith.constant 0 : index
    %c0_118 = arith.constant 0 : index
    %122 = vector.load %arg5[%c3_116, %c0_117, %c0_118] : memref<9x256x256xbf16, #tpu.memory_space<vmem>>, vector<1x256x256xbf16>
    %123 = vector.shape_cast %122 : vector<1x256x256xbf16> to vector<256x256xbf16>
    %cst_119 = arith.constant dense<0.000000e+00> : vector<64x256xf32>
    %124 = tpu.matmul %121, %123, %cst_119 {dimension_numbers = #tpu.dot_dimension_numbers<[1], [0], [0], [1], [0, 0, 1, 1], [], []>} : vector<64x256xbf16>, vector<256x256xbf16>, vector<64x256xf32> -> vector<64x256xf32>
    %125 = arith.addf %118, %124 : vector<64x256xf32>
    %c1_120 = arith.constant 1 : index
    %c1_121 = arith.constant 1 : index
    %c0_122 = arith.constant 0 : index
    %126 = vector.load %arg16[%c1_120, %c1_121, %c0_122] : memref<10x10x256xf32, #tpu.memory_space<vmem>>, vector<8x8x256xf32>
    %127 = vector.shape_cast %126 : vector<8x8x256xf32> to vector<64x256xf32>
    %128 = arith.truncf %127 : vector<64x256xf32> to vector<64x256xbf16>
    %c4_123 = arith.constant 4 : index
    %c0_124 = arith.constant 0 : index
    %c0_125 = arith.constant 0 : index
    %129 = vector.load %arg5[%c4_123, %c0_124, %c0_125] : memref<9x256x256xbf16, #tpu.memory_space<vmem>>, vector<1x256x256xbf16>
    %130 = vector.shape_cast %129 : vector<1x256x256xbf16> to vector<256x256xbf16>
    %cst_126 = arith.constant dense<0.000000e+00> : vector<64x256xf32>
    %131 = tpu.matmul %128, %130, %cst_126 {dimension_numbers = #tpu.dot_dimension_numbers<[1], [0], [0], [1], [0, 0, 1, 1], [], []>} : vector<64x256xbf16>, vector<256x256xbf16>, vector<64x256xf32> -> vector<64x256xf32>
    %132 = arith.addf %125, %131 : vector<64x256xf32>
    %c1_127 = arith.constant 1 : index
    %c2_128 = arith.constant 2 : index
    %c0_129 = arith.constant 0 : index
    %133 = vector.load %arg16[%c1_127, %c2_128, %c0_129] : memref<10x10x256xf32, #tpu.memory_space<vmem>>, vector<8x8x256xf32>
    %134 = vector.shape_cast %133 : vector<8x8x256xf32> to vector<64x256xf32>
    %135 = arith.truncf %134 : vector<64x256xf32> to vector<64x256xbf16>
    %c5_130 = arith.constant 5 : index
    %c0_131 = arith.constant 0 : index
    %c0_132 = arith.constant 0 : index
    %136 = vector.load %arg5[%c5_130, %c0_131, %c0_132] : memref<9x256x256xbf16, #tpu.memory_space<vmem>>, vector<1x256x256xbf16>
    %137 = vector.shape_cast %136 : vector<1x256x256xbf16> to vector<256x256xbf16>
    %cst_133 = arith.constant dense<0.000000e+00> : vector<64x256xf32>
    %138 = tpu.matmul %135, %137, %cst_133 {dimension_numbers = #tpu.dot_dimension_numbers<[1], [0], [0], [1], [0, 0, 1, 1], [], []>} : vector<64x256xbf16>, vector<256x256xbf16>, vector<64x256xf32> -> vector<64x256xf32>
    %139 = arith.addf %132, %138 : vector<64x256xf32>
    %c2_134 = arith.constant 2 : index
    %c0_135 = arith.constant 0 : index
    %c0_136 = arith.constant 0 : index
    %140 = vector.load %arg16[%c2_134, %c0_135, %c0_136] : memref<10x10x256xf32, #tpu.memory_space<vmem>>, vector<8x8x256xf32>
    %141 = vector.shape_cast %140 : vector<8x8x256xf32> to vector<64x256xf32>
    %142 = arith.truncf %141 : vector<64x256xf32> to vector<64x256xbf16>
    %c6_137 = arith.constant 6 : index
    %c0_138 = arith.constant 0 : index
    %c0_139 = arith.constant 0 : index
    %143 = vector.load %arg5[%c6_137, %c0_138, %c0_139] : memref<9x256x256xbf16, #tpu.memory_space<vmem>>, vector<1x256x256xbf16>
    %144 = vector.shape_cast %143 : vector<1x256x256xbf16> to vector<256x256xbf16>
    %cst_140 = arith.constant dense<0.000000e+00> : vector<64x256xf32>
    %145 = tpu.matmul %142, %144, %cst_140 {dimension_numbers = #tpu.dot_dimension_numbers<[1], [0], [0], [1], [0, 0, 1, 1], [], []>} : vector<64x256xbf16>, vector<256x256xbf16>, vector<64x256xf32> -> vector<64x256xf32>
    %146 = arith.addf %139, %145 : vector<64x256xf32>
    %c2_141 = arith.constant 2 : index
    %c1_142 = arith.constant 1 : index
    %c0_143 = arith.constant 0 : index
    %147 = vector.load %arg16[%c2_141, %c1_142, %c0_143] : memref<10x10x256xf32, #tpu.memory_space<vmem>>, vector<8x8x256xf32>
    %148 = vector.shape_cast %147 : vector<8x8x256xf32> to vector<64x256xf32>
    %149 = arith.truncf %148 : vector<64x256xf32> to vector<64x256xbf16>
    %c7_144 = arith.constant 7 : index
    %c0_145 = arith.constant 0 : index
    %c0_146 = arith.constant 0 : index
    %150 = vector.load %arg5[%c7_144, %c0_145, %c0_146] : memref<9x256x256xbf16, #tpu.memory_space<vmem>>, vector<1x256x256xbf16>
    %151 = vector.shape_cast %150 : vector<1x256x256xbf16> to vector<256x256xbf16>
    %cst_147 = arith.constant dense<0.000000e+00> : vector<64x256xf32>
    %152 = tpu.matmul %149, %151, %cst_147 {dimension_numbers = #tpu.dot_dimension_numbers<[1], [0], [0], [1], [0, 0, 1, 1], [], []>} : vector<64x256xbf16>, vector<256x256xbf16>, vector<64x256xf32> -> vector<64x256xf32>
    %153 = arith.addf %146, %152 : vector<64x256xf32>
    %c2_148 = arith.constant 2 : index
    %c2_149 = arith.constant 2 : index
    %c0_150 = arith.constant 0 : index
    %154 = vector.load %arg16[%c2_148, %c2_149, %c0_150] : memref<10x10x256xf32, #tpu.memory_space<vmem>>, vector<8x8x256xf32>
    %155 = vector.shape_cast %154 : vector<8x8x256xf32> to vector<64x256xf32>
    %156 = arith.truncf %155 : vector<64x256xf32> to vector<64x256xbf16>
    %c8_151 = arith.constant 8 : index
    %c0_152 = arith.constant 0 : index
    %c0_153 = arith.constant 0 : index
    %157 = vector.load %arg5[%c8_151, %c0_152, %c0_153] : memref<9x256x256xbf16, #tpu.memory_space<vmem>>, vector<1x256x256xbf16>
    %158 = vector.shape_cast %157 : vector<1x256x256xbf16> to vector<256x256xbf16>
    %cst_154 = arith.constant dense<0.000000e+00> : vector<64x256xf32>
    %159 = tpu.matmul %156, %158, %cst_154 {dimension_numbers = #tpu.dot_dimension_numbers<[1], [0], [0], [1], [0, 0, 1, 1], [], []>} : vector<64x256xbf16>, vector<256x256xbf16>, vector<64x256xf32> -> vector<64x256xf32>
    %160 = arith.addf %153, %159 : vector<64x256xf32>
    %c0_155 = arith.constant 0 : index
    %c0_156 = arith.constant 0 : index
    %161 = vector.load %arg11[%c0_155, %c0_156] : memref<1x256xf32, #tpu.memory_space<vmem>>, vector<1x256xf32>
    %162 = vector.broadcast %161 : vector<1x256xf32> to vector<64x256xf32>
    %163 = arith.mulf %160, %162 : vector<64x256xf32>
    %c0_157 = arith.constant 0 : index
    %c0_158 = arith.constant 0 : index
    %164 = vector.load %arg12[%c0_157, %c0_158] : memref<1x256xf32, #tpu.memory_space<vmem>>, vector<1x256xf32>
    %165 = vector.broadcast %164 : vector<1x256xf32> to vector<64x256xf32>
    %166 = arith.addf %163, %165 : vector<64x256xf32>
    %cst_159 = arith.constant 0.000000e+00 : f32
    %167 = vector.broadcast %cst_159 : f32 to vector<64x256xf32>
    %168 = arith.maximumf %166, %167 : vector<64x256xf32>
    %169 = arith.truncf %168 : vector<64x256xf32> to vector<64x256xbf16>
    %c0_160 = arith.constant 0 : index
    %c0_161 = arith.constant 0 : index
    %170 = vector.load %arg6[%c0_160, %c0_161] : memref<256x128xbf16, #tpu.memory_space<vmem>>, vector<256x128xbf16>
    %cst_162 = arith.constant dense<0.000000e+00> : vector<64x128xf32>
    %171 = tpu.matmul %169, %170, %cst_162 {dimension_numbers = #tpu.dot_dimension_numbers<[1], [0], [0], [1], [0, 0, 1, 1], [], []>} : vector<64x256xbf16>, vector<256x128xbf16>, vector<64x128xf32> -> vector<64x128xf32>
    %c0_163 = arith.constant 0 : index
    %c0_164 = arith.constant 0 : index
    %172 = vector.load %arg13[%c0_163, %c0_164] : memref<1x128xf32, #tpu.memory_space<vmem>>, vector<1x128xf32>
    %173 = vector.broadcast %172 : vector<1x128xf32> to vector<64x128xf32>
    %174 = arith.addf %171, %173 : vector<64x128xf32>
    %175 = vector.shape_cast %174 : vector<64x128xf32> to vector<8x8x128xf32>
    %c0_165 = arith.constant 0 : index
    %c0_166 = arith.constant 0 : index
    %c0_167 = arith.constant 0 : index
    %c0_168 = arith.constant 0 : index
    %176 = vector.load %arg14[%c0_165, %c0_166, %c0_167, %c0_168] : memref<1x8x8x128xf32, #tpu.memory_space<vmem>>, vector<1x8x8x128xf32>
    %177 = vector.shape_cast %176 : vector<1x8x8x128xf32> to vector<8x8x128xf32>
    %178 = vector.shape_cast %175 : vector<8x8x128xf32> to vector<1x8x8x128xf32>
    tpu.vector_store %arg14[%c0_165, %c0_166, %c0_167, %c0_168], %178 {strides = array<i32>} : memref<1x8x8x128xf32, #tpu.memory_space<vmem>>, vector<1x8x8x128xf32>,
    return
  }
  func.func @transform_0(%arg0: i32) -> (i32, i32, i32, i32) {
    %c0_i32 = arith.constant 0 : i32
    %c0_i32_0 = arith.constant 0 : i32
    %c0_i32_1 = arith.constant 0 : i32
    %c0_i32_2 = arith.constant 0 : i32
    return %arg0, %c0_i32, %c0_i32_0, %c0_i32_1 : i32, i32, i32, i32
  }
  func.func @transform_1(%arg0: i32) -> (i32, i32, i32, i32) {
    %c0_i32 = arith.constant 0 : i32
    %c0_i32_0 = arith.constant 0 : i32
    %c0_i32_1 = arith.constant 0 : i32
    %c0_i32_2 = arith.constant 0 : i32
    return %arg0, %c0_i32, %c0_i32_0, %c0_i32_1 : i32, i32, i32, i32
  }
  func.func @transform_2(%arg0: i32) -> (i32, i32) {
    %c0_i32 = arith.constant 0 : i32
    %c0_i32_0 = arith.constant 0 : i32
    %c0_i32_1 = arith.constant 0 : i32
    return %c0_i32, %c0_i32_0 : i32, i32
  }
  func.func @transform_3(%arg0: i32) -> (i32, i32, i32) {
    %c0_i32 = arith.constant 0 : i32
    %c0_i32_0 = arith.constant 0 : i32
    %c0_i32_1 = arith.constant 0 : i32
    %c0_i32_2 = arith.constant 0 : i32
    return %c0_i32, %c0_i32_0, %c0_i32_1 : i32, i32, i32
  }
  func.func @transform_4(%arg0: i32) -> (i32, i32, i32) {
    %c0_i32 = arith.constant 0 : i32
    %c0_i32_0 = arith.constant 0 : i32
    %c0_i32_1 = arith.constant 0 : i32
    %c0_i32_2 = arith.constant 0 : i32
    return %c0_i32, %c0_i32_0, %c0_i32_1 : i32, i32, i32
  }
  func.func @transform_5(%arg0: i32) -> (i32, i32) {
    %c0_i32 = arith.constant 0 : i32
    %c0_i32_0 = arith.constant 0 : i32
    %c0_i32_1 = arith.constant 0 : i32
    return %c0_i32, %c0_i32_0 : i32, i32
  }
  func.func @transform_6(%arg0: i32) -> (i32, i32) {
    %c0_i32 = arith.constant 0 : i32
    %c0_i32_0 = arith.constant 0 : i32
    %c0_i32_1 = arith.constant 0 : i32
    return %c0_i32, %c0_i32_0 : i32, i32
  }
  func.func @transform_7(%arg0: i32) -> (i32, i32) {
    %c0_i32 = arith.constant 0 : i32
    %c0_i32_0 = arith.constant 0 : i32
    %c0_i32_1 = arith.constant 0 : i32
    return %c0_i32, %c0_i32_0 : i32, i32
  }
  func.func @transform_8(%arg0: i32) -> (i32, i32) {
    %c0_i32 = arith.constant 0 : i32
    %c0_i32_0 = arith.constant 0 : i32
    %c0_i32_1 = arith.constant 0 : i32
    return %c0_i32, %c0_i32_0 : i32, i32
  }
  func.func @transform_9(%arg0: i32) -> (i32, i32) {
    %c0_i32 = arith.constant 0 : i32
    %c0_i32_0 = arith.constant 0 : i32
    %c0_i32_1 = arith.constant 0 : i32
    return %c0_i32, %c0_i32_0 : i32, i32
  }
  func.func @transform_10(%arg0: i32) -> (i32, i32) {
    %c0_i32 = arith.constant 0 : i32
    %c0_i32_0 = arith.constant 0 : i32
    %c0_i32_1 = arith.constant 0 : i32
    return %c0_i32, %c0_i32_0 : i32, i32
  }
  func.func @transform_11(%arg0: i32) -> (i32, i32) {
    %c0_i32 = arith.constant 0 : i32
    %c0_i32_0 = arith.constant 0 : i32
    %c0_i32_1 = arith.constant 0 : i32
    return %c0_i32, %c0_i32_0 : i32, i32
  }
  func.func @transform_12(%arg0: i32) -> (i32, i32) {
    %c0_i32 = arith.constant 0 : i32
    %c0_i32_0 = arith.constant 0 : i32
    %c0_i32_1 = arith.constant 0 : i32
    return %c0_i32, %c0_i32_0 : i32, i32
  }
  func.func @transform_13(%arg0: i32) -> (i32, i32, i32, i32) {
    %c0_i32 = arith.constant 0 : i32
    %c0_i32_0 = arith.constant 0 : i32
    %c0_i32_1 = arith.constant 0 : i32
    %c0_i32_2 = arith.constant 0 : i32
    return %arg0, %c0_i32, %c0_i32_0, %c0_i32_1 : i32, i32, i32, i32
  }
}

</mosaic_0001>

<bundles_post_ra>
// kernel: decoder_forward.1
= control target key start
LH: loop header
LB: loop body
LE: loop exit
PB: predicated region body
PF: predicated region fallthrough
CT: control target
= control target key end

     0   :  { %s14898_s25 = smov 0   ;;  %s19526_s0 = inlined_call_operand.vmem [shape: f32[2,8,8,256], index: 0, kind: input, shape index: {}]   ;;  %s19527_s1 = inlined_call_operand.vmem [shape: f32[2,8,8,256], index: 1, kind: input, shape index: {}]   ;;  %s19528_s2 = inlined_call_operand.vmem [shape: bf16[256,256], index: 2, kind: input, shape index: {}]   ;;  %s19529_s3 = inlined_call_operand.vmem [shape: bf16[9,512,256], index: 3, kind: input, shape index: {}]   ;;  %s19530_s4 = inlined_call_operand.vmem [shape: bf16[9,256,256], index: 4, kind: input, shape index: {}]   ;;  %s19531_s5 = inlined_call_operand.vmem [shape: bf16[256,128], index: 5, kind: input, shape index: {}]   ;;  %s19532_s6 = inlined_call_operand.vmem [shape: f32[1,256], index: 6, kind: input, shape index: {}]   ;;  %s19533_s7 = inlined_call_operand.vmem [shape: f32[1,256], index: 7, kind: input, shape index: {}]   ;;  %s19534_s8 = inlined_call_operand.vmem [shape: f32[1,256], index: 8, kind: input, shape index: {}, may-alias: {8,10}]   ;;  %s19535_s9 = inlined_call_operand.vmem [shape: f32[1,256], index: 9, kind: input, shape index: {}, may-alias: {9,11}]   ;;  %s19536_s10 = inlined_call_operand.vmem [shape: f32[1,256], index: 10, kind: input, shape index: {}, may-alias: {8,10}]   ;;  %s19537_s11 = inlined_call_operand.vmem [shape: f32[1,256], index: 11, kind: input, shape index: {}, may-alias: {9,11}]   ;;  %s19538_s12 = inlined_call_operand.vmem [shape: f32[1,128], index: 12, kind: input, shape index: {}]   ;;  %s19539_s13 = inlined_call_operand.vmem [shape: f32[2,8,8,128], index: 13, kind: output, shape index: {}]  }
   0x1 LB: > { %s11691_s26 = sadd.s32 4294967295, %s14825_s25   ;;  %p11695_p0 = scmp.ge.s32.totalorder %s14825_s25, 1  ;;  %s14825_s25 = sphi %s14898_s25, %s23_s25  }
   0x2   : > { %p397_p1 = scmp.lt.s32.totalorder %s14825_s25, 3 }
   0x4   : > { %p398_p2 = pnand %p11695_p0, %p397_p1 }
   0x6   : > { %401 = sbr.rel (%p398_p2) target bundleno = 1734 (0x6c6), region = 72 }
   0xb   : > { %v14909_v0 = vld [vmem:[%s19528_s2 + $0x74] ss:$8 sps:$4 sm:$0xff]   ;;  %v14914_v1 = vld [vmem:[%s19528_s2 + $0x70] ss:$8 sps:$4 sm:$0xff]   ;;  %v14827_v2 = vmov 0.0   ;;  %p446_p3 = scmp.lt.s32.totalorder %s11691_s26, 1 }
   0xc   : > { %824 = vst [vmem:[#allocation2 + $0x8] sm:$0xff] %v14827_v2  ;;  %828 = vst [vmem:[#allocation2 + $0xf0] sm:$0x3] %v14827_v2  ;;  %678 = vmatprep.subr.bf16.mxu0 %v14909_v0  ;;  %v13456_v3 = vld [vmem:[%s19528_s2 + $0x64] ss:$8 sps:$4 sm:$0xff]   ;;  %vm1320_vm0 = vcmask 1046528  }
   0xd   : > { %832 = vst [vmem:[#allocation2 + $0x148] sm:$0xff] %v14827_v2  ;;  %836 = vst [vmem:[#allocation2 + $0xc0] sm:$0x3] %v14827_v2  ;;  %679 = vmatpush1.bf16.msra.mxu0 %v14914_v1  ;;  %v13458_v4 = vld [vmem:[%s19528_s2 + $0x60] ss:$8 sps:$4 sm:$0xff]   ;;  %s19752_s26 = smov (!%p446_p3, %s11691_s26), 1 }
   0xe   : > { %823 = vst [vmem:[#allocation2 + $0xc8] sm:$0xff] %v14827_v2  ;;  %825 = vst [vmem:[#allocation2 + $0x40] sm:$0xff] %v14827_v2  ;;  %680 = vmatprep.subr.bf16.mxu0 %v13456_v3  ;;  %v13459_v5 = vld [vmem:[%s19528_s2 + $0x54] ss:$8 sps:$4 sm:$0xff]   ;;  %v13461_v6 = vld [vmem:[%s19528_s2 + $0x50] ss:$8 sps:$4 sm:$0xff]  }
   0xf   : > { %826 = vst [vmem:[#allocation2 + $0x28] sm:$0xff] %v14827_v2  ;;  %827 = vst [vmem:[#allocation2 + $0xe8] sm:$0x3] %v14827_v2  ;;  %v13462_v7 = vld [vmem:[%s19528_s2 + $0x44] ss:$8 sps:$4 sm:$0xff]   ;;  %s13385_s15 = sshll.u32 %s19752_s26, 7 }
  0x10   : > { %829 = vst [vmem:[#allocation2 + $0x70] sm:$0x3] %v14827_v2  ;;  %830 = vst [vmem:[#allocation2 + $0x120] sm:$0x3] %v14827_v2  ;;  %v13464_v8 = vld [vmem:[%s19528_s2 + $0x40] ss:$8 sps:$4 sm:$0xff]   ;;  %s15077_s20 = scalar_lea.vmem %s19527_s1, %s13385_s15  ;;  %s15161_s21 = scalar_lea.vmem %s19526_s0, %s13385_s15 }
  0x11   : > { %831 = vst [vmem:[#allocation2 + $0xd8] sm:$0xff] %v14827_v2  ;;  %833 = vst [vmem:[#allocation2 + $0x158] sm:$0xff] %v14827_v2  ;;  %681 = vmatpush1.bf16.msra.mxu0 %v13458_v4  ;;  %v13465_v9 = vld [vmem:[%s19528_s2 + $0x34] ss:$8 sps:$4 sm:$0xff]   ;;  %v13467_v10 = vld [vmem:[%s19528_s2 + $0x30] ss:$8 sps:$4 sm:$0xff]  }
  0x12   : > { %834 = vst [vmem:[#allocation2 + $0x108] sm:$0xff] %v14827_v2  ;;  %835 = vst [vmem:[#allocation2 + $0x220] sm:$0x3] %v14827_v2  ;;  %682 = vmatprep.subr.bf16.mxu0 %v13459_v5  ;;  %v13468_v11 = vld [vmem:[%s19528_s2 + $0x24] ss:$8 sps:$4 sm:$0xff]   ;;  %v465_v15 = vld [vmem:[%s15077_s20 + $0x18] sm:$0xff] }
  0x13   : > { %837 = vst [vmem:[#allocation2 + $0x140] sm:$0x3] %v14827_v2  ;;  %838 = vst [vmem:[#allocation2 + $0x200] sm:$0x3] %v14827_v2  ;;  %v13470_v12 = vld [vmem:[%s19528_s2 + $0x20] ss:$8 sps:$4 sm:$0xff]  }
  0x14   : > { %839 = vst [vmem:[#allocation2 + $0x80] sm:$0xff] %v14827_v2  ;;  %840 = vst [vmem:[#allocation2 + $0x30] sm:$0xff] %v14827_v2  ;;  %v13471_v13 = vld [vmem:[%s19528_s2 + $0x14] ss:$8 sps:$4 sm:$0xff]   ;;  %v463_v14 = vld [vmem:[%s15077_s20 + $0x8] sm:$0xff]  ;;  %vm2590_vm1 = vcmask 1045504  }
  0x15   : > { %841 = vst [vmem:[#allocation2 + $0x10] sm:$0xff] %v14827_v2  ;;  %842 = vst [vmem:[#allocation2 + $0x160] sm:$0xff] %v14827_v2  ;;  %683 = vmatpush1.bf16.msra.mxu0 %v13461_v6  ;;  %v479_v16 = vpack.c.bf16 %v465_v15, %v463_v14  ;;  %v13473_v17 = vld [vmem:[%s19528_s2 + $0x10] ss:$8 sps:$4 sm:$0xff]   ;;  %v13474_v18 = vld [vmem:[%s19528_s2 + $0x4] ss:$8 sps:$4 sm:$0xff]  }
  0x16   : > { %843 = vst [vmem:[#allocation2 + $0x1d8] sm:$0x3] %v14827_v2  ;;  %844 = vst [vmem:[#allocation2 + $0x1a0] sm:$0x3] %v14827_v2  ;;  %684 = vmatprep.subr.bf16.mxu0 %v13462_v7  ;;  %v13476_v19 = vld [vmem:[%s19528_s2] ss:$8 sps:$4 sm:$0xff]  }
  0x17   : > { %845 = vst [vmem:[#allocation2 + $0x248] sm:$0x3] %v14827_v2  ;;  %846 = vst [vmem:[#allocation2 + $0x218] sm:$0x3] %v14827_v2  ;;  %710 = vmatprep.mubr.bf16.mxu0 %v479_v16  ;;  %v13477_v20 = vld [vmem:[%s19528_s2 + $0xf4] ss:$8 sps:$4 sm:$0xff]  }
  0x18   : > { %847 = vst [vmem:[#allocation2 + $0x190] sm:$0xff] %v14827_v2  ;;  %848 = vst [vmem:[#allocation2 + $0x48] sm:$0xff] %v14827_v2  ;;  %v13501_v21 = vld [vmem:[%s19529_s3 + $0x274] ss:$8 sps:$4 sm:$0xff]   ;;  %v13503_v22 = vld [vmem:[%s19529_s3 + $0x270] ss:$8 sps:$4 sm:$0xff]  }
  0x19   : > { %849 = vst [vmem:[#allocation2 + $0x68] sm:$0xff] %v14827_v2  ;;  %850 = vst [vmem:[#allocation2 + $0x238] sm:$0xff] %v14827_v2  ;;  %685 = vmatpush1.bf16.msra.mxu0 %v13464_v8  ;;  %v13504_v23 = vld [vmem:[%s19529_s3 + $0x264] ss:$8 sps:$4 sm:$0xff]   ;;  %1850 = vmatprep.subr.bf16.mxu1 %v13501_v21  ;;  %v13506_v24 = vld [vmem:[%s19529_s3 + $0x260] ss:$8 sps:$4 sm:$0xff]  }
  0x1a   : > { %851 = vst [vmem:[#allocation2 + $0x188] sm:$0x3] %v14827_v2  ;;  %852 = vst [vmem:[#allocation2 + $0x250] sm:$0x3] %v14827_v2  ;;  %686 = vmatprep.subr.bf16.mxu0 %v13465_v9  ;;  %1851 = vmatpush1.bf16.msra.mxu1 %v13503_v22  ;;  %v13479_v25 = vld [vmem:[%s19528_s2 + $0xf0] ss:$8 sps:$4 sm:$0xff]  }
  0x1b   : > { %853 = vst [vmem:[#allocation2 + $0xb8] sm:$0x3] %v14827_v2  ;;  %854 = vst [vmem:[#allocation2 + $0x268] sm:$0x3] %v14827_v2  ;;  %1852 = vmatprep.subr.bf16.mxu1 %v13504_v23  ;;  %v13507_v26 = vld [vmem:[%s19529_s3 + $0x254] ss:$8 sps:$4 sm:$0xff]  }
  0x1c   : > { %855 = vst [vmem:[#allocation2 + $0xf8] sm:$0xff] %v14827_v2  ;;  %856 = vst [vmem:[#allocation2 + $0x98] sm:$0xff] %v14827_v2  ;;  %v13480_v27 = vld [vmem:[%s19528_s2 + $0xe4] ss:$8 sps:$4 sm:$0xff]   ;;  %v13509_v28 = vld [vmem:[%s19529_s3 + $0x250] ss:$8 sps:$4 sm:$0xff]  }
  0x1d   : > { %857 = vst [vmem:[#allocation2 + $0xe0] sm:$0xff] %v14827_v2  ;;  %858 = vst [vmem:[#allocation2 + $0x198] sm:$0xff] %v14827_v2  ;;  %687 = vmatpush1.bf16.msra.mxu0 %v13467_v10  ;;  %v13482_v29 = vld [vmem:[%s19528_s2 + $0xe0] ss:$8 sps:$4 sm:$0xff]   ;;  %v13510_v30 = vld [vmem:[%s19529_s3 + $0x244] ss:$8 sps:$4 sm:$0xff]  }
  0x1e   : > { %859 = vst [vmem:[#allocation2 + $0x1d0] sm:$0x3] %v14827_v2  ;;  %860 = vst [vmem:[#allocation2 + $0x1e0] sm:$0x3] %v14827_v2  ;;  %688 = vmatprep.subr.bf16.mxu0 %v13468_v11  ;;  %1853 = vmatpush1.bf16.msra.mxu1 %v13506_v24  ;;  %v13483_v31 = vld [vmem:[%s19528_s2 + $0xd4] ss:$8 sps:$4 sm:$0xff]  }
  0x1f   : > { %861 = vst [vmem:[#allocation2 + $0x1a8] sm:$0x3] %v14827_v2  ;;  %862 = vst [vmem:[#allocation2 + $0x228] sm:$0x3] %v14827_v2  ;;  %1854 = vmatprep.subr.bf16.mxu1 %v13507_v26  ;;  %v13512_v32 = vld [vmem:[%s19529_s3 + $0x240] ss:$8 sps:$4 sm:$0xff]  }
  0x20   : > { %863 = vst [vmem:[#allocation2] sm:$0xff] %v14827_v2  ;;  %864 = vst [vmem:[#allocation2 + $0x1b0] sm:$0xff] %v14827_v2  ;;  %v13485_v33 = vld [vmem:[%s19528_s2 + $0xd0] ss:$8 sps:$4 sm:$0xff]   ;;  %v13513_v34 = vld [vmem:[%s19529_s3 + $0x234] ss:$8 sps:$4 sm:$0xff]  }
  0x21   : > { %865 = vst [vmem:[#allocation2 + $0x90] sm:$0xff] %v14827_v2  ;;  %866 = vst [vmem:[#allocation2 + $0x270] sm:$0xff] %v14827_v2  ;;  %689 = vmatpush1.bf16.msra.mxu0 %v13470_v12  ;;  %v13486_v35 = vld [vmem:[%s19528_s2 + $0xc4] ss:$8 sps:$4 sm:$0xff]   ;;  %v13515_v36 = vld [vmem:[%s19529_s3 + $0x230] ss:$8 sps:$4 sm:$0xff]  }
  0x22   : > { %867 = vst [vmem:[#allocation2 + $0x1e8] sm:$0x3] %v14827_v2  ;;  %868 = vst [vmem:[#allocation2 + $0x38] sm:$0x3] %v14827_v2  ;;  %690 = vmatprep.subr.bf16.mxu0 %v13471_v13  ;;  %1855 = vmatpush1.bf16.msra.mxu1 %v13509_v28  ;;  %v13488_v37 = vld [vmem:[%s19528_s2 + $0xc0] ss:$8 sps:$4 sm:$0xff]  }
  0x23   : > { %869 = vst [vmem:[#allocation2 + $0x1c8] sm:$0x3] %v14827_v2  ;;  %870 = vst [vmem:[#allocation2 + $0x18] sm:$0x3] %v14827_v2  ;;  %1856 = vmatprep.subr.bf16.mxu1 %v13510_v30  ;;  %v13516_v38 = vld [vmem:[%s19529_s3 + $0x224] ss:$8 sps:$4 sm:$0xff]  }
  0x24   : > { %871 = vst [vmem:[#allocation2 + $0x78] sm:$0xff] %v14827_v2  ;;  %872 = vst [vmem:[#allocation2 + $0x1f0] sm:$0xff] %v14827_v2  ;;  %v13489_v39 = vld [vmem:[%s19528_s2 + $0xb4] ss:$8 sps:$4 sm:$0xff]   ;;  %v13518_v40 = vld [vmem:[%s19529_s3 + $0x220] ss:$8 sps:$4 sm:$0xff]  }
  0x25   : > { %873 = vst [vmem:[#allocation2 + $0xa0] sm:$0xff] %v14827_v2  ;;  %874 = vst [vmem:[#allocation2 + $0x1f8] sm:$0xff] %v14827_v2  ;;  %691 = vmatpush1.bf16.msra.mxu0 %v13473_v17  ;;  %v13491_v41 = vld [vmem:[%s19528_s2 + $0xb0] ss:$8 sps:$4 sm:$0xff]   ;;  %v13519_v42 = vld [vmem:[%s19529_s3 + $0x214] ss:$8 sps:$4 sm:$0xff]  }
  0x26   : > { %875 = vst [vmem:[#allocation2 + $0x58] sm:$0x3] %v14827_v2  ;;  %876 = vst [vmem:[#allocation2 + $0x258] sm:$0x3] %v14827_v2  ;;  %692 = vmatprep.subr.bf16.mxu0 %v13474_v18  ;;  %1857 = vmatpush1.bf16.msra.mxu1 %v13512_v32  ;;  %v13492_v43 = vld [vmem:[%s19528_s2 + $0xa4] ss:$8 sps:$4 sm:$0xff]  }
  0x27   : > { %877 = vst [vmem:[#allocation2 + $0x260] sm:$0x3] %v14827_v2  ;;  %878 = vst [vmem:[#allocation2 + $0x100] sm:$0x3] %v14827_v2  ;;  %1858 = vmatprep.subr.bf16.mxu1 %v13513_v34  ;;  %v904_v44 = vld [vmem:[%s15161_s21 + $0x8] sm:$0xff]  ;;  %v903_v49 = vld [vmem:[%s15161_s21] sm:$0xff] }
  0x28   : > { %879 = vst [vmem:[#allocation2 + $0x1b8] sm:$0xff] %v14827_v2  ;;  %880 = vst [vmem:[#allocation2 + $0x168] sm:$0xff] %v14827_v2  ;;  %v13521_v45 = vld [vmem:[%s19529_s3 + $0x210] ss:$8 sps:$4 sm:$0xff]   ;;  %v936_v46 = vrot.slane %v904_v44, 7  ;;  %v935_v52 = vrot.slane %v903_v49, 7 }
  0x29   : > { %881 = vst [vmem:[#allocation2 + $0xd0] sm:$0xff] %v14827_v2  ;;  %882 = vst [vmem:[#allocation2 + $0x278] sm:$0xff] %v14827_v2  ;;  %693 = vmatpush1.bf16.msra.mxu0 %v13476_v19  ;;  %v13494_v47 = vld [vmem:[%s19528_s2 + $0xa0] ss:$8 sps:$4 sm:$0xff]   ;;  %v13522_v48 = vld [vmem:[%s19529_s3 + $0x204] ss:$8 sps:$4 sm:$0xff]  }
  0x2a   : > { %883 = vst [vmem:[#allocation2 + $0x210] sm:$0x3] %v14827_v2  ;;  %884 = vst [vmem:[#allocation2 + $0x180] sm:$0x3] %v14827_v2  ;;  %694 = vmatprep.subr.bf16.mxu0 %v13477_v20  ;;  %1859 = vmatpush1.bf16.msra.mxu1 %v13515_v36  ;;  %v13495_v50 = vld [vmem:[%s19528_s2 + $0x94] ss:$8 sps:$4 sm:$0xff]  }
  0x2b   : > { %885 = vst [vmem:[#allocation2 + $0x130] sm:$0x3] %v14827_v2  ;;  %886 = vst [vmem:[#allocation2 + $0x110] sm:$0x3] %v14827_v2  ;;  %1860 = vmatprep.subr.bf16.mxu1 %v13516_v38  ;;  %v1193_v51 = vld [vmem:[#allocation2 + $0x8] sm:$0xfe] }
  0x2c   : > { %887 = vst [vmem:[#allocation2 + $0xa8] sm:$0xff] %v14827_v2  ;;  %888 = vst [vmem:[#allocation2 + $0x60] sm:$0xff] %v14827_v2  ;;  %v1197_v53 = vld [vmem:[#allocation2 + $0xf0] sm:$0x1]  ;;  %v13524_v55 = vld [vmem:[%s19529_s3 + $0x200] ss:$8 sps:$4 sm:$0xff]  }
  0x2d   : > { %889 = vst [vmem:[#allocation2 + $0x138] sm:$0xff] %v14827_v2  ;;  %890 = vst [vmem:[#allocation2 + $0x208] sm:$0xff] %v14827_v2  ;;  %695 = vmatpush2.bf16.msra.mxu0 %v13479_v25  ;;  %v13497_v54 = vld [vmem:[%s19528_s2 + $0x90] ss:$8 sps:$4 sm:$0xff]   ;;  %v13525_v56 = vld [vmem:[%s19529_s3 + $0x2f4] ss:$8 sps:$4 sm:$0xff]  }
  0x2e   : > { %891 = vst [vmem:[#allocation2 + $0x240] sm:$0x3] %v14827_v2  ;;  %892 = vst [vmem:[#allocation2 + $0x88] sm:$0x3] %v14827_v2  ;;  %696 = vmatprep.subr.bf16.mxu0 %v13480_v27  ;;  %1861 = vmatpush1.bf16.msra.mxu1 %v13518_v40  ;;  %v13498_v57 = vld [vmem:[%s19528_s2 + $0x84] ss:$8 sps:$4 sm:$0xff]  }
  0x2f   : > { %893 = vst [vmem:[#allocation2 + $0x118] sm:$0x3] %v14827_v2  ;;  %894 = vst [vmem:[#allocation2 + $0x128] sm:$0x3] %v14827_v2  ;;  %1862 = vmatprep.subr.bf16.mxu1 %v13519_v42  ;;  %v1324_v58 = vrot.slane %v1193_v51, 1  ;;  %v1325_v59 = vrot.slane %v1197_v53, 1 }
  0x30   : > { %895 = vst [vmem:[#allocation2 + $0x1c0] sm:$0xff] %v14827_v2  ;;  %896 = vst [vmem:[#allocation2 + $0x230] sm:$0xff] %v14827_v2  ;;  %v13500_v60 = vld [vmem:[%s19528_s2 + $0x80] ss:$8 sps:$4 sm:$0xff]   ;;  %v464_v62 = vld [vmem:[%s15077_s20 + $0x10] sm:$0xff]  ;;  %s13387_s22 = sshll.u32 %s19752_s26, 6 }
  0x31   : > { %897 = vst [vmem:[#allocation2 + $0x170] sm:$0xff] %v14827_v2  ;;  %898 = vst [vmem:[#allocation2 + $0x150] sm:$0xff] %v14827_v2  ;;  %697 = vmatpush2.bf16.msra.mxu0 %v13482_v29  ;;  %v462_v61 = vld [vmem:[%s15077_s20] sm:$0xff]  ;;  %v467_v63 = vld [vmem:[%s15077_s20 + $0x28] sm:$0xff]  ;;  %v1326_v6 = vsel %vm1320_vm0, %v1324_v58, %v1325_v59  ;;  %s19513_s27 = scalar_lea.vmem %s19539_s13, %s13387_s22 }
  0x32   : > { %899 = vst [vmem:[#allocation2 + $0x20] sm:$0x3] %v14827_v2  ;;  %900 = vst [vmem:[#allocation2 + $0x178] sm:$0x3] %v14827_v2  ;;  %698 = vmatprep.subr.bf16.mxu0 %v13483_v31  ;;  %1863 = vmatpush1.bf16.msra.mxu1 %v13521_v45  ;;  %v469_v0 = vld [vmem:[%s15077_s20 + $0x38] sm:$0xff]  ;;  %v478_v9 = vpack.c.bf16 %v464_v62, %v462_v61  ;;  %v466_v16 = vld [vmem:[%s15077_s20 + $0x20] sm:$0xff] }
  0x33   : > { %901 = vst [vmem:[#allocation2 + $0x50] sm:$0x3] %v14827_v2  ;;  %902 = vst [vmem:[#allocation2 + $0xb0] sm:$0x3] %v14827_v2  ;;  %1864 = vmatprep.subr.bf16.mxu1 %v13522_v48  ;;  %v13527_v1 = vld [vmem:[%s19529_s3 + $0x2f0] ss:$8 sps:$4 sm:$0xff]   ;;  %v481_v12 = vpack.c.bf16 %v469_v0, %v467_v63 }
  0x34   : > { %7821 = vst [vmem:[#allocation3 + $0x78] sm:$0xff] %v14827_v2  ;;  %7822 = vst [vmem:[#allocation3 + $0x68] sm:$0xff] %v14827_v2  ;;  %v13551_v5 = vld [vmem:[%s19529_s3 + $0x374] ss:$8 sps:$4 sm:$0xff]   ;;  %v13530_v10 = vld [vmem:[%s19529_s3 + $0x2e0] ss:$8 sps:$4 sm:$0xff]  }
  0x35   : > { %7823 = vst [vmem:[#allocation3 + $0xe8] sm:$0x3] %v14827_v2  ;;  %7824 = vst [vmem:[#allocation3 + $0xc8] sm:$0x3] %v14827_v2  ;;  %699 = vmatpush2.bf16.msra.mxu0 %v13485_v33  ;;  %v13531_v13 = vld [vmem:[%s19529_s3 + $0x2d4] ss:$8 sps:$4 sm:$0xff]  }
  0x36   : > { %7825 = vst [vmem:[#allocation3 + $0x10] sm:$0xff] %v14827_v2  ;;  %7826 = vst [vmem:[#allocation3 + $0xb0] sm:$0xff] %v14827_v2  ;;  %700 = vmatprep.subr.bf16.mxu0 %v13486_v35  ;;  %1865 = vmatpush1.bf16.msra.mxu1 %v13524_v55  ;;  %v13549_v15 = vld [vmem:[%s19529_s3 + $0x370] ss:$8 sps:$4 sm:$0xff]   ;;  %v13557_v18 = vld [vmem:[%s19529_s3 + $0x364] ss:$8 sps:$4 sm:$0xff]  }
  0x37   : > { %7827 = vst [vmem:[#allocation3 + $0xa8] sm:$0x3] %v14827_v2  ;;  %7828 = vst [vmem:[#allocation3 + $0x120] sm:$0x3] %v14827_v2  ;;  %1866 = vmatprep.subr.bf16.mxu1 %v13525_v56  ;;  %v468_v17 = vld [vmem:[%s15077_s20 + $0x30] sm:$0xff]  ;;  %v471_v19 = vld [vmem:[%s15077_s20 + $0x48] sm:$0xff] }
  0x38   : > { %7829 = vst [vmem:[#allocation3 + $0xd0] sm:$0xff] %v14827_v2  ;;  %7830 = vst [vmem:[#allocation3 + $0x20] sm:$0xff] %v14827_v2  ;;  %v13533_v20 = vld [vmem:[%s19529_s3 + $0x2d0] ss:$8 sps:$4 sm:$0xff]   ;;  %v13534_v21 = vld [vmem:[%s19529_s3 + $0x2c4] ss:$8 sps:$4 sm:$0xff]   ;;  %v480_v25 = vpack.c.bf16 %v468_v17, %v466_v16 }
  0x39   : > { %7831 = vst [vmem:[#allocation3 + $0x50] sm:$0x3] %v14827_v2  ;;  %7832 = vst [vmem:[#allocation3 + $0x70] sm:$0x3] %v14827_v2  ;;  %701 = vmatpush2.bf16.msra.mxu0 %v13488_v37  ;;  %v473_v22 = vld [vmem:[%s15077_s20 + $0x58] sm:$0xff]  ;;  %v470_v30 = vld [vmem:[%s15077_s20 + $0x40] sm:$0xff] }
  0x3a   : > { %7833 = vst [vmem:[#allocation3] sm:$0xff] %v14827_v2  ;;  %7834 = vst [vmem:[#allocation3 + $0x118] sm:$0xff] %v14827_v2  ;;  %702 = vmatprep.subr.bf16.mxu0 %v13489_v39  ;;  %1867 = vmatpush2.bf16.msra.mxu1 %v13527_v1  ;;  %v13555_v23 = vld [vmem:[%s19529_s3 + $0x360] ss:$8 sps:$4 sm:$0xff]   ;;  %v13563_v24 = vld [vmem:[%s19529_s3 + $0x354] ss:$8 sps:$4 sm:$0xff]   ;;  %v483_v27 = vpack.c.bf16 %v473_v22, %v471_v19 }
  0x3b   : > { %7835 = vst [vmem:[#allocation3 + $0x128] sm:$0x3] %v14827_v2  ;;  %7836 = vst [vmem:[#allocation3 + $0x30] sm:$0x3] %v14827_v2  ;;  %v13536_v26 = vld [vmem:[%s19529_s3 + $0x2c0] ss:$8 sps:$4 sm:$0xff]  }
  0x3c   : > { %7837 = vst [vmem:[#allocation3 + $0xf8] sm:$0xff] %v14827_v2  ;;  %7838 = vst [vmem:[#allocation3 + $0xe0] sm:$0xff] %v14827_v2  ;;  %v13537_v28 = vld [vmem:[%s19529_s3 + $0x2b4] ss:$8 sps:$4 sm:$0xff]   ;;  %v13561_v29 = vld [vmem:[%s19529_s3 + $0x350] ss:$8 sps:$4 sm:$0xff]  }
  0x3d   : > { %7839 = vst [vmem:[#allocation3 + $0xa0] sm:$0x3] %v14827_v2  ;;  %7840 = vst [vmem:[#allocation3 + $0xf0] sm:$0x3] %v14827_v2  ;;  %703 = vmatpush2.bf16.msra.mxu0 %v13491_v41  ;;  %v472_v31 = vld [vmem:[%s15077_s20 + $0x50] sm:$0xff]  ;;  %v475_v33 = vld [vmem:[%s15077_s20 + $0x68] sm:$0xff] }
  0x3e   : > { %7841 = vst [vmem:[#allocation3 + $0x130] sm:$0xff] %v14827_v2  ;;  %7842 = vst [vmem:[#allocation3 + $0xb8] sm:$0xff] %v14827_v2  ;;  %704 = vmatprep.subr.bf16.mxu0 %v13492_v43  ;;  %v13569_v32 = vld [vmem:[%s19529_s3 + $0x344] ss:$8 sps:$4 sm:$0xff]   ;;  %v477_v34 = vld [vmem:[%s15077_s20 + $0x78] sm:$0xff]  ;;  %v482_v45 = vpack.c.bf16 %v472_v31, %v470_v30 }
  0x3f   : > { %7843 = vst [vmem:[#allocation3 + $0x28] sm:$0x3] %v14827_v2  ;;  %7844 = vst [vmem:[#allocation3 + $0x98] sm:$0x3] %v14827_v2  ;;  %v13539_v35 = vld [vmem:[%s19529_s3 + $0x2b0] ss:$8 sps:$4 sm:$0xff]  }
  0x40   : > { %7845 = vst [vmem:[#allocation3 + $0x48] sm:$0xff] %v14827_v2  ;;  %7846 = vst [vmem:[#allocation3 + $0x110] sm:$0xff] %v14827_v2  ;;  %v13540_v36 = vld [vmem:[%s19529_s3 + $0x2a4] ss:$8 sps:$4 sm:$0xff]   ;;  %v13542_v37 = vld [vmem:[%s19529_s3 + $0x2a0] ss:$8 sps:$4 sm:$0xff]  }
  0x41   : > { %7847 = vst [vmem:[#allocation3 + $0x88] sm:$0x3] %v14827_v2  ;;  %7848 = vst [vmem:[#allocation3 + $0x58] sm:$0x3] %v14827_v2  ;;  %705 = vmatpush2.bf16.msra.mxu0 %v13494_v47  ;;  %v1192_v38 = vld [vmem:[#allocation2 + $0xc8] sm:$0xfe]  ;;  %v485_v47 = vpack.c.bf16 %v477_v34, %v475_v33 }
  0x42   : > { %7849 = vst [vmem:[#allocation3 + $0x80] sm:$0xff] %v14827_v2  ;;  %7850 = vst [vmem:[#allocation3 + $0xd8] sm:$0xff] %v14827_v2  ;;  %706 = vmatprep.subr.bf16.mxu0 %v13495_v50  ;;  %v13567_v39 = vld [vmem:[%s19529_s3 + $0x340] ss:$8 sps:$4 sm:$0xff]   ;;  %v13543_v40 = vld [vmem:[%s19529_s3 + $0x294] ss:$8 sps:$4 sm:$0xff]  }
  0x43   : > { %7851 = vst [vmem:[#allocation3 + $0x38] sm:$0x3] %v14827_v2  ;;  %7852 = vst [vmem:[#allocation3 + $0xc0] sm:$0x3] %v14827_v2  ;;  %v1196_v41 = vld [vmem:[#allocation2 + $0xe8] sm:$0x1] }
  0x44   : > { %7853 = vst [vmem:[#allocation3 + $0x90] sm:$0xff] %v14827_v2  ;;  %7854 = vst [vmem:[#allocation3 + $0x138] sm:$0xff] %v14827_v2  ;;  %v13575_v44 = vld [vmem:[%s19529_s3 + $0x334] ss:$8 sps:$4 sm:$0xff]   ;;  %v13581_v48 = vld [vmem:[%s19529_s3 + $0x324] ss:$8 sps:$4 sm:$0xff]  }
  0x45   : > { %7855 = vst [vmem:[#allocation3 + $0x18] sm:$0x3] %v14827_v2  ;;  %7856 = vst [vmem:[#allocation3 + $0x8] sm:$0x3] %v14827_v2  ;;  %707 = vmatpush2.bf16.msra.mxu0 %v13497_v54  ;;  %v13545_v49 = vld [vmem:[%s19529_s3 + $0x290] ss:$8 sps:$4 sm:$0xff]  }
  0x46   : > { %7857 = vst [vmem:[#allocation3 + $0x40] sm:$0xff] %v14827_v2  ;;  %7858 = vst [vmem:[#allocation3 + $0x60] sm:$0xff] %v14827_v2  ;;  %708 = vmatprep.subr.bf16.mxu0 %v13498_v57  ;;  %v474_v50 = vld [vmem:[%s15077_s20 + $0x60] sm:$0xff]  ;;  %v476_v51 = vld [vmem:[%s15077_s20 + $0x70] sm:$0xff]  ;;  %v1321_v53 = vrot.slane %v1192_v38, 1  ;;  %v1322_v54 = vrot.slane %v1196_v41, 1 }
  0x47   : > { %7859 = vst [vmem:[#allocation3 + $0x100] sm:$0x3] %v14827_v2  ;;  %7860 = vst [vmem:[#allocation3 + $0x108] sm:$0x3] %v14827_v2  ;;  %v13528_v2 = vld [vmem:[%s19529_s3 + $0x2e4] ss:$8 sps:$4 sm:$0xff]   ;;  %v484_v61 = vpack.c.bf16 %v476_v51, %v474_v50 }
  0x48   : > { %969 = vst [vmem:[#allocation2 + $0x148] sm:$0xfe] %v936_v46  ;;  %971 = vst [vmem:[#allocation2 + $0xc0] sm:$0x1] %v936_v46  ;;  %1868 = vmatprep.subr.bf16.mxu1 %v13528_v2  ;;  %v13573_v46 = vld [vmem:[%s19529_s3 + $0x330] ss:$8 sps:$4 sm:$0xff]   ;;  %v1323_v62 = vsel %vm1320_vm0, %v1321_v53, %v1322_v54 }
  0x49   : > { %968 = vst [vmem:[#allocation2 + $0xd8] sm:$0xfe] %v935_v52  ;;  %970 = vst [vmem:[#allocation2 + $0x220] sm:$0x1] %v935_v52  ;;  %709 = vmatpush2.bf16.msra.mxu0 %v13500_v60  ;;  %1869 = vmatpush2.bf16.msra.mxu1 %v13530_v10  ;;  %v13546_v52 = vld [vmem:[%s19529_s3 + $0x284] ss:$8 sps:$4 sm:$0xff]  }
  0x4a   : > { %1923 = vmatprep.subr.bf16.mxu0 %v13551_v5  ;;  %1870 = vmatprep.subr.bf16.mxu1 %v13531_v13  ;;  %v13579_v57 = vld [vmem:[%s19529_s3 + $0x320] ss:$8 sps:$4 sm:$0xff]   ;;  %v13587_v58 = vld [vmem:[%s19529_s3 + $0x314] ss:$8 sps:$4 sm:$0xff]   ;;  %v13585_v0 = vld [vmem:[%s19529_s3 + $0x310] ss:$8 sps:$4 sm:$0xff]  }
  0x4b   : > { %v13548_v59 = vld [vmem:[%s19529_s3 + $0x280] ss:$8 sps:$4 sm:$0xff]   ;;  %v13554_v60 = vld [vmem:[%s19529_s3 + $0x74] ss:$8 sps:$4 sm:$0xff]   ;;  %v13593_v1 = vld [vmem:[%s19529_s3 + $0x304] ss:$8 sps:$4 sm:$0xff]  }
  0x4c   : > { %711 = vmatmul.mubr.bf16.vlgmr.msra.gmra.mxu0 %v478_v9  ;;  %v13552_v2 = vld [vmem:[%s19529_s3 + $0x70] ss:$8 sps:$4 sm:$0xff]   ;;  %v13591_v5 = vld [vmem:[%s19529_s3 + $0x300] ss:$8 sps:$4 sm:$0xff]   ;;  %v13605_v10 = vld [vmem:[%s19529_s3 + $0x3e4] ss:$8 sps:$4 sm:$0xff]  }
  0x4d   : > { %720 = vmatprep.mubr.bf16.mxu0 %v481_v12  ;;  %1924 = vmatpush1.bf16.msra.mxu0 %v13549_v15  ;;  %v13597_v9 = vld [vmem:[%s19529_s3 + $0x3f0] ss:$8 sps:$4 sm:$0xff]   ;;  %v13572_v12 = vld [vmem:[%s19529_s3 + $0x44] ss:$8 sps:$4 sm:$0xff]   ;;  %v13603_v13 = vld [vmem:[%s19529_s3 + $0x3e0] ss:$8 sps:$4 sm:$0xff]  }
  0x4e   : > { %1925 = vmatprep.subr.bf16.mxu0 %v13557_v18  ;;  %1871 = vmatpush2.bf16.msra.mxu1 %v13533_v20  ;;  %v13578_v15 = vld [vmem:[%s19529_s3 + $0x34] ss:$8 sps:$4 sm:$0xff]   ;;  %v13576_v16 = vld [vmem:[%s19529_s3 + $0x30] ss:$8 sps:$4 sm:$0xff]   ;;  %v13584_v17 = vld [vmem:[%s19529_s3 + $0x24] ss:$8 sps:$4 sm:$0xff]  }
  0x4f   : > { %v1201_v3 = vld [vmem:[#allocation2 + $0x148] sm:$0xfe]  ;;  %v1205_v4 = vld [vmem:[#allocation2 + $0xc0] sm:$0x1]  ;;  %1872 = vmatprep.subr.bf16.mxu1 %v13534_v21  ;;  %v13590_v19 = vld [vmem:[%s19529_s3 + $0x14] ss:$8 sps:$4 sm:$0xff]  }
  0x50   : > { %v1336_v7 = vrot.slane %v1201_v3, 1  ;;  %v1337_v8 = vrot.slane %v1205_v4, 1  ;;  %v1200_v42 = vld [vmem:[#allocation2 + $0xd8] sm:$0xfe]  ;;  %v1204_v43 = vld [vmem:[#allocation2 + $0x220] sm:$0x1] }
  0x51   : > { %1926 = vmatpush1.bf16.msra.mxu0 %v13555_v23  ;;  %v1333_v55 = vrot.slane %v1200_v42, 1  ;;  %v1334_v56 = vrot.slane %v1204_v43, 1  ;;  %v13560_v4 = vld [vmem:[%s19529_s3 + $0x64] ss:$8 sps:$4 sm:$0xff]   ;;  %v13582_v18 = vld [vmem:[%s19529_s3 + $0x20] ss:$8 sps:$4 sm:$0xff]  }
  0x52   : > { %v1338_v11 = vsel %vm1320_vm0, %v1336_v7, %v1337_v8  ;;  %1927 = vmatprep.subr.bf16.mxu0 %v13563_v24  ;;  %1873 = vmatpush2.bf16.msra.mxu1 %v13536_v26  ;;  %v13558_v7 = vld [vmem:[%s19529_s3 + $0x60] ss:$8 sps:$4 sm:$0xff]   ;;  %v13566_v8 = vld [vmem:[%s19529_s3 + $0x54] ss:$8 sps:$4 sm:$0xff]   ;;  %v13588_v20 = vld [vmem:[%s19529_s3 + $0x10] ss:$8 sps:$4 sm:$0xff]  }
  0x53   : > { %v1450_v14 = vpack.c.bf16 %v1338_v11, %v1326_v6  ;;  %1874 = vmatprep.subr.bf16.mxu1 %v13537_v28  ;;  %v1335_v63 = vsel %vm1320_vm0, %v1333_v55, %v1334_v56  ;;  %v13599_v6 = vld [vmem:[%s19529_s3 + $0x3f4] ss:$8 sps:$4 sm:$0xff]   ;;  %v13564_v11 = vld [vmem:[%s19529_s3 + $0x50] ss:$8 sps:$4 sm:$0xff]   ;;  %v13596_v21 = vld [vmem:[%s19529_s3 + $0x4] ss:$8 sps:$4 sm:$0xff]  }
  0x54   : > { %721 = vmatmul.mubr.bf16.gmra.mxu0 %v480_v25  ;;  %v1449_v3 = vpack.c.bf16 %v1335_v63, %v1323_v62  ;;  %v13594_v22 = vld [vmem:[%s19529_s3] ss:$8 sps:$4 sm:$0xff]   ;;  %v906_v23 = vld [vmem:[%s15161_s21 + $0x18] sm:$0xff]  ;;  %v905_v28 = vld [vmem:[%s15161_s21 + $0x10] sm:$0xff] }
  0x55   : > { %1882 = vmatprep.mubr.bf16.mxu1 %v1450_v14  ;;  %730 = vmatprep.mubr.bf16.mxu0 %v483_v27  ;;  %v13570_v14 = vld [vmem:[%s19529_s3 + $0x40] ss:$8 sps:$4 sm:$0xff]   ;;  %v13602_v25 = vld [vmem:[%s19529_s3 + $0xf4] ss:$8 sps:$4 sm:$0xff]   ;;  %v938_v26 = vrot.slane %v906_v23, 7  ;;  %v937_v30 = vrot.slane %v905_v28, 7 }
  0x56   : > { %1928 = vmatpush1.bf16.msra.mxu0 %v13561_v29  ;;  %1875 = vmatpush2.bf16.msra.mxu1 %v13539_v35  ;;  %v908_v24 = vld [vmem:[%s15161_s21 + $0x28] sm:$0xff]  ;;  %v907_v29 = vld [vmem:[%s15161_s21 + $0x20] sm:$0xff]  ;;  %v910_v35 = vld [vmem:[%s15161_s21 + $0x38] sm:$0xff] }
  0x57   : > { %1929 = vmatprep.subr.bf16.mxu0 %v13569_v32  ;;  %1876 = vmatprep.subr.bf16.mxu1 %v13540_v36  ;;  %v940_v27 = vrot.slane %v908_v24, 7  ;;  %v939_v31 = vrot.slane %v907_v29, 7  ;;  %973 = vst [vmem:[#allocation2 + $0x30] sm:$0xfe] %v938_v26  ;;  %975 = vst [vmem:[#allocation2 + $0x1a0] sm:$0x1] %v938_v26 }
  0x58   : > { %v13600_v32 = vld [vmem:[%s19529_s3 + $0xf0] ss:$8 sps:$4 sm:$0xff]   ;;  %972 = vst [vmem:[#allocation2 + $0x80] sm:$0xfe] %v937_v30  ;;  %974 = vst [vmem:[#allocation2 + $0x1d8] sm:$0x1] %v937_v30 }
  0x59   : > { %977 = vst [vmem:[#allocation2 + $0x48] sm:$0xfe] %v940_v27  ;;  %979 = vst [vmem:[#allocation2 + $0x250] sm:$0x1] %v940_v27  ;;  %v13608_v33 = vld [vmem:[%s19529_s3 + $0xe4] ss:$8 sps:$4 sm:$0xff]  }
  0x5a   : > { %1930 = vmatpush1.bf16.msra.mxu0 %v13567_v39  ;;  %1877 = vmatpush2.bf16.msra.mxu1 %v13542_v37  ;;  %976 = vst [vmem:[#allocation2 + $0x190] sm:$0xfe] %v939_v31  ;;  %978 = vst [vmem:[#allocation2 + $0x188] sm:$0x1] %v939_v31  ;;  %v13606_v34 = vld [vmem:[%s19529_s3 + $0xe0] ss:$8 sps:$4 sm:$0xff]  }
  0x5b   : > { %1931 = vmatprep.subr.bf16.mxu0 %v13575_v44  ;;  %1878 = vmatprep.subr.bf16.mxu1 %v13543_v40  ;;  %v912_v36 = vld [vmem:[%s15161_s21 + $0x48] sm:$0xff]  ;;  %v942_v37 = vrot.slane %v910_v35, 7  ;;  %v909_v39 = vld [vmem:[%s15161_s21 + $0x30] sm:$0xff]  ;;  %v911_v40 = vld [vmem:[%s15161_s21 + $0x40] sm:$0xff] }
  0x5c   : > { %731 = vmatmul.mubr.bf16.gmra.mxu0 %v482_v45  ;;  %v944_v38 = vrot.slane %v912_v36, 7  ;;  %v941_v50 = vrot.slane %v909_v39, 7  ;;  %v13609_v51 = vld [vmem:[%s19529_s3 + $0x3d0] ss:$8 sps:$4 sm:$0xff]   ;;  %v943_v54 = vrot.slane %v911_v40, 7  ;;  %v915_v39 = vld [vmem:[%s15161_s21 + $0x60] sm:$0xff] }
  0x5d   : > { %740 = vmatprep.mubr.bf16.mxu0 %v485_v47  ;;  %981 = vst [vmem:[#allocation2 + $0x98] sm:$0xfe] %v942_v37  ;;  %983 = vst [vmem:[#allocation2 + $0x1e0] sm:$0x1] %v942_v37  ;;  %v913_v35 = vld [vmem:[%s15161_s21 + $0x50] sm:$0xff] }
  0x5e   : > { %1932 = vmatpush1.bf16.msra.mxu0 %v13573_v46  ;;  %1879 = vmatpush2.bf16.msra.mxu1 %v13545_v49  ;;  %v1209_v41 = vld [vmem:[#allocation2 + $0x30] sm:$0xfe]  ;;  %v1213_v42 = vld [vmem:[#allocation2 + $0x1a0] sm:$0x1]  ;;  %985 = vst [vmem:[#allocation2 + $0x1b0] sm:$0xfe] %v944_v38 }
  0x5f   : > { %1933 = vmatprep.subr.bf16.mxu0 %v13581_v48  ;;  %1880 = vmatprep.subr.bf16.mxu1 %v13546_v52  ;;  %v1348_v45 = vrot.slane %v1209_v41, 1  ;;  %v1349_v46 = vrot.slane %v1213_v42, 1  ;;  %987 = vst [vmem:[#allocation2 + $0x38] sm:$0x1] %v944_v38  ;;  %v13611_v48 = vld [vmem:[%s19529_s3 + $0x3d4] ss:$8 sps:$4 sm:$0xff]  }
  0x60   : > { %v1217_v43 = vld [vmem:[#allocation2 + $0x48] sm:$0xfe]  ;;  %v1221_v44 = vld [vmem:[#allocation2 + $0x250] sm:$0x1]  ;;  %v1208_v53 = vld [vmem:[#allocation2 + $0x80] sm:$0xfe] }
  0x61   : > { %v1360_v47 = vrot.slane %v1217_v43, 1  ;;  %v1361_v49 = vrot.slane %v1221_v44, 1  ;;  %v1350_v52 = vsel %vm1320_vm0, %v1348_v45, %v1349_v46  ;;  %v1212_v56 = vld [vmem:[#allocation2 + $0x1d8] sm:$0x1]  ;;  %980 = vst [vmem:[#allocation2 + $0xf8] sm:$0xfe] %v941_v50 }
  0x62   : > { %1934 = vmatpush1.bf16.msra.mxu0 %v13579_v57  ;;  %1881 = vmatpush2.bf16.msra.mxu1 %v13548_v59  ;;  %v1216_v57 = vld [vmem:[#allocation2 + $0x190] sm:$0xfe]  ;;  %982 = vst [vmem:[#allocation2 + $0x1d0] sm:$0x1] %v941_v50  ;;  %v1220_v59 = vld [vmem:[#allocation2 + $0x188] sm:$0x1] }
  0x63   : > { %1935 = vmatprep.subr.bf16.mxu0 %v13587_v58  ;;  %2316 = vmatprep.subr.bf16.mxu1 %v13554_v60  ;;  %v1362_v55 = vsel %vm1320_vm0, %v1360_v47, %v1361_v49  ;;  %v1345_v60 = vrot.slane %v1208_v53, 1  ;;  %984 = vst [vmem:[#allocation2] sm:$0xfe] %v943_v54  ;;  %986 = vst [vmem:[#allocation2 + $0x1e8] sm:$0x1] %v943_v54  ;;  %v1346_v62 = vrot.slane %v1212_v56, 1 }
  0x64   : > { %741 = vmatmul.mubr.bf16.gmra.mxu0 %v484_v61  ;;  %v1454_v58 = vpack.c.bf16 %v1362_v55, %v1350_v52  ;;  %v13614_v61 = vld [vmem:[%s19529_s3 + $0xd4] ss:$8 sps:$4 sm:$0xff]   ;;  %v1357_v63 = vrot.slane %v1216_v57, 1  ;;  %v13624_v37 = vld [vmem:[%s19529_s3 + $0xb0] ss:$8 sps:$4 sm:$0xff]   ;;  %v945_v40 = vrot.slane %v913_v35, 7 }
  0x65   : > { %1883 = vmatmul.mubr.bf16.vlgmr.msra.gmra.mxu1 %v1449_v3  ;;  %v13615_v3 = vld [vmem:[%s19529_s3 + $0x3c0] ss:$8 sps:$4 sm:$0xff]   ;;  %v13629_v38 = vld [vmem:[%s19529_s3 + $0x3a4] ss:$8 sps:$4 sm:$0xff]   ;;  %v947_v43 = vrot.slane %v915_v39, 7 }
  0x66   : > { %1936 = vmatpush1.bf16.msra.mxu0 %v13585_v0  ;;  %2317 = vmatpush1.bf16.msra.mxu1 %v13552_v2  ;;  %v1358_v0 = vrot.slane %v1220_v59, 1  ;;  %v914_v2 = vld [vmem:[%s15161_s21 + $0x58] sm:$0xff]  ;;  %v13627_v42 = vld [vmem:[%s19529_s3 + $0x3a0] ss:$8 sps:$4 sm:$0xff]   ;;  %988 = vst [vmem:[#allocation2 + $0x78] sm:$0xfe] %v945_v40 }
  0x67   : > { %1937 = vmatprep.subr.bf16.mxu0 %v13593_v1  ;;  %2318 = vmatprep.subr.bf16.mxu1 %v13560_v4  ;;  %v13612_v1 = vld [vmem:[%s19529_s3 + $0xd0] ss:$8 sps:$4 sm:$0xff]   ;;  %v13617_v4 = vld [vmem:[%s19529_s3 + $0x3c4] ss:$8 sps:$4 sm:$0xff]   ;;  %990 = vst [vmem:[#allocation2 + $0x58] sm:$0x1] %v945_v40 }
  0x68   : > { %1892 = vmatprep.mubr.bf16.mxu1 %v1454_v58  ;;  %v1224_v23 = vld [vmem:[#allocation2 + $0xf8] sm:$0xfe]  ;;  %v13632_v47 = vld [vmem:[%s19529_s3 + $0xa4] ss:$8 sps:$4 sm:$0xff]   ;;  %992 = vst [vmem:[#allocation2 + $0x1b8] sm:$0xfe] %v947_v43 }
  0x69   : > { %v1228_v24 = vld [vmem:[#allocation2 + $0x1d0] sm:$0x1]  ;;  %v1369_v28 = vrot.slane %v1224_v23, 1  ;;  %994 = vst [vmem:[#allocation2 + $0x210] sm:$0x1] %v947_v43 }
  0x6a   : > { %1938 = vmatpush1.bf16.msra.mxu0 %v13591_v5  ;;  %2319 = vmatpush1.bf16.msra.mxu1 %v13558_v7  ;;  %v946_v5 = vrot.slane %v914_v2, 7  ;;  %v1359_v7 = vsel %vm1320_vm0, %v1357_v63, %v1358_v0  ;;  %v1232_v26 = vld [vmem:[#allocation2] sm:$0xfe]  ;;  %v1236_v27 = vld [vmem:[#allocation2 + $0x1e8] sm:$0x1]  ;;  %v1370_v29 = vrot.slane %v1228_v24, 1 }
  0x6b   : > { %1939 = vmatprep.subr.bf16.mxu0 %v13599_v6  ;;  %2320 = vmatprep.subr.bf16.mxu1 %v13566_v8  ;;  %v1347_v6 = vsel %vm1320_vm0, %v1345_v60, %v1346_v62  ;;  %v1225_v8 = vld [vmem:[#allocation2 + $0x98] sm:$0xfe]  ;;  %v1381_v31 = vrot.slane %v1232_v26, 1  ;;  %v1092_v23 = vld [vmem:[#allocation2 + $0x190] sm:$0xff]  ;;  %v13698_v39 = vld [vmem:[%s19529_s3 + $0x464] ss:$8 sps:$4 sm:$0xff]  }
  0x6c   : > { %989 = vst [vmem:[#allocation2 + $0x1f0] sm:$0xfe] %v946_v5  ;;  %991 = vst [vmem:[#allocation2 + $0x258] sm:$0x1] %v946_v5  ;;  %v1371_v36 = vsel %vm1320_vm0, %v1369_v28, %v1370_v29  ;;  %v13635_v49 = vld [vmem:[%s19529_s3 + $0x394] ss:$8 sps:$4 sm:$0xff]  }
  0x6d   : > { %v13633_v50 = vld [vmem:[%s19529_s3 + $0x390] ss:$8 sps:$4 sm:$0xff]   ;;  %v13638_v53 = vld [vmem:[%s19529_s3 + $0x94] ss:$8 sps:$4 sm:$0xff]   ;;  %v13639_v5 = vld [vmem:[%s19529_s3 + $0x380] ss:$8 sps:$4 sm:$0xff]  }
  0x6e   : > { %1940 = vmatpush2.bf16.msra.mxu0 %v13597_v9  ;;  %2321 = vmatpush1.bf16.msra.mxu1 %v13564_v11  ;;  %v1229_v9 = vld [vmem:[#allocation2 + $0x1e0] sm:$0x1]  ;;  %v916_v11 = vld [vmem:[%s15161_s21 + $0x68] sm:$0xff]  ;;  %v13636_v56 = vld [vmem:[%s19529_s3 + $0x90] ss:$8 sps:$4 sm:$0xff]  }
  0x6f   : > { %1941 = vmatprep.subr.bf16.mxu0 %v13605_v10  ;;  %2322 = vmatprep.subr.bf16.mxu1 %v13572_v12  ;;  %v1233_v10 = vld [vmem:[#allocation2 + $0x1b0] sm:$0xfe]  ;;  %v1453_v12 = vpack.c.bf16 %v1359_v7, %v1347_v6  ;;  %v1240_v60 = vld [vmem:[#allocation2 + $0x78] sm:$0xfe]  ;;  %v13641_v6 = vld [vmem:[%s19529_s3 + $0x384] ss:$8 sps:$4 sm:$0xff]  }
  0x70   : > { %v1248_v62 = vld [vmem:[#allocation2 + $0x1b8] sm:$0xfe]  ;;  %v1252_v63 = vld [vmem:[#allocation2 + $0x210] sm:$0x1]  ;;  %v1393_v0 = vrot.slane %v1240_v60, 1  ;;  %v1100_v29 = vld [vmem:[#allocation2] sm:$0xff] }
  0x71   : > { %1893 = vmatmul.mubr.bf16.gmra.mxu1 %v1453_v12  ;;  %v1101_v26 = vld [vmem:[#allocation2 + $0x1b0] sm:$0xff]  ;;  %v1096_v28 = vld [vmem:[#allocation2 + $0xf8] sm:$0xff]  ;;  %v13696_v40 = vld [vmem:[%s19529_s3 + $0x460] ss:$8 sps:$4 sm:$0xff]  }
  0x72   : > { %1942 = vmatpush2.bf16.msra.mxu0 %v13603_v13  ;;  %2323 = vmatpush1.bf16.msra.mxu1 %v13570_v14  ;;  %v13620_v13 = vld [vmem:[%s19529_s3 + $0xc4] ss:$8 sps:$4 sm:$0xff]   ;;  %v1237_v14 = vld [vmem:[#allocation2 + $0x38] sm:$0x1] }
  0x73   : > { %2324 = vmatprep.subr.bf16.mxu1 %v13578_v15  ;;  %1943 = vmatprep.subr.bf16.mxu0 %v13611_v48  ;;  %v1372_v15 = vrot.slane %v1225_v8, 1  ;;  %v1241_v45 = vld [vmem:[#allocation2 + $0x1f0] sm:$0xfe]  ;;  %v1245_v46 = vld [vmem:[#allocation2 + $0x258] sm:$0x1] }
  0x74   : > { %v13630_v48 = vld [vmem:[%s19529_s3 + $0xa0] ss:$8 sps:$4 sm:$0xff]   ;;  %v1397_v52 = vrot.slane %v1245_v46, 1  ;;  %v1108_v35 = vld [vmem:[#allocation2 + $0x1b8] sm:$0xff]  ;;  %v13710_v43 = vld [vmem:[%s19529_s3 + $0x444] ss:$8 sps:$4 sm:$0xff]  }
  0x75   : > { %v13714_v46 = vld [vmem:[%s19529_s3 + $0x430] ss:$8 sps:$4 sm:$0xff]  }
  0x76   : > { %2325 = vmatpush1.bf16.msra.mxu1 %v13576_v16  ;;  %1944 = vmatpush2.bf16.msra.mxu0 %v13609_v51  ;;  %v1373_v16 = vrot.slane %v1229_v9, 1  ;;  %v1396_v51 = vrot.slane %v1241_v45, 1  ;;  %v13644_v9 = vld [vmem:[%s19529_s3 + $0x84] ss:$8 sps:$4 sm:$0xff]   ;;  %v13716_v45 = vld [vmem:[%s19529_s3 + $0x434] ss:$8 sps:$4 sm:$0xff]  }
  0x77   : > { %2326 = vmatprep.subr.bf16.mxu1 %v13584_v17  ;;  %1945 = vmatprep.subr.bf16.mxu0 %v13617_v4  ;;  %v13618_v17 = vld [vmem:[%s19529_s3 + $0xc0] ss:$8 sps:$4 sm:$0xff]   ;;  %v1406_v4 = vrot.slane %v1252_v63, 1  ;;  %v13750_v63 = vld [vmem:[%s19529_s3 + $0x4d0] ss:$8 sps:$4 sm:$0xff]  }
  0x78   : > { %v1398_v57 = vsel %vm1320_vm0, %v1396_v51, %v1397_v52  ;;  %v13734_v51 = vld [vmem:[%s19529_s3 + $0x404] ss:$8 sps:$4 sm:$0xff]   ;;  %v13732_v52 = vld [vmem:[%s19529_s3 + $0x400] ss:$8 sps:$4 sm:$0xff]  }
  0x7a   : > { %2327 = vmatpush1.bf16.msra.mxu1 %v13582_v18  ;;  %1946 = vmatpush2.bf16.msra.mxu0 %v13615_v3  ;;  %v13623_v18 = vld [vmem:[%s19529_s3 + $0x3b4] ss:$8 sps:$4 sm:$0xff]   ;;  %v1405_v3 = vrot.slane %v1248_v62, 1  ;;  %v779_v62 = vld [vmem:[%s19533_s7] sm:$0x3] }
  0x7b   : > { %2328 = vmatprep.subr.bf16.mxu1 %v13590_v19  ;;  %v1384_v19 = vrot.slane %v1233_v10, 1  ;;  %1947 = vmatprep.subr.bf16.mxu0 %v13623_v18 }
  0x7c   : > { %v1407_v10 = vsel %vm1320_vm0, %v1405_v3, %v1406_v4 }
  0x7e   : > { %2329 = vmatpush1.bf16.msra.mxu1 %v13588_v20  ;;  %v1385_v20 = vrot.slane %v1237_v14, 1  ;;  %v1085_v14 = vld [vmem:[#allocation2 + $0x148] sm:$0xff] }
  0x7f   : > { %2330 = vmatprep.subr.bf16.mxu1 %v13596_v21  ;;  %v13621_v21 = vld [vmem:[%s19529_s3 + $0x3b0] ss:$8 sps:$4 sm:$0xff]  }
  0x80   : > { %1948 = vmatpush2.bf16.msra.mxu0 %v13621_v21 }
  0x81   : > { %1949 = vmatprep.subr.bf16.mxu0 %v13629_v38  ;;  %v13690_v38 = vld [vmem:[%s19529_s3 + $0x470] ss:$8 sps:$4 sm:$0xff]  }
  0x82   : > { %2331 = vmatpush1.bf16.msra.mxu1 %v13594_v22  ;;  %v1374_v22 = vsel %vm1320_vm0, %v1372_v15, %v1373_v16  ;;  %v14813_v15 = vld [vmem:[#allocation2 + $0x8] sm:$0xff] }
  0x83   : > { %2332 = vmatprep.subr.bf16.mxu1 %v13602_v25  ;;  %v1386_v25 = vsel %vm1320_vm0, %v1384_v19, %v1385_v20  ;;  %v1113_v16 = vpack.c.bf16 %v1085_v14, %v14813_v15  ;;  %v1089_v19 = vld [vmem:[#allocation2 + $0x30] sm:$0xff]  ;;  %v1093_v20 = vld [vmem:[#allocation2 + $0x48] sm:$0xff] }
  0x84   : > { %v1458_v30 = vpack.c.bf16 %v1386_v25, %v1374_v22  ;;  %1950 = vmatpush2.bf16.msra.mxu0 %v13627_v42  ;;  %v1117_v21 = vpack.c.bf16 %v1093_v20, %v1089_v19  ;;  %v1088_v22 = vld [vmem:[#allocation2 + $0x80] sm:$0xff]  ;;  %v1097_v25 = vld [vmem:[#allocation2 + $0x98] sm:$0xff] }
  0x85   : > { %1951 = vmatprep.subr.bf16.mxu0 %v13635_v49  ;;  %v1116_v24 = vpack.c.bf16 %v1092_v23, %v1088_v22  ;;  %v13702_v42 = vld [vmem:[%s19529_s3 + $0x450] ss:$8 sps:$4 sm:$0xff]   ;;  %v13728_v49 = vld [vmem:[%s19529_s3 + $0x414] ss:$8 sps:$4 sm:$0xff]  }
  0x86   : > { %2333 = vmatpush2.bf16.msra.mxu1 %v13600_v32  ;;  %v1382_v32 = vrot.slane %v1236_v27, 1  ;;  %1902 = vmatprep.mubr.bf16.mxu1 %v1458_v30  ;;  %v1121_v27 = vpack.c.bf16 %v1101_v26, %v1097_v25  ;;  %v1120_v30 = vpack.c.bf16 %v1100_v29, %v1096_v28  ;;  %v13764_v14 = vld [vmem:[%s19529_s3 + $0x4b4] ss:$8 sps:$4 sm:$0xff]   ;;  %v13770_v25 = vld [vmem:[%s19529_s3 + $0x4a4] ss:$8 sps:$4 sm:$0xff]  }
  0x87   : > { %2334 = vmatprep.subr.bf16.mxu1 %v13608_v33  ;;  %v13626_v33 = vld [vmem:[%s19529_s3 + $0xb4] ss:$8 sps:$4 sm:$0xff]  }
  0x88   : > { %v1383_v41 = vsel %vm1320_vm0, %v1381_v31, %v1382_v32  ;;  %1952 = vmatpush2.bf16.msra.mxu0 %v13633_v50  ;;  %v1105_v31 = vld [vmem:[#allocation2 + $0x1f0] sm:$0xff] }
  0x89   : > { %v1457_v44 = vpack.c.bf16 %v1383_v41, %v1371_v36  ;;  %1953 = vmatprep.subr.bf16.mxu0 %v13641_v6  ;;  %v13704_v41 = vld [vmem:[%s19529_s3 + $0x454] ss:$8 sps:$4 sm:$0xff]   ;;  %v13726_v50 = vld [vmem:[%s19529_s3 + $0x410] ss:$8 sps:$4 sm:$0xff]   ;;  %v13758_v6 = vld [vmem:[%s19529_s3 + $0x4c4] ss:$8 sps:$4 sm:$0xff]  }
  0x8a   : > { %2335 = vmatpush2.bf16.msra.mxu1 %v13606_v34  ;;  %v948_v34 = vrot.slane %v916_v11, 7  ;;  %v13642_v11 = vld [vmem:[%s19529_s3 + $0x80] ss:$8 sps:$4 sm:$0xff]  }
  0x8b   : > { %2336 = vmatprep.subr.bf16.mxu1 %v13614_v61  ;;  %1903 = vmatmul.mubr.bf16.gmra.mxu1 %v1457_v44  ;;  %v1244_v61 = vld [vmem:[#allocation2 + $0x58] sm:$0x1]  ;;  %v13708_v44 = vld [vmem:[%s19529_s3 + $0x440] ss:$8 sps:$4 sm:$0xff]  }
  0x8c   : > { %993 = vst [vmem:[#allocation2 + $0x168] sm:$0xfe] %v948_v34  ;;  %995 = vst [vmem:[#allocation2 + $0x180] sm:$0x1] %v948_v34  ;;  %1954 = vmatpush2.bf16.msra.mxu0 %v13639_v5  ;;  %v1104_v34 = vld [vmem:[#allocation2 + $0x78] sm:$0xff] }
  0x8d   : > { %v1124_v36 = vpack.c.bf16 %v1108_v35, %v1104_v34  ;;  %v13756_v5 = vld [vmem:[%s19529_s3 + $0x4c0] ss:$8 sps:$4 sm:$0xff]  }
  0x8e   : > { %2337 = vmatpush2.bf16.msra.mxu1 %v13612_v1  ;;  %v1394_v1 = vrot.slane %v1244_v61, 1 }
  0x8f   : > { %2338 = vmatprep.subr.bf16.mxu1 %v13620_v13  ;;  %v13647_v13 = vld [vmem:[%s19529_s3 + $0x174] ss:$8 sps:$4 sm:$0xff]  }
  0x90   : > { %v1395_v8 = vsel %vm1320_vm0, %v1393_v0, %v1394_v1  ;;  %2389 = vmatprep.subr.bf16.mxu0 %v13647_v13  ;;  %v13752_v0 = vld [vmem:[%s19529_s3 + $0x4d4] ss:$8 sps:$4 sm:$0xff]   ;;  %v13762_v13 = vld [vmem:[%s19529_s3 + $0x4b0] ss:$8 sps:$4 sm:$0xff]  }
  0x91   : > { %v1461_v12 = vpack.c.bf16 %v1407_v10, %v1395_v8 }
  0x92   : > { %2339 = vmatpush2.bf16.msra.mxu1 %v13618_v17  ;;  %v1084_v17 = vld [vmem:[#allocation2 + $0xd8] sm:$0xff] }
  0x93   : > { %2340 = vmatprep.subr.bf16.mxu1 %v13626_v33  ;;  %v1249_v54 = vld [vmem:[#allocation2 + $0x168] sm:$0xfe]  ;;  %v1253_v55 = vld [vmem:[#allocation2 + $0x180] sm:$0x1]  ;;  %v1112_v18 = vpack.c.bf16 %v1084_v17, %v14813_v15 }
  0x94   : > { %v1408_v58 = vrot.slane %v1249_v54, 1  ;;  %v1409_v59 = vrot.slane %v1253_v55, 1  ;;  %v1109_v32 = vld [vmem:[#allocation2 + $0x168] sm:$0xff]  ;;  %v13738_v54 = vld [vmem:[%s19529_s3 + $0x4f0] ss:$8 sps:$4 sm:$0xff]  }
  0x95   : > { %v1125_v33 = vpack.c.bf16 %v1109_v32, %v1105_v31  ;;  %v13740_v55 = vld [vmem:[%s19529_s3 + $0x4f4] ss:$8 sps:$4 sm:$0xff]   ;;  %v1199_v31 = vld [vmem:[#allocation2 + $0x120] sm:$0x1] }
  0x96   : > { %2341 = vmatpush2.bf16.msra.mxu1 %v13624_v37  ;;  %v1410_v2 = vsel %vm1320_vm0, %v1408_v58, %v1409_v59  ;;  %v13692_v37 = vld [vmem:[%s19529_s3 + $0x474] ss:$8 sps:$4 sm:$0xff]   ;;  %v13746_v58 = vld [vmem:[%s19529_s3 + $0x4e4] ss:$8 sps:$4 sm:$0xff]   ;;  %v751_v59 = vld [vmem:[%s19532_s6] sm:$0x3] }
  0x97   : > { %2342 = vmatprep.subr.bf16.mxu1 %v13632_v47  ;;  %v1462_v7 = vpack.c.bf16 %v1410_v2, %v1398_v57  ;;  %v13722_v47 = vld [vmem:[%s19529_s3 + $0x424] ss:$8 sps:$4 sm:$0xff]   ;;  %v13744_v57 = vld [vmem:[%s19529_s3 + $0x4e0] ss:$8 sps:$4 sm:$0xff]  }
  0x99   : > { %1912 = vmatprep.mubr.bf16.mxu1 %v1462_v7 }
  0x9a   : > { %2343 = vmatpush2.bf16.msra.mxu1 %v13630_v48  ;;  %v13720_v48 = vld [vmem:[%s19529_s3 + $0x420] ss:$8 sps:$4 sm:$0xff]  }
  0x9b   : > { %2344 = vmatprep.subr.bf16.mxu1 %v13638_v53  ;;  %1913 = vmatmul.mubr.bf16.gmra.mxu1 %v1461_v12  ;;  %v753_v53 = vlaneseq }
  0x9c   : > { %2348 = vmatprep.mubr.bf16.mxu1 %v1113_v16 }
  0x9e   : > { %2345 = vmatpush2.bf16.msra.mxu1 %v13636_v56  ;;  %v754_v56 = vshrl.u32 %v753_v53, 7 }
  0x9f   : > { %2346 = vmatprep.subr.bf16.mxu1 %v13644_v9 }
  0xa0   : > { %v15549_v60 = vsub.s32 0, %v754_v56  ;;  %v15551_v61 = vsub.s32 1, %v754_v56 }
  0xa2   : > { %2347 = vmatpush2.bf16.msra.mxu1 %v13642_v11  ;;  %19544 = vst [vmem:[#allocation4_spill] sm:$0xff] %v15549_v60  ;;  %19545 = vst [vmem:[#allocation5_spill] sm:$0xff] %v15551_v61  ;;  %v15563_v1 = vrot.slane %v751_v59, %v15549_v60  ;;  %v15566_v2 = vrot.slane %v779_v62, %v15549_v60  ;;  %v15569_v3 = vrot.slane %v751_v59, %v15551_v61 }
  0xa3   : > { %3120 = vmatprep.subr.bf16.mxu1 %v13692_v37  ;;  %v15579_v8 = vrot.slane %v779_v62, %v15551_v61 }
  0xa5   : > { %2349 = vmatmul.mubr.bf16.vlgmr.msra.gmra.mxu1 %v1112_v18 }
  0xa6   : > { %2358 = vmatprep.mubr.bf16.mxu1 %v1117_v21  ;;  %3121 = vmatpush1.bf16.msra.mxu1 %v13690_v38  ;;  %v1194_v38 = vld [vmem:[#allocation2 + $0x40] sm:$0xfe] }
  0xa7   : > { %3122 = vmatprep.subr.bf16.mxu1 %v13698_v39  ;;  %v13774_v39 = vld [vmem:[%s19529_s3 + $0x490] ss:$8 sps:$4 sm:$0xff]   ;;  %v1327_v56 = vrot.slane %v1194_v38, 1 }
  0xaa   : > { %3123 = vmatpush1.bf16.msra.mxu1 %v13696_v40  ;;  %v13776_v40 = vld [vmem:[%s19529_s3 + $0x494] ss:$8 sps:$4 sm:$0xff]  }
  0xab   : > { %3124 = vmatprep.subr.bf16.mxu1 %v13704_v41 }
  0xad   : > { %2359 = vmatmul.mubr.bf16.gmra.mxu1 %v1116_v24  ;;  %v13768_v24 = vld [vmem:[%s19529_s3 + $0x4a0] ss:$8 sps:$4 sm:$0xff]  }
  0xae   : > { %2368 = vmatprep.mubr.bf16.mxu1 %v1121_v27  ;;  %3125 = vmatpush1.bf16.msra.mxu1 %v13702_v42 }
  0xaf   : > { %3126 = vmatprep.subr.bf16.mxu1 %v13710_v43 }
  0xb2   : > { %3127 = vmatpush1.bf16.msra.mxu1 %v13708_v44 }
  0xb3   : > { %3128 = vmatprep.subr.bf16.mxu1 %v13716_v45  ;;  %v1198_v45 = vld [vmem:[#allocation2 + $0x70] sm:$0x1] }
  0xb5   : > { %2369 = vmatmul.mubr.bf16.gmra.mxu1 %v1120_v30  ;;  %v1195_v30 = vld [vmem:[#allocation2 + $0x28] sm:$0xfe] }
  0xb6   : > { %2378 = vmatprep.mubr.bf16.mxu1 %v1125_v33  ;;  %3129 = vmatpush1.bf16.msra.mxu1 %v13714_v46 }
  0xb7   : > { %3130 = vmatprep.subr.bf16.mxu1 %v13722_v47  ;;  %v1330_v47 = vrot.slane %v1195_v30, 1 }
  0xba   : > { %3131 = vmatpush1.bf16.msra.mxu1 %v13720_v48  ;;  %v1331_v48 = vrot.slane %v1199_v31, 1 }
  0xbb   : > { %3132 = vmatprep.subr.bf16.mxu1 %v13728_v49 }
  0xbd   : > { %2379 = vmatmul.mubr.bf16.gmra.mxu1 %v1124_v36 }
  0xbe   : > { %3133 = vmatpush1.bf16.msra.mxu1 %v13726_v50 }
  0xbf   : > { %3134 = vmatprep.subr.bf16.mxu1 %v13734_v51 }
  0xc2   : > { %3135 = vmatpush1.bf16.msra.mxu1 %v13732_v52 }
  0xc3   : > { %3136 = vmatprep.subr.bf16.mxu1 %v13740_v55 }
  0xc6   : > { %3137 = vmatpush2.bf16.msra.mxu1 %v13738_v54 }
  0xc7   : > { %3138 = vmatprep.subr.bf16.mxu1 %v13746_v58 }
  0xca   : > { %3139 = vmatpush2.bf16.msra.mxu1 %v13744_v57  ;;  %v1328_v57 = vrot.slane %v1198_v45, 1 }
  0xcb   : > { %3140 = vmatprep.subr.bf16.mxu1 %v13752_v0  ;;  %v13780_v0 = vld [vmem:[%s19529_s3 + $0x480] ss:$8 sps:$4 sm:$0xff]  }
  0xce   : > { %3141 = vmatpush2.bf16.msra.mxu1 %v13750_v63 }
  0xcf   : > { %3142 = vmatprep.subr.bf16.mxu1 %v13758_v6 }
  0xd2   : > { %3143 = vmatpush2.bf16.msra.mxu1 %v13756_v5 }
  0xd3   : > { %3144 = vmatprep.subr.bf16.mxu1 %v13764_v14 }
  0xd6   : > { %3145 = vmatpush2.bf16.msra.mxu1 %v13762_v13 }
  0xd7   : > { %3146 = vmatprep.subr.bf16.mxu1 %v13770_v25 }
  0xda   : > { %3147 = vmatpush2.bf16.msra.mxu1 %v13768_v24 }
  0xdb   : > { %3148 = vmatprep.subr.bf16.mxu1 %v13776_v40 }
  0xde   : > { %3149 = vmatpush2.bf16.msra.mxu1 %v13774_v39 }
 0x10c   : > { %v712_v4 = vpop.f32.mrf.mxu0 }
 0x10d   : > { %v763_v7 = vmul.f32 %v15563_v1, %v712_v4  ;;  %v13782_v4 = vld [vmem:[%s19529_s3 + $0x484] ss:$8 sps:$4 sm:$0xff]  }
 0x10e   : > { %v714_v9 = vpop.f32.mrf.mxu0  ;;  %3150 = vmatprep.subr.bf16.mxu1 %v13782_v4 }
 0x10f   : > { %v791_v10 = vadd.f32 %v15566_v2, %v763_v7  ;;  %v764_v11 = vmul.f32 %v15569_v3, %v714_v9  ;;  %v1332_v9 = vsel %vm1320_vm0, %v1330_v47, %v1331_v48  ;;  %3151 = vmatpush2.bf16.msra.mxu1 %v13780_v0 }
 0x110   : > { %v716_v12 = vpop.f32.mrf.mxu0 }
 0x111   : > { %v807_v15 = vmax.f32 %v791_v10, 0.0  ;;  %v792_v16 = vadd.f32 %v15579_v8, %v764_v11  ;;  %v765_v17 = vmul.f32 %v15563_v1, %v716_v12 }
 0x112   : > { %v718_v18 = vpop.f32.mrf.mxu0 }
 0x113   : > { %v1016_v19 = vrot.slane %v807_v15, 7  ;;  %v808_v20 = vmax.f32 %v792_v16, 0.0  ;;  %v793_v21 = vadd.f32 %v15566_v2, %v765_v17  ;;  %v766_v22 = vmul.f32 %v15569_v3, %v718_v18 }
 0x114   : > { %v722_v23 = vpop.f32.mrf.mxu0 }
 0x115   : > { %1048 = vst [vmem:[#allocation2 + $0x158] sm:$0xfe] %v1016_v19  ;;  %1050 = vst [vmem:[#allocation2 + $0x140] sm:$0x1] %v1016_v19  ;;  %v1017_v26 = vrot.slane %v808_v20, 7  ;;  %v809_v27 = vmax.f32 %v793_v21, 0.0  ;;  %v794_v28 = vadd.f32 %v15579_v8, %v766_v22  ;;  %v767_v29 = vmul.f32 %v15563_v1, %v722_v23 }
 0x116   : > { %v724_v32 = vpop.f32.mrf.mxu0  ;;  %v1329_v19 = vsel %vm1320_vm0, %v1327_v56, %v1328_v57 }
 0x117   : > { %1049 = vst [vmem:[#allocation2 + $0x108] sm:$0xfe] %v1017_v26  ;;  %1051 = vst [vmem:[#allocation2 + $0x200] sm:$0x1] %v1017_v26  ;;  %v1018_v33 = vrot.slane %v809_v27, 7  ;;  %v810_v34 = vmax.f32 %v794_v28, 0.0  ;;  %v795_v35 = vadd.f32 %v15566_v2, %v767_v29  ;;  %v768_v36 = vmul.f32 %v15569_v3, %v724_v32 }
 0x118   : > { %v726_v37 = vpop.f32.mrf.mxu0 }
 0x119   : > { %1052 = vst [vmem:[#allocation2 + $0x10] sm:$0xfe] %v1018_v33  ;;  %1054 = vst [vmem:[#allocation2 + $0x248] sm:$0x1] %v1018_v33  ;;  %v1019_v41 = vrot.slane %v810_v34, 7  ;;  %v811_v42 = vmax.f32 %v795_v35, 0.0  ;;  %v796_v43 = vadd.f32 %v15579_v8, %v768_v36  ;;  %v769_v44 = vmul.f32 %v15563_v1, %v726_v37 }
 0x11a   : > { %v728_v46 = vpop.f32.mrf.mxu0  ;;  %v13645_v37 = vld [vmem:[%s19529_s3 + $0x170] ss:$8 sps:$4 sm:$0xff]  }
 0x11b   : > { %1053 = vst [vmem:[#allocation2 + $0x160] sm:$0xfe] %v1019_v41  ;;  %1055 = vst [vmem:[#allocation2 + $0x218] sm:$0x1] %v1019_v41  ;;  %v1020_v49 = vrot.slane %v811_v42, 7  ;;  %v812_v50 = vmax.f32 %v796_v43, 0.0  ;;  %v797_v51 = vadd.f32 %v15566_v2, %v769_v44  ;;  %v770_v52 = vmul.f32 %v15569_v3, %v728_v46 }
 0x11c   : > { %v732_v53 = vpop.f32.mrf.mxu0  ;;  %v1202_v54 = vld [vmem:[#allocation2 + $0x158] sm:$0xfe]  ;;  %v1206_v55 = vld [vmem:[#allocation2 + $0x140] sm:$0x1] }
 0x11d   : > { %1056 = vst [vmem:[#allocation2 + $0x68] sm:$0xfe] %v1020_v49  ;;  %1058 = vst [vmem:[#allocation2 + $0xb8] sm:$0x1] %v1020_v49  ;;  %v1021_v58 = vrot.slane %v812_v50, 7  ;;  %v813_v59 = vmax.f32 %v797_v51, 0.0  ;;  %v798_v62 = vadd.f32 %v15579_v8, %v770_v52  ;;  %v771_v63 = vmul.f32 %v15563_v1, %v732_v53 }
 0x11e   : > { %v734_v5 = vpop.f32.mrf.mxu0  ;;  %v1203_v6 = vld [vmem:[#allocation2 + $0x108] sm:$0xfe]  ;;  %v1207_v7 = vld [vmem:[#allocation2 + $0x200] sm:$0x1]  ;;  %v1339_v10 = vrot.slane %v1202_v54, 1  ;;  %v1340_v11 = vrot.slane %v1206_v55, 1 }
 0x11f   : > { %1057 = vst [vmem:[#allocation2 + $0x238] sm:$0xfe] %v1021_v58  ;;  %1059 = vst [vmem:[#allocation2 + $0x268] sm:$0x1] %v1021_v58  ;;  %v1022_v12 = vrot.slane %v813_v59, 7  ;;  %v814_v13 = vmax.f32 %v798_v62, 0.0  ;;  %v799_v14 = vadd.f32 %v15566_v2, %v771_v63  ;;  %v772_v15 = vmul.f32 %v15569_v3, %v734_v5 }
 0x120   : > { %v736_v16 = vpop.f32.mrf.mxu0  ;;  %v1342_v17 = vrot.slane %v1203_v6, 1  ;;  %v1343_v18 = vrot.slane %v1207_v7, 1  ;;  %v1341_v20 = vsel %vm1320_vm0, %v1339_v10, %v1340_v11  ;;  %v1210_v21 = vld [vmem:[#allocation2 + $0x10] sm:$0xfe]  ;;  %v1214_v22 = vld [vmem:[#allocation2 + $0x248] sm:$0x1] }
 0x121   : > { %1060 = vst [vmem:[#allocation2 + $0xe0] sm:$0xfe] %v1022_v12  ;;  %1062 = vst [vmem:[#allocation2 + $0x1a8] sm:$0x1] %v1022_v12  ;;  %v1023_v23 = vrot.slane %v814_v13, 7  ;;  %v815_v24 = vmax.f32 %v799_v14, 0.0  ;;  %v800_v25 = vadd.f32 %v15579_v8, %v772_v15  ;;  %v773_v26 = vmul.f32 %v15563_v1, %v736_v16 }
 0x122   : > { %v738_v27 = vpop.f32.mrf.mxu0  ;;  %v1344_v28 = vsel %vm1320_vm0, %v1342_v17, %v1343_v18  ;;  %v1211_v29 = vld [vmem:[#allocation2 + $0x160] sm:$0xfe]  ;;  %v1215_v30 = vld [vmem:[#allocation2 + $0x218] sm:$0x1]  ;;  %v1351_v31 = vrot.slane %v1210_v21, 1  ;;  %v1352_v32 = vrot.slane %v1214_v22, 1  ;;  %v1451_v40 = vpack.c.bf16 %v1341_v20, %v1329_v19 }
 0x123   : > { %1061 = vst [vmem:[#allocation2 + $0x198] sm:$0xfe] %v1023_v23  ;;  %1063 = vst [vmem:[#allocation2 + $0x228] sm:$0x1] %v1023_v23  ;;  %v1024_v33 = vrot.slane %v815_v24, 7  ;;  %v816_v34 = vmax.f32 %v800_v25, 0.0  ;;  %v801_v35 = vadd.f32 %v15566_v2, %v773_v26  ;;  %v774_v36 = vmul.f32 %v15569_v3, %v738_v27 }
 0x124   : > { %v742_v38 = vpop.f32.mrf.mxu0  ;;  %v1452_v39 = vpack.c.bf16 %v1344_v28, %v1332_v9  ;;  %v1354_v41 = vrot.slane %v1211_v29, 1  ;;  %v1355_v42 = vrot.slane %v1215_v30, 1  ;;  %v1218_v43 = vld [vmem:[#allocation2 + $0x68] sm:$0xfe]  ;;  %v1222_v44 = vld [vmem:[#allocation2 + $0xb8] sm:$0x1]  ;;  %v1353_v0 = vsel %vm1320_vm0, %v1351_v31, %v1352_v32 }
 0x125   : > { %1064 = vst [vmem:[#allocation2 + $0x90] sm:$0xfe] %v1024_v33  ;;  %1066 = vst [vmem:[#allocation2 + $0x1c8] sm:$0x1] %v1024_v33  ;;  %v1025_v45 = vrot.slane %v816_v34, 7  ;;  %v817_v46 = vmax.f32 %v801_v35, 0.0  ;;  %v802_v47 = vadd.f32 %v15579_v8, %v774_v36  ;;  %v775_v48 = vmul.f32 %v15563_v1, %v742_v38 }
 0x126   : > { %v13650_v49 = vld [vmem:[%s19529_s3 + $0x164] ss:$8 sps:$4 sm:$0xff]   ;;  %1955 = vmatprep.mubr.bf16.mxu0 %v1452_v39  ;;  %v744_v50 = vpop.f32.mrf.mxu0  ;;  %v1219_v51 = vld [vmem:[#allocation2 + $0x238] sm:$0xfe]  ;;  %v1223_v52 = vld [vmem:[#allocation2 + $0x268] sm:$0x1]  ;;  %v1356_v10 = vsel %vm1320_vm0, %v1354_v41, %v1355_v42 }
 0x127   : > { %v1363_v53 = vrot.slane %v1218_v43, 1  ;;  %v1364_v54 = vrot.slane %v1222_v44, 1  ;;  %1065 = vst [vmem:[#allocation2 + $0x270] sm:$0xfe] %v1025_v45  ;;  %1067 = vst [vmem:[#allocation2 + $0x18] sm:$0x1] %v1025_v45  ;;  %v803_v57 = vadd.f32 %v15566_v2, %v775_v48  ;;  %1956 = vmatmul.mubr.bf16.vlgmr.msra.gmra.mxu0 %v1451_v40  ;;  %v776_v58 = vmul.f32 %v15569_v3, %v744_v50 }
 0x128   : > { %v1026_v55 = vrot.slane %v817_v46, 7  ;;  %v818_v56 = vmax.f32 %v802_v47, 0.0  ;;  %2390 = vmatpush1.bf16.msra.mxu0 %v13645_v37  ;;  %v13648_v59 = vld [vmem:[%s19529_s3 + $0x160] ss:$8 sps:$4 sm:$0xff]   ;;  %v1366_v62 = vrot.slane %v1219_v51, 1  ;;  %v1367_v63 = vrot.slane %v1223_v52, 1  ;;  %v746_v5 = vpop.f32.mrf.mxu0 }
 0x129   : > { %v1226_v4 = vld [vmem:[#allocation2 + $0xe0] sm:$0xfe]  ;;  %v819_v7 = vmax.f32 %v803_v57, 0.0  ;;  %v804_v9 = vadd.f32 %v15579_v8, %v776_v58  ;;  %2391 = vmatprep.subr.bf16.mxu0 %v13650_v49  ;;  %v13653_v11 = vld [vmem:[%s19529_s3 + $0x154] ss:$8 sps:$4 sm:$0xff]   ;;  %v1365_v14 = vsel %vm1320_vm0, %v1363_v53, %v1364_v54  ;;  %v777_v18 = vmul.f32 %v15563_v1, %v746_v5 }
 0x12a   : > { %1068 = vst [vmem:[#allocation2 + $0xa0] sm:$0xfe] %v1026_v55  ;;  %1070 = vst [vmem:[#allocation2 + $0x260] sm:$0x1] %v1026_v55  ;;  %v1027_v6 = vrot.slane %v818_v56, 7  ;;  %v1368_v13 = vsel %vm1320_vm0, %v1366_v62, %v1367_v63  ;;  %v1375_v17 = vrot.slane %v1226_v4, 1  ;;  %v748_v19 = vpop.f32.mrf.mxu0  ;;  %v1455_v31 = vpack.c.bf16 %v1365_v14, %v1353_v0 }
 0x12b   : > { %v1230_v12 = vld [vmem:[#allocation2 + $0x1a8] sm:$0x1]  ;;  %v1227_v15 = vld [vmem:[#allocation2 + $0x198] sm:$0xfe]  ;;  %v1028_v20 = vrot.slane %v819_v7, 7  ;;  %v820_v21 = vmax.f32 %v804_v9, 0.0  ;;  %v1456_v22 = vpack.c.bf16 %v1368_v13, %v1356_v10  ;;  %v805_v29 = vadd.f32 %v15566_v2, %v777_v18 }
 0x12c   : > { %v1231_v16 = vld [vmem:[#allocation2 + $0x228] sm:$0x1]  ;;  %1069 = vst [vmem:[#allocation2 + $0x1f8] sm:$0xfe] %v1027_v6  ;;  %1071 = vst [vmem:[#allocation2 + $0x100] sm:$0x1] %v1027_v6  ;;  %2392 = vmatpush1.bf16.msra.mxu0 %v13648_v59  ;;  %v778_v1 = vmul.f32 %v15569_v3, %v748_v19 }
 0x12d   : > { %v13651_v23 = vld [vmem:[%s19529_s3 + $0x150] ss:$8 sps:$4 sm:$0xff]   ;;  %v1378_v24 = vrot.slane %v1227_v15, 1  ;;  %v1379_v25 = vrot.slane %v1231_v16, 1  ;;  %v1238_v27 = vld [vmem:[#allocation2 + $0x1c8] sm:$0x1]  ;;  %1965 = vmatprep.mubr.bf16.mxu0 %v1456_v22  ;;  %2393 = vmatprep.subr.bf16.mxu0 %v13653_v11 }
 0x12e   : > { %v1234_v26 = vld [vmem:[#allocation2 + $0x90] sm:$0xfe]  ;;  %v1376_v28 = vrot.slane %v1230_v12, 1  ;;  %1072 = vst [vmem:[#allocation2 + $0xd0] sm:$0xfe] %v1028_v20  ;;  %v1029_v30 = vrot.slane %v820_v21, 7  ;;  %v806_v38 = vadd.f32 %v15579_v8, %v778_v1 }
 0x12f   : > { %1074 = vst [vmem:[#allocation2 + $0x130] sm:$0x1] %v1028_v20  ;;  %v13656_v32 = vld [vmem:[%s19529_s3 + $0x144] ss:$8 sps:$4 sm:$0xff]   ;;  %v1387_v33 = vrot.slane %v1234_v26, 1  ;;  %v1388_v34 = vrot.slane %v1238_v27, 1  ;;  %1966 = vmatmul.mubr.bf16.gmra.mxu0 %v1455_v31  ;;  %v1380_v3 = vsel %vm1320_vm0, %v1378_v24, %v1379_v25 }
 0x130   : > { %v1235_v35 = vld [vmem:[#allocation2 + $0x270] sm:$0xfe]  ;;  %v1239_v36 = vld [vmem:[#allocation2 + $0x18] sm:$0x1]  ;;  %v821_v37 = vmax.f32 %v805_v29, 0.0  ;;  %2394 = vmatpush1.bf16.msra.mxu0 %v13651_v23  ;;  %v1377_v42 = vsel %vm1320_vm0, %v1375_v17, %v1376_v28  ;;  %v822_v46 = vmax.f32 %v806_v38, 0.0 }
 0x131   : > { %1073 = vst [vmem:[#allocation2 + $0x278] sm:$0xfe] %v1029_v30  ;;  %1075 = vst [vmem:[#allocation2 + $0x110] sm:$0x1] %v1029_v30  ;;  %v13654_v2 = vld [vmem:[%s19529_s3 + $0x140] ss:$8 sps:$4 sm:$0xff]   ;;  %v1389_v43 = vsel %vm1320_vm0, %v1387_v33, %v1388_v34  ;;  %2395 = vmatprep.subr.bf16.mxu0 %v13656_v32 }
 0x132   : > { %v1390_v39 = vrot.slane %v1235_v35, 1  ;;  %v1391_v40 = vrot.slane %v1239_v36, 1  ;;  %v13788_v41 = vld [vmem:[%s19529_s3 + $0x674] ss:$8 sps:$4 sm:$0xff]   ;;  %v1242_v44 = vld [vmem:[#allocation2 + $0xa0] sm:$0xfe]  ;;  %v1459_v56 = vpack.c.bf16 %v1389_v43, %v1377_v42 }
 0x133   : > { %v13659_v8 = vld [vmem:[%s19529_s3 + $0x134] ss:$8 sps:$4 sm:$0xff]   ;;  %v1030_v45 = vrot.slane %v821_v37, 7  ;;  %v1246_v48 = vld [vmem:[#allocation2 + $0x260] sm:$0x1]  ;;  %3715 = vmatprep.subr.bf16.mxu1 %v13788_v41  ;;  %v1031_v55 = vrot.slane %v822_v46, 7 }
 0x134   : > { %v1392_v47 = vsel %vm1320_vm0, %v1390_v39, %v1391_v40  ;;  %v2463_v49 = vld [vmem:[#allocation2 + $0x8] sm:$0xfc]  ;;  %v2467_v50 = vld [vmem:[#allocation2 + $0xf0] sm:$0x3]  ;;  %v1243_v53 = vld [vmem:[#allocation2 + $0x1f8] sm:$0xfe]  ;;  %2396 = vmatpush1.bf16.msra.mxu0 %v13654_v2 }
 0x135   : > { %v1460_v51 = vpack.c.bf16 %v1392_v47, %v1380_v3  ;;  %v13657_v52 = vld [vmem:[%s19529_s3 + $0x130] ss:$8 sps:$4 sm:$0xff]   ;;  %v1247_v54 = vld [vmem:[#allocation2 + $0x100] sm:$0x1]  ;;  %1076 = vst [vmem:[#allocation2 + $0x138] sm:$0xfe] %v1030_v45  ;;  %2397 = vmatprep.subr.bf16.mxu0 %v13659_v8 }
 0x136   : > { %1078 = vst [vmem:[#allocation2 + $0x118] sm:$0x1] %v1030_v45  ;;  %v13662_v57 = vld [vmem:[%s19529_s3 + $0x124] ss:$8 sps:$4 sm:$0xff]   ;;  %v1402_v58 = vrot.slane %v1243_v53, 1  ;;  %v1403_v59 = vrot.slane %v1247_v54, 1 }
 0x137   : > { %v1399_v62 = vrot.slane %v1242_v44, 1  ;;  %v2471_v63 = vld [vmem:[#allocation2 + $0x148] sm:$0xfc]  ;;  %1975 = vmatprep.mubr.bf16.mxu0 %v1460_v51  ;;  %v1250_v0 = vld [vmem:[#allocation2 + $0xd0] sm:$0xfe]  ;;  %v1400_v5 = vrot.slane %v1246_v48, 1 }
 0x138   : > { %v1254_v4 = vld [vmem:[#allocation2 + $0x130] sm:$0x1]  ;;  %1077 = vst [vmem:[#allocation2 + $0x208] sm:$0xfe] %v1031_v55  ;;  %1079 = vst [vmem:[#allocation2 + $0x128] sm:$0x1] %v1031_v55  ;;  %1976 = vmatmul.mubr.bf16.gmra.mxu0 %v1459_v56  ;;  %v1404_v16 = vsel %vm1320_vm0, %v1402_v58, %v1403_v59 }
 0x139   : > { %v2475_v6 = vld [vmem:[#allocation2 + $0xc0] sm:$0x3]  ;;  %v2594_v7 = vrot.slane %v2463_v49, 2  ;;  %v1411_v9 = vrot.slane %v1250_v0, 1  ;;  %v1412_v10 = vrot.slane %v1254_v4, 1  ;;  %v2595_v15 = vrot.slane %v2467_v50, 2  ;;  %2398 = vmatpush1.bf16.msra.mxu0 %v13657_v52 }
 0x13a   : > { %v2462_v11 = vld [vmem:[#allocation2 + $0xc8] sm:$0xfc]  ;;  %v2466_v12 = vld [vmem:[#allocation2 + $0xe8] sm:$0x3]  ;;  %v1251_v13 = vld [vmem:[#allocation2 + $0x278] sm:$0xfe]  ;;  %v1401_v22 = vsel %vm1320_vm0, %v1399_v62, %v1400_v5  ;;  %2399 = vmatprep.subr.bf16.mxu0 %v13662_v57 }
 0x13b   : > { %v1255_v14 = vld [vmem:[#allocation2 + $0x110] sm:$0x1]  ;;  %v1414_v17 = vrot.slane %v1251_v13, 1  ;;  %v2470_v19 = vld [vmem:[#allocation2 + $0xd8] sm:$0xfc]  ;;  %v1413_v23 = vsel %vm1320_vm0, %v1411_v9, %v1412_v10  ;;  %v2596_v24 = vsel %vm2590_vm1, %v2594_v7, %v2595_v15  ;;  %v2606_v25 = vrot.slane %v2471_v63, 2 }
 0x13c   : > { %v1415_v18 = vrot.slane %v1255_v14, 1  ;;  %v2474_v20 = vld [vmem:[#allocation2 + $0x220] sm:$0x3]  ;;  %v13665_v27 = vld [vmem:[%s19529_s3 + $0x114] ss:$8 sps:$4 sm:$0xff]   ;;  %v2607_v28 = vrot.slane %v2475_v6, 2  ;;  %v1463_v33 = vpack.c.bf16 %v1413_v23, %v1401_v22 }
 0x13d   : > { %v13660_v21 = vld [vmem:[%s19529_s3 + $0x120] ss:$8 sps:$4 sm:$0xff]   ;;  %v2591_v29 = vrot.slane %v2462_v11, 2  ;;  %v2592_v1 = vrot.slane %v2466_v12, 2  ;;  %v2603_v31 = vrot.slane %v2470_v19, 2  ;;  %v2604_v32 = vrot.slane %v2474_v20, 2 }
 0x13e   : > { %v1416_v26 = vsel %vm1320_vm0, %v1414_v17, %v1415_v18  ;;  %v1087_v34 = vld [vmem:[#allocation2 + $0x108] sm:$0xff]  ;;  %v2608_v35 = vsel %vm2590_vm1, %v2606_v25, %v2607_v28  ;;  %2400 = vmatpush1.bf16.msra.mxu0 %v13660_v21  ;;  %v13663_v37 = vld [vmem:[%s19529_s3 + $0x110] ss:$8 sps:$4 sm:$0xff]   ;;  %v13671_v44 = vld [vmem:[%s19529_s3 + $0x1f4] ss:$8 sps:$4 sm:$0xff]  }
 0x13f   : > { %v1464_v30 = vpack.c.bf16 %v1416_v26, %v1404_v16  ;;  %v2593_v36 = vsel %vm2590_vm1, %v2591_v29, %v2592_v1  ;;  %v2720_v38 = vpack.c.bf16 %v2608_v35, %v2596_v24  ;;  %v2605_v2 = vsel %vm2590_vm1, %v2603_v31, %v2604_v32  ;;  %2401 = vmatprep.subr.bf16.mxu0 %v13665_v27  ;;  %v13668_v3 = vld [vmem:[%s19529_s3 + $0x104] ss:$8 sps:$4 sm:$0xff]   ;;  %v13786_v39 = vld [vmem:[%s19529_s3 + $0x670] ss:$8 sps:$4 sm:$0xff]   ;;  %v13666_v43 = vld [vmem:[%s19529_s3 + $0x100] ss:$8 sps:$4 sm:$0xff]  }
 0x140   : > { %v2719_v40 = vpack.c.bf16 %v2605_v2, %v2593_v36  ;;  %v15704_v41 = vld [vmem:[#allocation2 + $0x8] sm:$0xff]  ;;  %v13800_v46 = vld [vmem:[%s19529_s3 + $0x654] ss:$8 sps:$4 sm:$0xff]   ;;  %v2483_v48 = vld [vmem:[#allocation2 + $0x1a0] sm:$0x3] }
 0x141   : > { %1985 = vmatprep.mubr.bf16.mxu0 %v1464_v30  ;;  %v1115_v8 = vpack.c.bf16 %v1087_v34, %v15704_v41  ;;  %3152 = vmatprep.mubr.bf16.mxu1 %v2720_v38  ;;  %v13794_v42 = vld [vmem:[%s19529_s3 + $0x664] ss:$8 sps:$4 sm:$0xff]   ;;  %v13792_v45 = vld [vmem:[%s19529_s3 + $0x660] ss:$8 sps:$4 sm:$0xff]   ;;  %v2479_v47 = vld [vmem:[#allocation2 + $0x30] sm:$0xfc] }
 0x142   : > { %1986 = vmatmul.mubr.bf16.gmra.mxu0 %v1463_v33  ;;  %3153 = vmatmul.mubr.bf16.vlgmr.msra.gmra.mxu1 %v2719_v40  ;;  %v2487_v49 = vld [vmem:[#allocation2 + $0x48] sm:$0xfc]  ;;  %v2491_v50 = vld [vmem:[#allocation2 + $0x250] sm:$0x3]  ;;  %v2618_v51 = vrot.slane %v2479_v47, 2  ;;  %v2619_v52 = vrot.slane %v2483_v48, 2 }
 0x143   : > { %2402 = vmatpush1.bf16.msra.mxu0 %v13663_v37  ;;  %2421 = vmatprep.mubr.bf16.mxu0 %v1115_v8  ;;  %v2630_v53 = vrot.slane %v2487_v49, 2  ;;  %v2631_v54 = vrot.slane %v2491_v50, 2  ;;  %v2478_v55 = vld [vmem:[#allocation2 + $0x80] sm:$0xfc]  ;;  %v2482_v56 = vld [vmem:[#allocation2 + $0x1d8] sm:$0x3] }
 0x144   : > { %2403 = vmatprep.subr.bf16.mxu0 %v13668_v3  ;;  %3716 = vmatpush1.bf16.msra.mxu1 %v13786_v39  ;;  %v2620_v57 = vsel %vm2590_vm1, %v2618_v51, %v2619_v52  ;;  %v2486_v58 = vld [vmem:[#allocation2 + $0x190] sm:$0xfc]  ;;  %v2490_v59 = vld [vmem:[#allocation2 + $0x188] sm:$0x3]  ;;  %v2615_v62 = vrot.slane %v2478_v55, 2  ;;  %v2616_v63 = vrot.slane %v2482_v56, 2 }
 0x145   : > { %3717 = vmatprep.subr.bf16.mxu1 %v13794_v42  ;;  %v13669_v0 = vld [vmem:[%s19529_s3 + $0x1f0] ss:$8 sps:$4 sm:$0xff]   ;;  %v2632_v4 = vsel %vm2590_vm1, %v2630_v53, %v2631_v54  ;;  %v2627_v5 = vrot.slane %v2486_v58, 2  ;;  %v2628_v6 = vrot.slane %v2490_v59, 2  ;;  %v13674_v7 = vld [vmem:[%s19529_s3 + $0x1e4] ss:$8 sps:$4 sm:$0xff]  }
 0x146   : > { %v13798_v9 = vld [vmem:[%s19529_s3 + $0x650] ss:$8 sps:$4 sm:$0xff]   ;;  %v2724_v10 = vpack.c.bf16 %v2632_v4, %v2620_v57  ;;  %v2617_v11 = vsel %vm2590_vm1, %v2615_v62, %v2616_v63  ;;  %v13806_v12 = vld [vmem:[%s19529_s3 + $0x644] ss:$8 sps:$4 sm:$0xff]   ;;  %v13672_v15 = vld [vmem:[%s19529_s3 + $0x1e0] ss:$8 sps:$4 sm:$0xff]  }
 0x147   : > { %2404 = vmatpush1.bf16.msra.mxu0 %v13666_v43  ;;  %v2629_v13 = vsel %vm2590_vm1, %v2627_v5, %v2628_v6  ;;  %v13677_v16 = vld [vmem:[%s19529_s3 + $0x1d4] ss:$8 sps:$4 sm:$0xff]   ;;  %v13804_v17 = vld [vmem:[%s19529_s3 + $0x640] ss:$8 sps:$4 sm:$0xff]   ;;  %v13675_v18 = vld [vmem:[%s19529_s3 + $0x1d0] ss:$8 sps:$4 sm:$0xff]  }
 0x148   : > { %2405 = vmatprep.subr.bf16.mxu0 %v13671_v44  ;;  %3718 = vmatpush1.bf16.msra.mxu1 %v13792_v45  ;;  %v2723_v14 = vpack.c.bf16 %v2629_v13, %v2617_v11  ;;  %v13812_v19 = vld [vmem:[%s19529_s3 + $0x634] ss:$8 sps:$4 sm:$0xff]   ;;  %v13680_v20 = vld [vmem:[%s19529_s3 + $0x1c4] ss:$8 sps:$4 sm:$0xff]   ;;  %v13810_v21 = vld [vmem:[%s19529_s3 + $0x630] ss:$8 sps:$4 sm:$0xff]  }
 0x149   : > { %3719 = vmatprep.subr.bf16.mxu1 %v13800_v46  ;;  %3162 = vmatprep.mubr.bf16.mxu1 %v2724_v10  ;;  %v2495_v22 = vld [vmem:[#allocation2 + $0x98] sm:$0xfc]  ;;  %v2499_v23 = vld [vmem:[#allocation2 + $0x1e0] sm:$0x3]  ;;  %v13818_v24 = vld [vmem:[%s19529_s3 + $0x624] ss:$8 sps:$4 sm:$0xff]  }
 0x14a   : > { %3163 = vmatmul.mubr.bf16.gmra.mxu1 %v2723_v14  ;;  %v2503_v25 = vld [vmem:[#allocation2 + $0x1b0] sm:$0xfc]  ;;  %v2507_v26 = vld [vmem:[#allocation2 + $0x38] sm:$0x3]  ;;  %v2642_v27 = vrot.slane %v2495_v22, 2  ;;  %v2643_v28 = vrot.slane %v2499_v23, 2 }
 0x14b   : > { %2406 = vmatpush2.bf16.msra.mxu0 %v13669_v0  ;;  %v2654_v29 = vrot.slane %v2503_v25, 2  ;;  %v2655_v1 = vrot.slane %v2507_v26, 2  ;;  %v2494_v30 = vld [vmem:[#allocation2 + $0xf8] sm:$0xfc]  ;;  %v2498_v31 = vld [vmem:[#allocation2 + $0x1d0] sm:$0x3] }
 0x14c   : > { %2407 = vmatprep.subr.bf16.mxu0 %v13674_v7  ;;  %3720 = vmatpush1.bf16.msra.mxu1 %v13798_v9  ;;  %v2644_v32 = vsel %vm2590_vm1, %v2642_v27, %v2643_v28  ;;  %v2502_v33 = vld [vmem:[#allocation2] sm:$0xfc]  ;;  %v2506_v34 = vld [vmem:[#allocation2 + $0x1e8] sm:$0x3]  ;;  %v2639_v35 = vrot.slane %v2494_v30, 2  ;;  %v2640_v36 = vrot.slane %v2498_v31, 2 }
 0x14d   : > { %3721 = vmatprep.subr.bf16.mxu1 %v13806_v12  ;;  %v2656_v37 = vsel %vm2590_vm1, %v2654_v29, %v2655_v1  ;;  %v2651_v38 = vrot.slane %v2502_v33, 2  ;;  %v2652_v2 = vrot.slane %v2506_v34, 2  ;;  %v13678_v3 = vld [vmem:[%s19529_s3 + $0x1c0] ss:$8 sps:$4 sm:$0xff]   ;;  %v13683_v8 = vld [vmem:[%s19529_s3 + $0x1b4] ss:$8 sps:$4 sm:$0xff]  }
 0x14e   : > { %v2728_v39 = vpack.c.bf16 %v2656_v37, %v2644_v32  ;;  %v2641_v40 = vsel %vm2590_vm1, %v2639_v35, %v2640_v36  ;;  %v13816_v42 = vld [vmem:[%s19529_s3 + $0x620] ss:$8 sps:$4 sm:$0xff]   ;;  %v13681_v45 = vld [vmem:[%s19529_s3 + $0x1b0] ss:$8 sps:$4 sm:$0xff]   ;;  %v13824_v46 = vld [vmem:[%s19529_s3 + $0x614] ss:$8 sps:$4 sm:$0xff]  }
 0x14f   : > { %2408 = vmatpush2.bf16.msra.mxu0 %v13672_v15  ;;  %v2653_v43 = vsel %vm2590_vm1, %v2651_v38, %v2652_v2  ;;  %v13686_v47 = vld [vmem:[%s19529_s3 + $0x1a4] ss:$8 sps:$4 sm:$0xff]   ;;  %v13822_v48 = vld [vmem:[%s19529_s3 + $0x610] ss:$8 sps:$4 sm:$0xff]   ;;  %v13684_v49 = vld [vmem:[%s19529_s3 + $0x1a0] ss:$8 sps:$4 sm:$0xff]  }
 0x150   : > { %2409 = vmatprep.subr.bf16.mxu0 %v13677_v16  ;;  %3722 = vmatpush1.bf16.msra.mxu1 %v13804_v17  ;;  %v2727_v44 = vpack.c.bf16 %v2653_v43, %v2641_v40  ;;  %v13830_v50 = vld [vmem:[%s19529_s3 + $0x604] ss:$8 sps:$4 sm:$0xff]   ;;  %v2511_v51 = vld [vmem:[#allocation2 + $0x1f0] sm:$0xfc]  ;;  %v2515_v52 = vld [vmem:[#allocation2 + $0x258] sm:$0x3] }
 0x151   : > { %3723 = vmatprep.subr.bf16.mxu1 %v13812_v19  ;;  %3172 = vmatprep.mubr.bf16.mxu1 %v2728_v39  ;;  %v13689_v53 = vld [vmem:[%s19529_s3 + $0x194] ss:$8 sps:$4 sm:$0xff]   ;;  %v2519_v54 = vld [vmem:[#allocation2 + $0x168] sm:$0xfc]  ;;  %v2523_v55 = vld [vmem:[#allocation2 + $0x180] sm:$0x3] }
 0x152   : > { %3173 = vmatmul.mubr.bf16.gmra.mxu1 %v2727_v44  ;;  %v2666_v56 = vrot.slane %v2511_v51, 2  ;;  %v2667_v57 = vrot.slane %v2515_v52, 2  ;;  %v2678_v58 = vrot.slane %v2519_v54, 2  ;;  %v2679_v59 = vrot.slane %v2523_v55, 2  ;;  %v2510_v62 = vld [vmem:[#allocation2 + $0x78] sm:$0xfc] }
 0x153   : > { %2410 = vmatpush2.bf16.msra.mxu0 %v13675_v18  ;;  %v2514_v63 = vld [vmem:[#allocation2 + $0x58] sm:$0x3]  ;;  %v2518_v4 = vld [vmem:[#allocation2 + $0x1b8] sm:$0xfc]  ;;  %v2522_v5 = vld [vmem:[#allocation2 + $0x210] sm:$0x3] }
 0x154   : > { %2411 = vmatprep.subr.bf16.mxu0 %v13680_v20  ;;  %3724 = vmatpush1.bf16.msra.mxu1 %v13810_v21  ;;  %v2668_v0 = vsel %vm2590_vm1, %v2666_v56, %v2667_v57  ;;  %v2663_v6 = vrot.slane %v2510_v62, 2  ;;  %v2664_v7 = vrot.slane %v2514_v63, 2  ;;  %v13828_v9 = vld [vmem:[%s19529_s3 + $0x600] ss:$8 sps:$4 sm:$0xff]   ;;  %v2680_v10 = vsel %vm2590_vm1, %v2678_v58, %v2679_v59  ;;  %v13687_v15 = vld [vmem:[%s19529_s3 + $0x190] ss:$8 sps:$4 sm:$0xff]  }
 0x155   : > { %3725 = vmatprep.subr.bf16.mxu1 %v13818_v24  ;;  %v2675_v11 = vrot.slane %v2518_v4, 2  ;;  %v2676_v12 = vrot.slane %v2522_v5, 2  ;;  %v2732_v13 = vpack.c.bf16 %v2680_v10, %v2668_v0  ;;  %v13695_v17 = vld [vmem:[%s19529_s3 + $0x184] ss:$8 sps:$4 sm:$0xff]   ;;  %v13836_v19 = vld [vmem:[%s19529_s3 + $0x6f4] ss:$8 sps:$4 sm:$0xff]  }
 0x156   : > { %v2665_v14 = vsel %vm2590_vm1, %v2663_v6, %v2664_v7  ;;  %v13834_v20 = vld [vmem:[%s19529_s3 + $0x6f0] ss:$8 sps:$4 sm:$0xff]   ;;  %v13842_v21 = vld [vmem:[%s19529_s3 + $0x6e4] ss:$8 sps:$4 sm:$0xff]   ;;  %v13693_v22 = vld [vmem:[%s19529_s3 + $0x180] ss:$8 sps:$4 sm:$0xff]  }
 0x157   : > { %2412 = vmatpush2.bf16.msra.mxu0 %v13678_v3  ;;  %v2677_v16 = vsel %vm2590_vm1, %v2675_v11, %v2676_v12  ;;  %3182 = vmatprep.mubr.bf16.mxu1 %v2732_v13  ;;  %v13701_v23 = vld [vmem:[%s19529_s3 + $0x574] ss:$8 sps:$4 sm:$0xff]   ;;  %v13840_v25 = vld [vmem:[%s19529_s3 + $0x6e0] ss:$8 sps:$4 sm:$0xff]   ;;  %v13699_v28 = vld [vmem:[%s19529_s3 + $0x570] ss:$8 sps:$4 sm:$0xff]  }
 0x158   : > { %2413 = vmatprep.subr.bf16.mxu0 %v13683_v8  ;;  %3726 = vmatpush1.bf16.msra.mxu1 %v13816_v42  ;;  %v2731_v18 = vpack.c.bf16 %v2677_v16, %v2665_v14  ;;  %v1086_v24 = vld [vmem:[#allocation2 + $0x158] sm:$0xff]  ;;  %v15834_v1 = vld [vmem:[#allocation2 + $0x160] sm:$0xff]  ;;  %v3283_v33 = vld [vmem:[#allocation2 + $0x148] sm:$0xff] }
 0x159   : > { %3727 = vmatprep.subr.bf16.mxu1 %v13824_v46  ;;  %v1095_v26 = vld [vmem:[#allocation2 + $0x238] sm:$0xff]  ;;  %v1114_v29 = vpack.c.bf16 %v1086_v24, %v15704_v41  ;;  %v13707_v30 = vld [vmem:[%s19529_s3 + $0x564] ss:$8 sps:$4 sm:$0xff]   ;;  %v13705_v34 = vld [vmem:[%s19529_s3 + $0x560] ss:$8 sps:$4 sm:$0xff]  }
 0x15a   : > { %3183 = vmatmul.mubr.bf16.gmra.mxu1 %v2731_v18  ;;  %v13848_v27 = vld [vmem:[%s19529_s3 + $0x6d4] ss:$8 sps:$4 sm:$0xff]   ;;  %v1119_v31 = vpack.c.bf16 %v1095_v26, %v15834_v1  ;;  %v13846_v32 = vld [vmem:[%s19529_s3 + $0x6d0] ss:$8 sps:$4 sm:$0xff]   ;;  %v13854_v41 = vld [vmem:[%s19529_s3 + $0x6c4] ss:$8 sps:$4 sm:$0xff]  }
 0x15b   : > { %2414 = vmatpush2.bf16.msra.mxu0 %v13681_v45  ;;  %v3287_v35 = vld [vmem:[#allocation2 + $0x30] sm:$0xff]  ;;  %v1094_v38 = vld [vmem:[#allocation2 + $0x68] sm:$0xff]  ;;  %v1099_v3 = vld [vmem:[#allocation2 + $0x198] sm:$0xff] }
 0x15c   : > { %2415 = vmatprep.subr.bf16.mxu0 %v13686_v47  ;;  %3728 = vmatpush1.bf16.msra.mxu1 %v13822_v48  ;;  %v13713_v36 = vld [vmem:[%s19529_s3 + $0x554] ss:$8 sps:$4 sm:$0xff]   ;;  %v3315_v37 = vpack.c.bf16 %v3287_v35, %v3283_v33  ;;  %v13852_v2 = vld [vmem:[%s19529_s3 + $0x6c0] ss:$8 sps:$4 sm:$0xff]   ;;  %v13711_v42 = vld [vmem:[%s19529_s3 + $0x550] ss:$8 sps:$4 sm:$0xff]  }
 0x15d   : > { %3729 = vmatprep.subr.bf16.mxu1 %v13830_v50  ;;  %v1103_v39 = vld [vmem:[#allocation2 + $0x270] sm:$0xff]  ;;  %v13719_v44 = vld [vmem:[%s19529_s3 + $0x544] ss:$8 sps:$4 sm:$0xff]   ;;  %v13717_v48 = vld [vmem:[%s19529_s3 + $0x540] ss:$8 sps:$4 sm:$0xff]  }
 0x15e   : > { %v13860_v40 = vld [vmem:[%s19529_s3 + $0x6b4] ss:$8 sps:$4 sm:$0xff]   ;;  %3747 = vmatprep.mubr.bf16.mxu1 %v3315_v37  ;;  %v1123_v45 = vpack.c.bf16 %v1103_v39, %v1099_v3  ;;  %v13858_v46 = vld [vmem:[%s19529_s3 + $0x6b0] ss:$8 sps:$4 sm:$0xff]   ;;  %v13866_v47 = vld [vmem:[%s19529_s3 + $0x6a4] ss:$8 sps:$4 sm:$0xff]  }
 0x15f   : > { %2416 = vmatpush2.bf16.msra.mxu0 %v13684_v49  ;;  %v1090_v8 = vld [vmem:[#allocation2 + $0x10] sm:$0xff]  ;;  %v1098_v50 = vld [vmem:[#allocation2 + $0xe0] sm:$0xff]  ;;  %v2465_v52 = vld [vmem:[#allocation2 + $0x28] sm:$0xfc] }
 0x160   : > { %2417 = vmatprep.subr.bf16.mxu0 %v13689_v53  ;;  %3730 = vmatpush1.bf16.msra.mxu1 %v13828_v9  ;;  %v1118_v43 = vpack.c.bf16 %v1094_v38, %v1090_v8  ;;  %v13725_v49 = vld [vmem:[%s19529_s3 + $0x534] ss:$8 sps:$4 sm:$0xff]   ;;  %v2469_v53 = vld [vmem:[#allocation2 + $0x120] sm:$0x3]  ;;  %v13723_v58 = vld [vmem:[%s19529_s3 + $0x530] ss:$8 sps:$4 sm:$0xff]  }
 0x161   : > { %3731 = vmatprep.subr.bf16.mxu1 %v13836_v19  ;;  %v1102_v51 = vld [vmem:[#allocation2 + $0x90] sm:$0xff]  ;;  %v13864_v54 = vld [vmem:[%s19529_s3 + $0x6a0] ss:$8 sps:$4 sm:$0xff]   ;;  %v1107_v55 = vld [vmem:[#allocation2 + $0x1f8] sm:$0xff]  ;;  %v2600_v6 = vrot.slane %v2465_v52, 2  ;;  %v2601_v7 = vrot.slane %v2469_v53, 2 }
 0x162   : > { %v1111_v56 = vld [vmem:[#allocation2 + $0x278] sm:$0xff]  ;;  %v2473_v59 = vld [vmem:[#allocation2 + $0x108] sm:$0xfc]  ;;  %v2477_v62 = vld [vmem:[#allocation2 + $0x200] sm:$0x3]  ;;  %v1122_v63 = vpack.c.bf16 %v1102_v51, %v1098_v50 }
 0x163   : > { %2418 = vmatpush2.bf16.msra.mxu0 %v13687_v15  ;;  %v13872_v57 = vld [vmem:[%s19529_s3 + $0x694] ss:$8 sps:$4 sm:$0xff]   ;;  %v13731_v0 = vld [vmem:[%s19529_s3 + $0x524] ss:$8 sps:$4 sm:$0xff]   ;;  %v1127_v4 = vpack.c.bf16 %v1111_v56, %v1107_v55  ;;  %v13870_v5 = vld [vmem:[%s19529_s3 + $0x690] ss:$8 sps:$4 sm:$0xff]   ;;  %v2602_v19 = vsel %vm2590_vm1, %v2600_v6, %v2601_v7 }
 0x164   : > { %2419 = vmatprep.subr.bf16.mxu0 %v13695_v17  ;;  %3732 = vmatpush2.bf16.msra.mxu1 %v13834_v20  ;;  %v2612_v9 = vrot.slane %v2473_v59, 2  ;;  %v2613_v10 = vrot.slane %v2477_v62, 2  ;;  %v13878_v11 = vld [vmem:[%s19529_s3 + $0x684] ss:$8 sps:$4 sm:$0xff]   ;;  %v13729_v12 = vld [vmem:[%s19529_s3 + $0x520] ss:$8 sps:$4 sm:$0xff]  }
 0x165   : > { %3733 = vmatprep.subr.bf16.mxu1 %v13842_v21  ;;  %v1106_v13 = vld [vmem:[#allocation2 + $0xa0] sm:$0xff]  ;;  %v1110_v14 = vld [vmem:[#allocation2 + $0xd0] sm:$0xff]  ;;  %v3282_v17 = vld [vmem:[#allocation2 + $0xd8] sm:$0xff] }
 0x166   : > { %v13737_v15 = vld [vmem:[%s19529_s3 + $0x514] ss:$8 sps:$4 sm:$0xff]   ;;  %v13876_v16 = vld [vmem:[%s19529_s3 + $0x680] ss:$8 sps:$4 sm:$0xff]   ;;  %v2614_v20 = vsel %vm2590_vm1, %v2612_v9, %v2613_v10  ;;  %v13735_v24 = vld [vmem:[%s19529_s3 + $0x510] ss:$8 sps:$4 sm:$0xff]   ;;  %v1126_v26 = vpack.c.bf16 %v1110_v14, %v1106_v13 }
 0x167   : > { %2420 = vmatpush2.bf16.msra.mxu0 %v13693_v22  ;;  %v3286_v18 = vld [vmem:[#allocation2 + $0x80] sm:$0xff]  ;;  %v13884_v21 = vld [vmem:[%s19529_s3 + $0x874] ss:$8 sps:$4 sm:$0xff]   ;;  %v3291_v22 = vld [vmem:[#allocation2 + $0x48] sm:$0xff] }
 0x168   : > { %3193 = vmatprep.subr.bf16.mxu0 %v13701_v23  ;;  %3734 = vmatpush2.bf16.msra.mxu1 %v13840_v25  ;;  %v3295_v23 = vld [vmem:[#allocation2 + $0x98] sm:$0xff]  ;;  %v13741_v35 = vld [vmem:[%s19529_s3 + $0x500] ss:$8 sps:$4 sm:$0xff]   ;;  %v3290_v38 = vld [vmem:[#allocation2 + $0x190] sm:$0xff] }
 0x169   : > { %3735 = vmatprep.subr.bf16.mxu1 %v13848_v27  ;;  %v918_v25 = vld [vmem:[%s15161_s21 + $0x78] sm:$0xff]  ;;  %v13743_v27 = vld [vmem:[%s19529_s3 + $0x504] ss:$8 sps:$4 sm:$0xff]   ;;  %v13888_v37 = vld [vmem:[%s19529_s3 + $0x860] ss:$8 sps:$4 sm:$0xff]  }
 0x16a   : > { %2422 = vmatmul.mubr.bf16.vlgmr.msra.gmra.mxu0 %v1114_v29  ;;  %v950_v29 = vrot.slane %v918_v25, 7  ;;  %v13896_v3 = vld [vmem:[%s19529_s3 + $0x854] ss:$8 sps:$4 sm:$0xff]   ;;  %v13747_v8 = vld [vmem:[%s19529_s3 + $0x5f0] ss:$8 sps:$4 sm:$0xff]   ;;  %v3298_v50 = vld [vmem:[#allocation2] sm:$0xff] }
 0x16b   : > { %2431 = vmatprep.mubr.bf16.mxu0 %v1119_v31  ;;  %3194 = vmatpush1.bf16.msra.mxu0 %v13699_v28  ;;  %v3314_v28 = vpack.c.bf16 %v3286_v18, %v3282_v17  ;;  %v2722_v31 = vpack.c.bf16 %v2614_v20, %v2602_v19  ;;  %v3299_v39 = vld [vmem:[#allocation2 + $0x1b0] sm:$0xff]  ;;  %v3302_v51 = vld [vmem:[#allocation2 + $0x78] sm:$0xff]  ;;  %v3307_v53 = vld [vmem:[#allocation2 + $0x168] sm:$0xff] }
 0x16c   : > { %3195 = vmatprep.subr.bf16.mxu0 %v13707_v30  ;;  %3736 = vmatpush2.bf16.msra.mxu1 %v13846_v32  ;;  %v917_v30 = vld [vmem:[%s15161_s21 + $0x70] sm:$0xff]  ;;  %997 = vst [vmem:[#allocation2 + $0x60] sm:$0xfe] %v950_v29  ;;  %999 = vst [vmem:[#allocation2 + $0x88] sm:$0x1] %v950_v29 }
 0x16d   : > { %3737 = vmatprep.subr.bf16.mxu1 %v13854_v41  ;;  %v13882_v32 = vld [vmem:[%s19529_s3 + $0x870] ss:$8 sps:$4 sm:$0xff]   ;;  %v3319_v41 = vpack.c.bf16 %v3295_v23, %v3291_v22  ;;  %v949_v33 = vrot.slane %v917_v30, 7  ;;  %v13908_v52 = vld [vmem:[%s19529_s3 + $0x834] ss:$8 sps:$4 sm:$0xff]  }
 0x16e   : > { %v13759_v55 = vld [vmem:[%s19529_s3 + $0x5d0] ss:$8 sps:$4 sm:$0xff]   ;;  %v13767_v56 = vld [vmem:[%s19529_s3 + $0x5c4] ss:$8 sps:$4 sm:$0xff]   ;;  %v13920_v7 = vld [vmem:[%s19529_s3 + $0x814] ss:$8 sps:$4 sm:$0xff]  }
 0x16f   : > { %3196 = vmatpush1.bf16.msra.mxu0 %v13705_v34  ;;  %v13890_v34 = vld [vmem:[%s19529_s3 + $0x864] ss:$8 sps:$4 sm:$0xff]   ;;  %996 = vst [vmem:[#allocation2 + $0xa8] sm:$0xfe] %v949_v33  ;;  %998 = vst [vmem:[#allocation2 + $0x240] sm:$0x1] %v949_v33 }
 0x170   : > { %3197 = vmatprep.subr.bf16.mxu0 %v13713_v36  ;;  %3738 = vmatpush2.bf16.msra.mxu1 %v13852_v2  ;;  %v13749_v36 = vld [vmem:[%s19529_s3 + $0x5f4] ss:$8 sps:$4 sm:$0xff]   ;;  %v13914_v62 = vld [vmem:[%s19529_s3 + $0x824] ss:$8 sps:$4 sm:$0xff]   ;;  %v13771_v9 = vld [vmem:[%s19529_s3 + $0x5b0] ss:$8 sps:$4 sm:$0xff]  }
 0x171   : > { %3739 = vmatprep.subr.bf16.mxu1 %v13860_v40  ;;  %v3294_v2 = vld [vmem:[#allocation2 + $0xf8] sm:$0xff]  ;;  %v3303_v40 = vld [vmem:[#allocation2 + $0x1f0] sm:$0xff]  ;;  %v13779_v10 = vld [vmem:[%s19529_s3 + $0x5a4] ss:$8 sps:$4 sm:$0xff]  }
 0x172   : > { %2432 = vmatmul.mubr.bf16.gmra.mxu0 %v1118_v43  ;;  %v3318_v43 = vpack.c.bf16 %v3294_v2, %v3290_v38  ;;  %v13926_v13 = vld [vmem:[%s19529_s3 + $0x804] ss:$8 sps:$4 sm:$0xff]   ;;  %v13777_v14 = vld [vmem:[%s19529_s3 + $0x5a0] ss:$8 sps:$4 sm:$0xff]   ;;  %v13785_v17 = vld [vmem:[%s19529_s3 + $0x594] ss:$8 sps:$4 sm:$0xff]  }
 0x173   : > { %2441 = vmatprep.mubr.bf16.mxu0 %v1123_v45  ;;  %3198 = vmatpush1.bf16.msra.mxu0 %v13711_v42  ;;  %v13755_v42 = vld [vmem:[%s19529_s3 + $0x5e4] ss:$8 sps:$4 sm:$0xff]   ;;  %v3323_v45 = vpack.c.bf16 %v3303_v40, %v3299_v39  ;;  %v2472_v18 = vld [vmem:[#allocation2 + $0x158] sm:$0xfc]  ;;  %v2476_v19 = vld [vmem:[#allocation2 + $0x140] sm:$0x3] }
 0x174   : > { %3199 = vmatprep.subr.bf16.mxu0 %v13719_v44  ;;  %3740 = vmatpush2.bf16.msra.mxu1 %v13858_v46  ;;  %v13894_v44 = vld [vmem:[%s19529_s3 + $0x850] ss:$8 sps:$4 sm:$0xff]   ;;  %v13902_v46 = vld [vmem:[%s19529_s3 + $0x844] ss:$8 sps:$4 sm:$0xff]   ;;  %v13924_v22 = vld [vmem:[%s19529_s3 + $0x800] ss:$8 sps:$4 sm:$0xff]  }
 0x175   : > { %3741 = vmatprep.subr.bf16.mxu1 %v13866_v47  ;;  %v13753_v47 = vld [vmem:[%s19529_s3 + $0x5e0] ss:$8 sps:$4 sm:$0xff]   ;;  %v2489_v23 = vld [vmem:[#allocation2 + $0x238] sm:$0xfc]  ;;  %v2609_v30 = vrot.slane %v2472_v18, 2 }
 0x176   : > { %v3310_v6 = vld [vmem:[#allocation2 + $0xa8] sm:$0xff]  ;;  %v2481_v20 = vld [vmem:[#allocation2 + $0x160] sm:$0xfc]  ;;  %v13932_v25 = vld [vmem:[%s19529_s3 + $0x8f4] ss:$8 sps:$4 sm:$0xff]  }
 0x177   : > { %3200 = vmatpush1.bf16.msra.mxu0 %v13717_v48  ;;  %v13761_v48 = vld [vmem:[%s19529_s3 + $0x5d4] ss:$8 sps:$4 sm:$0xff]   ;;  %v2488_v38 = vld [vmem:[#allocation2 + $0x68] sm:$0xfc]  ;;  %v2492_v2 = vld [vmem:[#allocation2 + $0xb8] sm:$0x3] }
 0x178   : > { %3201 = vmatprep.subr.bf16.mxu0 %v13725_v49  ;;  %3742 = vmatpush2.bf16.msra.mxu1 %v13864_v54  ;;  %v13900_v49 = vld [vmem:[%s19529_s3 + $0x840] ss:$8 sps:$4 sm:$0xff]   ;;  %v2480_v39 = vld [vmem:[#allocation2 + $0x10] sm:$0xfc]  ;;  %v3916_v60 = vld [vmem:[#allocation2 + $0x18] sm:$0x1] }
 0x179   : > { %3743 = vmatprep.subr.bf16.mxu1 %v13872_v57  ;;  %v3311_v54 = vld [vmem:[#allocation2 + $0x60] sm:$0xff]  ;;  %v3322_v57 = vpack.c.bf16 %v3302_v51, %v3298_v50  ;;  %v3878_v40 = vld [vmem:[#allocation2 + $0x148] sm:$0xfe]  ;;  %v2497_v51 = vld [vmem:[#allocation2 + $0x198] sm:$0xfc] }
 0x17a   : > { %2442 = vmatmul.mubr.bf16.gmra.mxu0 %v1122_v63  ;;  %v3327_v59 = vpack.c.bf16 %v3311_v54, %v3307_v53  ;;  %v13765_v63 = vld [vmem:[%s19529_s3 + $0x5c0] ss:$8 sps:$4 sm:$0xff]  }
 0x17b   : > { %2451 = vmatprep.mubr.bf16.mxu0 %v1127_v4  ;;  %3202 = vmatpush1.bf16.msra.mxu0 %v13723_v58  ;;  %v13906_v58 = vld [vmem:[%s19529_s3 + $0x830] ss:$8 sps:$4 sm:$0xff]   ;;  %v13912_v4 = vld [vmem:[%s19529_s3 + $0x820] ss:$8 sps:$4 sm:$0xff]  }
 0x17c   : > { %3203 = vmatprep.subr.bf16.mxu0 %v13731_v0  ;;  %3744 = vmatpush2.bf16.msra.mxu1 %v13870_v5  ;;  %v13773_v0 = vld [vmem:[%s19529_s3 + $0x5b4] ss:$8 sps:$4 sm:$0xff]   ;;  %v2501_v54 = vld [vmem:[#allocation2 + $0x228] sm:$0x3] }
 0x17d   : > { %3745 = vmatprep.subr.bf16.mxu1 %v13878_v11  ;;  %v3306_v5 = vld [vmem:[#allocation2 + $0x1b8] sm:$0xff] }
 0x17e   : > { %v3326_v11 = vpack.c.bf16 %v3310_v6, %v3306_v5 }
 0x17f   : > { %3204 = vmatpush1.bf16.msra.mxu0 %v13729_v12  ;;  %v13918_v12 = vld [vmem:[%s19529_s3 + $0x810] ss:$8 sps:$4 sm:$0xff]  }
 0x180   : > { %3205 = vmatprep.subr.bf16.mxu0 %v13737_v15  ;;  %3746 = vmatpush2.bf16.msra.mxu1 %v13876_v16  ;;  %v2464_v15 = vld [vmem:[#allocation2 + $0x40] sm:$0xfc]  ;;  %v2468_v16 = vld [vmem:[#allocation2 + $0x70] sm:$0x3] }
 0x181   : > { %4534 = vmatprep.subr.bf16.mxu1 %v13884_v21  ;;  %v2485_v21 = vld [vmem:[#allocation2 + $0x218] sm:$0x3]  ;;  %v2598_v29 = vrot.slane %v2468_v16, 2 }
 0x182   : > { %2452 = vmatmul.mubr.bf16.gmra.mxu0 %v1126_v26  ;;  %v13783_v26 = vld [vmem:[%s19529_s3 + $0x590] ss:$8 sps:$4 sm:$0xff]   ;;  %v2625_v33 = vrot.slane %v2485_v21, 2 }
 0x183   : > { %3206 = vmatpush1.bf16.msra.mxu0 %v13735_v24  ;;  %3225 = vmatprep.mubr.bf16.mxu0 %v2722_v31  ;;  %v2493_v24 = vld [vmem:[#allocation2 + $0x268] sm:$0x3]  ;;  %v2610_v31 = vrot.slane %v2476_v19, 2  ;;  %v13942_v16 = vld [vmem:[%s19529_s3 + $0x8d0] ss:$8 sps:$4 sm:$0xff]  }
 0x184   : > { %3207 = vmatprep.subr.bf16.mxu0 %v13743_v27  ;;  %3748 = vmatmul.mubr.bf16.vlgmr.msra.gmra.mxu1 %v3314_v28  ;;  %v13791_v27 = vld [vmem:[%s19529_s3 + $0x584] ss:$8 sps:$4 sm:$0xff]   ;;  %v2597_v28 = vrot.slane %v2464_v15, 2 }
 0x185   : > { %4535 = vmatpush1.bf16.msra.mxu1 %v13882_v32  ;;  %3757 = vmatprep.mubr.bf16.mxu1 %v3319_v41  ;;  %v13789_v32 = vld [vmem:[%s19529_s3 + $0x580] ss:$8 sps:$4 sm:$0xff]   ;;  %v2624_v41 = vrot.slane %v2481_v20, 2  ;;  %v13950_v20 = vld [vmem:[%s19529_s3 + $0x8c4] ss:$8 sps:$4 sm:$0xff]  }
 0x186   : > { %4536 = vmatprep.subr.bf16.mxu1 %v13890_v34  ;;  %v2636_v34 = vrot.slane %v2489_v23, 2  ;;  %v2496_v19 = vld [vmem:[#allocation2 + $0xe0] sm:$0xfc]  ;;  %v2504_v23 = vld [vmem:[#allocation2 + $0x90] sm:$0xfc] }
 0x187   : > { %3208 = vmatpush1.bf16.msra.mxu0 %v13741_v35  ;;  %v2637_v35 = vrot.slane %v2493_v24, 2  ;;  %v2508_v24 = vld [vmem:[#allocation2 + $0x1c8] sm:$0x3] }
 0x188   : > { %3209 = vmatprep.subr.bf16.mxu0 %v13749_v36  ;;  %v13930_v36 = vld [vmem:[%s19529_s3 + $0x8f0] ss:$8 sps:$4 sm:$0xff]  }
 0x189   : > { %4537 = vmatpush1.bf16.msra.mxu1 %v13888_v37  ;;  %v13797_v37 = vld [vmem:[%s19529_s3 + $0x774] ss:$8 sps:$4 sm:$0xff]   ;;  %v2638_v50 = vsel %vm2590_vm1, %v2636_v34, %v2637_v35  ;;  %v13815_v35 = vld [vmem:[%s19529_s3 + $0x744] ss:$8 sps:$4 sm:$0xff]  }
 0x18a   : > { %4538 = vmatprep.subr.bf16.mxu1 %v13896_v3  ;;  %v13938_v3 = vld [vmem:[%s19529_s3 + $0x8e4] ss:$8 sps:$4 sm:$0xff]  }
 0x18b   : > { %3210 = vmatpush2.bf16.msra.mxu0 %v13747_v8  ;;  %v3882_v8 = vld [vmem:[#allocation2 + $0xc0] sm:$0x1] }
 0x18c   : > { %3211 = vmatprep.subr.bf16.mxu0 %v13755_v42  ;;  %3758 = vmatmul.mubr.bf16.gmra.mxu1 %v3318_v43  ;;  %v3886_v42 = vld [vmem:[#allocation2 + $0x30] sm:$0xfe]  ;;  %v2484_v43 = vld [vmem:[#allocation2 + $0x248] sm:$0x3] }
 0x18d   : > { %4539 = vmatpush1.bf16.msra.mxu1 %v13894_v44  ;;  %3767 = vmatprep.mubr.bf16.mxu1 %v3323_v45  ;;  %v3890_v44 = vld [vmem:[#allocation2 + $0x1a0] sm:$0x1]  ;;  %v4008_v45 = vrot.slane %v3878_v40, 1 }
 0x18e   : > { %4540 = vmatprep.subr.bf16.mxu1 %v13902_v46  ;;  %v4009_v46 = vrot.slane %v3882_v8, 1  ;;  %v4021_v53 = vrot.slane %v3890_v44, 1  ;;  %v13813_v44 = vld [vmem:[%s19529_s3 + $0x740] ss:$8 sps:$4 sm:$0xff]  }
 0x18f   : > { %3212 = vmatpush2.bf16.msra.mxu0 %v13753_v47  ;;  %v4020_v47 = vrot.slane %v3886_v42, 1 }
 0x190   : > { %3213 = vmatprep.subr.bf16.mxu0 %v13761_v48  ;;  %v2599_v48 = vsel %vm2590_vm1, %v2597_v28, %v2598_v29  ;;  %v13807_v29 = vld [vmem:[%s19529_s3 + $0x750] ss:$8 sps:$4 sm:$0xff]  }
 0x191   : > { %4541 = vmatpush1.bf16.msra.mxu1 %v13900_v49  ;;  %v2611_v49 = vsel %vm2590_vm1, %v2609_v30, %v2610_v31  ;;  %v2525_v30 = vld [vmem:[#allocation2 + $0x110] sm:$0x3]  ;;  %v13948_v31 = vld [vmem:[%s19529_s3 + $0x8c0] ss:$8 sps:$4 sm:$0xff]  }
 0x192   : > { %4542 = vmatprep.subr.bf16.mxu1 %v13908_v52  ;;  %v13936_v52 = vld [vmem:[%s19529_s3 + $0x8e0] ss:$8 sps:$4 sm:$0xff]   ;;  %v2721_v5 = vpack.c.bf16 %v2611_v49, %v2599_v48  ;;  %v2685_v8 = vrot.slane %v2525_v30, 2  ;;  %v13831_v30 = vld [vmem:[%s19529_s3 + $0x710] ss:$8 sps:$4 sm:$0xff]  }
 0x193   : > { %3214 = vmatpush2.bf16.msra.mxu0 %v13759_v55  ;;  %v2505_v55 = vld [vmem:[#allocation2 + $0x270] sm:$0xfc]  ;;  %v2516_v48 = vld [vmem:[#allocation2 + $0x260] sm:$0x3] }
 0x194   : > { %3215 = vmatprep.subr.bf16.mxu0 %v13767_v56  ;;  %3768 = vmatmul.mubr.bf16.gmra.mxu1 %v3322_v57  ;;  %v13944_v56 = vld [vmem:[%s19529_s3 + $0x8d4] ss:$8 sps:$4 sm:$0xff]   ;;  %v4010_v57 = vsel %vm1320_vm0, %v4008_v45, %v4009_v46  ;;  %v2660_v15 = vrot.slane %v2505_v55, 2  ;;  %v13962_v45 = vld [vmem:[%s19529_s3 + $0x8a4] ss:$8 sps:$4 sm:$0xff]  }
 0x195   : > { %4543 = vmatpush1.bf16.msra.mxu1 %v13906_v58  ;;  %3777 = vmatprep.mubr.bf16.mxu1 %v3327_v59  ;;  %v13795_v58 = vld [vmem:[%s19529_s3 + $0x770] ss:$8 sps:$4 sm:$0xff]   ;;  %v2626_v59 = vsel %vm2590_vm1, %v2624_v41, %v2625_v33  ;;  %v13821_v46 = vld [vmem:[%s19529_s3 + $0x734] ss:$8 sps:$4 sm:$0xff]   ;;  %v13960_v55 = vld [vmem:[%s19529_s3 + $0x8a0] ss:$8 sps:$4 sm:$0xff]  }
 0x196   : > { %4544 = vmatprep.subr.bf16.mxu1 %v13914_v62  ;;  %v2633_v62 = vrot.slane %v2488_v38, 2  ;;  %v2726_v6 = vpack.c.bf16 %v2638_v50, %v2626_v59  ;;  %v2657_v38 = vrot.slane %v2504_v23, 2  ;;  %v3881_v59 = vld [vmem:[#allocation2 + $0x220] sm:$0x1] }
 0x197   : > { %3216 = vmatpush2.bf16.msra.mxu0 %v13765_v63  ;;  %v2634_v63 = vrot.slane %v2492_v2, 2  ;;  %v2658_v2 = vrot.slane %v2508_v24, 2 }
 0x198   : > { %3217 = vmatprep.subr.bf16.mxu0 %v13773_v0  ;;  %v2509_v0 = vld [vmem:[#allocation2 + $0x18] sm:$0x3] }
 0x199   : > { %4545 = vmatpush1.bf16.msra.mxu1 %v13912_v4  ;;  %v4022_v4 = vsel %vm1320_vm0, %v4020_v47, %v4021_v53  ;;  %v2661_v18 = vrot.slane %v2509_v0, 2  ;;  %v2635_v21 = vsel %vm2590_vm1, %v2633_v62, %v2634_v63  ;;  %v2512_v47 = vld [vmem:[#allocation2 + $0xa0] sm:$0xfc]  ;;  %v2659_v50 = vsel %vm2590_vm1, %v2657_v38, %v2658_v2  ;;  %v2520_v53 = vld [vmem:[#allocation2 + $0xd0] sm:$0xfc] }
 0x19a   : > { %4546 = vmatprep.subr.bf16.mxu1 %v13920_v7  ;;  %v13803_v7 = vld [vmem:[%s19529_s3 + $0x764] ss:$8 sps:$4 sm:$0xff]   ;;  %v3889_v63 = vld [vmem:[#allocation2 + $0x1d8] sm:$0x1]  ;;  %v3901_v2 = vld [vmem:[#allocation2 + $0xf8] sm:$0xfe] }
 0x19b   : > { %3218 = vmatpush2.bf16.msra.mxu0 %v13771_v9  ;;  %v2621_v9 = vrot.slane %v2480_v39, 2  ;;  %v2662_v34 = vsel %vm2590_vm1, %v2660_v15, %v2661_v18  ;;  %v3885_v62 = vld [vmem:[#allocation2 + $0x80] sm:$0xfe]  ;;  %v3894_v0 = vld [vmem:[#allocation2 + $0x48] sm:$0xfe] }
 0x19c   : > { %3219 = vmatprep.subr.bf16.mxu0 %v13779_v10  ;;  %3778 = vmatmul.mubr.bf16.gmra.mxu1 %v3326_v11  ;;  %v4134_v10 = vpack.c.bf16 %v4022_v4, %v4010_v57  ;;  %v13801_v11 = vld [vmem:[%s19529_s3 + $0x760] ss:$8 sps:$4 sm:$0xff]   ;;  %v13968_v57 = vld [vmem:[%s19529_s3 + $0x894] ss:$8 sps:$4 sm:$0xff]   ;;  %v13966_v15 = vld [vmem:[%s19529_s3 + $0x890] ss:$8 sps:$4 sm:$0xff]  }
 0x19d   : > { %4547 = vmatpush1.bf16.msra.mxu1 %v13918_v12  ;;  %v2622_v12 = vrot.slane %v2484_v43, 2  ;;  %v13954_v43 = vld [vmem:[%s19529_s3 + $0x8b0] ss:$8 sps:$4 sm:$0xff]   ;;  %v4017_v18 = vrot.slane %v3885_v62, 1 }
 0x19e   : > { %4548 = vmatprep.subr.bf16.mxu1 %v13926_v13  ;;  %v2648_v13 = vrot.slane %v2497_v51, 2  ;;  %4566 = vmatprep.mubr.bf16.mxu1 %v4134_v10  ;;  %v13827_v10 = vld [vmem:[%s19529_s3 + $0x724] ss:$8 sps:$4 sm:$0xff]   ;;  %v13843_v62 = vld [vmem:[%s19529_s3 + $0x7f0] ss:$8 sps:$4 sm:$0xff]  }
 0x19f   : > { %3220 = vmatpush2.bf16.msra.mxu0 %v13777_v14  ;;  %v2649_v14 = vrot.slane %v2501_v54, 2  ;;  %v2623_v28 = vsel %vm2590_vm1, %v2621_v9, %v2622_v12  ;;  %v2524_v54 = vld [vmem:[#allocation2 + $0x130] sm:$0x3]  ;;  %v3906_v9 = vld [vmem:[#allocation2 + $0x1e0] sm:$0x1]  ;;  %v2670_v12 = vrot.slane %v2516_v48, 2 }
 0x1a0   : > { %3221 = vmatprep.subr.bf16.mxu0 %v13785_v17  ;;  %v13809_v17 = vld [vmem:[%s19529_s3 + $0x754] ss:$8 sps:$4 sm:$0xff]   ;;  %v2725_v41 = vpack.c.bf16 %v2635_v21, %v2623_v28  ;;  %v4032_v21 = vrot.slane %v3894_v0, 1  ;;  %v4045_v24 = vrot.slane %v3906_v9, 1 }
 0x1a1   : > { %4549 = vmatpush1.bf16.msra.mxu1 %v13924_v22  ;;  %v2500_v22 = vld [vmem:[#allocation2 + $0x1a8] sm:$0x3]  ;;  %v2650_v33 = vsel %vm2590_vm1, %v2648_v13, %v2649_v14  ;;  %v2681_v13 = vrot.slane %v2520_v53, 2  ;;  %v2682_v14 = vrot.slane %v2524_v54, 2 }
 0x1a2   : > { %4550 = vmatprep.subr.bf16.mxu1 %v13932_v25  ;;  %v2513_v25 = vld [vmem:[#allocation2 + $0x1f8] sm:$0xfc]  ;;  %v2730_v42 = vpack.c.bf16 %v2662_v34, %v2650_v33  ;;  %v3893_v34 = vld [vmem:[#allocation2 + $0x190] sm:$0xfe] }
 0x1a3   : > { %3222 = vmatpush2.bf16.msra.mxu0 %v13783_v26  ;;  %v2517_v26 = vld [vmem:[#allocation2 + $0x100] sm:$0x3] }
 0x1a4   : > { %3223 = vmatprep.subr.bf16.mxu0 %v13791_v27  ;;  %v2521_v27 = vld [vmem:[#allocation2 + $0x278] sm:$0xfc]  ;;  %v2673_v39 = vrot.slane %v2517_v26, 2 }
 0x1a5   : > { %4551 = vmatpush2.bf16.msra.mxu1 %v13930_v36  ;;  %v2645_v36 = vrot.slane %v2496_v19, 2  ;;  %v2684_v40 = vrot.slane %v2521_v27, 2  ;;  %v4018_v19 = vrot.slane %v3889_v63, 1  ;;  %v13833_v26 = vld [vmem:[%s19529_s3 + $0x714] ss:$8 sps:$4 sm:$0xff]  }
 0x1a6   : > { %4552 = vmatprep.subr.bf16.mxu1 %v13938_v3  ;;  %v2672_v3 = vrot.slane %v2513_v25, 2  ;;  %v13825_v25 = vld [vmem:[%s19529_s3 + $0x720] ss:$8 sps:$4 sm:$0xff]  }
 0x1a7   : > { %3224 = vmatpush2.bf16.msra.mxu0 %v13789_v32  ;;  %v13956_v32 = vld [vmem:[%s19529_s3 + $0x8b4] ss:$8 sps:$4 sm:$0xff]   ;;  %v13972_v27 = vld [vmem:[%s19529_s3 + $0x880] ss:$8 sps:$4 sm:$0xff]   ;;  %v4019_v33 = vsel %vm1320_vm0, %v4017_v18, %v4018_v19 }
 0x1a8   : > { %3788 = vmatprep.subr.bf16.mxu0 %v13797_v37  ;;  %v2646_v37 = vrot.slane %v2500_v22, 2  ;;  %v2674_v51 = vsel %vm2590_vm1, %v2672_v3, %v2673_v39  ;;  %v3905_v3 = vld [vmem:[#allocation2 + $0x1d0] sm:$0x1]  ;;  %v3910_v39 = vld [vmem:[#allocation2 + $0x1b0] sm:$0xfe] }
 0x1a9   : > { %4553 = vmatpush2.bf16.msra.mxu1 %v13936_v52  ;;  %v2686_v52 = vsel %vm2590_vm1, %v2684_v40, %v2685_v8  ;;  %v3914_v40 = vld [vmem:[#allocation2 + $0x38] sm:$0x1]  ;;  %v3918_v8 = vld [vmem:[#allocation2 + $0x1f0] sm:$0xfe]  ;;  %v4056_v53 = vrot.slane %v3910_v39, 1 }
 0x1aa   : > { %3226 = vmatmul.mubr.bf16.vlgmr.msra.gmra.mxu0 %v2721_v5  ;;  %4554 = vmatprep.subr.bf16.mxu1 %v13944_v56  ;;  %v2647_v49 = vsel %vm2590_vm1, %v2645_v36, %v2646_v37  ;;  %v13819_v56 = vld [vmem:[%s19529_s3 + $0x730] ss:$8 sps:$4 sm:$0xff]   ;;  %v2734_v5 = vpack.c.bf16 %v2686_v52, %v2674_v51  ;;  %v13839_v36 = vld [vmem:[%s19529_s3 + $0x704] ss:$8 sps:$4 sm:$0xff]   ;;  %v4042_v51 = vrot.slane %v3905_v3, 1  ;;  %v4057_v54 = vrot.slane %v3914_v40, 1 }
 0x1ab   : > { %3235 = vmatprep.mubr.bf16.mxu0 %v2726_v6  ;;  %3789 = vmatpush1.bf16.msra.mxu0 %v13795_v58  ;;  %v3877_v58 = vld [vmem:[#allocation2 + $0xd8] sm:$0xfe]  ;;  %v2729_v4 = vpack.c.bf16 %v2659_v50, %v2647_v49  ;;  %v3898_v6 = vld [vmem:[#allocation2 + $0x250] sm:$0x1]  ;;  %v4041_v50 = vrot.slane %v3901_v2, 1 }
 0x1ac   : > { %3790 = vmatprep.subr.bf16.mxu0 %v13803_v7  ;;  %v3902_v7 = vld [vmem:[#allocation2 + $0x98] sm:$0xfe]  ;;  %v4033_v22 = vrot.slane %v3898_v6, 1  ;;  %v13986_v52 = vld [vmem:[%s19529_s3 + $0xa64] ss:$8 sps:$4 sm:$0xff]   ;;  %v4058_v9 = vsel %vm1320_vm0, %v4056_v53, %v4057_v54 }
 0x1ad   : > { %4555 = vmatpush2.bf16.msra.mxu1 %v13942_v16  ;;  %v4005_v16 = vrot.slane %v3877_v58, 1  ;;  %v4044_v23 = vrot.slane %v3902_v7, 1  ;;  %v13984_v58 = vld [vmem:[%s19529_s3 + $0xa60] ss:$8 sps:$4 sm:$0xff]   ;;  %v4043_v0 = vsel %vm1320_vm0, %v4041_v50, %v4042_v51  ;;  %v3917_v6 = vld [vmem:[#allocation2 + $0x78] sm:$0xfe] }
 0x1ae   : > { %4556 = vmatprep.subr.bf16.mxu1 %v13950_v20  ;;  %v13974_v20 = vld [vmem:[%s19529_s3 + $0x884] ss:$8 sps:$4 sm:$0xff]   ;;  %v4034_v37 = vsel %vm1320_vm0, %v4032_v21, %v4033_v22  ;;  %v13849_v19 = vld [vmem:[%s19529_s3 + $0x7e0] ss:$8 sps:$4 sm:$0xff]   ;;  %v13855_v3 = vld [vmem:[%s19529_s3 + $0x7d0] ss:$8 sps:$4 sm:$0xff]  }
 0x1af   : > { %3791 = vmatpush1.bf16.msra.mxu0 %v13801_v11  ;;  %v2669_v11 = vrot.slane %v2512_v47, 2  ;;  %v4046_v38 = vsel %vm1320_vm0, %v4044_v23, %v4045_v24  ;;  %v13978_v47 = vld [vmem:[%s19529_s3 + $0xa70] ss:$8 sps:$4 sm:$0xff]   ;;  %v13851_v7 = vld [vmem:[%s19529_s3 + $0x7e4] ss:$8 sps:$4 sm:$0xff]   ;;  %v4065_v23 = vrot.slane %v3917_v6, 1 }
 0x1b0   : > { %3792 = vmatprep.subr.bf16.mxu0 %v13809_v17  ;;  %v4006_v17 = vrot.slane %v3881_v59, 1  ;;  %v4138_v48 = vpack.c.bf16 %v4046_v38, %v4034_v37  ;;  %v13992_v59 = vld [vmem:[%s19529_s3 + $0xa54] ss:$8 sps:$4 sm:$0xff]   ;;  %v16177_v37 = vpop.f32.mrf.mxu1  ;;  %v13863_v39 = vld [vmem:[%s19529_s3 + $0x7c4] ss:$8 sps:$4 sm:$0xff]  }
 0x1b1   : > { %4557 = vmatpush2.bf16.msra.mxu1 %v13948_v31  ;;  %v2671_v28 = vsel %vm2590_vm1, %v2669_v11, %v2670_v12  ;;  %v3285_v31 = vld [vmem:[#allocation2 + $0x108] sm:$0xff]  ;;  %v3921_v11 = vld [vmem:[#allocation2 + $0x58] sm:$0x1]  ;;  %v13869_v50 = vld [vmem:[%s19529_s3 + $0x7b4] ss:$8 sps:$4 sm:$0xff]  }
 0x1b2   : > { %3236 = vmatmul.mubr.bf16.gmra.mxu0 %v2725_v41  ;;  %4558 = vmatprep.subr.bf16.mxu1 %v13956_v32  ;;  %v13980_v32 = vld [vmem:[%s19529_s3 + $0xa74] ss:$8 sps:$4 sm:$0xff]   ;;  %v4007_v41 = vsel %vm1320_vm0, %v4005_v16, %v4006_v17  ;;  %v3926_v12 = vld [vmem:[#allocation2 + $0x168] sm:$0xfe]  ;;  %v3938_v16 = vld [vmem:[#allocation2 + $0x88] sm:$0x1] }
 0x1b3   : > { %3245 = vmatprep.mubr.bf16.mxu0 %v2730_v42  ;;  %3793 = vmatpush1.bf16.msra.mxu0 %v13807_v29  ;;  %v2683_v29 = vsel %vm2590_vm1, %v2681_v13, %v2682_v14  ;;  %v3922_v42 = vld [vmem:[#allocation2 + $0x258] sm:$0x1]  ;;  %v3930_v13 = vld [vmem:[#allocation2 + $0x180] sm:$0x1]  ;;  %v4066_v24 = vrot.slane %v3921_v11, 1 }
 0x1b4   : > { %3794 = vmatprep.subr.bf16.mxu0 %v13815_v35  ;;  %v3897_v35 = vld [vmem:[#allocation2 + $0x188] sm:$0x1]  ;;  %v13990_v14 = vld [vmem:[%s19529_s3 + $0xa50] ss:$8 sps:$4 sm:$0xff]   ;;  %v14028_v6 = vld [vmem:[%s19529_s3 + $0xaf4] ss:$8 sps:$4 sm:$0xff]  }
 0x1b5   : > { %4559 = vmatpush2.bf16.msra.mxu1 %v13954_v43  ;;  %v2733_v43 = vpack.c.bf16 %v2683_v29, %v2671_v28  ;;  %v4030_v49 = vrot.slane %v3897_v35, 1  ;;  %v4093_v28 = vrot.slane %v3938_v16, 1  ;;  %v13857_v29 = vld [vmem:[%s19529_s3 + $0x7d4] ss:$8 sps:$4 sm:$0xff]   ;;  %v14002_v40 = vld [vmem:[%s19529_s3 + $0xa30] ss:$8 sps:$4 sm:$0xff]  }
 0x1b6   : > { %4560 = vmatprep.subr.bf16.mxu1 %v13962_v45  ;;  %v4133_v45 = vpack.c.bf16 %v4019_v33, %v4007_v41  ;;  %v3929_v41 = vld [vmem:[#allocation2 + $0x210] sm:$0x1]  ;;  %v3933_v33 = vld [vmem:[#allocation2 + $0xa8] sm:$0xfe]  ;;  %v4701_v16 = vld [vmem:[#allocation2 + $0xc0] sm:$0x3] }
 0x1b7   : > { %3795 = vmatpush1.bf16.msra.mxu0 %v13813_v44  ;;  %v3317_v44 = vpack.c.bf16 %v15834_v1, %v3285_v31  ;;  %v4068_v1 = vrot.slane %v3918_v8, 1  ;;  %v3925_v31 = vld [vmem:[#allocation2 + $0x1b8] sm:$0xfe]  ;;  %v14010_v8 = vld [vmem:[%s19529_s3 + $0xa24] ss:$8 sps:$4 sm:$0xff]  }
 0x1b8   : > { %3796 = vmatprep.subr.bf16.mxu0 %v13821_v46  ;;  %v4029_v46 = vrot.slane %v3893_v34, 1  ;;  %v3937_v34 = vld [vmem:[#allocation2 + $0x240] sm:$0x1] }
 0x1b9   : > { %4561 = vmatpush2.bf16.msra.mxu1 %v13960_v55  ;;  %v4069_v55 = vrot.slane %v3922_v42, 1  ;;  %v14008_v51 = vld [vmem:[%s19529_s3 + $0xa20] ss:$8 sps:$4 sm:$0xff]  }
 0x1ba   : > { %3246 = vmatmul.mubr.bf16.gmra.mxu0 %v2729_v4  ;;  %4562 = vmatprep.subr.bf16.mxu1 %v13968_v57  ;;  %v13845_v57 = vld [vmem:[%s19529_s3 + $0x7f4] ss:$8 sps:$4 sm:$0xff]   ;;  %v4031_v63 = vsel %vm1320_vm0, %v4029_v46, %v4030_v49  ;;  %v3909_v4 = vld [vmem:[#allocation2] sm:$0xfe]  ;;  %v4089_v46 = vrot.slane %v3933_v33, 1 }
 0x1bb   : > { %3255 = vmatprep.mubr.bf16.mxu0 %v2734_v5  ;;  %3797 = vmatpush1.bf16.msra.mxu0 %v13819_v56  ;;  %v13837_v56 = vld [vmem:[%s19529_s3 + $0x700] ss:$8 sps:$4 sm:$0xff]   ;;  %v4137_v17 = vpack.c.bf16 %v4043_v0, %v4031_v63  ;;  %v4053_v18 = vrot.slane %v3909_v4, 1  ;;  %v13881_v0 = vld [vmem:[%s19529_s3 + $0x794] ss:$8 sps:$4 sm:$0xff]  }
 0x1bc   : > { %3798 = vmatprep.subr.bf16.mxu0 %v13827_v10  ;;  %v3913_v5 = vld [vmem:[#allocation2 + $0x1e8] sm:$0x1]  ;;  %v4070_v10 = vsel %vm1320_vm0, %v4068_v1, %v4069_v55  ;;  %v13867_v55 = vld [vmem:[%s19529_s3 + $0x7b0] ss:$8 sps:$4 sm:$0xff]   ;;  %v13899_v33 = vld [vmem:[%s19529_s3 + $0x964] ss:$8 sps:$4 sm:$0xff]  }
 0x1bd   : > { %4563 = vmatpush2.bf16.msra.mxu1 %v13966_v15  ;;  %v3934_v15 = vld [vmem:[#allocation2 + $0x60] sm:$0xfe]  ;;  %v4142_v21 = vpack.c.bf16 %v4070_v10, %v4058_v9  ;;  %v4054_v22 = vrot.slane %v3913_v5, 1  ;;  %v14026_v10 = vld [vmem:[%s19529_s3 + $0xaf0] ss:$8 sps:$4 sm:$0xff]  }
 0x1be   : > { %4564 = vmatprep.subr.bf16.mxu1 %v13974_v20  ;;  %v13998_v20 = vld [vmem:[%s19529_s3 + $0xa44] ss:$8 sps:$4 sm:$0xff]   ;;  %v13861_v49 = vld [vmem:[%s19529_s3 + $0x7c0] ss:$8 sps:$4 sm:$0xff]  }
 0x1bf   : > { %3799 = vmatpush1.bf16.msra.mxu0 %v13825_v25  ;;  %v4080_v25 = vrot.slane %v3926_v12, 1  ;;  %v4055_v35 = vsel %vm1320_vm0, %v4053_v18, %v4054_v22  ;;  %v13873_v63 = vld [vmem:[%s19529_s3 + $0x7a0] ss:$8 sps:$4 sm:$0xff]   ;;  %v13887_v9 = vld [vmem:[%s19529_s3 + $0x784] ss:$8 sps:$4 sm:$0xff]   ;;  %v3288_v22 = vld [vmem:[#allocation2 + $0x10] sm:$0xff] }
 0x1c0   : > { %3800 = vmatprep.subr.bf16.mxu0 %v13833_v26  ;;  %v4081_v26 = vrot.slane %v3930_v13, 1  ;;  %v14020_v4 = vld [vmem:[%s19529_s3 + $0xa00] ss:$8 sps:$4 sm:$0xff]   ;;  %v13893_v13 = vld [vmem:[%s19529_s3 + $0x974] ss:$8 sps:$4 sm:$0xff]  }
 0x1c1   : > { %4565 = vmatpush2.bf16.msra.mxu1 %v13972_v27  ;;  %v4092_v27 = vrot.slane %v3934_v15, 1  ;;  %v13885_v11 = vld [vmem:[%s19529_s3 + $0x780] ss:$8 sps:$4 sm:$0xff]  }
 0x1c2   : > { %3256 = vmatmul.mubr.bf16.gmra.mxu0 %v2733_v43  ;;  %5353 = vmatprep.subr.bf16.mxu1 %v13980_v32  ;;  %v14004_v32 = vld [vmem:[%s19529_s3 + $0xa34] ss:$8 sps:$4 sm:$0xff]   ;;  %v4082_v38 = vsel %vm1320_vm0, %v4080_v25, %v4081_v26  ;;  %v4077_v43 = vrot.slane %v3925_v31, 1  ;;  %v4697_v15 = vld [vmem:[#allocation2 + $0x148] sm:$0xfc] }
 0x1c3   : > { %3801 = vmatpush1.bf16.msra.mxu0 %v13831_v30  ;;  %3820 = vmatprep.mubr.bf16.mxu0 %v3317_v44  ;;  %v13996_v30 = vld [vmem:[%s19529_s3 + $0xa40] ss:$8 sps:$4 sm:$0xff]   ;;  %v4094_v2 = vsel %vm1320_vm0, %v4092_v27, %v4093_v28  ;;  %v3293_v26 = vld [vmem:[#allocation2 + $0x238] sm:$0xff] }
 0x1c4   : > { %3802 = vmatprep.subr.bf16.mxu0 %v13839_v36  ;;  %4567 = vmatmul.mubr.bf16.vlgmr.msra.gmra.mxu1 %v4133_v45  ;;  %v4067_v36 = vsel %vm1320_vm0, %v4065_v23, %v4066_v24  ;;  %v4146_v44 = vpack.c.bf16 %v4094_v2, %v4082_v38  ;;  %v4078_v45 = vrot.slane %v3929_v41, 1  ;;  %v4709_v18 = vld [vmem:[#allocation2 + $0x1a0] sm:$0x3]  ;;  %v3297_v27 = vld [vmem:[#allocation2 + $0x198] sm:$0xff]  ;;  %v14046_v2 = vld [vmem:[%s19529_s3 + $0xac4] ss:$8 sps:$4 sm:$0xff]  }
 0x1c5   : > { %5354 = vmatpush1.bf16.msra.mxu1 %v13978_v47  ;;  %4576 = vmatprep.mubr.bf16.mxu1 %v4138_v48  ;;  %v4141_v42 = vpack.c.bf16 %v4067_v36, %v4055_v35  ;;  %v4090_v47 = vrot.slane %v3937_v34, 1  ;;  %v16193_v48 = vpop.f32.mrf.mxu1  ;;  %v14032_v23 = vld [vmem:[%s19529_s3 + $0xae0] ss:$8 sps:$4 sm:$0xff]   ;;  %v4840_v24 = vrot.slane %v4709_v18, 2  ;;  %v14040_v28 = vld [vmem:[%s19529_s3 + $0xad4] ss:$8 sps:$4 sm:$0xff]   ;;  %v3321_v35 = vpack.c.bf16 %v3297_v27, %v3293_v26 }
 0x1c6   : > { %5355 = vmatprep.subr.bf16.mxu1 %v13986_v52  ;;  %v14016_v52 = vld [vmem:[%s19529_s3 + $0xa14] ss:$8 sps:$4 sm:$0xff]   ;;  %v4079_v53 = vsel %vm1320_vm0, %v4077_v43, %v4078_v45  ;;  %v13891_v31 = vld [vmem:[%s19529_s3 + $0x970] ss:$8 sps:$4 sm:$0xff]   ;;  %v3880_v18 = vld [vmem:[#allocation2 + $0x108] sm:$0xfe] }
 0x1c7   : > { %3803 = vmatpush1.bf16.msra.mxu0 %v13837_v56  ;;  %v4091_v54 = vsel %vm1320_vm0, %v4089_v46, %v4090_v47  ;;  %v16209_v1 = vpop.f32.mrf.mxu1  ;;  %v13875_v56 = vld [vmem:[%s19529_s3 + $0x7a4] ss:$8 sps:$4 sm:$0xff]   ;;  %v14038_v36 = vld [vmem:[%s19529_s3 + $0xad0] ss:$8 sps:$4 sm:$0xff]   ;;  %v14052_v45 = vld [vmem:[%s19529_s3 + $0xab4] ss:$8 sps:$4 sm:$0xff]  }
 0x1c8   : > { %3804 = vmatprep.subr.bf16.mxu0 %v13845_v57  ;;  %v14014_v57 = vld [vmem:[%s19529_s3 + $0xa10] ss:$8 sps:$4 sm:$0xff]  }
 0x1c9   : > { %5356 = vmatpush1.bf16.msra.mxu1 %v13984_v58  ;;  %v4145_v58 = vpack.c.bf16 %v4091_v54, %v4079_v53  ;;  %v3305_v43 = vld [vmem:[#allocation2 + $0x1f8] sm:$0xff] }
 0x1ca   : > { %5357 = vmatprep.subr.bf16.mxu1 %v13992_v59  ;;  %v16220_v59 = vpop.f32.mrf.mxu1  ;;  %v14050_v53 = vld [vmem:[%s19529_s3 + $0xab0] ss:$8 sps:$4 sm:$0xff]  }
 0x1cb   : > { %3805 = vmatpush2.bf16.msra.mxu0 %v13843_v62  ;;  %v14022_v62 = vld [vmem:[%s19529_s3 + $0xa04] ss:$8 sps:$4 sm:$0xff]  }
 0x1cc   : > { %3806 = vmatprep.subr.bf16.mxu0 %v13851_v7  ;;  %4577 = vmatmul.mubr.bf16.gmra.mxu1 %v4137_v17  ;;  %v16234_v5 = vpop.f32.mrf.mxu1  ;;  %v13879_v7 = vld [vmem:[%s19529_s3 + $0x790] ss:$8 sps:$4 sm:$0xff]  }
 0x1cd   : > { %5358 = vmatpush1.bf16.msra.mxu1 %v13990_v14  ;;  %4586 = vmatprep.mubr.bf16.mxu1 %v4142_v21  ;;  %v14034_v14 = vld [vmem:[%s19529_s3 + $0xae4] ss:$8 sps:$4 sm:$0xff]   ;;  %v4705_v17 = vld [vmem:[#allocation2 + $0x30] sm:$0xfc] }
 0x1ce   : > { %5359 = vmatprep.subr.bf16.mxu1 %v13998_v20  ;;  %v16251_v12 = vpop.f32.mrf.mxu1  ;;  %v4828_v20 = vrot.slane %v4701_v16, 2  ;;  %v4839_v21 = vrot.slane %v4705_v17, 2 }
 0x1cf   : > { %3807 = vmatpush2.bf16.msra.mxu0 %v13849_v19  ;;  %v4827_v19 = vrot.slane %v4697_v15, 2  ;;  %v4704_v15 = vld [vmem:[#allocation2 + $0x80] sm:$0xfc] }
 0x1d0   : > { %3808 = vmatprep.subr.bf16.mxu0 %v13857_v29  ;;  %v16262_v25 = vpop.f32.mrf.mxu1 }
 0x1d1   : > { %5360 = vmatpush1.bf16.msra.mxu1 %v13996_v30  ;;  %v4829_v29 = vsel %vm2590_vm1, %v4827_v19, %v4828_v20  ;;  %v3284_v30 = vld [vmem:[#allocation2 + $0x158] sm:$0xff]  ;;  %v3884_v19 = vld [vmem:[#allocation2 + $0x200] sm:$0x1] }
 0x1d2   : > { %5361 = vmatprep.subr.bf16.mxu1 %v14004_v32  ;;  %v4841_v32 = vsel %vm2590_vm1, %v4839_v21, %v4840_v24  ;;  %v3316_v41 = vpack.c.bf16 %v3288_v22, %v3284_v30  ;;  %v16278_v38 = vpop.f32.mrf.mxu1  ;;  %v4708_v20 = vld [vmem:[#allocation2 + $0x1d8] sm:$0x3]  ;;  %v4713_v21 = vld [vmem:[#allocation2 + $0x48] sm:$0xfc]  ;;  %v4717_v22 = vld [vmem:[#allocation2 + $0x250] sm:$0x3] }
 0x1d3   : > { %3809 = vmatpush2.bf16.msra.mxu0 %v13855_v3  ;;  %v4953_v34 = vpack.c.bf16 %v4841_v32, %v4829_v29  ;;  %v13897_v3 = vld [vmem:[%s19529_s3 + $0x960] ss:$8 sps:$4 sm:$0xff]  }
 0x1d4   : > { %3810 = vmatprep.subr.bf16.mxu0 %v13863_v39  ;;  %4587 = vmatmul.mubr.bf16.gmra.mxu1 %v4141_v42  ;;  %v3292_v39 = vld [vmem:[#allocation2 + $0x68] sm:$0xff]  ;;  %v3301_v42 = vld [vmem:[#allocation2 + $0x270] sm:$0xff]  ;;  %v16295_v46 = vpop.f32.mrf.mxu1  ;;  %v4725_v24 = vld [vmem:[#allocation2 + $0x1e0] sm:$0x3] }
 0x1d5   : > { %5362 = vmatpush1.bf16.msra.mxu1 %v14002_v40  ;;  %4596 = vmatprep.mubr.bf16.mxu1 %v4146_v44  ;;  %v3296_v40 = vld [vmem:[#allocation2 + $0xe0] sm:$0xff] }
 0x1d6   : > { %5363 = vmatprep.subr.bf16.mxu1 %v14010_v8  ;;  %v13905_v8 = vld [vmem:[%s19529_s3 + $0x954] ss:$8 sps:$4 sm:$0xff]   ;;  %v14044_v44 = vld [vmem:[%s19529_s3 + $0xac0] ss:$8 sps:$4 sm:$0xff]   ;;  %v16308_v54 = vpop.f32.mrf.mxu1 }
 0x1d7   : > { %3811 = vmatpush2.bf16.msra.mxu0 %v13861_v49  ;;  %v13903_v49 = vld [vmem:[%s19529_s3 + $0x950] ss:$8 sps:$4 sm:$0xff]  }
 0x1d8   : > { %3812 = vmatprep.subr.bf16.mxu0 %v13869_v50  ;;  %v3320_v50 = vpack.c.bf16 %v3296_v40, %v3292_v39  ;;  %v16330_v16 = vpop.f32.mrf.mxu1  ;;  %v4852_v39 = vrot.slane %v4717_v22, 2  ;;  %v14074_v22 = vld [vmem:[%s19529_s3 + $0xc70] ss:$8 sps:$4 sm:$0xff]  }
 0x1d9   : > { %5364 = vmatpush1.bf16.msra.mxu1 %v14008_v51  ;;  %v13911_v51 = vld [vmem:[%s19529_s3 + $0x944] ss:$8 sps:$4 sm:$0xff]  }
 0x1da   : > { %5365 = vmatprep.subr.bf16.mxu1 %v14016_v52  ;;  %v3325_v52 = vpack.c.bf16 %v3305_v43, %v3301_v42  ;;  %v13921_v42 = vld [vmem:[%s19529_s3 + $0x920] ss:$8 sps:$4 sm:$0xff]   ;;  %v3308_v43 = vld [vmem:[#allocation2 + $0xd0] sm:$0xff] }
 0x1db   : > { %3813 = vmatpush2.bf16.msra.mxu0 %v13867_v55 }
 0x1dc   : > { %3814 = vmatprep.subr.bf16.mxu0 %v13875_v56  ;;  %4597 = vmatmul.mubr.bf16.gmra.mxu1 %v4145_v58  ;;  %v14058_v56 = vld [vmem:[%s19529_s3 + $0xaa4] ss:$8 sps:$4 sm:$0xff]   ;;  %v3300_v58 = vld [vmem:[#allocation2 + $0x90] sm:$0xff] }
 0x1dd   : > { %5366 = vmatpush1.bf16.msra.mxu1 %v14014_v57  ;;  %5385 = vmatprep.mubr.bf16.mxu1 %v4953_v34  ;;  %v13909_v57 = vld [vmem:[%s19529_s3 + $0x940] ss:$8 sps:$4 sm:$0xff]   ;;  %v4837_v34 = vrot.slane %v4708_v20, 2 }
 0x1de   : > { %5367 = vmatprep.subr.bf16.mxu1 %v14022_v62  ;;  %v3304_v62 = vld [vmem:[#allocation2 + $0xa0] sm:$0xff] }
 0x1df   : > { %3815 = vmatpush2.bf16.msra.mxu0 %v13873_v63  ;;  %v3309_v63 = vld [vmem:[#allocation2 + $0x278] sm:$0xff]  ;;  %v3324_v26 = vpack.c.bf16 %v3304_v62, %v3300_v58  ;;  %v4712_v62 = vld [vmem:[#allocation2 + $0x190] sm:$0xfc] }
 0x1e0   : > { %3816 = vmatprep.subr.bf16.mxu0 %v13881_v0  ;;  %v3313_v0 = vld [vmem:[#allocation2 + $0x208] sm:$0xff] }
 0x1e1   : > { %5368 = vmatpush1.bf16.msra.mxu1 %v14020_v4  ;;  %v3888_v4 = vld [vmem:[#allocation2 + $0x160] sm:$0xfe]  ;;  %v3329_v27 = vpack.c.bf16 %v3313_v0, %v3309_v63  ;;  %v4716_v63 = vld [vmem:[#allocation2 + $0x188] sm:$0x3]  ;;  %v4720_v0 = vld [vmem:[#allocation2 + $0xf8] sm:$0xfc] }
 0x1e2   : > { %5369 = vmatprep.subr.bf16.mxu1 %v14028_v6  ;;  %v3892_v6 = vld [vmem:[#allocation2 + $0x218] sm:$0x1]  ;;  %v4026_v29 = vrot.slane %v3888_v4, 1 }
 0x1e3   : > { %3817 = vmatpush2.bf16.msra.mxu0 %v13879_v7  ;;  %v13917_v7 = vld [vmem:[%s19529_s3 + $0x934] ss:$8 sps:$4 sm:$0xff]   ;;  %v4027_v30 = vrot.slane %v3892_v6, 1 }
 0x1e4   : > { %3818 = vmatprep.subr.bf16.mxu0 %v13887_v9  ;;  %v14056_v9 = vld [vmem:[%s19529_s3 + $0xaa0] ss:$8 sps:$4 sm:$0xff]  }
 0x1e5   : > { %5370 = vmatpush2.bf16.msra.mxu1 %v14026_v10  ;;  %v14064_v10 = vld [vmem:[%s19529_s3 + $0xa94] ss:$8 sps:$4 sm:$0xff]  }
 0x1e6   : > { %5371 = vmatprep.subr.bf16.mxu1 %v14034_v14  ;;  %v4700_v14 = vld [vmem:[#allocation2 + $0x220] sm:$0x3] }
 0x1e7   : > { %3819 = vmatpush2.bf16.msra.mxu0 %v13885_v11  ;;  %v16297_v47 = vpop.f32.mrf.mxu0  ;;  %v13915_v11 = vld [vmem:[%s19529_s3 + $0x930] ss:$8 sps:$4 sm:$0xff]  }
 0x1e8   : > { %4607 = vmatprep.subr.bf16.mxu0 %v13893_v13  ;;  %v4696_v13 = vld [vmem:[#allocation2 + $0xd8] sm:$0xfc] }
 0x1e9   : > { %5372 = vmatpush2.bf16.msra.mxu1 %v14032_v23  ;;  %v16310_v55 = vpop.f32.mrf.mxu0  ;;  %v4721_v23 = vld [vmem:[#allocation2 + $0x98] sm:$0xfc]  ;;  %v4824_v32 = vrot.slane %v4696_v13, 2  ;;  %v4733_v13 = vld [vmem:[#allocation2 + $0x38] sm:$0x3] }
 0x1ea   : > { %3821 = vmatmul.mubr.bf16.vlgmr.msra.gmra.mxu0 %v3316_v41  ;;  %5373 = vmatprep.subr.bf16.mxu1 %v14040_v28  ;;  %v13923_v28 = vld [vmem:[%s19529_s3 + $0x924] ss:$8 sps:$4 sm:$0xff]   ;;  %v4825_v41 = vrot.slane %v4700_v14, 2  ;;  %v4863_v40 = vrot.slane %v4721_v23, 2 }
 0x1eb   : > { %3830 = vmatprep.mubr.bf16.mxu0 %v3321_v35  ;;  %4608 = vmatpush1.bf16.msra.mxu0 %v13891_v31  ;;  %v16332_v17 = vpop.f32.mrf.mxu0  ;;  %v14062_v31 = vld [vmem:[%s19529_s3 + $0xa90] ss:$8 sps:$4 sm:$0xff]   ;;  %v16340_v35 = vpop.f32.mrf.mxu1 }
 0x1ec   : > { %4609 = vmatprep.subr.bf16.mxu0 %v13899_v33  ;;  %v4836_v33 = vrot.slane %v4704_v15, 2  ;;  %v4737_v15 = vld [vmem:[#allocation2 + $0x1f0] sm:$0xfc] }
 0x1ed   : > { %5374 = vmatpush2.bf16.msra.mxu1 %v14038_v36  ;;  %v16342_v36 = vpop.f32.mrf.mxu0  ;;  %v16365_v4 = vpop.f32.mrf.mxu1 }
 0x1ee   : > { %5375 = vmatprep.subr.bf16.mxu1 %v14046_v2  ;;  %v14070_v2 = vld [vmem:[%s19529_s3 + $0xa84] ss:$8 sps:$4 sm:$0xff]   ;;  %v4838_v58 = vsel %vm2590_vm1, %v4836_v33, %v4837_v34  ;;  %v4876_v33 = vrot.slane %v4733_v13, 2  ;;  %v4887_v34 = vrot.slane %v4737_v15, 2 }
 0x1ef   : > { %4610 = vmatpush1.bf16.msra.mxu0 %v13897_v3  ;;  %v4851_v3 = vrot.slane %v4713_v21, 2  ;;  %v16367_v6 = vpop.f32.mrf.mxu0  ;;  %v13935_v21 = vld [vmem:[%s19529_s3 + $0x904] ss:$8 sps:$4 sm:$0xff]  }
 0x1f0   : > { %4611 = vmatprep.subr.bf16.mxu0 %v13905_v8  ;;  %v4864_v8 = vrot.slane %v4725_v24, 2  ;;  %v4848_v24 = vrot.slane %v4712_v62, 2  ;;  %v4749_v62 = vld [vmem:[#allocation2 + $0x180] sm:$0x3] }
 0x1f1   : > { %5376 = vmatpush2.bf16.msra.mxu1 %v14044_v44  ;;  %v3312_v44 = vld [vmem:[#allocation2 + $0x138] sm:$0xff] }
 0x1f2   : > { %3831 = vmatmul.mubr.bf16.gmra.mxu0 %v3320_v50  ;;  %5377 = vmatprep.subr.bf16.mxu1 %v14052_v45  ;;  %v4014_v45 = vrot.slane %v3880_v18, 1  ;;  %v13929_v50 = vld [vmem:[%s19529_s3 + $0x914] ss:$8 sps:$4 sm:$0xff]   ;;  %v4741_v18 = vld [vmem:[#allocation2 + $0x258] sm:$0x3] }
 0x1f3   : > { %3840 = vmatprep.mubr.bf16.mxu0 %v3325_v52  ;;  %4612 = vmatpush1.bf16.msra.mxu0 %v13903_v49  ;;  %v4015_v49 = vrot.slane %v3884_v19, 1  ;;  %v14076_v52 = vld [vmem:[%s19529_s3 + $0xc74] ss:$8 sps:$4 sm:$0xff]   ;;  %v3328_v19 = vpack.c.bf16 %v3312_v44, %v3308_v43 }
 0x1f4   : > { %4613 = vmatprep.subr.bf16.mxu0 %v13911_v51  ;;  %v14068_v51 = vld [vmem:[%s19529_s3 + $0xa80] ss:$8 sps:$4 sm:$0xff]  }
 0x1f5   : > { %5378 = vmatpush2.bf16.msra.mxu1 %v14050_v53  ;;  %v13927_v53 = vld [vmem:[%s19529_s3 + $0x910] ss:$8 sps:$4 sm:$0xff]   ;;  %v4016_v14 = vsel %vm1320_vm0, %v4014_v45, %v4015_v49  ;;  %v4728_v45 = vld [vmem:[#allocation2] sm:$0xfc]  ;;  %v4732_v49 = vld [vmem:[#allocation2 + $0x1e8] sm:$0x3] }
 0x1f6   : > { %5379 = vmatprep.subr.bf16.mxu1 %v14058_v56  ;;  %v4028_v56 = vsel %vm1320_vm0, %v4026_v29, %v4027_v30  ;;  %v4860_v29 = vrot.slane %v4720_v0, 2  ;;  %v4757_v0 = vld [vmem:[#allocation2 + $0x88] sm:$0x3] }
 0x1f7   : > { %4614 = vmatpush1.bf16.msra.mxu0 %v13909_v57  ;;  %v4826_v57 = vsel %vm2590_vm1, %v4824_v32, %v4825_v41  ;;  %v4136_v20 = vpack.c.bf16 %v4028_v56, %v4016_v14  ;;  %v16383_v32 = vpop.f32.mrf.mxu0  ;;  %v4873_v14 = vrot.slane %v4732_v49, 2  ;;  %v13959_v49 = vld [vmem:[%s19529_s3 + $0x9c4] ss:$8 sps:$4 sm:$0xff]  }
 0x1f8   : > { %4615 = vmatprep.subr.bf16.mxu0 %v13917_v7  ;;  %v4853_v7 = vsel %vm2590_vm1, %v4851_v3, %v4852_v39  ;;  %v4952_v23 = vpack.c.bf16 %v4838_v58, %v4826_v57  ;;  %v13933_v3 = vld [vmem:[%s19529_s3 + $0x900] ss:$8 sps:$4 sm:$0xff]   ;;  %v13941_v39 = vld [vmem:[%s19529_s3 + $0x9f4] ss:$8 sps:$4 sm:$0xff]   ;;  %v4740_v57 = vld [vmem:[#allocation2 + $0x58] sm:$0x3] }
 0x1f9   : > { %5380 = vmatpush2.bf16.msra.mxu1 %v14056_v9  ;;  %v4865_v9 = vsel %vm2590_vm1, %v4863_v40, %v4864_v8  ;;  %v14080_v40 = vld [vmem:[%s19529_s3 + $0xc60] ss:$8 sps:$4 sm:$0xff]   ;;  %v14088_v8 = vld [vmem:[%s19529_s3 + $0xc54] ss:$8 sps:$4 sm:$0xff]  }
 0x1fa   : > { %3841 = vmatmul.mubr.bf16.gmra.mxu0 %v3324_v26  ;;  %5381 = vmatprep.subr.bf16.mxu1 %v14064_v10  ;;  %v4724_v10 = vld [vmem:[#allocation2 + $0x1d0] sm:$0x3]  ;;  %v14082_v26 = vld [vmem:[%s19529_s3 + $0xc64] ss:$8 sps:$4 sm:$0xff]  }
 0x1fb   : > { %3850 = vmatprep.mubr.bf16.mxu0 %v3329_v27  ;;  %4616 = vmatpush1.bf16.msra.mxu0 %v13915_v11  ;;  %v4729_v11 = vld [vmem:[#allocation2 + $0x1b0] sm:$0xfc]  ;;  %v4957_v27 = vpack.c.bf16 %v4865_v9, %v4853_v7  ;;  %v4861_v30 = vrot.slane %v4724_v10, 2  ;;  %v4745_v58 = vld [vmem:[#allocation2 + $0x168] sm:$0xfc]  ;;  %v4872_v10 = vrot.slane %v4728_v45, 2 }
 0x1fc   : > { %4617 = vmatprep.subr.bf16.mxu0 %v13923_v28  ;;  %v4849_v28 = vrot.slane %v4716_v63, 2  ;;  %v4875_v41 = vrot.slane %v4729_v11, 2  ;;  %v4753_v63 = vld [vmem:[#allocation2 + $0x60] sm:$0xfc]  ;;  %v14086_v11 = vld [vmem:[%s19529_s3 + $0xc50] ss:$8 sps:$4 sm:$0xff]  }
 0x1fd   : > { %5382 = vmatpush2.bf16.msra.mxu1 %v14062_v31  ;;  %v16381_v31 = vpop.f32.mrf.mxu1  ;;  %v4862_v44 = vsel %vm2590_vm1, %v4860_v29, %v4861_v30  ;;  %v13947_v7 = vld [vmem:[%s19529_s3 + $0x9e4] ss:$8 sps:$4 sm:$0xff]   ;;  %v13953_v29 = vld [vmem:[%s19529_s3 + $0x9d4] ss:$8 sps:$4 sm:$0xff]   ;;  %v14092_v30 = vld [vmem:[%s19529_s3 + $0xc40] ss:$8 sps:$4 sm:$0xff]  }
 0x1fe   : > { %5383 = vmatprep.subr.bf16.mxu1 %v14070_v2  ;;  %v4888_v2 = vrot.slane %v4741_v18, 2  ;;  %v4850_v43 = vsel %vm2590_vm1, %v4848_v24, %v4849_v28  ;;  %v4885_v18 = vrot.slane %v4740_v57, 2  ;;  %v4911_v24 = vrot.slane %v4753_v63, 2  ;;  %v14106_v57 = vld [vmem:[%s19529_s3 + $0xc24] ss:$8 sps:$4 sm:$0xff]  }
 0x1ff   : > { %4618 = vmatpush1.bf16.msra.mxu0 %v13921_v42  ;;  %v13939_v42 = vld [vmem:[%s19529_s3 + $0x9f0] ss:$8 sps:$4 sm:$0xff]   ;;  %v4956_v9 = vpack.c.bf16 %v4862_v44, %v4850_v43  ;;  %v4756_v43 = vld [vmem:[#allocation2 + $0x240] sm:$0x3] }
 0x200   : > { %4619 = vmatprep.subr.bf16.mxu0 %v13929_v50  ;;  %v4736_v50 = vld [vmem:[#allocation2 + $0x78] sm:$0xfc]  ;;  %v4889_v56 = vsel %vm2590_vm1, %v4887_v34, %v4888_v2 }
 0x201   : > { %5384 = vmatpush2.bf16.msra.mxu1 %v14068_v51  ;;  %v16402_v51 = vpop.f32.mrf.mxu1  ;;  %v4884_v15 = vrot.slane %v4736_v50, 2  ;;  %v4744_v2 = vld [vmem:[#allocation2 + $0x1b8] sm:$0xfc] }
 0x202   : > { %3851 = vmatmul.mubr.bf16.gmra.mxu0 %v3328_v19  ;;  %5949 = vmatprep.subr.bf16.mxu1 %v14076_v52  ;;  %v16404_v52 = vpop.f32.mrf.mxu0  ;;  %v13951_v44 = vld [vmem:[%s19529_s3 + $0x9d0] ss:$8 sps:$4 sm:$0xff]  }
 0x203   : > { %4620 = vmatpush1.bf16.msra.mxu0 %v13927_v53  ;;  %4639 = vmatprep.mubr.bf16.mxu0 %v4136_v20  ;;  %v4877_v53 = vsel %vm2590_vm1, %v4875_v41, %v4876_v33  ;;  %v16414_v19 = vpop.f32.mrf.mxu1  ;;  %v14100_v41 = vld [vmem:[%s19529_s3 + $0xc34] ss:$8 sps:$4 sm:$0xff]   ;;  %v4874_v33 = vsel %vm2590_vm1, %v4872_v10, %v4873_v14  ;;  %v4886_v34 = vsel %vm2590_vm1, %v4884_v15, %v4885_v18  ;;  %v14098_v50 = vld [vmem:[%s19529_s3 + $0xc30] ss:$8 sps:$4 sm:$0xff]  }
 0x204   : > { %4621 = vmatprep.subr.bf16.mxu0 %v13935_v21  ;;  %5386 = vmatmul.mubr.bf16.vlgmr.msra.gmra.mxu1 %v4952_v23  ;;  %v4961_v13 = vpack.c.bf16 %v4889_v56, %v4877_v53  ;;  %v16416_v20 = vpop.f32.mrf.mxu0  ;;  %v14094_v21 = vld [vmem:[%s19529_s3 + $0xc44] ss:$8 sps:$4 sm:$0xff]   ;;  %v4900_v23 = vrot.slane %v4749_v62, 2  ;;  %v4960_v53 = vpack.c.bf16 %v4886_v34, %v4874_v33  ;;  %v4896_v56 = vrot.slane %v4744_v2, 2  ;;  %v13965_v10 = vld [vmem:[%s19529_s3 + $0x9b4] ss:$8 sps:$4 sm:$0xff]  }
 0x205   : > { %5950 = vmatpush1.bf16.msra.mxu1 %v14074_v22  ;;  %5395 = vmatprep.mubr.bf16.mxu1 %v4957_v27  ;;  %v4899_v22 = vrot.slane %v4745_v58, 2  ;;  %v13945_v27 = vld [vmem:[%s19529_s3 + $0x9e0] ss:$8 sps:$4 sm:$0xff]   ;;  %v14112_v14 = vld [vmem:[%s19529_s3 + $0xc14] ss:$8 sps:$4 sm:$0xff]  }
 0x206   : > { %5951 = vmatprep.subr.bf16.mxu1 %v14082_v26  ;;  %v4912_v26 = vrot.slane %v4757_v0, 2  ;;  %v16424_v28 = vpop.f32.mrf.mxu0  ;;  %v4909_v0 = vrot.slane %v4756_v43, 2  ;;  %v13977_v33 = vld [vmem:[%s19529_s3 + $0x994] ss:$8 sps:$4 sm:$0xff]   ;;  %v14116_v34 = vld [vmem:[%s19529_s3 + $0xc00] ss:$8 sps:$4 sm:$0xff]  }
 0x207   : > { %4622 = vmatpush1.bf16.msra.mxu0 %v13933_v3  ;;  %v16437_v3 = vpop.f32.mrf.mxu1  ;;  %v3900_v43 = vld [vmem:[#allocation2 + $0x268] sm:$0x1] }
 0x208   : > { %4623 = vmatprep.subr.bf16.mxu0 %v13941_v39  ;;  %v4901_v39 = vsel %vm2590_vm1, %v4899_v22, %v4900_v23  ;;  %v16444_v45 = vpop.f32.mrf.mxu0  ;;  %v13963_v22 = vld [vmem:[%s19529_s3 + $0x9b0] ss:$8 sps:$4 sm:$0xff]   ;;  %v13971_v23 = vld [vmem:[%s19529_s3 + $0x9a4] ss:$8 sps:$4 sm:$0xff]  }
 0x209   : > { %5952 = vmatpush1.bf16.msra.mxu1 %v14080_v40  ;;  %v4913_v40 = vsel %vm2590_vm1, %v4911_v24, %v4912_v26  ;;  %v14110_v24 = vld [vmem:[%s19529_s3 + $0xc10] ss:$8 sps:$4 sm:$0xff]  }
 0x20a   : > { %5953 = vmatprep.subr.bf16.mxu1 %v14088_v8  ;;  %v4748_v8 = vld [vmem:[#allocation2 + $0x210] sm:$0x3]  ;;  %v4965_v58 = vpack.c.bf16 %v4913_v40, %v4901_v39  ;;  %v3891_v40 = vld [vmem:[#allocation2 + $0x248] sm:$0x1] }
 0x20b   : > { %4624 = vmatpush2.bf16.msra.mxu0 %v13939_v42  ;;  %v4752_v42 = vld [vmem:[#allocation2 + $0xa8] sm:$0xfc]  ;;  %v4897_v62 = vrot.slane %v4748_v8, 2  ;;  %v3887_v39 = vld [vmem:[#allocation2 + $0x10] sm:$0xfe] }
 0x20c   : > { %4625 = vmatprep.subr.bf16.mxu0 %v13947_v7  ;;  %5396 = vmatmul.mubr.bf16.gmra.mxu1 %v4956_v9  ;;  %v4908_v63 = vrot.slane %v4752_v42, 2  ;;  %v16455_v7 = vpop.f32.mrf.mxu1  ;;  %v13957_v9 = vld [vmem:[%s19529_s3 + $0x9c0] ss:$8 sps:$4 sm:$0xff]   ;;  %v3896_v8 = vld [vmem:[#allocation2 + $0x238] sm:$0xfe] }
 0x20d   : > { %5954 = vmatpush1.bf16.msra.mxu1 %v14086_v11  ;;  %5405 = vmatprep.mubr.bf16.mxu1 %v4961_v13  ;;  %v14104_v11 = vld [vmem:[%s19529_s3 + $0xc20] ss:$8 sps:$4 sm:$0xff]   ;;  %v16466_v13 = vpop.f32.mrf.mxu0  ;;  %v4898_v15 = vsel %vm2590_vm1, %v4896_v56, %v4897_v62  ;;  %v14124_v42 = vld [vmem:[%s19529_s3 + $0xcf4] ss:$8 sps:$4 sm:$0xff]   ;;  %v13975_v56 = vld [vmem:[%s19529_s3 + $0x990] ss:$8 sps:$4 sm:$0xff]  }
 0x20e   : > { %5955 = vmatprep.subr.bf16.mxu1 %v14094_v21  ;;  %v4910_v18 = vsel %vm2590_vm1, %v4908_v63, %v4909_v0  ;;  %v16473_v21 = vpop.f32.mrf.mxu1  ;;  %v14122_v63 = vld [vmem:[%s19529_s3 + $0xcf0] ss:$8 sps:$4 sm:$0xff]   ;;  %v4023_v0 = vrot.slane %v3887_v39, 1  ;;  %v13989_v39 = vld [vmem:[%s19529_s3 + $0xb74] ss:$8 sps:$4 sm:$0xff]  }
 0x20f   : > { %4626 = vmatpush2.bf16.msra.mxu0 %v13945_v27  ;;  %v16484_v26 = vpop.f32.mrf.mxu0  ;;  %v14118_v27 = vld [vmem:[%s19529_s3 + $0xc04] ss:$8 sps:$4 sm:$0xff]  }
 0x210   : > { %4627 = vmatprep.subr.bf16.mxu0 %v13953_v29  ;;  %v4964_v29 = vpack.c.bf16 %v4910_v18, %v4898_v15 }
 0x211   : > { %5956 = vmatpush1.bf16.msra.mxu1 %v14092_v30  ;;  %v16489_v30 = vpop.f32.mrf.mxu1  ;;  %v16500_v2 = vpop.f32.mrf.mxu0 }
 0x212   : > { %5957 = vmatprep.subr.bf16.mxu1 %v14100_v41  ;;  %v13969_v41 = vld [vmem:[%s19529_s3 + $0x9a0] ss:$8 sps:$4 sm:$0xff]  }
 0x213   : > { %4628 = vmatpush2.bf16.msra.mxu0 %v13951_v44  ;;  %v3904_v44 = vld [vmem:[#allocation2 + $0x198] sm:$0xfe]  ;;  %v16513_v62 = vpop.f32.mrf.mxu0 }
 0x214   : > { %4629 = vmatprep.subr.bf16.mxu0 %v13959_v49  ;;  %5406 = vmatmul.mubr.bf16.gmra.mxu1 %v4960_v53  ;;  %v16505_v49 = vpop.f32.mrf.mxu1  ;;  %v3883_v53 = vld [vmem:[#allocation2 + $0x140] sm:$0x1]  ;;  %v4050_v15 = vrot.slane %v3904_v44, 1 }
 0x215   : > { %5958 = vmatpush1.bf16.msra.mxu1 %v14098_v50  ;;  %5415 = vmatprep.mubr.bf16.mxu1 %v4965_v58  ;;  %v3879_v50 = vld [vmem:[#allocation2 + $0x158] sm:$0xfe]  ;;  %v3908_v58 = vld [vmem:[#allocation2 + $0x228] sm:$0x1] }
 0x216   : > { %5959 = vmatprep.subr.bf16.mxu1 %v14106_v57  ;;  %v13983_v57 = vld [vmem:[%s19529_s3 + $0x984] ss:$8 sps:$4 sm:$0xff]   ;;  %v4051_v18 = vrot.slane %v3908_v58, 1 }
 0x217   : > { %4630 = vmatpush2.bf16.msra.mxu0 %v13957_v9  ;;  %v4024_v9 = vrot.slane %v3891_v40, 1  ;;  %v3899_v40 = vld [vmem:[#allocation2 + $0xb8] sm:$0x1] }
 0x218   : > { %4631 = vmatprep.subr.bf16.mxu0 %v13965_v10  ;;  %v4038_v10 = vrot.slane %v3896_v8, 1  ;;  %v3903_v8 = vld [vmem:[#allocation2 + $0xe0] sm:$0xfe]  ;;  %v4052_v61 = vsel %vm1320_vm0, %v4050_v15, %v4051_v18 }
 0x219   : > { %5960 = vmatpush1.bf16.msra.mxu1 %v14104_v11  ;;  %v16518_v11 = vpop.f32.mrf.mxu1  ;;  %v4025_v44 = vsel %vm1320_vm0, %v4023_v0, %v4024_v9  ;;  %v13987_v0 = vld [vmem:[%s19529_s3 + $0xb70] ss:$8 sps:$4 sm:$0xff]   ;;  %v13995_v18 = vld [vmem:[%s19529_s3 + $0xb64] ss:$8 sps:$4 sm:$0xff]  }
 0x21a   : > { %5961 = vmatprep.subr.bf16.mxu1 %v14112_v14  ;;  %v4039_v14 = vrot.slane %v3900_v43, 1  ;;  %v1958_v43 = vadd.f32 %v16297_v47, %v16177_v37  ;;  %v14136_v37 = vld [vmem:[%s19529_s3 + $0xcd4] ss:$8 sps:$4 sm:$0xff]   ;;  %v1960_v47 = vadd.f32 %v16310_v55, %v16193_v48  ;;  %v4047_v48 = vrot.slane %v3903_v8, 1 }
 0x21b   : > { %4632 = vmatpush2.bf16.msra.mxu0 %v13963_v22  ;;  %v14130_v22 = vld [vmem:[%s19529_s3 + $0xce4] ss:$8 sps:$4 sm:$0xff]   ;;  %v3920_v9 = vld [vmem:[#allocation2 + $0x1f8] sm:$0xfe] }
 0x21c   : > { %4633 = vmatprep.subr.bf16.mxu0 %v13971_v23  ;;  %5416 = vmatmul.mubr.bf16.gmra.mxu1 %v4964_v29  ;;  %v13981_v23 = vld [vmem:[%s19529_s3 + $0x980] ss:$8 sps:$4 sm:$0xff]   ;;  %v4040_v58 = vsel %vm1320_vm0, %v4038_v10, %v4039_v14  ;;  %v2351_v55 = vadd.f32 %v16437_v3, %v1958_v43  ;;  %v3911_v43 = vld [vmem:[#allocation2 + $0x90] sm:$0xfe] }
 0x21d   : > { %5962 = vmatpush1.bf16.msra.mxu1 %v14110_v24  ;;  %v4011_v24 = vrot.slane %v3879_v50, 1  ;;  %v3895_v29 = vld [vmem:[#allocation2 + $0x68] sm:$0xfe]  ;;  %v3907_v50 = vld [vmem:[#allocation2 + $0x1a8] sm:$0x1] }
 0x21e   : > { %5963 = vmatprep.subr.bf16.mxu1 %v14118_v27  ;;  %v4012_v27 = vrot.slane %v3883_v53, 1  ;;  %v3912_v53 = vld [vmem:[#allocation2 + $0x270] sm:$0xfe]  ;;  %v3924_v10 = vld [vmem:[#allocation2 + $0x100] sm:$0x1] }
 0x21f   : > { %4634 = vmatpush2.bf16.msra.mxu0 %v13969_v41  ;;  %v5517_v41 = vld [vmem:[#allocation2 + $0x30] sm:$0xff]  ;;  %v4075_v8 = vrot.slane %v3924_v10, 1  ;;  %v13993_v3 = vld [vmem:[%s19529_s3 + $0xb60] ss:$8 sps:$4 sm:$0xff]  }
 0x220   : > { %4635 = vmatprep.subr.bf16.mxu0 %v13977_v33  ;;  %v5521_v33 = vld [vmem:[#allocation2 + $0x48] sm:$0xff] }
 0x221   : > { %5964 = vmatpush1.bf16.msra.mxu1 %v14116_v34  ;;  %v16526_v34 = vpop.f32.mrf.mxu0  ;;  %v14140_v10 = vld [vmem:[%s19529_s3 + $0xcc0] ss:$8 sps:$4 sm:$0xff]  }
 0x222   : > { %5965 = vmatprep.subr.bf16.mxu1 %v14124_v42  ;;  %v5549_v42 = vpack.c.bf16 %v5521_v33, %v5517_v41  ;;  %v4036_v41 = vrot.slane %v3899_v40, 1  ;;  %v14134_v33 = vld [vmem:[%s19529_s3 + $0xcd0] ss:$8 sps:$4 sm:$0xff]   ;;  %v4074_v40 = vrot.slane %v3920_v9, 1  ;;  %v3923_v9 = vld [vmem:[#allocation2 + $0x260] sm:$0x1] }
 0x223   : > { %4636 = vmatpush2.bf16.msra.mxu0 %v13975_v56  ;;  %v14128_v56 = vld [vmem:[%s19529_s3 + $0xce0] ss:$8 sps:$4 sm:$0xff]   ;;  %v16550_v14 = vpop.f32.mrf.mxu0 }
 0x224   : > { %4637 = vmatprep.subr.bf16.mxu0 %v13983_v57  ;;  %v16537_v57 = vpop.f32.mrf.mxu1  ;;  %5981 = vmatprep.mubr.bf16.mxu1 %v5549_v42 }
 0x225   : > { %5966 = vmatpush2.bf16.msra.mxu1 %v14122_v63  ;;  %v4013_v63 = vsel %vm1320_vm0, %v4011_v24, %v4012_v27  ;;  %v4140_v24 = vpack.c.bf16 %v4052_v61, %v4040_v58  ;;  %v4048_v27 = vrot.slane %v3907_v50, 1  ;;  %v2353_v61 = vadd.f32 %v16455_v7, %v1960_v47  ;;  %v3915_v7 = vld [vmem:[#allocation2 + $0x1c8] sm:$0x1] }
 0x226   : > { %5967 = vmatprep.subr.bf16.mxu1 %v14130_v22  ;;  %v4135_v15 = vpack.c.bf16 %v4025_v44, %v4013_v63  ;;  %v4035_v22 = vrot.slane %v3895_v29, 1  ;;  %v4062_v44 = vrot.slane %v3912_v53, 1  ;;  %v4063_v29 = vrot.slane %v3916_v60, 1 }
 0x227   : > { %4638 = vmatpush2.bf16.msra.mxu0 %v13981_v23  ;;  %v1962_v23 = vadd.f32 %v16332_v17, %v16209_v1  ;;  %v14142_v1 = vld [vmem:[%s19529_s3 + $0xcc4] ss:$8 sps:$4 sm:$0xff]   ;;  %v4049_v63 = vsel %vm1320_vm0, %v4047_v48, %v4048_v27 }
 0x228   : > { %5426 = vmatprep.subr.bf16.mxu0 %v13989_v39  ;;  %v16561_v39 = vpop.f32.mrf.mxu1  ;;  %v4037_v53 = vsel %vm1320_vm0, %v4035_v22, %v4036_v41  ;;  %v4076_v22 = vsel %vm1320_vm0, %v4074_v40, %v4075_v8  ;;  %v3932_v41 = vld [vmem:[#allocation2 + $0x110] sm:$0x1]  ;;  %v1972_v8 = vadd.f32 %v16404_v52, %v16262_v25 }
 0x229   : > { %5968 = vmatpush2.bf16.msra.mxu1 %v14128_v56  ;;  %v14001_v56 = vld [vmem:[%s19529_s3 + $0xb54] ss:$8 sps:$4 sm:$0xff]   ;;  %v2355_v58 = vadd.f32 %v16473_v21, %v1962_v23  ;;  %v3936_v23 = vld [vmem:[#allocation2 + $0x208] sm:$0xfe] }
 0x22a   : > { %v2423_v42 = vpop.f32.mrf.mxu0  ;;  %4640 = vmatmul.mubr.bf16.vlgmr.msra.gmra.mxu0 %v4135_v15  ;;  %5969 = vmatprep.subr.bf16.mxu1 %v14136_v37  ;;  %v16572_v50 = vpop.f32.mrf.mxu1  ;;  %v1968_v37 = vadd.f32 %v16367_v6, %v16234_v5  ;;  %v3928_v21 = vld [vmem:[#allocation2 + $0x278] sm:$0xfe]  ;;  %v1970_v6 = vadd.f32 %v16383_v32, %v16251_v12  ;;  %v4059_v12 = vrot.slane %v3911_v43, 1  ;;  %v4060_v32 = vrot.slane %v3915_v7, 1  ;;  %v14005_v7 = vld [vmem:[%s19529_s3 + $0xb40] ss:$8 sps:$4 sm:$0xff]  }
 0x22b   : > { %v16567_v17 = vadd.f32 %v2423_v42, %v2351_v55  ;;  %4649 = vmatprep.mubr.bf16.mxu0 %v4140_v24  ;;  %5427 = vmatpush1.bf16.msra.mxu0 %v13987_v0  ;;  %v3919_v0 = vld [vmem:[#allocation2 + $0xa0] sm:$0xfe]  ;;  %v14148_v5 = vld [vmem:[%s19529_s3 + $0xcb4] ss:$8 sps:$4 sm:$0xff]   ;;  %v13999_v55 = vld [vmem:[%s19529_s3 + $0xb50] ss:$8 sps:$4 sm:$0xff]   ;;  %v4139_v42 = vpack.c.bf16 %v4049_v63, %v4037_v53 }
 0x22c   : > { %v2425_v60 = vpop.f32.mrf.mxu0  ;;  %5428 = vmatprep.subr.bf16.mxu0 %v13995_v18  ;;  %v4064_v18 = vsel %vm1320_vm0, %v4062_v44, %v4063_v29  ;;  %v3940_v24 = vld [vmem:[#allocation2 + $0x128] sm:$0x1]  ;;  %v16599_v27 = vpop.f32.mrf.mxu1  ;;  %v14007_v44 = vld [vmem:[%s19529_s3 + $0xb44] ss:$8 sps:$4 sm:$0xff]   ;;  %v4071_v29 = vrot.slane %v3919_v0, 1  ;;  %v2361_v40 = vadd.f32 %v16505_v49, %v1968_v37  ;;  %v4086_v53 = vrot.slane %v3928_v21, 1 }
 0x22d   : > { %v16581_v47 = vadd.f32 %v2425_v60, %v2353_v61  ;;  %5970 = vmatpush2.bf16.msra.mxu1 %v14134_v33  ;;  %v4072_v61 = vrot.slane %v3923_v9, 1  ;;  %v4099_v43 = vrot.slane %v3940_v24, 1  ;;  %v14154_v49 = vld [vmem:[%s19529_s3 + $0xca4] ss:$8 sps:$4 sm:$0xff]   ;;  %v2363_v25 = vadd.f32 %v16518_v11, %v1970_v6  ;;  %v3927_v37 = vld [vmem:[#allocation2 + $0xd0] sm:$0xfe] }
 0x22e   : > { %v2427_v15 = vpop.f32.mrf.mxu0  ;;  %5971 = vmatprep.subr.bf16.mxu1 %v14142_v1  ;;  %v4144_v1 = vpack.c.bf16 %v4076_v22, %v4064_v18  ;;  %v3931_v63 = vld [vmem:[#allocation2 + $0x130] sm:$0x1]  ;;  %v2374_v0 = vpop.f32.mrf.mxu1  ;;  %v2365_v11 = vadd.f32 %v16537_v57, %v1972_v8  ;;  %v1978_v18 = vadd.f32 %v16424_v28, %v16295_v46  ;;  %v3939_v24 = vld [vmem:[#allocation2 + $0x118] sm:$0x1]  ;;  %v4083_v57 = vrot.slane %v3927_v37, 1 }
 0x22f   : > { %v16594_v48 = vadd.f32 %v2427_v15, %v2355_v58  ;;  %5429 = vmatpush1.bf16.msra.mxu0 %v13993_v3  ;;  %v14146_v3 = vld [vmem:[%s19529_s3 + $0xcb0] ss:$8 sps:$4 sm:$0xff]   ;;  %v4098_v58 = vrot.slane %v3936_v23, 1  ;;  %v14013_v15 = vld [vmem:[%s19529_s3 + $0xb34] ss:$8 sps:$4 sm:$0xff]   ;;  %v4073_v21 = vsel %vm1320_vm0, %v4071_v29, %v4072_v61  ;;  %v1980_v28 = vadd.f32 %v16444_v45, %v16308_v54 }
 0x230   : > { %v16601_v33 = vpop.f32.mrf.mxu0  ;;  %5430 = vmatprep.subr.bf16.mxu0 %v14001_v56  ;;  %v4087_v56 = vrot.slane %v3932_v41, 1  ;;  %v3935_v41 = vld [vmem:[#allocation2 + $0x138] sm:$0xfe]  ;;  %v4707_v29 = vld [vmem:[#allocation2 + $0x160] sm:$0xfc]  ;;  %v16646_v8 = vpop.f32.mrf.mxu1 }
 0x231   : > { %19546 = vst [vmem:[#allocation6_spill] sm:$0xff] %v16601_v33  ;;  %5972 = vmatpush2.bf16.msra.mxu1 %v14140_v10  ;;  %v4061_v10 = vsel %vm1320_vm0, %v4059_v12, %v4060_v32  ;;  %v4100_v23 = vsel %vm1320_vm0, %v4098_v58, %v4099_v43  ;;  %v14160_v46 = vld [vmem:[%s19529_s3 + $0xc94] ss:$8 sps:$4 sm:$0xff]   ;;  %v14011_v12 = vld [vmem:[%s19529_s3 + $0xb30] ss:$8 sps:$4 sm:$0xff]   ;;  %v4095_v45 = vrot.slane %v3935_v41, 1 }
 0x232   : > { %v2433_v60 = vpop.f32.mrf.mxu0  ;;  %4650 = vmatmul.mubr.bf16.gmra.mxu0 %v4139_v42  ;;  %5973 = vmatprep.subr.bf16.mxu1 %v14148_v5  ;;  %v14152_v5 = vld [vmem:[%s19529_s3 + $0xca0] ss:$8 sps:$4 sm:$0xff]   ;;  %v4084_v42 = vrot.slane %v3931_v63, 1  ;;  %v4143_v61 = vpack.c.bf16 %v4073_v21, %v4061_v10  ;;  %v14019_v54 = vld [vmem:[%s19529_s3 + $0xb24] ss:$8 sps:$4 sm:$0xff]   ;;  %v4096_v58 = vrot.slane %v3939_v24, 1  ;;  %v2380_v10 = vpop.f32.mrf.mxu1 }
 0x233   : > { %v16616_v52 = vadd.f32 %v2433_v60, %v2361_v40  ;;  %4659 = vmatprep.mubr.bf16.mxu0 %v4144_v1  ;;  %5431 = vmatpush1.bf16.msra.mxu0 %v13999_v55  ;;  %v4088_v55 = vsel %vm1320_vm0, %v4086_v53, %v4087_v56  ;;  %v4699_v32 = vld [vmem:[#allocation2 + $0x108] sm:$0xfc]  ;;  %v4711_v40 = vld [vmem:[#allocation2 + $0x218] sm:$0x3]  ;;  %v2371_v60 = vadd.f32 %v16572_v50, %v1978_v18  ;;  %v14172_v21 = vld [vmem:[%s19529_s3 + $0xe74] ss:$8 sps:$4 sm:$0xff]  }
 0x234   : > { %v2435_v9 = vpop.f32.mrf.mxu0  ;;  %5432 = vmatprep.subr.bf16.mxu0 %v14007_v44  ;;  %v1982_v53 = vadd.f32 %v16466_v13, %v16330_v16  ;;  %v4148_v56 = vpack.c.bf16 %v4100_v23, %v4088_v55  ;;  %v14158_v43 = vld [vmem:[%s19529_s3 + $0xc90] ss:$8 sps:$4 sm:$0xff]   ;;  %v4846_v37 = vrot.slane %v4711_v40, 2  ;;  %v2373_v50 = vadd.f32 %v16599_v27, %v1980_v28  ;;  %v14017_v16 = vld [vmem:[%s19529_s3 + $0xb20] ss:$8 sps:$4 sm:$0xff]  }
 0x235   : > { %v16628_v22 = vadd.f32 %v2435_v9, %v2363_v25  ;;  %5974 = vmatpush2.bf16.msra.mxu1 %v14146_v3  ;;  %v4703_v3 = vld [vmem:[#allocation2 + $0x200] sm:$0x3]  ;;  %v14025_v13 = vld [vmem:[%s19529_s3 + $0xb14] ss:$8 sps:$4 sm:$0xff]   ;;  %v4085_v27 = vsel %vm1320_vm0, %v4083_v57, %v4084_v42  ;;  %v4097_v55 = vsel %vm1320_vm0, %v4095_v45, %v4096_v58 }
 0x236   : > { %v2437_v6 = vpop.f32.mrf.mxu0  ;;  %5975 = vmatprep.subr.bf16.mxu1 %v14154_v49  ;;  %v14166_v49 = vld [vmem:[%s19529_s3 + $0xc84] ss:$8 sps:$4 sm:$0xff]   ;;  %v14164_v9 = vld [vmem:[%s19529_s3 + $0xc80] ss:$8 sps:$4 sm:$0xff]   ;;  %v4834_v18 = vrot.slane %v4703_v3, 2  ;;  %v2375_v41 = vadd.f32 %v2374_v0, %v1982_v53  ;;  %v5520_v24 = vld [vmem:[#allocation2 + $0x190] sm:$0xff]  ;;  %v4147_v40 = vpack.c.bf16 %v4097_v55, %v4085_v27 }
 0x237   : > { %v16641_v44 = vadd.f32 %v2437_v6, %v2365_v11  ;;  %5433 = vmatpush1.bf16.msra.mxu0 %v14005_v7  ;;  %v4845_v7 = vrot.slane %v4707_v29, 2  ;;  %v4833_v11 = vrot.slane %v4699_v32, 2  ;;  %v5516_v23 = vld [vmem:[#allocation2 + $0x80] sm:$0xff]  ;;  %v5529_v42 = vld [vmem:[#allocation2 + $0x1b0] sm:$0xff]  ;;  %v2382_v32 = vpop.f32.mrf.mxu1 }
 0x238   : > { %v16648_v1 = vpop.f32.mrf.mxu0  ;;  %5434 = vmatprep.subr.bf16.mxu0 %v14013_v15  ;;  %v14029_v3 = vld [vmem:[%s19529_s3 + $0xb00] ss:$8 sps:$4 sm:$0xff]   ;;  %v14178_v53 = vld [vmem:[%s19529_s3 + $0xe64] ss:$8 sps:$4 sm:$0xff]  }
 0x239   : > { %19547 = vst [vmem:[#allocation7_spill] sm:$0xff] %v16648_v1  ;;  %5976 = vmatpush2.bf16.msra.mxu1 %v14152_v5  ;;  %v1988_v5 = vadd.f32 %v16500_v2, %v16365_v4  ;;  %v4847_v57 = vsel %vm2590_vm1, %v4845_v7, %v4846_v37  ;;  %v14023_v4 = vld [vmem:[%s19529_s3 + $0xb10] ss:$8 sps:$4 sm:$0xff]   ;;  %v14031_v2 = vld [vmem:[%s19529_s3 + $0xb04] ss:$8 sps:$4 sm:$0xff]   ;;  %v2384_v7 = vpop.f32.mrf.mxu1 }
 0x23a   : > { %v2443_v25 = vpop.f32.mrf.mxu0  ;;  %4660 = vmatmul.mubr.bf16.gmra.mxu0 %v4143_v61  ;;  %5977 = vmatprep.subr.bf16.mxu1 %v14160_v46  ;;  %v5525_v46 = vld [vmem:[#allocation2 + $0x98] sm:$0xff]  ;;  %v4835_v61 = vsel %vm2590_vm1, %v4833_v11, %v4834_v18  ;;  %v14190_v55 = vld [vmem:[%s19529_s3 + $0xe44] ss:$8 sps:$4 sm:$0xff]   ;;  %v4759_v1 = vld [vmem:[#allocation2 + $0x128] sm:$0x3] }
 0x23b   : > { %v16663_v63 = vadd.f32 %v2443_v25, %v2371_v60  ;;  %4669 = vmatprep.mubr.bf16.mxu0 %v4148_v56  ;;  %5435 = vmatpush1.bf16.msra.mxu0 %v14011_v12  ;;  %v1990_v12 = vadd.f32 %v16513_v62, %v16381_v31  ;;  %v2381_v31 = vadd.f32 %v2380_v10, %v1988_v5  ;;  %v14170_v60 = vld [vmem:[%s19529_s3 + $0xe70] ss:$8 sps:$4 sm:$0xff]  }
 0x23c   : > { %v2445_v15 = vpop.f32.mrf.mxu0  ;;  %5436 = vmatprep.subr.bf16.mxu0 %v14019_v54  ;;  %v5548_v54 = vpack.c.bf16 %v5520_v24, %v5516_v23  ;;  %v1992_v62 = vadd.f32 %v16526_v34, %v16402_v51  ;;  %v4955_v45 = vpack.c.bf16 %v4847_v57, %v4835_v61  ;;  %v5553_v56 = vpack.c.bf16 %v5529_v42, %v5525_v46  ;;  %v14037_v34 = vld [vmem:[%s19529_s3 + $0xbf4] ss:$8 sps:$4 sm:$0xff]   ;;  %v14035_v18 = vld [vmem:[%s19529_s3 + $0xbf0] ss:$8 sps:$4 sm:$0xff]   ;;  %v14041_v24 = vld [vmem:[%s19529_s3 + $0xbe0] ss:$8 sps:$4 sm:$0xff]  }
 0x23d   : > { %v16680_v6 = vadd.f32 %v2445_v15, %v2373_v50  ;;  %5978 = vmatpush2.bf16.msra.mxu1 %v14158_v43  ;;  %v2383_v43 = vadd.f32 %v2382_v32, %v1990_v12  ;;  %v5524_v25 = vld [vmem:[#allocation2 + $0xf8] sm:$0xff]  ;;  %v5533_v10 = vld [vmem:[#allocation2 + $0x1f0] sm:$0xff]  ;;  %v5537_v15 = vld [vmem:[#allocation2 + $0x168] sm:$0xff] }
 0x23e   : > { %v2447_v28 = vpop.f32.mrf.mxu0  ;;  %5979 = vmatprep.subr.bf16.mxu1 %v14166_v49  ;;  %v14176_v49 = vld [vmem:[%s19529_s3 + $0xe60] ss:$8 sps:$4 sm:$0xff]   ;;  %v14184_v50 = vld [vmem:[%s19529_s3 + $0xe54] ss:$8 sps:$4 sm:$0xff]   ;;  %v14182_v5 = vld [vmem:[%s19529_s3 + $0xe50] ss:$8 sps:$4 sm:$0xff]   ;;  %v5557_v23 = vpack.c.bf16 %v5537_v15, %v5533_v10 }
 0x23f   : > { %v16686_v0 = vadd.f32 %v2447_v28, %v2375_v41  ;;  %5437 = vmatpush1.bf16.msra.mxu0 %v14017_v16  ;;  %v2385_v16 = vadd.f32 %v2384_v7, %v1992_v62  ;;  %v14049_v46 = vld [vmem:[%s19529_s3 + $0xbd4] ss:$8 sps:$4 sm:$0xff]   ;;  %v16741_v28 = vpop.f32.mrf.mxu1  ;;  %v14188_v57 = vld [vmem:[%s19529_s3 + $0xe40] ss:$8 sps:$4 sm:$0xff]   ;;  %v14055_v61 = vld [vmem:[%s19529_s3 + $0xbc4] ss:$8 sps:$4 sm:$0xff]  }
 0x240   : > { %v16694_v29 = vpop.f32.mrf.mxu0  ;;  %5438 = vmatprep.subr.bf16.mxu0 %v14025_v13  ;;  %19549 = vst [vmem:[#allocation9_spill] sm:$0xff] %v16741_v28  ;;  %v14196_v42 = vld [vmem:[%s19529_s3 + $0xe34] ss:$8 sps:$4 sm:$0xff]   ;;  %v14067_v7 = vld [vmem:[%s19529_s3 + $0xba4] ss:$8 sps:$4 sm:$0xff]  }
 0x241   : > { %19548 = vst [vmem:[#allocation8_spill] sm:$0xff] %v16694_v29  ;;  %5980 = vmatpush2.bf16.msra.mxu1 %v14164_v9  ;;  %v5528_v9 = vld [vmem:[#allocation2] sm:$0xff]  ;;  %v5532_v12 = vld [vmem:[#allocation2 + $0x78] sm:$0xff]  ;;  %v16749_v32 = vpop.f32.mrf.mxu1 }
 0x242   : > { %v2453_v58 = vpop.f32.mrf.mxu0  ;;  %4670 = vmatmul.mubr.bf16.gmra.mxu0 %v4147_v40  ;;  %6768 = vmatprep.subr.bf16.mxu1 %v14172_v21  ;;  %v14043_v21 = vld [vmem:[%s19529_s3 + $0xbe4] ss:$8 sps:$4 sm:$0xff]   ;;  %v5552_v41 = vpack.c.bf16 %v5528_v9, %v5524_v25  ;;  %v14047_v40 = vld [vmem:[%s19529_s3 + $0xbd0] ss:$8 sps:$4 sm:$0xff]   ;;  %v14065_v15 = vld [vmem:[%s19529_s3 + $0xba0] ss:$8 sps:$4 sm:$0xff]  }
 0x243   : > { %v16708_v51 = vadd.f32 %v2453_v58, %v2381_v31  ;;  %5439 = vmatpush1.bf16.msra.mxu0 %v14023_v4  ;;  %5458 = vmatprep.mubr.bf16.mxu0 %v4955_v45  ;;  %v5536_v4 = vld [vmem:[#allocation2 + $0x1b8] sm:$0xff]  ;;  %v14202_v31 = vld [vmem:[%s19529_s3 + $0xe24] ss:$8 sps:$4 sm:$0xff]   ;;  %v14200_v58 = vld [vmem:[%s19529_s3 + $0xe20] ss:$8 sps:$4 sm:$0xff]  }
 0x244   : > { %v2455_v37 = vpop.f32.mrf.mxu0  ;;  %5440 = vmatprep.subr.bf16.mxu0 %v14031_v2  ;;  %5982 = vmatmul.mubr.bf16.vlgmr.msra.gmra.mxu1 %v5548_v54  ;;  %v5541_v2 = vld [vmem:[#allocation2 + $0x60] sm:$0xff]  ;;  %v14194_v54 = vld [vmem:[%s19529_s3 + $0xe30] ss:$8 sps:$4 sm:$0xff]   ;;  %v5556_v62 = vpack.c.bf16 %v5536_v4, %v5532_v12  ;;  %v14815_v45 = vld [vmem:[#allocation2 + $0x8] sm:$0xff] }
 0x245   : > { %v16719_v13 = vadd.f32 %v2455_v37, %v2383_v43  ;;  %6769 = vmatpush1.bf16.msra.mxu1 %v14170_v60  ;;  %5991 = vmatprep.mubr.bf16.mxu1 %v5553_v56  ;;  %v16763_v60 = vpop.f32.mrf.mxu1  ;;  %v14061_v56 = vld [vmem:[%s19529_s3 + $0xbb4] ss:$8 sps:$4 sm:$0xff]   ;;  %v14059_v25 = vld [vmem:[%s19529_s3 + $0xbb0] ss:$8 sps:$4 sm:$0xff]   ;;  %v16807_v12 = vld [vmem:[#allocation2 + $0x68] sm:$0xfc] }
 0x246   : > { %v2457_v27 = vpop.f32.mrf.mxu0  ;;  %6770 = vmatprep.subr.bf16.mxu1 %v14178_v53  ;;  %v14053_v53 = vld [vmem:[%s19529_s3 + $0xbc0] ss:$8 sps:$4 sm:$0xff]   ;;  %v14208_v43 = vld [vmem:[%s19529_s3 + $0xe14] ss:$8 sps:$4 sm:$0xff]   ;;  %v14206_v37 = vld [vmem:[%s19529_s3 + $0xe10] ss:$8 sps:$4 sm:$0xff]  }
 0x247   : > { %v16721_v11 = vadd.f32 %v2457_v27, %v2385_v16  ;;  %5441 = vmatpush1.bf16.msra.mxu0 %v14029_v3  ;;  %v5561_v3 = vpack.c.bf16 %v14815_v45, %v5541_v2  ;;  %v4698_v9 = vld [vmem:[#allocation2 + $0x158] sm:$0xfc]  ;;  %v19551_v29 = vrot.slane %v16807_v12, 2  ;;  %v14236_v12 = vld [vmem:[%s19529_s3 + $0xec0] ss:$8 sps:$4 sm:$0xff]  }
 0x248   : > { %5442 = vmatprep.subr.bf16.mxu0 %v14037_v34  ;;  %v5540_v34 = vld [vmem:[#allocation2 + $0xa8] sm:$0xff]  ;;  %v14073_v27 = vld [vmem:[%s19529_s3 + $0xb94] ss:$8 sps:$4 sm:$0xff]   ;;  %v4830_v4 = vrot.slane %v4698_v9, 2  ;;  %v14071_v2 = vld [vmem:[%s19529_s3 + $0xb90] ss:$8 sps:$4 sm:$0xff]  }
 0x249   : > { %6771 = vmatpush1.bf16.msra.mxu1 %v14176_v49  ;;  %v16777_v49 = vpop.f32.mrf.mxu1  ;;  %v5560_v16 = vpack.c.bf16 %v14815_v45, %v5540_v34  ;;  %v14226_v45 = vld [vmem:[%s19529_s3 + $0xee4] ss:$8 sps:$4 sm:$0xff]   ;;  %v6112_v9 = vld [vmem:[#allocation2 + $0x30] sm:$0xfe] }
 0x24a   : > { %6772 = vmatprep.subr.bf16.mxu1 %v14184_v50  ;;  %v14214_v50 = vld [vmem:[%s19529_s3 + $0xe04] ss:$8 sps:$4 sm:$0xff]  }
 0x24b   : > { %5443 = vmatpush2.bf16.msra.mxu0 %v14035_v18  ;;  %v16791_v10 = vpop.f32.mrf.mxu1  ;;  %v4706_v18 = vld [vmem:[#allocation2 + $0x10] sm:$0xfc] }
 0x24c   : > { %5444 = vmatprep.subr.bf16.mxu0 %v14043_v21  ;;  %5992 = vmatmul.mubr.bf16.gmra.mxu1 %v5552_v41  ;;  %v4710_v21 = vld [vmem:[#allocation2 + $0x248] sm:$0x3] }
 0x24d   : > { %6773 = vmatpush1.bf16.msra.mxu1 %v14182_v5  ;;  %6001 = vmatprep.mubr.bf16.mxu1 %v5557_v23  ;;  %v14212_v41 = vld [vmem:[%s19529_s3 + $0xe00] ss:$8 sps:$4 sm:$0xff]  }
 0x24e   : > { %6774 = vmatprep.subr.bf16.mxu1 %v14190_v55  ;;  %v4702_v5 = vld [vmem:[#allocation2 + $0x140] sm:$0x3]  ;;  %v4715_v55 = vld [vmem:[#allocation2 + $0x238] sm:$0xfc]  ;;  %v4719_v23 = vld [vmem:[#allocation2 + $0x268] sm:$0x3] }
 0x24f   : > { %5445 = vmatpush2.bf16.msra.mxu0 %v14041_v24  ;;  %v16802_v24 = vpop.f32.mrf.mxu1 }
 0x250   : > { %5446 = vmatprep.subr.bf16.mxu0 %v14049_v46  ;;  %v14220_v46 = vld [vmem:[%s19529_s3 + $0xef4] ss:$8 sps:$4 sm:$0xff]  }
 0x251   : > { %6775 = vmatpush1.bf16.msra.mxu1 %v14188_v57  ;;  %v4723_v57 = vld [vmem:[#allocation2 + $0x198] sm:$0xfc] }
 0x252   : > { %6776 = vmatprep.subr.bf16.mxu1 %v14196_v42  ;;  %v4727_v42 = vld [vmem:[#allocation2 + $0x228] sm:$0x3]  ;;  %v4869_v34 = vrot.slane %v4723_v57, 2  ;;  %v4731_v57 = vld [vmem:[#allocation2 + $0x270] sm:$0xfc] }
 0x253   : > { %5447 = vmatpush2.bf16.msra.mxu0 %v14047_v40  ;;  %v14079_v40 = vld [vmem:[%s19529_s3 + $0xb84] ss:$8 sps:$4 sm:$0xff]  }
 0x254   : > { %5448 = vmatprep.subr.bf16.mxu0 %v14055_v61  ;;  %6002 = vmatmul.mubr.bf16.gmra.mxu1 %v5556_v62  ;;  %v14218_v61 = vld [vmem:[%s19529_s3 + $0xef0] ss:$8 sps:$4 sm:$0xff]   ;;  %v16818_v62 = vpop.f32.mrf.mxu1 }
 0x255   : > { %6777 = vmatpush1.bf16.msra.mxu1 %v14194_v54  ;;  %6011 = vmatprep.mubr.bf16.mxu1 %v5561_v3  ;;  %v4842_v54 = vrot.slane %v4706_v18, 2  ;;  %v14077_v3 = vld [vmem:[%s19529_s3 + $0xb80] ss:$8 sps:$4 sm:$0xff]  }
 0x256   : > { %6778 = vmatprep.subr.bf16.mxu1 %v14202_v31  ;;  %v4843_v31 = vrot.slane %v4710_v21, 2  ;;  %v16837_v21 = vpop.f32.mrf.mxu1 }
 0x257   : > { %5449 = vmatpush2.bf16.msra.mxu0 %v14053_v53  ;;  %v4831_v53 = vrot.slane %v4702_v5, 2  ;;  %v6242_v5 = vrot.slane %v6112_v9, 1  ;;  %v14232_v9 = vld [vmem:[%s19529_s3 + $0xed4] ss:$8 sps:$4 sm:$0xff]  }
 0x258   : > { %5450 = vmatprep.subr.bf16.mxu0 %v14061_v56  ;;  %v4857_v56 = vrot.slane %v4715_v55, 2  ;;  %v4844_v18 = vsel %vm2590_vm1, %v4842_v54, %v4843_v31  ;;  %v4735_v54 = vld [vmem:[#allocation2 + $0x18] sm:$0x3]  ;;  %v4739_v31 = vld [vmem:[#allocation2 + $0x1f8] sm:$0xfc] }
 0x259   : > { %6779 = vmatpush1.bf16.msra.mxu1 %v14200_v58  ;;  %v4858_v58 = vrot.slane %v4719_v23, 2 }
 0x25a   : > { %6780 = vmatprep.subr.bf16.mxu1 %v14208_v43  ;;  %v14085_v43 = vld [vmem:[%s19529_s3 + $0xd74] ss:$8 sps:$4 sm:$0xff]  }
 0x25b   : > { %5451 = vmatpush2.bf16.msra.mxu0 %v14059_v25  ;;  %v4870_v25 = vrot.slane %v4727_v42, 2 }
 0x25c   : > { %5452 = vmatprep.subr.bf16.mxu0 %v14067_v7  ;;  %6012 = vmatmul.mubr.bf16.gmra.mxu1 %v5560_v16  ;;  %v16829_v7 = vld [vmem:[#allocation2 + $0xb8] sm:$0x3]  ;;  %v16834_v16 = vld [vmem:[#allocation2 + $0x1a8] sm:$0x3] }
 0x25d   : > { %6781 = vmatpush1.bf16.msra.mxu1 %v14206_v37  ;;  %v4859_v37 = vsel %vm2590_vm1, %v4857_v56, %v4858_v58  ;;  %v16854_v58 = vpop.f32.mrf.mxu0 }
 0x25e   : > { %6782 = vmatprep.subr.bf16.mxu1 %v14214_v50  ;;  %v16832_v50 = vld [vmem:[#allocation2 + $0xe0] sm:$0xfc]  ;;  %19550 = vst [vmem:[#allocation10_spill] sm:$0xff] %v16854_v58  ;;  %v16888_v58 = vld [vmem:[#allocation2 + $0x208] sm:$0xfc] }
 0x25f   : > { %5453 = vmatpush2.bf16.msra.mxu0 %v14065_v15  ;;  %v6116_v15 = vld [vmem:[#allocation2 + $0x1a0] sm:$0x1] }
 0x260   : > { %5454 = vmatprep.subr.bf16.mxu0 %v14073_v27  ;;  %v6120_v27 = vld [vmem:[#allocation2 + $0x48] sm:$0xfe]  ;;  %v6243_v55 = vrot.slane %v6116_v15, 1 }
 0x261   : > { %6783 = vmatpush1.bf16.msra.mxu1 %v14212_v41  ;;  %v6124_v41 = vld [vmem:[#allocation2 + $0x250] sm:$0x1]  ;;  %v6254_v23 = vrot.slane %v6120_v27, 1 }
 0x262   : > { %6784 = vmatprep.subr.bf16.mxu1 %v14220_v46  ;;  %v14224_v46 = vld [vmem:[%s19529_s3 + $0xee0] ss:$8 sps:$4 sm:$0xff]   ;;  %v6255_v42 = vrot.slane %v6124_v41, 1  ;;  %v14083_v27 = vld [vmem:[%s19529_s3 + $0xd70] ss:$8 sps:$4 sm:$0xff]  }
 0x263   : > { %5455 = vmatpush2.bf16.msra.mxu0 %v14071_v2  ;;  %v4832_v2 = vsel %vm2590_vm1, %v4830_v4, %v4831_v53  ;;  %v4855_v4 = vrot.slane %v16829_v7, 2  ;;  %v4743_v53 = vld [vmem:[#allocation2 + $0x100] sm:$0x3] }
 0x264   : > { %5456 = vmatprep.subr.bf16.mxu0 %v14079_v40  ;;  %v4871_v40 = vsel %vm2590_vm1, %v4869_v34, %v4870_v25  ;;  %v4954_v15 = vpack.c.bf16 %v4844_v18, %v4832_v2  ;;  %v6256_v56 = vsel %vm1320_vm0, %v6254_v23, %v6255_v42  ;;  %v4866_v34 = vrot.slane %v16832_v50, 2  ;;  %v16861_v18 = vpop.f32.mrf.mxu1  ;;  %v14089_v7 = vld [vmem:[%s19529_s3 + $0xd60] ss:$8 sps:$4 sm:$0xff]   ;;  %v16866_v23 = vld [vmem:[#allocation2 + $0x90] sm:$0xfc] }
 0x265   : > { %6785 = vmatpush2.bf16.msra.mxu1 %v14218_v61  ;;  %v6244_v61 = vsel %vm1320_vm0, %v6242_v5, %v6243_v55  ;;  %v4881_v25 = vrot.slane %v4731_v57, 2  ;;  %v4959_v5 = vpack.c.bf16 %v4871_v40, %v4859_v37  ;;  %v4882_v55 = vrot.slane %v4735_v54, 2  ;;  %v16870_v42 = vld [vmem:[#allocation2 + $0xa0] sm:$0xfc]  ;;  %v14230_v50 = vld [vmem:[%s19529_s3 + $0xed0] ss:$8 sps:$4 sm:$0xff]  }
 0x266   : > { %6786 = vmatprep.subr.bf16.mxu1 %v14226_v45  ;;  %v14091_v45 = vld [vmem:[%s19529_s3 + $0xd64] ss:$8 sps:$4 sm:$0xff]   ;;  %v6368_v41 = vpack.c.bf16 %v6256_v56, %v6244_v61  ;;  %v14097_v57 = vld [vmem:[%s19529_s3 + $0xd54] ss:$8 sps:$4 sm:$0xff]   ;;  %v4893_v2 = vrot.slane %v4739_v31, 2  ;;  %v4894_v40 = vrot.slane %v4743_v53, 2  ;;  %v4856_v31 = vsel %vm2590_vm1, %v19551_v29, %v4855_v4  ;;  %v16893_v53 = vpop.f32.mrf.mxu1 }
 0x267   : > { %5457 = vmatpush2.bf16.msra.mxu0 %v14077_v3  ;;  %v4867_v3 = vrot.slane %v16834_v16, 2  ;;  %v14238_v37 = vld [vmem:[%s19529_s3 + $0xec4] ss:$8 sps:$4 sm:$0xff]   ;;  %v16881_v54 = vld [vmem:[#allocation2 + $0x260] sm:$0x3] }
 0x268   : > { %6022 = vmatprep.subr.bf16.mxu0 %v14085_v43  ;;  %v16868_v43 = vld [vmem:[#allocation2 + $0x1c8] sm:$0x3]  ;;  %v16884_v61 = vld [vmem:[#allocation2 + $0x278] sm:$0xfc]  ;;  %v16886_v56 = vld [vmem:[#allocation2 + $0x110] sm:$0x3]  ;;  %6800 = vmatprep.mubr.bf16.mxu1 %v6368_v41 }
 0x269   : > { %6787 = vmatpush2.bf16.msra.mxu1 %v14224_v46  ;;  %v14244_v29 = vld [vmem:[%s19529_s3 + $0xeb4] ss:$8 sps:$4 sm:$0xff]  }
 0x26a   : > { %v3227_v16 = vpop.f32.mrf.mxu0  ;;  %5459 = vmatmul.mubr.bf16.vlgmr.msra.gmra.mxu0 %v4954_v15  ;;  %6788 = vmatprep.subr.bf16.mxu1 %v14232_v9 }
 0x26b   : > { %v3228_v46 = vadd.f32 %v3227_v16, %v16749_v32  ;;  %5468 = vmatprep.mubr.bf16.mxu0 %v4959_v5  ;;  %6023 = vmatpush1.bf16.msra.mxu0 %v14083_v27  ;;  %v4868_v27 = vsel %vm2590_vm1, %v4866_v34, %v4867_v3  ;;  %v4883_v5 = vsel %vm2590_vm1, %v4881_v25, %v4882_v55  ;;  %v4890_v34 = vrot.slane %v16870_v42, 2  ;;  %v16911_v3 = vld [vmem:[#allocation2 + $0xd0] sm:$0xfc]  ;;  %v16913_v25 = vld [vmem:[#allocation2 + $0x130] sm:$0x3] }
 0x26c   : > { %v3229_v15 = vpop.f32.mrf.mxu0  ;;  %6024 = vmatprep.subr.bf16.mxu0 %v14091_v45  ;;  %v4895_v45 = vsel %vm2590_vm1, %v4893_v2, %v4894_v40  ;;  %v4958_v16 = vpack.c.bf16 %v4868_v27, %v4856_v31  ;;  %v4903_v31 = vrot.slane %v16913_v25, 2  ;;  %v6111_v25 = vld [vmem:[#allocation2 + $0x80] sm:$0xfe] }
 0x26d   : > { %v16896_v32 = vadd.f32 %v3228_v46, %v16567_v17  ;;  %v3230_v9 = vadd.f32 %v3229_v15, %v16763_v60  ;;  %6789 = vmatpush2.bf16.msra.mxu1 %v14230_v50  ;;  %v4878_v17 = vrot.slane %v16866_v23, 2  ;;  %v4879_v60 = vrot.slane %v16868_v43, 2  ;;  %v14095_v50 = vld [vmem:[%s19529_s3 + $0xd50] ss:$8 sps:$4 sm:$0xff]   ;;  %v14103_v23 = vld [vmem:[%s19529_s3 + $0xd44] ss:$8 sps:$4 sm:$0xff]  }
 0x26e   : > { %v3231_v4 = vpop.f32.mrf.mxu0  ;;  %6790 = vmatprep.subr.bf16.mxu1 %v14238_v37  ;;  %v4891_v43 = vrot.slane %v16881_v54, 2  ;;  %v4906_v37 = vrot.slane %v16886_v56, 2  ;;  %v4963_v40 = vpack.c.bf16 %v4895_v45, %v4883_v5  ;;  %v4918_v46 = vrot.slane %v4759_v1, 2  ;;  %v14242_v54 = vld [vmem:[%s19529_s3 + $0xeb0] ss:$8 sps:$4 sm:$0xff]  }
 0x26f   : > { %v16916_v41 = vadd.f32 %v3230_v9, %v16581_v47  ;;  %v3232_v55 = vadd.f32 %v3231_v4, %v16777_v49  ;;  %6025 = vmatpush1.bf16.msra.mxu0 %v14089_v7  ;;  %v4905_v47 = vrot.slane %v16884_v61, 2  ;;  %v4917_v49 = vrot.slane %v16888_v58, 2  ;;  %v16931_v7 = vpop.f32.mrf.mxu1  ;;  %v16942_v56 = vld [vmem:[#allocation2 + $0x138] sm:$0xfc]  ;;  %v16948_v1 = vld [vmem:[#allocation2 + $0x118] sm:$0x3] }
 0x270   : > { %v16926_v42 = vpop.f32.mrf.mxu0  ;;  %6026 = vmatprep.subr.bf16.mxu0 %v14097_v57  ;;  %v14250_v57 = vld [vmem:[%s19529_s3 + $0xea4] ss:$8 sps:$4 sm:$0xff]   ;;  %v4902_v15 = vrot.slane %v16911_v3, 2  ;;  %v4880_v27 = vsel %vm2590_vm1, %v4878_v17, %v4879_v60  ;;  %v4892_v5 = vsel %vm2590_vm1, %v4890_v34, %v4891_v43  ;;  %v14256_v4 = vld [vmem:[%s19529_s3 + $0xe94] ss:$8 sps:$4 sm:$0xff]  }
 0x271   : > { %v16934_v2 = vadd.f32 %v3232_v55, %v16594_v48  ;;  %6791 = vmatpush2.bf16.msra.mxu1 %v14236_v12  ;;  %v14101_v48 = vld [vmem:[%s19529_s3 + $0xd40] ss:$8 sps:$4 sm:$0xff]   ;;  %v16957_v12 = vpop.f32.mrf.mxu1  ;;  %v14107_v60 = vld [vmem:[%s19529_s3 + $0xd30] ss:$8 sps:$4 sm:$0xff]   ;;  %v4907_v34 = vsel %vm2590_vm1, %v4905_v47, %v4906_v37  ;;  %v4919_v3 = vsel %vm2590_vm1, %v4917_v49, %v4918_v46  ;;  %v4962_v37 = vpack.c.bf16 %v4892_v5, %v4880_v27 }
 0x272   : > { %v3237_v61 = vpop.f32.mrf.mxu0  ;;  %5469 = vmatmul.mubr.bf16.gmra.mxu0 %v4958_v16  ;;  %6792 = vmatprep.subr.bf16.mxu1 %v14244_v29  ;;  %v14248_v29 = vld [vmem:[%s19529_s3 + $0xea0] ss:$8 sps:$4 sm:$0xff]   ;;  %v6115_v55 = vld [vmem:[#allocation2 + $0x1d8] sm:$0x1]  ;;  %v4914_v49 = vrot.slane %v16942_v56, 2 }
 0x273   : > { %v3238_v58 = vadd.f32 %v3237_v61, %v16802_v24  ;;  %5478 = vmatprep.mubr.bf16.mxu0 %v4963_v40  ;;  %6027 = vmatpush1.bf16.msra.mxu0 %v14095_v50  ;;  %v14109_v24 = vld [vmem:[%s19529_s3 + $0xd34] ss:$8 sps:$4 sm:$0xff]   ;;  %v6123_v43 = vld [vmem:[#allocation2 + $0x188] sm:$0x1]  ;;  %v6132_v16 = vld [vmem:[#allocation2 + $0x1e0] sm:$0x1] }
 0x274   : > { %v3239_v9 = vpop.f32.mrf.mxu0  ;;  %6028 = vmatprep.subr.bf16.mxu0 %v14103_v23  ;;  %v6119_v50 = vld [vmem:[#allocation2 + $0x190] sm:$0xfe]  ;;  %v14262_v56 = vld [vmem:[%s19529_s3 + $0xe84] ss:$8 sps:$4 sm:$0xff]   ;;  %v6252_v5 = vrot.slane %v6123_v43, 1  ;;  %v4904_v43 = vsel %vm2590_vm1, %v4902_v15, %v4903_v31 }
 0x275   : > { %v16966_v45 = vadd.f32 %v3238_v58, %v16616_v52  ;;  %v3240_v17 = vadd.f32 %v3239_v9, %v16818_v62  ;;  %6793 = vmatpush2.bf16.msra.mxu1 %v14242_v54  ;;  %v14115_v52 = vld [vmem:[%s19529_s3 + $0xd24] ss:$8 sps:$4 sm:$0xff]   ;;  %v6128_v62 = vld [vmem:[#allocation2 + $0x98] sm:$0xfe]  ;;  %v6136_v46 = vld [vmem:[#allocation2 + $0x1b0] sm:$0xfe]  ;;  %v4967_v58 = vpack.c.bf16 %v4919_v3, %v4907_v34  ;;  %v16984_v9 = vpop.f32.mrf.mxu1 }
 0x276   : > { %v3241_v23 = vpop.f32.mrf.mxu0  ;;  %6794 = vmatprep.subr.bf16.mxu1 %v14250_v57  ;;  %v6140_v54 = vld [vmem:[#allocation2 + $0x38] sm:$0x1]  ;;  %19552 = vst [vmem:[#allocation11_spill] sm:$0xff] %v16984_v9  ;;  %v4915_v57 = vrot.slane %v16948_v1, 2  ;;  %v6251_v27 = vrot.slane %v6119_v50, 1  ;;  %v6267_v1 = vrot.slane %v6132_v16, 1 }
 0x277   : > { %v16978_v40 = vadd.f32 %v3240_v17, %v16628_v22  ;;  %v3242_v47 = vadd.f32 %v3241_v23, %v16837_v21  ;;  %6029 = vmatpush1.bf16.msra.mxu0 %v14101_v48  ;;  %v14254_v22 = vld [vmem:[%s19529_s3 + $0xe90] ss:$8 sps:$4 sm:$0xff]   ;;  %v6239_v17 = vrot.slane %v6111_v25, 1  ;;  %v6240_v21 = vrot.slane %v6115_v55, 1  ;;  %v3184_v50 = vpop.f32.mrf.mxu1  ;;  %v5519_v16 = vld [vmem:[#allocation2 + $0x160] sm:$0xff] }
 0x278   : > { %v16982_v61 = vpop.f32.mrf.mxu0  ;;  %6030 = vmatprep.subr.bf16.mxu0 %v14109_v24  ;;  %v6266_v24 = vrot.slane %v6128_v62, 1  ;;  %v6278_v3 = vrot.slane %v6136_v46, 1  ;;  %v6279_v23 = vrot.slane %v6140_v54, 1  ;;  %v4916_v62 = vsel %vm2590_vm1, %v4914_v49, %v4915_v57  ;;  %v14119_v31 = vld [vmem:[%s19529_s3 + $0xd10] ss:$8 sps:$4 sm:$0xff]  }
 0x279   : > { %v16991_v48 = vadd.f32 %v3242_v47, %v16641_v44  ;;  %6795 = vmatpush2.bf16.msra.mxu1 %v14248_v29  ;;  %v14113_v44 = vld [vmem:[%s19529_s3 + $0xd20] ss:$8 sps:$4 sm:$0xff]   ;;  %v5523_v29 = vld [vmem:[#allocation2 + $0x238] sm:$0xff]  ;;  %v6241_v47 = vsel %vm1320_vm0, %v6239_v17, %v6240_v21  ;;  %v6131_v46 = vld [vmem:[#allocation2 + $0x1d0] sm:$0x1]  ;;  %v4966_v17 = vpack.c.bf16 %v4916_v62, %v4904_v43 }
 0x27a   : > { %v3247_v34 = vpop.f32.mrf.mxu0  ;;  %5479 = vmatmul.mubr.bf16.gmra.mxu0 %v4962_v37  ;;  %6796 = vmatprep.subr.bf16.mxu1 %v14256_v4  ;;  %v14121_v4 = vld [vmem:[%s19529_s3 + $0xd14] ss:$8 sps:$4 sm:$0xff]   ;;  %v6253_v37 = vsel %vm1320_vm0, %v6251_v27, %v6252_v5  ;;  %v6135_v54 = vld [vmem:[#allocation2] sm:$0xfe]  ;;  %v6268_v57 = vsel %vm1320_vm0, %v6266_v24, %v6267_v1  ;;  %v5551_v21 = vpack.c.bf16 %v5523_v29, %v5519_v16  ;;  %v6152_v27 = vld [vmem:[#allocation2 + $0x168] sm:$0xfe] }
 0x27b   : > { %v3248_v25 = vadd.f32 %v3247_v34, %v16893_v53  ;;  %5488 = vmatprep.mubr.bf16.mxu0 %v4967_v58  ;;  %6031 = vmatpush1.bf16.msra.mxu0 %v14107_v60  ;;  %v14260_v53 = vld [vmem:[%s19529_s3 + $0xe80] ss:$8 sps:$4 sm:$0xff]   ;;  %v14268_v60 = vld [vmem:[%s19529_s3 + $0x1074] ss:$8 sps:$4 sm:$0xff]   ;;  %v14127_v24 = vld [vmem:[%s19529_s3 + $0xd04] ss:$8 sps:$4 sm:$0xff]   ;;  %v6367_v1 = vpack.c.bf16 %v6253_v37, %v6241_v47 }
 0x27c   : > { %v3249_v55 = vpop.f32.mrf.mxu0  ;;  %6032 = vmatprep.subr.bf16.mxu0 %v14115_v52  ;;  %v6127_v49 = vld [vmem:[#allocation2 + $0xf8] sm:$0xfe]  ;;  %v6139_v34 = vld [vmem:[#allocation2 + $0x1e8] sm:$0x1]  ;;  %v6156_v5 = vld [vmem:[#allocation2 + $0x180] sm:$0x1] }
 0x27d   : > { %v17012_v52 = vadd.f32 %v3248_v25, %v16663_v63  ;;  %v3250_v15 = vadd.f32 %v3249_v55, %v16931_v7  ;;  %6797 = vmatpush2.bf16.msra.mxu1 %v14254_v22  ;;  %v6280_v63 = vsel %vm1320_vm0, %v6278_v3, %v6279_v23  ;;  %v6144_v7 = vld [vmem:[#allocation2 + $0x1f0] sm:$0xfe]  ;;  %v6148_v25 = vld [vmem:[#allocation2 + $0x258] sm:$0x1]  ;;  %v6263_v3 = vrot.slane %v6127_v49, 1 }
 0x27e   : > { %v3251_v58 = vpop.f32.mrf.mxu0  ;;  %6798 = vmatprep.subr.bf16.mxu1 %v14262_v56  ;;  %v3186_v56 = vpop.f32.mrf.mxu1  ;;  %v6264_v23 = vrot.slane %v6131_v46, 1  ;;  %v6372_v29 = vpack.c.bf16 %v6280_v63, %v6268_v57  ;;  %v6276_v43 = vrot.slane %v6139_v34, 1  ;;  %v6290_v62 = vrot.slane %v6144_v7, 1  ;;  %v14131_v63 = vld [vmem:[%s19529_s3 + $0xdf0] ss:$8 sps:$4 sm:$0xff]  }
 0x27f   : > { %v17023_v55 = vadd.f32 %v3250_v15, %v16680_v6  ;;  %v3252_v22 = vadd.f32 %v3251_v58, %v16957_v12  ;;  %6033 = vmatpush1.bf16.msra.mxu0 %v14113_v44  ;;  %v6275_v6 = vrot.slane %v6135_v54, 1  ;;  %v14266_v12 = vld [vmem:[%s19529_s3 + $0x1070] ss:$8 sps:$4 sm:$0xff]   ;;  %v14274_v44 = vld [vmem:[%s19529_s3 + $0x1064] ss:$8 sps:$4 sm:$0xff]   ;;  %v6291_v16 = vrot.slane %v6148_v25, 1 }
 0x280   : > { %v17026_v33 = vpop.f32.mrf.mxu0  ;;  %6034 = vmatprep.subr.bf16.mxu0 %v14121_v4  ;;  %v6302_v47 = vrot.slane %v6152_v27, 1  ;;  %v6303_v37 = vrot.slane %v6156_v5, 1  ;;  %v3188_v46 = vpop.f32.mrf.mxu1  ;;  %v14133_v54 = vld [vmem:[%s19529_s3 + $0xdf4] ss:$8 sps:$4 sm:$0xff]   ;;  %v6147_v25 = vld [vmem:[#allocation2 + $0x58] sm:$0x1] }
 0x281   : > { %19553 = vst [vmem:[#allocation12_spill] sm:$0xff] %v17026_v33  ;;  %v17032_v15 = vadd.f32 %v3252_v22, %v16686_v0  ;;  %6799 = vmatpush2.bf16.msra.mxu1 %v14260_v53  ;;  %v14125_v53 = vld [vmem:[%s19529_s3 + $0xd00] ss:$8 sps:$4 sm:$0xff]   ;;  %v6277_v34 = vsel %vm1320_vm0, %v6275_v6, %v6276_v43  ;;  %v6143_v7 = vld [vmem:[#allocation2 + $0x78] sm:$0xfe] }
 0x282   : > { %v3257_v4 = vpop.f32.mrf.mxu0  ;;  %5489 = vmatmul.mubr.bf16.gmra.mxu0 %v4966_v17  ;;  %7587 = vmatprep.subr.bf16.mxu1 %v14268_v60  ;;  %v14272_v60 = vld [vmem:[%s19529_s3 + $0x1060] ss:$8 sps:$4 sm:$0xff]   ;;  %v6151_v22 = vld [vmem:[#allocation2 + $0x1b8] sm:$0xfe]  ;;  %v6304_v27 = vsel %vm1320_vm0, %v6302_v47, %v6303_v37  ;;  %v14139_v6 = vld [vmem:[%s19529_s3 + $0xde4] ss:$8 sps:$4 sm:$0xff]  }
 0x283   : > { %v3258_v0 = vadd.f32 %v3257_v4, %v3184_v50  ;;  %6035 = vmatpush1.bf16.msra.mxu0 %v14119_v31  ;;  %6054 = vmatprep.mubr.bf16.mxu0 %v5551_v21  ;;  %v14280_v50 = vld [vmem:[%s19529_s3 + $0x1054] ss:$8 sps:$4 sm:$0xff]   ;;  %v6265_v31 = vsel %vm1320_vm0, %v6263_v3, %v6264_v23  ;;  %v6292_v21 = vsel %vm1320_vm0, %v6290_v62, %v6291_v16  ;;  %v6160_v5 = vld [vmem:[#allocation2 + $0x60] sm:$0xfe]  ;;  %v6172_v23 = vld [vmem:[#allocation2 + $0x178] sm:$0x1] }
 0x284   : > { %v3259_v49 = vpop.f32.mrf.mxu0  ;;  %6036 = vmatprep.subr.bf16.mxu0 %v14127_v24  ;;  %6801 = vmatmul.mubr.bf16.vlgmr.msra.gmra.mxu1 %v6367_v1  ;;  %v6168_v3 = vld [vmem:[#allocation2 + $0x230] sm:$0xfe]  ;;  %v6299_v43 = vrot.slane %v6151_v22, 1  ;;  %v14286_v4 = vld [vmem:[%s19529_s3 + $0x1044] ss:$8 sps:$4 sm:$0xff]   ;;  %v6376_v16 = vpack.c.bf16 %v6304_v27, %v6292_v21  ;;  %v6314_v37 = vrot.slane %v6160_v5, 1 }
 0x285   : > { %v17054_v58 = vadd.f32 %v3258_v0, %v16708_v51  ;;  %v3260_v57 = vadd.f32 %v3259_v49, %v3186_v56  ;;  %7588 = vmatpush1.bf16.msra.mxu1 %v14266_v12  ;;  %6810 = vmatprep.mubr.bf16.mxu1 %v6372_v29  ;;  %v6155_v51 = vld [vmem:[#allocation2 + $0x210] sm:$0x1]  ;;  %v6164_v56 = vld [vmem:[#allocation2 + $0x88] sm:$0x1]  ;;  %v6371_v12 = vpack.c.bf16 %v6277_v34, %v6265_v31  ;;  %v6288_v29 = vrot.slane %v6147_v25, 1 }
 0x286   : > { %v3261_v17 = vpop.f32.mrf.mxu0  ;;  %7589 = vmatprep.subr.bf16.mxu1 %v14274_v44  ;;  %v6287_v44 = vrot.slane %v6143_v7, 1  ;;  %v6300_v47 = vrot.slane %v6155_v51, 1  ;;  %v6315_v0 = vrot.slane %v6164_v56, 1  ;;  %v6327_v49 = vrot.slane %v6172_v23, 1  ;;  %v6159_v31 = vld [vmem:[#allocation2 + $0xa8] sm:$0xfe] }
 0x287   : > { %v17063_v24 = vadd.f32 %v3260_v57, %v16719_v13  ;;  %v3262_v1 = vadd.f32 %v3261_v17, %v3188_v46  ;;  %6037 = vmatpush1.bf16.msra.mxu0 %v14125_v53  ;;  %v14278_v13 = vld [vmem:[%s19529_s3 + $0x1050] ss:$8 sps:$4 sm:$0xff]   ;;  %v6326_v53 = vrot.slane %v6168_v3, 1  ;;  %v14145_v46 = vld [vmem:[%s19529_s3 + $0xdd4] ss:$8 sps:$4 sm:$0xff]   ;;  %v6311_v3 = vrot.slane %v6159_v31, 1 }
 0x288   : > { %6038 = vmatprep.subr.bf16.mxu0 %v14133_v54  ;;  %v14284_v54 = vld [vmem:[%s19529_s3 + $0x1040] ss:$8 sps:$4 sm:$0xff]   ;;  %v6301_v34 = vsel %vm1320_vm0, %v6299_v43, %v6300_v47  ;;  %v6316_v17 = vsel %vm1320_vm0, %v6314_v37, %v6315_v0  ;;  %v14143_v27 = vld [vmem:[%s19529_s3 + $0xdd0] ss:$8 sps:$4 sm:$0xff]   ;;  %v14151_v51 = vld [vmem:[%s19529_s3 + $0xdc4] ss:$8 sps:$4 sm:$0xff]  }
 0x289   : > { %v17069_v62 = vadd.f32 %v3262_v1, %v16721_v11  ;;  %7590 = vmatpush1.bf16.msra.mxu1 %v14272_v60  ;;  %v14137_v11 = vld [vmem:[%s19529_s3 + $0xde0] ss:$8 sps:$4 sm:$0xff]   ;;  %v17086_v60 = vpop.f32.mrf.mxu1  ;;  %v6328_v21 = vsel %vm1320_vm0, %v6326_v53, %v6327_v49  ;;  %v14290_v5 = vld [vmem:[%s19529_s3 + $0x1030] ss:$8 sps:$4 sm:$0xff]   ;;  %v14298_v56 = vld [vmem:[%s19529_s3 + $0x1024] ss:$8 sps:$4 sm:$0xff]  }
 0x28a   : > { %7591 = vmatprep.subr.bf16.mxu1 %v14280_v50  ;;  %19554 = vst [vmem:[#allocation13_spill] sm:$0xff] %v17086_v60  ;;  %v14292_v50 = vld [vmem:[%s19529_s3 + $0x1034] ss:$8 sps:$4 sm:$0xff]   ;;  %v6163_v57 = vld [vmem:[#allocation2 + $0x240] sm:$0x1]  ;;  %v6380_v23 = vpack.c.bf16 %v6328_v21, %v6316_v17 }
 0x28b   : > { %6039 = vmatpush2.bf16.msra.mxu0 %v14131_v63  ;;  %v6289_v63 = vsel %vm1320_vm0, %v6287_v44, %v6288_v29  ;;  %v6167_v7 = vld [vmem:[#allocation2 + $0x1c0] sm:$0xfe]  ;;  %v6171_v25 = vld [vmem:[#allocation2 + $0x20] sm:$0x1]  ;;  %v17093_v22 = vpop.f32.mrf.mxu1  ;;  %v14155_v53 = vld [vmem:[%s19529_s3 + $0xdb0] ss:$8 sps:$4 sm:$0xff]  }
 0x28c   : > { %6040 = vmatprep.subr.bf16.mxu0 %v14139_v6  ;;  %6811 = vmatmul.mubr.bf16.gmra.mxu1 %v6371_v12  ;;  %v6375_v1 = vpack.c.bf16 %v6301_v34, %v6289_v63  ;;  %v6312_v6 = vrot.slane %v6163_v57, 1  ;;  %v6323_v12 = vrot.slane %v6167_v7, 1  ;;  %v6324_v44 = vrot.slane %v6171_v25, 1  ;;  %v14149_v43 = vld [vmem:[%s19529_s3 + $0xdc0] ss:$8 sps:$4 sm:$0xff]  }
 0x28d   : > { %7592 = vmatpush1.bf16.msra.mxu1 %v14278_v13  ;;  %6820 = vmatprep.mubr.bf16.mxu1 %v6376_v16  ;;  %v17109_v29 = vpop.f32.mrf.mxu1  ;;  %v14157_v13 = vld [vmem:[%s19529_s3 + $0xdb4] ss:$8 sps:$4 sm:$0xff]   ;;  %v14163_v49 = vld [vmem:[%s19529_s3 + $0xda4] ss:$8 sps:$4 sm:$0xff]   ;;  %v14161_v31 = vld [vmem:[%s19529_s3 + $0xda0] ss:$8 sps:$4 sm:$0xff]  }
 0x28e   : > { %7593 = vmatprep.subr.bf16.mxu1 %v14286_v4  ;;  %v14296_v4 = vld [vmem:[%s19529_s3 + $0x1020] ss:$8 sps:$4 sm:$0xff]   ;;  %v14304_v16 = vld [vmem:[%s19529_s3 + $0x1014] ss:$8 sps:$4 sm:$0xff]   ;;  %v6313_v47 = vsel %vm1320_vm0, %v6311_v3, %v6312_v6  ;;  %v6325_v37 = vsel %vm1320_vm0, %v6323_v12, %v6324_v44  ;;  %v14167_v25 = vld [vmem:[%s19529_s3 + $0xd90] ss:$8 sps:$4 sm:$0xff]  }
 0x28f   : > { %6041 = vmatpush2.bf16.msra.mxu0 %v14137_v11  ;;  %v17125_v0 = vpop.f32.mrf.mxu1  ;;  %v14302_v11 = vld [vmem:[%s19529_s3 + $0x1010] ss:$8 sps:$4 sm:$0xff]   ;;  %v14169_v57 = vld [vmem:[%s19529_s3 + $0xd94] ss:$8 sps:$4 sm:$0xff]   ;;  %v14308_v63 = vld [vmem:[%s19529_s3 + $0x1000] ss:$8 sps:$4 sm:$0xff]  }
 0x290   : > { %6042 = vmatprep.subr.bf16.mxu0 %v14145_v46  ;;  %v14310_v46 = vld [vmem:[%s19529_s3 + $0x1004] ss:$8 sps:$4 sm:$0xff]   ;;  %v14316_v7 = vld [vmem:[%s19529_s3 + $0x10f4] ss:$8 sps:$4 sm:$0xff]   ;;  %v14314_v21 = vld [vmem:[%s19529_s3 + $0x10f0] ss:$8 sps:$4 sm:$0xff]  }
 0x291   : > { %7594 = vmatpush1.bf16.msra.mxu1 %v14284_v54  ;;  %v6379_v54 = vpack.c.bf16 %v6325_v37, %v6313_v47  ;;  %v14175_v17 = vld [vmem:[%s19529_s3 + $0xd84] ss:$8 sps:$4 sm:$0xff]   ;;  %v6943_v3 = vld [vmem:[#allocation2 + $0x250] sm:$0x3]  ;;  %v5527_v47 = vld [vmem:[#allocation2 + $0x198] sm:$0xff] }
 0x292   : > { %7595 = vmatprep.subr.bf16.mxu1 %v14292_v50  ;;  %v17139_v50 = vpop.f32.mrf.mxu1  ;;  %v7074_v44 = vrot.slane %v6943_v3, 2  ;;  %v5531_v37 = vld [vmem:[#allocation2 + $0x270] sm:$0xff] }
 0x293   : > { %6043 = vmatpush2.bf16.msra.mxu0 %v14143_v27  ;;  %19555 = vst [vmem:[#allocation14_spill] sm:$0xff] %v17139_v50  ;;  %v14193_v3 = vld [vmem:[%s19529_s3 + $0xf54] ss:$8 sps:$4 sm:$0xff]   ;;  %v14211_v50 = vld [vmem:[%s19529_s3 + $0xf24] ss:$8 sps:$4 sm:$0xff]  }
 0x294   : > { %6044 = vmatprep.subr.bf16.mxu0 %v14151_v51  ;;  %6821 = vmatmul.mubr.bf16.gmra.mxu1 %v6375_v1  ;;  %v17150_v34 = vpop.f32.mrf.mxu1  ;;  %v14322_v51 = vld [vmem:[%s19529_s3 + $0x10e4] ss:$8 sps:$4 sm:$0xff]  }
 0x295   : > { %7596 = vmatpush1.bf16.msra.mxu1 %v14290_v5  ;;  %6830 = vmatprep.mubr.bf16.mxu1 %v6380_v23  ;;  %v6931_v5 = vld [vmem:[#allocation2 + $0x30] sm:$0xfc]  ;;  %v6939_v1 = vld [vmem:[#allocation2 + $0x48] sm:$0xfc] }
 0x296   : > { %7597 = vmatprep.subr.bf16.mxu1 %v14298_v56  ;;  %v17164_v27 = vpop.f32.mrf.mxu1  ;;  %v6935_v56 = vld [vmem:[#allocation2 + $0x1a0] sm:$0x3]  ;;  %v7061_v23 = vrot.slane %v6931_v5, 2  ;;  %v7073_v12 = vrot.slane %v6939_v1, 2  ;;  %v14334_v5 = vld [vmem:[%s19529_s3 + $0x10c4] ss:$8 sps:$4 sm:$0xff]  }
 0x297   : > { %6045 = vmatpush2.bf16.msra.mxu0 %v14149_v43  ;;  %v7062_v6 = vrot.slane %v6935_v56, 2  ;;  %v14173_v43 = vld [vmem:[%s19529_s3 + $0xd80] ss:$8 sps:$4 sm:$0xff]   ;;  %v5555_v56 = vpack.c.bf16 %v5531_v37, %v5527_v47  ;;  %v14340_v47 = vld [vmem:[%s19529_s3 + $0x10b4] ss:$8 sps:$4 sm:$0xff]  }
 0x298   : > { %6046 = vmatprep.subr.bf16.mxu0 %v14157_v13  ;;  %v5522_v13 = vld [vmem:[#allocation2 + $0x68] sm:$0xff] }
 0x299   : > { %7598 = vmatpush1.bf16.msra.mxu1 %v14296_v4  ;;  %v7063_v4 = vsel %vm2590_vm1, %v7061_v23, %v7062_v6  ;;  %v5526_v6 = vld [vmem:[#allocation2 + $0xe0] sm:$0xff] }
 0x29a   : > { %7599 = vmatprep.subr.bf16.mxu1 %v14304_v16  ;;  %v14181_v16 = vld [vmem:[%s19529_s3 + $0xf74] ss:$8 sps:$4 sm:$0xff]  }
 0x29b   : > { %6047 = vmatpush2.bf16.msra.mxu0 %v14155_v53  ;;  %v17176_v53 = vpop.f32.mrf.mxu1 }
 0x29c   : > { %6048 = vmatprep.subr.bf16.mxu0 %v14163_v49  ;;  %6831 = vmatmul.mubr.bf16.gmra.mxu1 %v6379_v54  ;;  %v7075_v49 = vsel %vm2590_vm1, %v7073_v12, %v7074_v44  ;;  %v14320_v54 = vld [vmem:[%s19529_s3 + $0x10e0] ss:$8 sps:$4 sm:$0xff]   ;;  %v5530_v12 = vld [vmem:[#allocation2 + $0x90] sm:$0xff] }
 0x29d   : > { %7600 = vmatpush1.bf16.msra.mxu1 %v14302_v11  ;;  %v5518_v11 = vld [vmem:[#allocation2 + $0x10] sm:$0xff]  ;;  %v14332_v44 = vld [vmem:[%s19529_s3 + $0x10c0] ss:$8 sps:$4 sm:$0xff]  }
 0x29e   : > { %7601 = vmatprep.subr.bf16.mxu1 %v14310_v46  ;;  %v14179_v46 = vld [vmem:[%s19529_s3 + $0xf70] ss:$8 sps:$4 sm:$0xff]  }
 0x29f   : > { %6049 = vmatpush2.bf16.msra.mxu0 %v14161_v31  ;;  %v14328_v31 = vld [vmem:[%s19529_s3 + $0x10d4] ss:$8 sps:$4 sm:$0xff]  }
 0x2a0   : > { %6050 = vmatprep.subr.bf16.mxu0 %v14169_v57  ;;  %v7187_v57 = vpack.c.bf16 %v7075_v49, %v7063_v4  ;;  %v5539_v4 = vld [vmem:[#allocation2 + $0x278] sm:$0xff] }
 0x2a1   : > { %7602 = vmatpush1.bf16.msra.mxu1 %v14308_v63  ;;  %v14187_v63 = vld [vmem:[%s19529_s3 + $0xf64] ss:$8 sps:$4 sm:$0xff]   ;;  %v14191_v49 = vld [vmem:[%s19529_s3 + $0xf50] ss:$8 sps:$4 sm:$0xff]  }
 0x2a2   : > { %7603 = vmatprep.subr.bf16.mxu1 %v14316_v7  ;;  %v14326_v7 = vld [vmem:[%s19529_s3 + $0x10d0] ss:$8 sps:$4 sm:$0xff]   ;;  %7619 = vmatprep.mubr.bf16.mxu1 %v7187_v57  ;;  %v5554_v57 = vpack.c.bf16 %v5530_v12, %v5526_v6  ;;  %v5543_v12 = vld [vmem:[#allocation2 + $0x208] sm:$0xff] }
 0x2a3   : > { %6051 = vmatpush2.bf16.msra.mxu0 %v14167_v25  ;;  %v17194_v25 = vpop.f32.mrf.mxu0 }
 0x2a4   : > { %6052 = vmatprep.subr.bf16.mxu0 %v14175_v17  ;;  %19556 = vst [vmem:[#allocation15_spill] sm:$0xff] %v17194_v25  ;;  %v5550_v17 = vpack.c.bf16 %v5522_v13, %v5518_v11  ;;  %v5535_v13 = vld [vmem:[#allocation2 + $0x1f8] sm:$0xff] }
 0x2a5   : > { %7604 = vmatpush2.bf16.msra.mxu1 %v14314_v21  ;;  %v17196_v21 = vpop.f32.mrf.mxu1  ;;  %v6959_v25 = vld [vmem:[#allocation2 + $0x38] sm:$0x3] }
 0x2a6   : > { %7605 = vmatprep.subr.bf16.mxu1 %v14322_v51  ;;  %19557 = vst [vmem:[#allocation16_spill] sm:$0xff] %v17196_v21  ;;  %v14185_v51 = vld [vmem:[%s19529_s3 + $0xf60] ss:$8 sps:$4 sm:$0xff]   ;;  %v7098_v28 = vrot.slane %v6959_v25, 2  ;;  %v6950_v25 = vld [vmem:[#allocation2 + $0x1d0] sm:$0x3] }
 0x2a7   : > { %6053 = vmatpush2.bf16.msra.mxu0 %v14173_v43 }
 0x2a8   : > { %6841 = vmatprep.subr.bf16.mxu0 %v14181_v16  ;;  %v17211_v16 = vpop.f32.mrf.mxu1 }
 0x2a9   : > { %7606 = vmatpush2.bf16.msra.mxu1 %v14320_v54 }
 0x2aa   : > { %v3822_v1 = vpop.f32.mrf.mxu0  ;;  %6055 = vmatmul.mubr.bf16.vlgmr.msra.gmra.mxu0 %v5550_v17  ;;  %7607 = vmatprep.subr.bf16.mxu1 %v14328_v31 }
 0x2ab   : > { %v3823_v23 = vadd.f32 %v3822_v1, %v17093_v22  ;;  %6064 = vmatprep.mubr.bf16.mxu0 %v5555_v56  ;;  %6842 = vmatpush1.bf16.msra.mxu0 %v14179_v46  ;;  %v14199_v46 = vld [vmem:[%s19529_s3 + $0xf44] ss:$8 sps:$4 sm:$0xff]  }
 0x2ac   : > { %v3824_v43 = vpop.f32.mrf.mxu0  ;;  %6843 = vmatprep.subr.bf16.mxu0 %v14187_v63  ;;  %v17235_v63 = vpop.f32.mrf.mxu1  ;;  %v5534_v56 = vld [vmem:[#allocation2 + $0xa0] sm:$0xff] }
 0x2ad   : > { %v17217_v22 = vadd.f32 %v3823_v23, %v16896_v32  ;;  %v3825_v37 = vadd.f32 %v3824_v43, %v17109_v29  ;;  %7608 = vmatpush2.bf16.msra.mxu1 %v14326_v7  ;;  %v14338_v32 = vld [vmem:[%s19529_s3 + $0x10b0] ss:$8 sps:$4 sm:$0xff]   ;;  %v17237_v7 = vld [vmem:[#allocation2 + $0x160] sm:$0xfe]  ;;  %v6126_v43 = vld [vmem:[#allocation2 + $0x268] sm:$0x1] }
 0x2ae   : > { %v3826_v11 = vpop.f32.mrf.mxu0  ;;  %7609 = vmatprep.subr.bf16.mxu1 %v14334_v5  ;;  %v14197_v5 = vld [vmem:[%s19529_s3 + $0xf40] ss:$8 sps:$4 sm:$0xff]   ;;  %v17250_v23 = vld [vmem:[#allocation2 + $0x238] sm:$0xfe] }
 0x2af   : > { %v17227_v54 = vadd.f32 %v3825_v37, %v16916_v41  ;;  %v3827_v31 = vadd.f32 %v3826_v11, %v17125_v0  ;;  %6844 = vmatpush1.bf16.msra.mxu0 %v14185_v51  ;;  %v14346_v41 = vld [vmem:[%s19529_s3 + $0x10a4] ss:$8 sps:$4 sm:$0xff]   ;;  %v5559_v0 = vpack.c.bf16 %v5539_v4, %v5535_v13  ;;  %v5538_v51 = vld [vmem:[#allocation2 + $0xd0] sm:$0xff]  ;;  %v17261_v37 = vpop.f32.mrf.mxu1 }
 0x2b0   : > { %v17233_v29 = vpop.f32.mrf.mxu0  ;;  %6845 = vmatprep.subr.bf16.mxu0 %v14193_v3  ;;  %v17248_v3 = vld [vmem:[#allocation2 + $0x218] sm:$0x1]  ;;  %v17259_v13 = vld [vmem:[#allocation2 + $0x80] sm:$0xfc] }
 0x2b1   : > { %19558 = vst [vmem:[#allocation17_spill] sm:$0xff] %v17233_v29  ;;  %v17243_v17 = vadd.f32 %v3827_v31, %v16934_v2  ;;  %7610 = vmatpush2.bf16.msra.mxu1 %v14332_v44  ;;  %v14205_v2 = vld [vmem:[%s19529_s3 + $0xf34] ss:$8 sps:$4 sm:$0xff]   ;;  %v14344_v44 = vld [vmem:[%s19529_s3 + $0x10a0] ss:$8 sps:$4 sm:$0xff]   ;;  %v5558_v29 = vpack.c.bf16 %v5538_v51, %v5534_v56 }
 0x2b2   : > { %v3832_v1 = vpop.f32.mrf.mxu0  ;;  %6065 = vmatmul.mubr.bf16.gmra.mxu0 %v5554_v57  ;;  %7611 = vmatprep.subr.bf16.mxu1 %v14340_v47  ;;  %v6934_v47 = vld [vmem:[#allocation2 + $0x1d8] sm:$0x3] }
 0x2b3   : > { %v3833_v6 = vadd.f32 %v3832_v1, %v17150_v34  ;;  %6074 = vmatprep.mubr.bf16.mxu0 %v5559_v0  ;;  %6846 = vmatpush1.bf16.msra.mxu0 %v14191_v49  ;;  %v14352_v34 = vld [vmem:[%s19529_s3 + $0x1094] ss:$8 sps:$4 sm:$0xff]   ;;  %v14203_v57 = vld [vmem:[%s19529_s3 + $0xf30] ss:$8 sps:$4 sm:$0xff]   ;;  %v6248_v0 = vrot.slane %v17237_v7, 1  ;;  %v6260_v7 = vrot.slane %v17250_v23, 1 }
 0x2b4   : > { %v3834_v4 = vpop.f32.mrf.mxu0  ;;  %6847 = vmatprep.subr.bf16.mxu0 %v14199_v46  ;;  %v6938_v49 = vld [vmem:[#allocation2 + $0x190] sm:$0xfc]  ;;  %v6942_v46 = vld [vmem:[#allocation2 + $0x188] sm:$0x3]  ;;  %v6947_v1 = vld [vmem:[#allocation2 + $0x98] sm:$0xfc] }
 0x2b5   : > { %v17267_v11 = vadd.f32 %v3833_v6, %v16966_v45  ;;  %v3835_v31 = vadd.f32 %v3834_v4, %v17164_v27  ;;  %7612 = vmatpush2.bf16.msra.mxu1 %v14338_v32  ;;  %v6951_v45 = vld [vmem:[#allocation2 + $0x1e0] sm:$0x3]  ;;  %v6955_v6 = vld [vmem:[#allocation2 + $0x1b0] sm:$0xfc]  ;;  %v6249_v32 = vrot.slane %v17248_v3, 1 }
 0x2b6   : > { %v3836_v21 = vpop.f32.mrf.mxu0  ;;  %7613 = vmatprep.subr.bf16.mxu1 %v14346_v41  ;;  %v14350_v56 = vld [vmem:[%s19529_s3 + $0x1090] ss:$8 sps:$4 sm:$0xff]   ;;  %v17288_v41 = vld [vmem:[#allocation2 + $0x8] sm:$0xff]  ;;  %v7086_v33 = vrot.slane %v6951_v45, 2  ;;  %v7097_v9 = vrot.slane %v6955_v6, 2 }
 0x2b7   : > { %v17278_v27 = vadd.f32 %v3835_v31, %v16978_v40  ;;  %v3837_v4 = vadd.f32 %v3836_v21, %v17176_v53  ;;  %6848 = vmatpush1.bf16.msra.mxu0 %v14197_v5  ;;  %v5563_v60 = vpack.c.bf16 %v17288_v41, %v5543_v12  ;;  %v17291_v40 = vpop.f32.mrf.mxu1  ;;  %v6261_v31 = vrot.slane %v6126_v43, 1  ;;  %v14358_v53 = vld [vmem:[%s19529_s3 + $0x1084] ss:$8 sps:$4 sm:$0xff]   ;;  %v14209_v23 = vld [vmem:[%s19529_s3 + $0xf20] ss:$8 sps:$4 sm:$0xff]   ;;  %v5542_v43 = vld [vmem:[#allocation2 + $0x138] sm:$0xff] }
 0x2b8   : > { %v17286_v51 = vpop.f32.mrf.mxu0  ;;  %6849 = vmatprep.subr.bf16.mxu0 %v14205_v2  ;;  %19560 = vst [vmem:[#allocation19_spill] sm:$0xff] %v17291_v40  ;;  %v7058_v21 = vrot.slane %v17259_v13, 2  ;;  %v7059_v5 = vrot.slane %v6934_v47, 2  ;;  %v7070_v2 = vrot.slane %v6938_v49, 2  ;;  %v7071_v12 = vrot.slane %v6942_v46, 2 }
 0x2b9   : > { %19559 = vst [vmem:[#allocation18_spill] sm:$0xff] %v17286_v51  ;;  %v17298_v3 = vadd.f32 %v3837_v4, %v16991_v48  ;;  %7614 = vmatpush2.bf16.msra.mxu1 %v14344_v44  ;;  %v7085_v51 = vrot.slane %v6947_v1, 2  ;;  %v14217_v48 = vld [vmem:[%s19529_s3 + $0xf14] ss:$8 sps:$4 sm:$0xff]   ;;  %v14356_v44 = vld [vmem:[%s19529_s3 + $0x1080] ss:$8 sps:$4 sm:$0xff]   ;;  %v6262_v49 = vsel %vm1320_vm0, %v6260_v7, %v6261_v31  ;;  %v6250_v7 = vsel %vm1320_vm0, %v6248_v0, %v6249_v32 }
 0x2ba   : > { %v3842_v40 = vpop.f32.mrf.mxu0  ;;  %6075 = vmatmul.mubr.bf16.gmra.mxu0 %v5558_v29  ;;  %7615 = vmatprep.subr.bf16.mxu1 %v14352_v34  ;;  %v17310_v47 = vld [vmem:[#allocation2 + $0xf8] sm:$0xfc]  ;;  %v3779_v34 = vpop.f32.mrf.mxu1  ;;  %v6954_v46 = vld [vmem:[#allocation2] sm:$0xfc]  ;;  %v7060_v1 = vsel %vm2590_vm1, %v7058_v21, %v7059_v5  ;;  %v7072_v45 = vsel %vm2590_vm1, %v7070_v2, %v7071_v12  ;;  %v6963_v6 = vld [vmem:[#allocation2 + $0x1f0] sm:$0xfc]  ;;  %v5562_v0 = vpack.c.bf16 %v17288_v41, %v5542_v43 }
 0x2bb   : > { %v3843_v13 = vadd.f32 %v3842_v40, %v17211_v16  ;;  %6084 = vmatprep.mubr.bf16.mxu0 %v5563_v60  ;;  %6850 = vmatpush1.bf16.msra.mxu0 %v14203_v57  ;;  %v14215_v57 = vld [vmem:[%s19529_s3 + $0xf10] ss:$8 sps:$4 sm:$0xff]   ;;  %v7099_v40 = vsel %vm2590_vm1, %v7097_v9, %v7098_v28  ;;  %v6370_v32 = vpack.c.bf16 %v6262_v49, %v6250_v7  ;;  %v7083_v28 = vrot.slane %v6950_v25, 2  ;;  %v6979_v7 = vld [vmem:[#allocation2 + $0x60] sm:$0xfc] }
 0x2bc   : > { %v3844_v29 = vpop.f32.mrf.mxu0  ;;  %6851 = vmatprep.subr.bf16.mxu0 %v14211_v50  ;;  %v6958_v50 = vld [vmem:[#allocation2 + $0x1e8] sm:$0x3]  ;;  %v6967_v31 = vld [vmem:[#allocation2 + $0x258] sm:$0x3]  ;;  %v7186_v12 = vpack.c.bf16 %v7072_v45, %v7060_v1  ;;  %v7094_v9 = vrot.slane %v6954_v46, 2 }
 0x2bd   : > { %v17314_v60 = vadd.f32 %v3843_v13, %v17012_v52  ;;  %v3845_v16 = vadd.f32 %v3844_v29, %v17235_v63  ;;  %7616 = vmatpush2.bf16.msra.mxu1 %v14350_v56  ;;  %v14223_v52 = vld [vmem:[%s19529_s3 + $0xf04] ss:$8 sps:$4 sm:$0xff]   ;;  %v7087_v63 = vsel %vm2590_vm1, %v7085_v51, %v7086_v33  ;;  %v6975_v13 = vld [vmem:[#allocation2 + $0x180] sm:$0x3]  ;;  %v7082_v33 = vrot.slane %v17310_v47, 2 }
 0x2be   : > { %v3846_v4 = vpop.f32.mrf.mxu0  ;;  %7617 = vmatprep.subr.bf16.mxu1 %v14358_v53  ;;  %v6971_v56 = vld [vmem:[#allocation2 + $0x168] sm:$0xfc]  ;;  %v3781_v53 = vpop.f32.mrf.mxu1  ;;  %v7095_v29 = vrot.slane %v6958_v50, 2  ;;  %v7110_v41 = vrot.slane %v6967_v31, 2  ;;  %v7122_v49 = vrot.slane %v6975_v13, 2 }
 0x2bf   : > { %v17329_v21 = vadd.f32 %v3845_v16, %v17023_v55  ;;  %v3847_v5 = vadd.f32 %v3846_v4, %v17261_v37  ;;  %6852 = vmatpush1.bf16.msra.mxu0 %v14209_v23  ;;  %v7191_v55 = vpack.c.bf16 %v7099_v40, %v7087_v63  ;;  %v7109_v37 = vrot.slane %v6963_v6, 2  ;;  %v6966_v46 = vld [vmem:[#allocation2 + $0x58] sm:$0x3]  ;;  %v6970_v1 = vld [vmem:[#allocation2 + $0x1b8] sm:$0xfc] }
 0x2c0   : > { %v17333_v2 = vpop.f32.mrf.mxu0  ;;  %6853 = vmatprep.subr.bf16.mxu0 %v14217_v48  ;;  %v7121_v43 = vrot.slane %v6971_v56, 2  ;;  %v14221_v48 = vld [vmem:[%s19529_s3 + $0xf00] ss:$8 sps:$4 sm:$0xff]   ;;  %v3783_v25 = vpop.f32.mrf.mxu1  ;;  %v7084_v50 = vsel %vm2590_vm1, %v7082_v33, %v7083_v28  ;;  %v7096_v6 = vsel %vm2590_vm1, %v7094_v9, %v7095_v29  ;;  %v6974_v4 = vld [vmem:[#allocation2 + $0x210] sm:$0x3]  ;;  %v7118_v33 = vrot.slane %v6970_v1, 2 }
 0x2c1   : > { %v17337_v51 = vadd.f32 %v3847_v5, %v17032_v15  ;;  %7618 = vmatpush2.bf16.msra.mxu1 %v14356_v44  ;;  %v14229_v15 = vld [vmem:[%s19529_s3 + $0xff4] ss:$8 sps:$4 sm:$0xff]   ;;  %v6983_v31 = vld [vmem:[#allocation2 + $0x88] sm:$0x3]  ;;  %v6991_v13 = vld [vmem:[#allocation2 + $0x178] sm:$0x3] }
 0x2c2   : > { %v3852_v23 = vpop.f32.mrf.mxu0  ;;  %6085 = vmatmul.mubr.bf16.gmra.mxu0 %v5562_v0  ;;  %v6962_v44 = vld [vmem:[#allocation2 + $0x78] sm:$0xfc]  ;;  %v7123_v40 = vsel %vm2590_vm1, %v7121_v43, %v7122_v49  ;;  %v6987_v56 = vld [vmem:[#allocation2 + $0x230] sm:$0xfc]  ;;  %v14233_v9 = vld [vmem:[%s19529_s3 + $0xfe0] ss:$8 sps:$4 sm:$0xff]  }
 0x2c3   : > { %v3853_v16 = vadd.f32 %v3852_v23, %v3779_v34  ;;  %6854 = vmatpush1.bf16.msra.mxu0 %v14215_v57  ;;  %6873 = vmatprep.mubr.bf16.mxu0 %v6370_v32  ;;  %v14227_v57 = vld [vmem:[%s19529_s3 + $0xff0] ss:$8 sps:$4 sm:$0xff]   ;;  %v7190_v32 = vpack.c.bf16 %v7096_v6, %v7084_v50  ;;  %v7119_v29 = vrot.slane %v6974_v4, 2  ;;  %v7134_v23 = vrot.slane %v6983_v31, 2  ;;  %v6978_v49 = vld [vmem:[#allocation2 + $0xa8] sm:$0xfc] }
 0x2c4   : > { %v3854_v47 = vpop.f32.mrf.mxu0  ;;  %6855 = vmatprep.subr.bf16.mxu0 %v14223_v52  ;;  %7620 = vmatmul.mubr.bf16.vlgmr.msra.gmra.mxu1 %v7186_v12  ;;  %v14235_v52 = vld [vmem:[%s19529_s3 + $0xfe4] ss:$8 sps:$4 sm:$0xff]   ;;  %v7107_v12 = vrot.slane %v6966_v46, 2  ;;  %v7146_v43 = vrot.slane %v6991_v13, 2  ;;  %v7130_v6 = vrot.slane %v6978_v49, 2 }
 0x2c5   : > { %v17346_v45 = vadd.f32 %v3853_v16, %v17054_v58  ;;  %v3855_v34 = vadd.f32 %v3854_v47, %v3781_v53  ;;  %7629 = vmatprep.mubr.bf16.mxu1 %v7191_v55  ;;  %v7111_v58 = vsel %vm2590_vm1, %v7109_v37, %v7110_v41  ;;  %v7106_v53 = vrot.slane %v6962_v44, 2  ;;  %v17370_v16 = vpop.f32.mrf.mxu1  ;;  %v14239_v44 = vld [vmem:[%s19529_s3 + $0xfd0] ss:$8 sps:$4 sm:$0xff]   ;;  %v14247_v46 = vld [vmem:[%s19529_s3 + $0xfc4] ss:$8 sps:$4 sm:$0xff]  }
 0x2c6   : > { %v3856_v63 = vpop.f32.mrf.mxu0  ;;  %v7195_v55 = vpack.c.bf16 %v7123_v40, %v7111_v58  ;;  %v7133_v37 = vrot.slane %v6979_v7, 2  ;;  %v7145_v41 = vrot.slane %v6987_v56, 2  ;;  %v14245_v4 = vld [vmem:[%s19529_s3 + $0xfc0] ss:$8 sps:$4 sm:$0xff]   ;;  %v14253_v40 = vld [vmem:[%s19529_s3 + $0xfb4] ss:$8 sps:$4 sm:$0xff]  }
 0x2c7   : > { %v17359_v5 = vadd.f32 %v3855_v34, %v17063_v24  ;;  %v3857_v0 = vadd.f32 %v3856_v63, %v3783_v25  ;;  %6856 = vmatpush1.bf16.msra.mxu0 %v14221_v48  ;;  %v14241_v24 = vld [vmem:[%s19529_s3 + $0xfd4] ss:$8 sps:$4 sm:$0xff]   ;;  %v6986_v48 = vld [vmem:[#allocation2 + $0x1c0] sm:$0xfc]  ;;  %v7108_v47 = vsel %vm2590_vm1, %v7106_v53, %v7107_v12  ;;  %v7120_v25 = vsel %vm2590_vm1, %v7118_v33, %v7119_v29  ;;  %v17380_v1 = vpop.f32.mrf.mxu1  ;;  %v6117_v13 = vld [vmem:[#allocation2 + $0x248] sm:$0x1] }
 0x2c8   : > { %6857 = vmatprep.subr.bf16.mxu0 %v14229_v15  ;;  %v6990_v15 = vld [vmem:[#allocation2 + $0x20] sm:$0x3]  ;;  %v7135_v34 = vsel %vm2590_vm1, %v7133_v37, %v7134_v23  ;;  %v7194_v50 = vpack.c.bf16 %v7120_v25, %v7108_v47  ;;  %v6113_v56 = vld [vmem:[#allocation2 + $0x10] sm:$0xfe]  ;;  %v6130_v53 = vld [vmem:[#allocation2 + $0x198] sm:$0xfe] }
 0x2c9   : > { %v17362_v28 = vadd.f32 %v3857_v0, %v17069_v62  ;;  %v6982_v62 = vld [vmem:[#allocation2 + $0x240] sm:$0x3]  ;;  %v7143_v58 = vrot.slane %v6990_v15, 2  ;;  %v17390_v31 = vpop.f32.mrf.mxu1  ;;  %v6121_v0 = vld [vmem:[#allocation2 + $0x68] sm:$0xfe] }
 0x2ca   : > { %v7131_v63 = vrot.slane %v6982_v62, 2  ;;  %v6134_v12 = vld [vmem:[#allocation2 + $0x228] sm:$0x1]  ;;  %v6138_v33 = vld [vmem:[#allocation2 + $0x270] sm:$0xfe]  ;;  %v6257_v49 = vrot.slane %v6121_v0, 1 }
 0x2cb   : > { %6858 = vmatpush2.bf16.msra.mxu0 %v14227_v57  ;;  %v7147_v57 = vsel %vm2590_vm1, %v7145_v41, %v7146_v43  ;;  %v17400_v23 = vpop.f32.mrf.mxu1  ;;  %v6245_v41 = vrot.slane %v6113_v56, 1  ;;  %v6246_v43 = vrot.slane %v6117_v13, 1  ;;  %v6273_v47 = vrot.slane %v6134_v12, 1  ;;  %v14277_v56 = vld [vmem:[%s19529_s3 + $0x1174] ss:$8 sps:$4 sm:$0xff]  }
 0x2cc   : > { %6859 = vmatprep.subr.bf16.mxu0 %v14235_v52  ;;  %7630 = vmatmul.mubr.bf16.gmra.mxu1 %v7190_v32  ;;  %v7199_v7 = vpack.c.bf16 %v7147_v57, %v7135_v34  ;;  %v7142_v52 = vrot.slane %v6986_v48, 2  ;;  %v6125_v32 = vld [vmem:[#allocation2 + $0xb8] sm:$0x1]  ;;  %v7132_v29 = vsel %vm2590_vm1, %v7130_v6, %v7131_v63  ;;  %v6272_v48 = vrot.slane %v6130_v53, 1  ;;  %v14265_v34 = vld [vmem:[%s19529_s3 + $0xf94] ss:$8 sps:$4 sm:$0xff]  }
 0x2cd   : > { %7639 = vmatprep.mubr.bf16.mxu1 %v7195_v55  ;;  %v14251_v55 = vld [vmem:[%s19529_s3 + $0xfb0] ss:$8 sps:$4 sm:$0xff]   ;;  %v6258_v62 = vrot.slane %v6125_v32, 1  ;;  %v6284_v25 = vrot.slane %v6138_v33, 1  ;;  %v17408_v57 = vpop.f32.mrf.mxu1  ;;  %v14269_v63 = vld [vmem:[%s19529_s3 + $0xf80] ss:$8 sps:$4 sm:$0xff]  }
 0x2ce   : > { %v7144_v37 = vsel %vm2590_vm1, %v7142_v52, %v7143_v58  ;;  %19561 = vst [vmem:[#allocation20_spill] sm:$0xff] %v17408_v57  ;;  %v14263_v6 = vld [vmem:[%s19529_s3 + $0xf90] ss:$8 sps:$4 sm:$0xff]   ;;  %v6129_v52 = vld [vmem:[#allocation2 + $0xe0] sm:$0xfe]  ;;  %v6274_v13 = vsel %vm1320_vm0, %v6272_v48, %v6273_v47  ;;  %v17435_v48 = vpop.f32.mrf.mxu0 }
 0x2cf   : > { %6860 = vmatpush2.bf16.msra.mxu0 %v14233_v9  ;;  %v6142_v9 = vld [vmem:[#allocation2 + $0x18] sm:$0x1]  ;;  %v7198_v15 = vpack.c.bf16 %v7144_v37, %v7132_v29  ;;  %v6133_v58 = vld [vmem:[#allocation2 + $0x1a8] sm:$0x1]  ;;  %v6137_v53 = vld [vmem:[#allocation2 + $0x90] sm:$0xfe] }
 0x2d0   : > { %6861 = vmatprep.subr.bf16.mxu0 %v14241_v24  ;;  %v14259_v24 = vld [vmem:[%s19529_s3 + $0xfa4] ss:$8 sps:$4 sm:$0xff]   ;;  %v6141_v12 = vld [vmem:[#allocation2 + $0x1c8] sm:$0x1]  ;;  %v6146_v33 = vld [vmem:[#allocation2 + $0x1f8] sm:$0xfe] }
 0x2d1   : > { %v6154_v29 = vld [vmem:[#allocation2 + $0x278] sm:$0xfe]  ;;  %v6158_v37 = vld [vmem:[#allocation2 + $0x110] sm:$0x1]  ;;  %v6270_v47 = vrot.slane %v6133_v58, 1 }
 0x2d3   : > { %6862 = vmatpush2.bf16.msra.mxu0 %v14239_v44  ;;  %v14257_v44 = vld [vmem:[%s19529_s3 + $0xfa0] ss:$8 sps:$4 sm:$0xff]  }
 0x2d4   : > { %6863 = vmatprep.subr.bf16.mxu0 %v14247_v46  ;;  %7640 = vmatmul.mubr.bf16.gmra.mxu1 %v7194_v50  ;;  %v6285_v46 = vrot.slane %v6142_v9, 1  ;;  %v17410_v50 = vpop.f32.mrf.mxu1  ;;  %v6247_v9 = vsel %vm1320_vm0, %v6245_v41, %v6246_v43  ;;  %v6281_v41 = vrot.slane %v6137_v53, 1  ;;  %v6282_v43 = vrot.slane %v6141_v12, 1 }
 0x2d5   : > { %7649 = vmatprep.mubr.bf16.mxu1 %v7199_v7 }
 0x2d6   : > { %v17418_v7 = vpop.f32.mrf.mxu1  ;;  %v6286_v0 = vsel %vm1320_vm0, %v6284_v25, %v6285_v46  ;;  %v6296_v46 = vrot.slane %v6146_v33, 1 }
 0x2d7   : > { %6864 = vmatpush2.bf16.msra.mxu0 %v14245_v4  ;;  %v14271_v4 = vld [vmem:[%s19529_s3 + $0xf84] ss:$8 sps:$4 sm:$0xff]  }
 0x2d8   : > { %6865 = vmatprep.subr.bf16.mxu0 %v14253_v40  ;;  %v6259_v40 = vsel %vm1320_vm0, %v6257_v49, %v6258_v62  ;;  %v17429_v32 = vpop.f32.mrf.mxu1  ;;  %v14275_v49 = vld [vmem:[%s19529_s3 + $0x1170] ss:$8 sps:$4 sm:$0xff]   ;;  %v6374_v62 = vpack.c.bf16 %v6286_v0, %v6274_v13  ;;  %v6283_v13 = vsel %vm1320_vm0, %v6281_v41, %v6282_v43  ;;  %v14289_v0 = vld [vmem:[%s19529_s3 + $0x1154] ss:$8 sps:$4 sm:$0xff]  }
 0x2d9   : > { %v6174_v41 = vld [vmem:[#allocation2 + $0xb0] sm:$0x1] }
 0x2da   : > { %v17440_v25 = vpop.f32.mrf.mxu1 }
 0x2db   : > { %6866 = vmatpush2.bf16.msra.mxu0 %v14251_v55  ;;  %v6150_v55 = vld [vmem:[#allocation2 + $0x100] sm:$0x1]  ;;  %19562 = vst [vmem:[#allocation21_spill] sm:$0xff] %v17440_v25 }
 0x2dc   : > { %6867 = vmatprep.subr.bf16.mxu0 %v14259_v24  ;;  %7650 = vmatmul.mubr.bf16.gmra.mxu1 %v7198_v15  ;;  %v6369_v24 = vpack.c.bf16 %v6259_v40, %v6247_v9  ;;  %v14283_v15 = vld [vmem:[%s19529_s3 + $0x1164] ss:$8 sps:$4 sm:$0xff]   ;;  %v17451_v53 = vpop.f32.mrf.mxu1 }
 0x2df   : > { %6868 = vmatpush2.bf16.msra.mxu0 %v14257_v44  ;;  %v6269_v44 = vrot.slane %v6129_v52, 1 }
 0x2e0   : > { %6869 = vmatprep.subr.bf16.mxu0 %v14265_v34  ;;  %v6297_v34 = vrot.slane %v6150_v55, 1  ;;  %v6145_v55 = vld [vmem:[#allocation2 + $0xa0] sm:$0xfe] }
 0x2e1   : > { %v6271_v58 = vsel %vm1320_vm0, %v6269_v44, %v6270_v47 }
 0x2e2   : > { %v6298_v33 = vsel %vm1320_vm0, %v6296_v46, %v6297_v34  ;;  %v6373_v46 = vpack.c.bf16 %v6283_v13, %v6271_v58  ;;  %v6333_v13 = vrot.slane %v6174_v41, 1  ;;  %v6169_v41 = vld [vmem:[#allocation2 + $0x170] sm:$0xfe] }
 0x2e3   : > { %6870 = vmatpush2.bf16.msra.mxu0 %v14263_v6  ;;  %v6308_v6 = vrot.slane %v6154_v29, 1  ;;  %v6149_v29 = vld [vmem:[#allocation2 + $0x260] sm:$0x1] }
 0x2e4   : > { %6871 = vmatprep.subr.bf16.mxu0 %v14271_v4  ;;  %v6309_v4 = vrot.slane %v6158_v37, 1  ;;  %v6153_v37 = vld [vmem:[#allocation2 + $0xd0] sm:$0xfe] }
 0x2e6   : > { %v6310_v9 = vsel %vm1320_vm0, %v6308_v6, %v6309_v4  ;;  %v14295_v6 = vld [vmem:[%s19529_s3 + $0x1144] ss:$8 sps:$4 sm:$0xff]   ;;  %v17471_v4 = vpop.f32.mrf.mxu1 }
 0x2e7   : > { %6872 = vmatpush2.bf16.msra.mxu0 %v14269_v63  ;;  %v6378_v34 = vpack.c.bf16 %v6310_v9, %v6298_v33  ;;  %v14293_v33 = vld [vmem:[%s19529_s3 + $0x1140] ss:$8 sps:$4 sm:$0xff]  }
 0x2e8   : > { %7660 = vmatprep.subr.bf16.mxu0 %v14277_v56  ;;  %v14281_v56 = vld [vmem:[%s19529_s3 + $0x1160] ss:$8 sps:$4 sm:$0xff]  }
 0x2ea   : > { %v4641_v63 = vpop.f32.mrf.mxu0  ;;  %6874 = vmatmul.mubr.bf16.vlgmr.msra.gmra.mxu0 %v6369_v24 }
 0x2eb   : > { %v4642_v40 = vadd.f32 %v4641_v63, %v17380_v1  ;;  %6883 = vmatprep.mubr.bf16.mxu0 %v6374_v62  ;;  %7661 = vmatpush1.bf16.msra.mxu0 %v14275_v49  ;;  %v6157_v49 = vld [vmem:[#allocation2 + $0x130] sm:$0x1]  ;;  %v6162_v62 = vld [vmem:[#allocation2 + $0x208] sm:$0xfe]  ;;  %v6294_v63 = vrot.slane %v6149_v29, 1 }
 0x2ec   : > { %v4643_v52 = vpop.f32.mrf.mxu0  ;;  %7662 = vmatprep.subr.bf16.mxu0 %v14283_v15  ;;  %v6166_v15 = vld [vmem:[#allocation2 + $0x128] sm:$0x1] }
 0x2ed   : > { %v17454_v1 = vadd.f32 %v4642_v40, %v17217_v22  ;;  %v4644_v12 = vadd.f32 %v4643_v52, %v17390_v31  ;;  %v14287_v22 = vld [vmem:[%s19529_s3 + $0x1150] ss:$8 sps:$4 sm:$0xff]   ;;  %v6305_v40 = vrot.slane %v6153_v37, 1 }
 0x2ee   : > { %v4645_v24 = vpop.f32.mrf.mxu0  ;;  %v6170_v31 = vld [vmem:[#allocation2 + $0x150] sm:$0xfe] }
 0x2ef   : > { %v17460_v44 = vadd.f32 %v4644_v12, %v17227_v54  ;;  %v4646_v47 = vadd.f32 %v4645_v24, %v17400_v23  ;;  %7663 = vmatpush1.bf16.msra.mxu0 %v14281_v56  ;;  %v6293_v54 = vrot.slane %v6145_v55, 1  ;;  %v6306_v56 = vrot.slane %v6157_v49, 1  ;;  %v4592_v55 = vpop.f32.mrf.mxu1 }
 0x2f0   : > { %v17466_v43 = vpop.f32.mrf.mxu0  ;;  %7664 = vmatprep.subr.bf16.mxu0 %v14289_v0  ;;  %v6320_v12 = vrot.slane %v6162_v62, 1  ;;  %v6321_v24 = vrot.slane %v6166_v15, 1  ;;  %v6332_v58 = vrot.slane %v6170_v31, 1  ;;  %v6161_v62 = vld [vmem:[#allocation2 + $0x138] sm:$0xfe] }
 0x2f1   : > { %19563 = vst [vmem:[#allocation22_spill] sm:$0xff] %v17466_v43  ;;  %v17474_v23 = vadd.f32 %v4646_v47, %v17243_v17  ;;  %v14301_v17 = vld [vmem:[%s19529_s3 + $0x1134] ss:$8 sps:$4 sm:$0xff]   ;;  %v6307_v49 = vsel %vm1320_vm0, %v6305_v40, %v6306_v56  ;;  %v6165_v15 = vld [vmem:[#allocation2 + $0x118] sm:$0x1] }
 0x2f2   : > { %v4651_v52 = vpop.f32.mrf.mxu0  ;;  %6884 = vmatmul.mubr.bf16.gmra.mxu0 %v6373_v46  ;;  %v6334_v31 = vsel %vm1320_vm0, %v6332_v58, %v6333_v13  ;;  %v6173_v46 = vld [vmem:[#allocation2 + $0x50] sm:$0x1]  ;;  %v14307_v56 = vld [vmem:[%s19529_s3 + $0x1124] ss:$8 sps:$4 sm:$0xff]   ;;  %v6329_v58 = vrot.slane %v6169_v41, 1 }
 0x2f3   : > { %v4652_v0 = vadd.f32 %v4651_v52, %v17410_v50  ;;  %6893 = vmatprep.mubr.bf16.mxu0 %v6378_v34  ;;  %7665 = vmatpush1.bf16.msra.mxu0 %v14287_v22  ;;  %v6295_v50 = vsel %vm1320_vm0, %v6293_v54, %v6294_v63  ;;  %v6322_v22 = vsel %vm1320_vm0, %v6320_v12, %v6321_v24  ;;  %v6945_v54 = vld [vmem:[#allocation2 + $0x268] sm:$0x3]  ;;  %v17503_v52 = vpop.f32.mrf.mxu1  ;;  %v6318_v12 = vrot.slane %v6165_v15, 1  ;;  %v14313_v15 = vld [vmem:[%s19529_s3 + $0x1114] ss:$8 sps:$4 sm:$0xff]  }
 0x2f4   : > { %v4653_v9 = vpop.f32.mrf.mxu0  ;;  %7666 = vmatprep.subr.bf16.mxu0 %v14295_v6  ;;  %v6941_v6 = vld [vmem:[#allocation2 + $0x238] sm:$0xfc]  ;;  %v6377_v40 = vpack.c.bf16 %v6307_v49, %v6295_v50  ;;  %19565 = vst [vmem:[#allocation24_spill] sm:$0xff] %v17503_v52  ;;  %v6382_v24 = vpack.c.bf16 %v6334_v31, %v6322_v22  ;;  %v6330_v13 = vrot.slane %v6173_v46, 1  ;;  %v14305_v49 = vld [vmem:[%s19529_s3 + $0x1120] ss:$8 sps:$4 sm:$0xff]  }
 0x2f5   : > { %v17484_v29 = vadd.f32 %v4652_v0, %v17267_v11  ;;  %v4654_v37 = vadd.f32 %v4653_v9, %v17418_v7  ;;  %v14299_v7 = vld [vmem:[%s19529_s3 + $0x1130] ss:$8 sps:$4 sm:$0xff]   ;;  %v6933_v0 = vld [vmem:[#allocation2 + $0x160] sm:$0xfc] }
 0x2f6   : > { %v4655_v47 = vpop.f32.mrf.mxu0  ;;  %v6331_v46 = vsel %vm1320_vm0, %v6329_v58, %v6330_v13  ;;  %v14317_v13 = vld [vmem:[%s19529_s3 + $0x1100] ss:$8 sps:$4 sm:$0xff]  }
 0x2f7   : > { %v17492_v34 = vadd.f32 %v4654_v37, %v17278_v27  ;;  %v4656_v11 = vadd.f32 %v4655_v47, %v17429_v32  ;;  %7667 = vmatpush1.bf16.msra.mxu0 %v14293_v33  ;;  %v6317_v27 = vrot.slane %v6161_v62, 1  ;;  %v6937_v33 = vld [vmem:[#allocation2 + $0x218] sm:$0x3]  ;;  %v7079_v37 = vrot.slane %v6941_v6, 2 }
 0x2f8   : > { %v17498_v63 = vpop.f32.mrf.mxu0  ;;  %7668 = vmatprep.subr.bf16.mxu0 %v14301_v17  ;;  %v7080_v17 = vrot.slane %v6945_v54, 2  ;;  %v7067_v47 = vrot.slane %v6933_v0, 2  ;;  %v7068_v22 = vrot.slane %v6937_v33, 2 }
 0x2f9   : > { %19564 = vst [vmem:[#allocation23_spill] sm:$0xff] %v17498_v63  ;;  %v17506_v32 = vadd.f32 %v4656_v11, %v17298_v3  ;;  %v4598_v3 = vpop.f32.mrf.mxu1  ;;  %v6319_v41 = vsel %vm1320_vm0, %v6317_v27, %v6318_v12  ;;  %v14319_v12 = vld [vmem:[%s19529_s3 + $0x1104] ss:$8 sps:$4 sm:$0xff]  }
 0x2fa   : > { %v4661_v9 = vpop.f32.mrf.mxu0  ;;  %6894 = vmatmul.mubr.bf16.gmra.mxu0 %v6377_v40  ;;  %v14311_v40 = vld [vmem:[%s19529_s3 + $0x1110] ss:$8 sps:$4 sm:$0xff]  }
 0x2fb   : > { %v4662_v50 = vadd.f32 %v4661_v9, %v17451_v53  ;;  %6903 = vmatprep.mubr.bf16.mxu0 %v6382_v24  ;;  %7669 = vmatpush1.bf16.msra.mxu0 %v14299_v7  ;;  %v7081_v7 = vsel %vm2590_vm1, %v7079_v37, %v7080_v17  ;;  %v4600_v27 = vpop.f32.mrf.mxu1  ;;  %v14325_v9 = vld [vmem:[%s19529_s3 + $0x11f4] ss:$8 sps:$4 sm:$0xff]  }
 0x2fc   : > { %v4663_v62 = vpop.f32.mrf.mxu0  ;;  %7670 = vmatprep.subr.bf16.mxu0 %v14307_v56  ;;  %v6381_v56 = vpack.c.bf16 %v6331_v46, %v6319_v41  ;;  %v14341_v46 = vld [vmem:[%s19529_s3 + $0x11c0] ss:$8 sps:$4 sm:$0xff]  }
 0x2fd   : > { %v17516_v31 = vadd.f32 %v4662_v50, %v17314_v60  ;;  %v4664_v53 = vadd.f32 %v4663_v62, %v17471_v4  ;;  %v7069_v4 = vsel %vm2590_vm1, %v7067_v47, %v7068_v22  ;;  %v4602_v33 = vpop.f32.mrf.mxu1  ;;  %v14323_v62 = vld [vmem:[%s19529_s3 + $0x11f0] ss:$8 sps:$4 sm:$0xff]   ;;  %v14337_v47 = vld [vmem:[%s19529_s3 + $0x11d4] ss:$8 sps:$4 sm:$0xff]  }
 0x2fe   : > { %v4665_v11 = vpop.f32.mrf.mxu0 }
 0x2ff   : > { %v17523_v6 = vadd.f32 %v4664_v53, %v17329_v21  ;;  %v4666_v54 = vadd.f32 %v4665_v11, %v4592_v55  ;;  %7671 = vmatpush1.bf16.msra.mxu0 %v14305_v49  ;;  %v7189_v55 = vpack.c.bf16 %v7081_v7, %v7069_v4  ;;  %v14343_v53 = vld [vmem:[%s19529_s3 + $0x11c4] ss:$8 sps:$4 sm:$0xff]   ;;  %v14349_v11 = vld [vmem:[%s19529_s3 + $0x11b4] ss:$8 sps:$4 sm:$0xff]   ;;  %v14353_v4 = vld [vmem:[%s19529_s3 + $0x11a0] ss:$8 sps:$4 sm:$0xff]  }
 0x300   : > { %v17528_v60 = vpop.f32.mrf.mxu0  ;;  %7672 = vmatprep.subr.bf16.mxu0 %v14313_v15 }
 0x301   : > { %19566 = vst [vmem:[#allocation25_spill] sm:$0xff] %v17528_v60  ;;  %v17535_v21 = vadd.f32 %v4666_v54, %v17337_v51  ;;  %v14347_v54 = vld [vmem:[%s19529_s3 + $0x11b0] ss:$8 sps:$4 sm:$0xff]  }
 0x302   : > { %v4671_v24 = vpop.f32.mrf.mxu0  ;;  %6904 = vmatmul.mubr.bf16.gmra.mxu0 %v6381_v56 }
 0x303   : > { %v4672_v58 = vadd.f32 %v4671_v24, %v4598_v3  ;;  %7673 = vmatpush1.bf16.msra.mxu0 %v14311_v40  ;;  %7692 = vmatprep.mubr.bf16.mxu0 %v7189_v55  ;;  %v14331_v3 = vld [vmem:[%s19529_s3 + $0x11e4] ss:$8 sps:$4 sm:$0xff]   ;;  %v6944_v24 = vld [vmem:[#allocation2 + $0xb8] sm:$0x3] }
 0x304   : > { %v4673_v0 = vpop.f32.mrf.mxu0  ;;  %7674 = vmatprep.subr.bf16.mxu0 %v14319_v12  ;;  %v14355_v40 = vld [vmem:[%s19529_s3 + $0x11a4] ss:$8 sps:$4 sm:$0xff]  }
 0x305   : > { %v17544_v51 = vadd.f32 %v4672_v58, %v17346_v45  ;;  %v4674_v37 = vadd.f32 %v4673_v0, %v4600_v27  ;;  %v14329_v45 = vld [vmem:[%s19529_s3 + $0x11e0] ss:$8 sps:$4 sm:$0xff]   ;;  %v14361_v27 = vld [vmem:[%s19529_s3 + $0x1194] ss:$8 sps:$4 sm:$0xff]  }
 0x306   : > { %v4675_v17 = vpop.f32.mrf.mxu0  ;;  %v6940_v55 = vld [vmem:[#allocation2 + $0x68] sm:$0xfc]  ;;  %v6949_v58 = vld [vmem:[#allocation2 + $0x198] sm:$0xfc]  ;;  %v6957_v0 = vld [vmem:[#allocation2 + $0x270] sm:$0xfc] }
 0x307   : > { %v17547_v50 = vadd.f32 %v4674_v37, %v17359_v5  ;;  %v4676_v49 = vadd.f32 %v4675_v17, %v4602_v33  ;;  %7675 = vmatpush1.bf16.msra.mxu0 %v14317_v13  ;;  %v17561_v5 = vpop.f32.mrf.mxu1  ;;  %v6953_v13 = vld [vmem:[#allocation2 + $0x228] sm:$0x3]  ;;  %v6961_v33 = vld [vmem:[#allocation2 + $0x18] sm:$0x3]  ;;  %v6932_v37 = vld [vmem:[#allocation2 + $0x10] sm:$0xfc] }
 0x308   : > { %7676 = vmatprep.subr.bf16.mxu0 %v14325_v9  ;;  %19567 = vst [vmem:[#allocation26_spill] sm:$0xff] %v17561_v5  ;;  %v14359_v9 = vld [vmem:[%s19529_s3 + $0x1190] ss:$8 sps:$4 sm:$0xff]   ;;  %v6936_v17 = vld [vmem:[#allocation2 + $0x248] sm:$0x3]  ;;  %v17617_v25 = vpop.f32.mrf.mxu0 }
 0x309   : > { %v17556_v15 = vadd.f32 %v4676_v49, %v17362_v28  ;;  %v17566_v22 = vpop.f32.mrf.mxu1  ;;  %v14335_v28 = vld [vmem:[%s19529_s3 + $0x11d0] ss:$8 sps:$4 sm:$0xff]   ;;  %v14364_v49 = vld [vmem:[%s19529_s3 + $0x1184] ss:$8 sps:$4 sm:$0xff]   ;;  %v6960_v5 = vld [vmem:[#allocation2 + $0x1c8] sm:$0x3] }
 0x30a   : > { %v7101_v63 = vrot.slane %v6960_v5, 2 }
 0x30b   : > { %7677 = vmatpush2.bf16.msra.mxu0 %v14323_v62  ;;  %v17574_v41 = vpop.f32.mrf.mxu1  ;;  %v7076_v62 = vrot.slane %v6940_v55, 2 }
 0x30c   : > { %7678 = vmatprep.subr.bf16.mxu0 %v14331_v3  ;;  %v7077_v3 = vrot.slane %v6944_v24, 2 }
 0x30d   : > { %v17582_v7 = vpop.f32.mrf.mxu1 }
 0x30e   : > { %v7078_v24 = vsel %vm2590_vm1, %v7076_v62, %v7077_v3 }
 0x30f   : > { %7679 = vmatpush2.bf16.msra.mxu0 %v14329_v45  ;;  %v17590_v56 = vpop.f32.mrf.mxu1 }
 0x310   : > { %7680 = vmatprep.subr.bf16.mxu0 %v14337_v47  ;;  %19568 = vst [vmem:[#allocation27_spill] sm:$0xff] %v17590_v56  ;;  %v7091_v47 = vrot.slane %v6949_v58, 2  ;;  %v6956_v56 = vld [vmem:[#allocation2 + $0x90] sm:$0xfc] }
 0x311   : > { %v17598_v12 = vpop.f32.mrf.mxu1  ;;  %v7100_v52 = vrot.slane %v6956_v56, 2 }
 0x313   : > { %7681 = vmatpush2.bf16.msra.mxu0 %v14335_v28  ;;  %v17606_v45 = vpop.f32.mrf.mxu1  ;;  %v7092_v28 = vrot.slane %v6953_v13, 2  ;;  %v7102_v56 = vsel %vm2590_vm1, %v7100_v52, %v7101_v63  ;;  %v6989_v63 = vld [vmem:[#allocation2 + $0x150] sm:$0xfc]  ;;  %v6993_v52 = vld [vmem:[#allocation2 + $0xb0] sm:$0x3] }
 0x314   : > { %7682 = vmatprep.subr.bf16.mxu0 %v14343_v53  ;;  %v7103_v53 = vrot.slane %v6957_v0, 2  ;;  %v6965_v0 = vld [vmem:[#allocation2 + $0x1f8] sm:$0xfc] }
 0x315   : > { %v17611_v55 = vpop.f32.mrf.mxu1  ;;  %v7093_v58 = vsel %vm2590_vm1, %v7091_v47, %v7092_v28  ;;  %v7115_v3 = vrot.slane %v6965_v0, 2  ;;  %v6972_v0 = vld [vmem:[#allocation2 + $0xd0] sm:$0xfc] }
 0x317   : > { %7683 = vmatpush2.bf16.msra.mxu0 %v14341_v46  ;;  %v7104_v46 = vrot.slane %v6961_v33, 2  ;;  %v17619_v62 = vpop.f32.mrf.mxu1 }
 0x318   : > { %7684 = vmatprep.subr.bf16.mxu0 %v14349_v11  ;;  %v7064_v11 = vrot.slane %v6932_v37, 2  ;;  %v6973_v37 = vld [vmem:[#allocation2 + $0x278] sm:$0xfc] }
 0x319   : > { %v7105_v13 = vsel %vm2590_vm1, %v7103_v53, %v7104_v46  ;;  %v7127_v28 = vrot.slane %v6973_v37, 2 }
 0x31a   : > { %v7193_v57 = vpack.c.bf16 %v7105_v13, %v7093_v58 }
 0x31b   : > { %7685 = vmatpush2.bf16.msra.mxu0 %v14347_v54  ;;  %v7065_v54 = vrot.slane %v6936_v17, 2  ;;  %v6977_v17 = vld [vmem:[#allocation2 + $0x110] sm:$0x3] }
 0x31c   : > { %7686 = vmatprep.subr.bf16.mxu0 %v14355_v40  ;;  %v14362_v40 = vld [vmem:[%s19529_s3 + $0x1180] ss:$8 sps:$4 sm:$0xff]   ;;  %v7128_v53 = vrot.slane %v6977_v17, 2 }
 0x31d   : > { %v7066_v33 = vsel %vm2590_vm1, %v7064_v11, %v7065_v54 }
 0x31e   : > { %v7188_v43 = vpack.c.bf16 %v7078_v24, %v7066_v33 }
 0x31f   : > { %7687 = vmatpush2.bf16.msra.mxu0 %v14353_v4  ;;  %v6948_v4 = vld [vmem:[#allocation2 + $0xe0] sm:$0xfc] }
 0x320   : > { %7688 = vmatprep.subr.bf16.mxu0 %v14361_v27  ;;  %v6952_v27 = vld [vmem:[#allocation2 + $0x1a8] sm:$0x3]  ;;  %v7088_v60 = vrot.slane %v6948_v4, 2  ;;  %v6964_v4 = vld [vmem:[#allocation2 + $0xa0] sm:$0xfc] }
 0x321   : > { %v7112_v17 = vrot.slane %v6964_v4, 2 }
 0x323   : > { %7689 = vmatpush2.bf16.msra.mxu0 %v14359_v9  ;;  %v6969_v9 = vld [vmem:[#allocation2 + $0x100] sm:$0x3] }
 0x324   : > { %7690 = vmatprep.subr.bf16.mxu0 %v14364_v49  ;;  %v7089_v49 = vrot.slane %v6952_v27, 2  ;;  %v7116_v47 = vrot.slane %v6969_v9, 2  ;;  %v6968_v27 = vld [vmem:[#allocation2 + $0x260] sm:$0x3]  ;;  %v6985_v9 = vld [vmem:[#allocation2 + $0x128] sm:$0x3] }
 0x326   : > { %v7090_v54 = vsel %vm2590_vm1, %v7088_v60, %v7089_v49  ;;  %v7117_v13 = vsel %vm2590_vm1, %v7115_v3, %v7116_v47  ;;  %v7113_v49 = vrot.slane %v6968_v27, 2  ;;  %v7124_v47 = vrot.slane %v6972_v0, 2 }
 0x327   : > { %7691 = vmatpush2.bf16.msra.mxu0 %v14362_v40  ;;  %v5407_v40 = vpop.f32.mrf.mxu1  ;;  %v7192_v60 = vpack.c.bf16 %v7102_v56, %v7090_v54  ;;  %v7140_v54 = vrot.slane %v6985_v9, 2  ;;  %v7151_v56 = vrot.slane %v6989_v63, 2 }
 0x328   : > { %v7114_v4 = vsel %vm2590_vm1, %v7112_v17, %v7113_v49 }
 0x32a   : > { %v5460_v46 = vpop.f32.mrf.mxu0  ;;  %7693 = vmatmul.mubr.bf16.vlgmr.msra.gmra.mxu0 %v7188_v43  ;;  %v7129_v43 = vsel %vm2590_vm1, %v7127_v28, %v7128_v53 }
 0x32b   : > { %v5461_v11 = vadd.f32 %v5460_v46, %v17566_v22  ;;  %7702 = vmatprep.mubr.bf16.mxu0 %v7193_v57  ;;  %v6976_v22 = vld [vmem:[#allocation2 + $0x130] sm:$0x3]  ;;  %v6981_v57 = vld [vmem:[#allocation2 + $0x208] sm:$0xfc]  ;;  %v7197_v3 = vpack.c.bf16 %v7129_v43, %v7117_v13  ;;  %v5409_v46 = vpop.f32.mrf.mxu1 }
 0x32c   : > { %v5462_v5 = vpop.f32.mrf.mxu0  ;;  %v7125_v28 = vrot.slane %v6976_v22, 2  ;;  %v7139_v53 = vrot.slane %v6981_v57, 2  ;;  %v6980_v22 = vld [vmem:[#allocation2 + $0x138] sm:$0xfc] }
 0x32d   : > { %v17625_v24 = vadd.f32 %v5461_v11, %v17454_v1  ;;  %v5463_v58 = vadd.f32 %v5462_v5, %v17574_v41  ;;  %v7152_v5 = vrot.slane %v6993_v52, 2 }
 0x32e   : > { %v5464_v33 = vpop.f32.mrf.mxu0  ;;  %v7126_v27 = vsel %vm2590_vm1, %v7124_v47, %v7125_v28  ;;  %v7141_v43 = vsel %vm2590_vm1, %v7139_v53, %v7140_v54 }
 0x32f   : > { %19569 = vst [vmem:[#allocation28_spill] sm:$0xff] %v17625_v24  ;;  %v17631_v37 = vadd.f32 %v5463_v58, %v17460_v44  ;;  %v5465_v1 = vadd.f32 %v5464_v33, %v17582_v7  ;;  %v5411_v58 = vpop.f32.mrf.mxu1  ;;  %v7153_v0 = vsel %vm2590_vm1, %v7151_v56, %v7152_v5  ;;  %v6984_v33 = vld [vmem:[#allocation2 + $0x118] sm:$0x3] }
 0x330   : > { %v17634_v41 = vpop.f32.mrf.mxu0  ;;  %v7201_v52 = vpack.c.bf16 %v7153_v0, %v7141_v43  ;;  %v7137_v49 = vrot.slane %v6984_v33, 2 }
 0x331   : > { %v17637_v11 = vadd.f32 %v5465_v1, %v17474_v23  ;;  %v17654_v1 = vpop.f32.mrf.mxu1 }
 0x332   : > { %v5470_v24 = vpop.f32.mrf.mxu0  ;;  %7703 = vmatmul.mubr.bf16.gmra.mxu0 %v7192_v60 }
 0x333   : > { %v5471_v44 = vadd.f32 %v5470_v24, %v17598_v12  ;;  %7712 = vmatprep.mubr.bf16.mxu0 %v7197_v3  ;;  %v6988_v12 = vld [vmem:[#allocation2 + $0x170] sm:$0xfc]  ;;  %v6992_v24 = vld [vmem:[#allocation2 + $0x50] sm:$0x3]  ;;  %v5417_v54 = vpop.f32.mrf.mxu1 }
 0x334   : > { %v5472_v7 = vpop.f32.mrf.mxu0  ;;  %v7148_v3 = vrot.slane %v6988_v12, 2  ;;  %v7149_v47 = vrot.slane %v6992_v24, 2 }
 0x335   : > { %v17643_v13 = vadd.f32 %v5471_v44, %v17484_v29  ;;  %v5473_v23 = vadd.f32 %v5472_v7, %v17606_v45  ;;  %v7196_v29 = vpack.c.bf16 %v7126_v27, %v7114_v4  ;;  %v7136_v45 = vrot.slane %v6980_v22, 2 }
 0x336   : > { %v5474_v57 = vpop.f32.mrf.mxu0  ;;  %v7150_v44 = vsel %vm2590_vm1, %v7148_v3, %v7149_v47  ;;  %v14377_v3 = vld [vmem:[%s19530_s4 + $0x50] ss:$8 sps:$4 sm:$0xff]   ;;  %v14382_v47 = vld [vmem:[%s19530_s4 + $0x154] ss:$8 sps:$4 sm:$0xff]  }
 0x337   : > { %19570 = vst [vmem:[#allocation29_spill] sm:$0xff] %v17643_v13  ;;  %v17649_v60 = vadd.f32 %v5473_v23, %v17492_v34  ;;  %v5475_v9 = vadd.f32 %v5474_v57, %v17611_v55  ;;  %v7138_v5 = vsel %vm2590_vm1, %v7136_v45, %v7137_v49  ;;  %v14374_v45 = vld [vmem:[%s19530_s4 + $0x160] ss:$8 sps:$4 sm:$0xff]   ;;  %v14379_v49 = vld [vmem:[%s19530_s4 + $0x54] ss:$8 sps:$4 sm:$0xff]  }
 0x338   : > { %v17652_v63 = vpop.f32.mrf.mxu0  ;;  %v7200_v23 = vpack.c.bf16 %v7150_v44, %v7138_v5  ;;  %v14386_v44 = vld [vmem:[%s19530_s4 + $0x140] ss:$8 sps:$4 sm:$0xff]   ;;  %v19633_v13 = vld [vmem:[#allocation19_spill] sm:$0xff] }
 0x339   : > { %19571 = vst [vmem:[#allocation30_spill] sm:$0xff] %v17649_v60  ;;  %v17657_v17 = vadd.f32 %v5475_v9, %v17506_v32 }
 0x33a   : > { %v5480_v28 = vpop.f32.mrf.mxu0  ;;  %7713 = vmatmul.mubr.bf16.gmra.mxu0 %v7196_v29  ;;  %v14370_v29 = vld [vmem:[%s19530_s4 + $0x174] ss:$8 sps:$4 sm:$0xff]  }
 0x33b   : > { %19572 = vst [vmem:[#allocation31_spill] sm:$0xff] %v17657_v17  ;;  %v5481_v53 = vadd.f32 %v5480_v28, %v5407_v40  ;;  %7722 = vmatprep.mubr.bf16.mxu0 %v7201_v52  ;;  %v5419_v40 = vpop.f32.mrf.mxu1  ;;  %v14371_v52 = vld [vmem:[%s19530_s4 + $0x60] ss:$8 sps:$4 sm:$0xff]   ;;  %8327 = vmatprep.subr.bf16.mxu1 %v14370_v29  ;;  %v14385_v28 = vld [vmem:[%s19530_s4 + $0x44] ss:$8 sps:$4 sm:$0xff]  }
 0x33c   : > { %v5482_v34 = vpop.f32.mrf.mxu0  ;;  %v14404_v29 = vld [vmem:[%s19530_s4 + $0x110] ss:$8 sps:$4 sm:$0xff]  }
 0x33d   : > { %v17660_v55 = vadd.f32 %v5481_v53, %v17516_v31  ;;  %v5483_v56 = vadd.f32 %v5482_v34, %v5409_v46  ;;  %v5421_v22 = vpop.f32.mrf.mxu1  ;;  %v14380_v53 = vld [vmem:[%s19530_s4 + $0x150] ss:$8 sps:$4 sm:$0xff]   ;;  %v14383_v34 = vld [vmem:[%s19530_s4 + $0x40] ss:$8 sps:$4 sm:$0xff]  }
 0x33e   : > { %v5484_v7 = vpop.f32.mrf.mxu0 }
 0x33f   : > { %19573 = vst [vmem:[#allocation32_spill] sm:$0xff] %v17660_v55  ;;  %v17665_v32 = vadd.f32 %v5483_v56, %v17523_v6  ;;  %v5485_v4 = vadd.f32 %v5484_v7, %v5411_v58  ;;  %v14365_v6 = vld [vmem:[%s19530_s4 + $0x70] ss:$8 sps:$4 sm:$0xff]   ;;  %v14367_v58 = vld [vmem:[%s19530_s4 + $0x74] ss:$8 sps:$4 sm:$0xff]   ;;  %v17729_v5 = vpop.f32.mrf.mxu1 }
 0x340   : > { %v17667_v27 = vpop.f32.mrf.mxu0  ;;  %8560 = vmatprep.subr.bf16.mxu0 %v14367_v58  ;;  %v14391_v56 = vld [vmem:[%s19530_s4 + $0x34] ss:$8 sps:$4 sm:$0xff]  }
 0x341   : > { %19574 = vst [vmem:[#allocation33_spill] sm:$0xff] %v17665_v32  ;;  %v17670_v43 = vadd.f32 %v5485_v4, %v17535_v21  ;;  %8561 = vmatpush1.bf16.msra.mxu0 %v14365_v6  ;;  %v17734_v7 = vpop.f32.mrf.mxu1  ;;  %v14389_v4 = vld [vmem:[%s19530_s4 + $0x30] ss:$8 sps:$4 sm:$0xff]   ;;  %v14398_v6 = vld [vmem:[%s19530_s4 + $0x120] ss:$8 sps:$4 sm:$0xff]  }
 0x342   : > { %v5490_v0 = vpop.f32.mrf.mxu0  ;;  %7723 = vmatmul.mubr.bf16.gmra.mxu0 %v7200_v23  ;;  %v14394_v23 = vld [vmem:[%s19530_s4 + $0x134] ss:$8 sps:$4 sm:$0xff]  }
 0x343   : > { %19575 = vst [vmem:[#allocation34_spill] sm:$0xff] %v17670_v43  ;;  %v5491_v31 = vadd.f32 %v5490_v0, %v5417_v54  ;;  %v14388_v54 = vld [vmem:[%s19530_s4 + $0x144] ss:$8 sps:$4 sm:$0xff]   ;;  %v14392_v0 = vld [vmem:[%s19530_s4 + $0x130] ss:$8 sps:$4 sm:$0xff]  }
 0x344   : > { %v5492_v46 = vpop.f32.mrf.mxu0  ;;  %v14460_v43 = vld [vmem:[%s19530_s4 + $0x184] ss:$8 sps:$4 sm:$0xff]  }
 0x345   : > { %v17673_v57 = vadd.f32 %v5491_v31, %v17544_v51  ;;  %v5493_v33 = vadd.f32 %v5492_v46, %v5419_v40  ;;  %v14368_v51 = vld [vmem:[%s19530_s4 + $0x170] ss:$8 sps:$4 sm:$0xff]   ;;  %v14397_v40 = vld [vmem:[%s19530_s4 + $0x24] ss:$8 sps:$4 sm:$0xff]   ;;  %v17748_v31 = vpop.f32.mrf.mxu1  ;;  %v14395_v46 = vld [vmem:[%s19530_s4 + $0x20] ss:$8 sps:$4 sm:$0xff]  }
 0x346   : > { %v5494_v12 = vpop.f32.mrf.mxu0  ;;  %8328 = vmatpush1.bf16.msra.mxu1 %v14368_v51  ;;  %v14409_v51 = vld [vmem:[%s19530_s4 + $0x4] ss:$8 sps:$4 sm:$0xff]  }
 0x347   : > { %19576 = vst [vmem:[#allocation35_spill] sm:$0xff] %v17673_v57  ;;  %v17682_v21 = vadd.f32 %v5493_v33, %v17547_v50  ;;  %v5495_v24 = vadd.f32 %v5494_v12, %v5421_v22  ;;  %v14373_v50 = vld [vmem:[%s19530_s4 + $0x64] ss:$8 sps:$4 sm:$0xff]   ;;  %v14403_v33 = vld [vmem:[%s19530_s4 + $0x14] ss:$8 sps:$4 sm:$0xff]   ;;  %v17762_v58 = vpop.f32.mrf.mxu1 }
 0x348   : > { %8562 = vmatprep.subr.bf16.mxu0 %v14373_v50  ;;  %v14400_v22 = vld [vmem:[%s19530_s4 + $0x124] ss:$8 sps:$4 sm:$0xff]   ;;  %v14401_v12 = vld [vmem:[%s19530_s4 + $0x10] ss:$8 sps:$4 sm:$0xff]   ;;  %v14407_v50 = vld [vmem:[%s19530_s4] ss:$8 sps:$4 sm:$0xff]  }
 0x349   : > { %19577 = vst [vmem:[#allocation36_spill] sm:$0xff] %v17682_v21  ;;  %v17685_v9 = vadd.f32 %v5495_v24, %v17556_v15  ;;  %v14376_v15 = vld [vmem:[%s19530_s4 + $0x164] ss:$8 sps:$4 sm:$0xff]   ;;  %8563 = vmatpush1.bf16.msra.mxu0 %v14371_v52  ;;  %v14406_v24 = vld [vmem:[%s19530_s4 + $0x114] ss:$8 sps:$4 sm:$0xff]   ;;  %v17776_v52 = vpop.f32.mrf.mxu1 }
 0x34a   : > { %8329 = vmatprep.subr.bf16.mxu1 %v14376_v15  ;;  %8564 = vmatprep.subr.bf16.mxu0 %v14379_v49  ;;  %v14412_v15 = vld [vmem:[%s19530_s4 + $0x104] ss:$8 sps:$4 sm:$0xff]   ;;  %v14454_v21 = vld [vmem:[%s19530_s4 + $0x194] ss:$8 sps:$4 sm:$0xff]   ;;  %v14455_v57 = vld [vmem:[%s19530_s4 + $0x80] ss:$8 sps:$4 sm:$0xff]  }
 0x34b   : > { %19578 = vst [vmem:[#allocation37_spill] sm:$0xff] %v17685_v9  ;;  %8330 = vmatpush1.bf16.msra.mxu1 %v14374_v45  ;;  %v14415_v45 = vld [vmem:[%s19530_s4 + $0xf4] ss:$8 sps:$4 sm:$0xff]   ;;  %v17787_v49 = vpop.f32.mrf.mxu1  ;;  %v14449_v9 = vld [vmem:[%s19530_s4 + $0x90] ss:$8 sps:$4 sm:$0xff]  }
 0x34c   : > { %8331 = vmatprep.subr.bf16.mxu1 %v14382_v47  ;;  %v14413_v47 = vld [vmem:[%s19530_s4 + $0xf0] ss:$8 sps:$4 sm:$0xff]  }
 0x34d   : > { %8565 = vmatpush1.bf16.msra.mxu0 %v14377_v3  ;;  %v14410_v3 = vld [vmem:[%s19530_s4 + $0x100] ss:$8 sps:$4 sm:$0xff]  }
 0x34e   : > { %8566 = vmatprep.subr.bf16.mxu0 %v14385_v28  ;;  %v14418_v28 = vld [vmem:[%s19530_s4 + $0x1f4] ss:$8 sps:$4 sm:$0xff]  }
 0x34f   : > { %8332 = vmatpush1.bf16.msra.mxu1 %v14380_v53  ;;  %v14421_v53 = vld [vmem:[%s19530_s4 + $0xe4] ss:$8 sps:$4 sm:$0xff]  }
 0x350   : > { %8333 = vmatprep.subr.bf16.mxu1 %v14388_v54  ;;  %v14416_v54 = vld [vmem:[%s19530_s4 + $0x1f0] ss:$8 sps:$4 sm:$0xff]  }
 0x351   : > { %8567 = vmatpush1.bf16.msra.mxu0 %v14383_v34  ;;  %v17801_v34 = vpop.f32.mrf.mxu1 }
 0x352   : > { %8568 = vmatprep.subr.bf16.mxu0 %v14391_v56  ;;  %v14419_v56 = vld [vmem:[%s19530_s4 + $0xe0] ss:$8 sps:$4 sm:$0xff]  }
 0x353   : > { %8334 = vmatpush1.bf16.msra.mxu1 %v14386_v44  ;;  %v17809_v44 = vpop.f32.mrf.mxu1 }
 0x354   : > { %8335 = vmatprep.subr.bf16.mxu1 %v14394_v23 }
 0x355   : > { %8569 = vmatpush1.bf16.msra.mxu0 %v14389_v4  ;;  %v17811_v4 = vpop.f32.mrf.mxu0 }
 0x356   : > { %8570 = vmatprep.subr.bf16.mxu0 %v14397_v40  ;;  %v17815_v40 = vpop.f32.mrf.mxu1 }
 0x357   : > { %8336 = vmatpush1.bf16.msra.mxu1 %v14392_v0 }
 0x358   : > { %8337 = vmatprep.subr.bf16.mxu1 %v14400_v22 }
 0x359   : > { %8571 = vmatpush1.bf16.msra.mxu0 %v14395_v46  ;;  %v17819_v46 = vpop.f32.mrf.mxu1 }
 0x35a   : > { %8572 = vmatprep.subr.bf16.mxu0 %v14403_v33 }
 0x35b   : > { %8338 = vmatpush1.bf16.msra.mxu1 %v14398_v6  ;;  %v17823_v33 = vpop.f32.mrf.mxu1  ;;  %v14422_v6 = vld [vmem:[%s19530_s4 + $0x1e0] ss:$8 sps:$4 sm:$0xff]  }
 0x35c   : > { %8339 = vmatprep.subr.bf16.mxu1 %v14406_v24  ;;  %v14425_v24 = vld [vmem:[%s19530_s4 + $0xd0] ss:$8 sps:$4 sm:$0xff]  }
 0x35d   : > { %8573 = vmatpush1.bf16.msra.mxu0 %v14401_v12  ;;  %v14424_v12 = vld [vmem:[%s19530_s4 + $0x1e4] ss:$8 sps:$4 sm:$0xff]  }
 0x35e   : > { %8574 = vmatprep.subr.bf16.mxu0 %v14409_v51  ;;  %v14427_v51 = vld [vmem:[%s19530_s4 + $0xd4] ss:$8 sps:$4 sm:$0xff]  }
 0x35f   : > { %8340 = vmatpush1.bf16.msra.mxu1 %v14404_v29 }
 0x360   : > { %8341 = vmatprep.subr.bf16.mxu1 %v14412_v15  ;;  %v14428_v15 = vld [vmem:[%s19530_s4 + $0x1d0] ss:$8 sps:$4 sm:$0xff]  }
 0x361   : > { %8575 = vmatpush1.bf16.msra.mxu0 %v14407_v50  ;;  %v17839_v50 = vpop.f32.mrf.mxu1 }
 0x362   : > { %8576 = vmatprep.subr.bf16.mxu0 %v14415_v45  ;;  %v14430_v45 = vld [vmem:[%s19530_s4 + $0x1d4] ss:$8 sps:$4 sm:$0xff]  }
 0x363   : > { %8342 = vmatpush1.bf16.msra.mxu1 %v14410_v3  ;;  %v14431_v3 = vld [vmem:[%s19530_s4 + $0xc0] ss:$8 sps:$4 sm:$0xff]  }
 0x364   : > { %8343 = vmatprep.subr.bf16.mxu1 %v14418_v28 }
 0x365   : > { %8577 = vmatpush2.bf16.msra.mxu0 %v14413_v47  ;;  %v14433_v47 = vld [vmem:[%s19530_s4 + $0xc4] ss:$8 sps:$4 sm:$0xff]  }
 0x366   : > { %8578 = vmatprep.subr.bf16.mxu0 %v14421_v53  ;;  %v17855_v53 = vpop.f32.mrf.mxu1 }
 0x367   : > { %8344 = vmatpush2.bf16.msra.mxu1 %v14416_v54  ;;  %v14434_v54 = vld [vmem:[%s19530_s4 + $0x1c0] ss:$8 sps:$4 sm:$0xff]  }
 0x368   : > { %8345 = vmatprep.subr.bf16.mxu1 %v14424_v12  ;;  %v14439_v12 = vld [vmem:[%s19530_s4 + $0xb4] ss:$8 sps:$4 sm:$0xff]  }
 0x369   : > { %8579 = vmatpush2.bf16.msra.mxu0 %v14419_v56  ;;  %v14436_v56 = vld [vmem:[%s19530_s4 + $0x1c4] ss:$8 sps:$4 sm:$0xff]  }
 0x36a   : > { %v17813_v23 = vpop.f32.mrf.mxu0  ;;  %8580 = vmatprep.subr.bf16.mxu0 %v14427_v51  ;;  %v17871_v51 = vpop.f32.mrf.mxu1 }
 0x36b   : > { %8346 = vmatpush2.bf16.msra.mxu1 %v14422_v6  ;;  %v14437_v6 = vld [vmem:[%s19530_s4 + $0xb0] ss:$8 sps:$4 sm:$0xff]   ;;  %19579 = vst [vmem:[#allocation38_spill] sm:$0xff] %v17871_v51 }
 0x36c   : > { %v17817_v0 = vpop.f32.mrf.mxu0  ;;  %8347 = vmatprep.subr.bf16.mxu1 %v14430_v45  ;;  %v14442_v45 = vld [vmem:[%s19530_s4 + $0x1b4] ss:$8 sps:$4 sm:$0xff]  }
 0x36d   : > { %8581 = vmatpush2.bf16.msra.mxu0 %v14425_v24 }
 0x36e   : > { %v17821_v22 = vpop.f32.mrf.mxu0  ;;  %8582 = vmatprep.subr.bf16.mxu0 %v14433_v47  ;;  %v14445_v47 = vld [vmem:[%s19530_s4 + $0xa4] ss:$8 sps:$4 sm:$0xff]  }
 0x36f   : > { %8348 = vmatpush2.bf16.msra.mxu1 %v14428_v15  ;;  %v14440_v15 = vld [vmem:[%s19530_s4 + $0x1b0] ss:$8 sps:$4 sm:$0xff]  }
 0x370   : > { %v17837_v29 = vpop.f32.mrf.mxu0  ;;  %8349 = vmatprep.subr.bf16.mxu1 %v14436_v56  ;;  %v17887_v56 = vpop.f32.mrf.mxu1 }
 0x371   : > { %8583 = vmatpush2.bf16.msra.mxu0 %v14431_v3  ;;  %v14443_v3 = vld [vmem:[%s19530_s4 + $0xa0] ss:$8 sps:$4 sm:$0xff]   ;;  %19580 = vst [vmem:[#allocation39_spill] sm:$0xff] %v17887_v56 }
 0x372   : > { %v17853_v28 = vpop.f32.mrf.mxu0  ;;  %8584 = vmatprep.subr.bf16.mxu0 %v14439_v12  ;;  %v14446_v12 = vld [vmem:[%s19530_s4 + $0x1a0] ss:$8 sps:$4 sm:$0xff]  }
 0x373   : > { %8350 = vmatpush2.bf16.msra.mxu1 %v14434_v54 }
 0x374   : > { %v17869_v24 = vpop.f32.mrf.mxu0  ;;  %8351 = vmatprep.subr.bf16.mxu1 %v14442_v45  ;;  %v14451_v45 = vld [vmem:[%s19530_s4 + $0x94] ss:$8 sps:$4 sm:$0xff]  }
 0x375   : > { %8585 = vmatpush2.bf16.msra.mxu0 %v14437_v6  ;;  %v14448_v6 = vld [vmem:[%s19530_s4 + $0x1a4] ss:$8 sps:$4 sm:$0xff]  }
 0x376   : > { %v17885_v54 = vpop.f32.mrf.mxu0  ;;  %8586 = vmatprep.subr.bf16.mxu0 %v14445_v47 }
 0x377   : > { %8352 = vmatpush2.bf16.msra.mxu1 %v14440_v15  ;;  %v17903_v15 = vpop.f32.mrf.mxu1 }
 0x378   : > { %8353 = vmatprep.subr.bf16.mxu1 %v14448_v6  ;;  %v17901_v47 = vpop.f32.mrf.mxu0  ;;  %19581 = vst [vmem:[#allocation40_spill] sm:$0xff] %v17903_v15  ;;  %v14457_v6 = vld [vmem:[%s19530_s4 + $0x84] ss:$8 sps:$4 sm:$0xff]   ;;  %v14463_v15 = vld [vmem:[%s19530_s4 + $0x374] ss:$8 sps:$4 sm:$0xff]  }
 0x379   : > { %8587 = vmatpush2.bf16.msra.mxu0 %v14443_v3  ;;  %v14452_v3 = vld [vmem:[%s19530_s4 + $0x190] ss:$8 sps:$4 sm:$0xff]  }
 0x37a   : > { %8588 = vmatprep.subr.bf16.mxu0 %v14451_v45  ;;  %v17917_v45 = vpop.f32.mrf.mxu0 }
 0x37b   : > { %8354 = vmatpush2.bf16.msra.mxu1 %v14446_v12  ;;  %v14458_v12 = vld [vmem:[%s19530_s4 + $0x180] ss:$8 sps:$4 sm:$0xff]  }
 0x37c   : > { %8355 = vmatprep.subr.bf16.mxu1 %v14454_v21  ;;  %v17932_v21 = vpop.f32.mrf.mxu0 }
 0x37d   : > { %8589 = vmatpush2.bf16.msra.mxu0 %v14449_v9  ;;  %v17919_v9 = vpop.f32.mrf.mxu1 }
 0x37e   : > { %19582 = vst [vmem:[#allocation41_spill] sm:$0xff] %v17919_v9  ;;  %8590 = vmatprep.subr.bf16.mxu0 %v14457_v6  ;;  %v17939_v9 = vpop.f32.mrf.mxu0 }
 0x37f   : > { %8356 = vmatpush2.bf16.msra.mxu1 %v14452_v3  ;;  %v17930_v56 = vpop.f32.mrf.mxu1  ;;  %v14466_v3 = vld [vmem:[%s19530_s4 + $0x274] ss:$8 sps:$4 sm:$0xff]  }
 0x380   : > { %19583 = vst [vmem:[#allocation42_spill] sm:$0xff] %v17930_v56  ;;  %8357 = vmatprep.subr.bf16.mxu1 %v14460_v43  ;;  %v17943_v32 = vpop.f32.mrf.mxu0 }
 0x381   : > { %8591 = vmatpush2.bf16.msra.mxu0 %v14455_v57  ;;  %v17937_v6 = vpop.f32.mrf.mxu1  ;;  %19586 = vst [vmem:[#allocation45_spill] sm:$0xff] %v17943_v32  ;;  %v19640_v32 = vld [vmem:[#allocation26_spill] sm:$0xff] }
 0x382   : > { %9268 = vmatprep.subr.bf16.mxu0 %v14463_v15  ;;  %19584 = vst [vmem:[#allocation43_spill] sm:$0xff] %v17937_v6  ;;  %v17947_v43 = vpop.f32.mrf.mxu0 }
 0x383   : > { %8358 = vmatpush2.bf16.msra.mxu1 %v14458_v12  ;;  %v17941_v57 = vpop.f32.mrf.mxu1  ;;  %19588 = vst [vmem:[#allocation47_spill] sm:$0xff] %v17947_v43 }
 0x384   : > { %8962 = vmatprep.subr.bf16.mxu1 %v14466_v3  ;;  %19585 = vst [vmem:[#allocation44_spill] sm:$0xff] %v17941_v57  ;;  %v17951_v15 = vpop.f32.mrf.mxu0 }
 0x385   : > { %v17945_v55 = vpop.f32.mrf.mxu1  ;;  %19590 = vst [vmem:[#allocation49_spill] sm:$0xff] %v17951_v15 }
 0x386   : > { %19587 = vst [vmem:[#allocation46_spill] sm:$0xff] %v17945_v55  ;;  %v17955_v51 = vpop.f32.mrf.mxu0 }
 0x387   : > { %v17949_v56 = vpop.f32.mrf.mxu1  ;;  %19592 = vst [vmem:[#allocation51_spill] sm:$0xff] %v17955_v51 }
 0x388   : > { %19589 = vst [vmem:[#allocation48_spill] sm:$0xff] %v17949_v56  ;;  %v17959_v17 = vpop.f32.mrf.mxu0 }
 0x389   : > { %v17953_v12 = vpop.f32.mrf.mxu1  ;;  %19594 = vst [vmem:[#allocation53_spill] sm:$0xff] %v17959_v17 }
 0x38a   : > { %19591 = vst [vmem:[#allocation50_spill] sm:$0xff] %v17953_v12 }
 0x38b   : > { %v17957_v6 = vpop.f32.mrf.mxu1 }
 0x38c   : > { %19593 = vst [vmem:[#allocation52_spill] sm:$0xff] %v17957_v6 }
 0x38d   : > { %v17961_v3 = vpop.f32.mrf.mxu1 }
 0x38e   : > { %19595 = vst [vmem:[#allocation54_spill] sm:$0xff] %v17961_v3 }
 0x38f   : > { %v17965_v60 = vpop.f32.mrf.mxu1 }
 0x390   : > { %19597 = vst [vmem:[#allocation56_spill] sm:$0xff] %v17965_v60 }
 0x391   : > { %v17969_v43 = vpop.f32.mrf.mxu1 }
 0x392   : > { %19599 = vst [vmem:[#allocation58_spill] sm:$0xff] %v17969_v43 }
 0x393   : > { %v17973_v15 = vpop.f32.mrf.mxu1 }
 0x394   : > { %19601 = vst [vmem:[#allocation60_spill] sm:$0xff] %v17973_v15 }
 0x395   : > { %v17977_v51 = vpop.f32.mrf.mxu1 }
 0x396   : > { %19603 = vst [vmem:[#allocation62_spill] sm:$0xff] %v17977_v51 }
 0x397   : > { %v17981_v17 = vpop.f32.mrf.mxu1 }
 0x398   : > { %19605 = vst [vmem:[#allocation64_spill] sm:$0xff] %v17981_v17  ;;  %v1964_v17 = vadd.f32 %v16342_v36, %v16220_v59  ;;  %v3234_v59 = vadd.f32 %v16926_v42, %v16791_v10  ;;  %v19626_v10 = vld [vmem:[#allocation14_spill] sm:$0xff]  ;;  %v19627_v42 = vld [vmem:[#allocation17_spill] sm:$0xff] }
 0x3aa   : > { %v17963_v57 = vpop.f32.mrf.mxu0 }
 0x3ab   : > { %19596 = vst [vmem:[#allocation55_spill] sm:$0xff] %v17963_v57  ;;  %v17985_v57 = vpop.f32.mrf.mxu1 }
 0x3ac   : > { %v17967_v55 = vpop.f32.mrf.mxu0  ;;  %19607 = vst [vmem:[#allocation66_spill] sm:$0xff] %v17985_v57  ;;  %v1974_v57 = vadd.f32 %v16416_v20, %v16278_v38  ;;  %v3244_v38 = vadd.f32 %v16982_v61, %v16861_v18  ;;  %v19628_v18 = vld [vmem:[#allocation16_spill] sm:$0xff]  ;;  %v19629_v61 = vld [vmem:[#allocation18_spill] sm:$0xff] }
 0x3ad   : > { %19598 = vst [vmem:[#allocation57_spill] sm:$0xff] %v17967_v55  ;;  %v17989_v55 = vpop.f32.mrf.mxu1 }
 0x3ae   : > { %v17971_v56 = vpop.f32.mrf.mxu0  ;;  %19609 = vst [vmem:[#allocation68_spill] sm:$0xff] %v17989_v55  ;;  %v1984_v55 = vadd.f32 %v16484_v26, %v16340_v35  ;;  %v19618_v35 = vld [vmem:[#allocation9_spill] sm:$0xff]  ;;  %v19619_v26 = vld [vmem:[#allocation11_spill] sm:$0xff] }
 0x3af   : > { %19600 = vst [vmem:[#allocation59_spill] sm:$0xff] %v17971_v56  ;;  %v17993_v56 = vpop.f32.mrf.mxu1 }
 0x3b0   : > { %v17975_v12 = vpop.f32.mrf.mxu0  ;;  %19611 = vst [vmem:[#allocation70_spill] sm:$0xff] %v17993_v56  ;;  %v1994_v56 = vadd.f32 %v16550_v14, %v16414_v19  ;;  %v2377_v36 = vadd.f32 %v16646_v8, %v1984_v55  ;;  %v19620_v19 = vld [vmem:[#allocation12_spill] sm:$0xff]  ;;  %v3839_v8 = vadd.f32 %v19629_v61, %v19628_v18 }
 0x3b1   : > { %19602 = vst [vmem:[#allocation61_spill] sm:$0xff] %v17975_v12  ;;  %v17997_v12 = vpop.f32.mrf.mxu1  ;;  %v3254_v14 = vadd.f32 %v19620_v19, %v19619_v26  ;;  %v19632_v26 = vld [vmem:[#allocation10_spill] sm:$0xff] }
 0x3b2   : > { %v17979_v6 = vpop.f32.mrf.mxu0  ;;  %19613 = vst [vmem:[#allocation72_spill] sm:$0xff] %v17997_v12  ;;  %v2387_v20 = vadd.f32 %v19618_v35, %v1994_v56  ;;  %v3829_v12 = vadd.f32 %v19627_v42, %v19626_v10  ;;  %v19631_v56 = vld [vmem:[#allocation8_spill] sm:$0xff]  ;;  %v19636_v42 = vld [vmem:[#allocation21_spill] sm:$0xff] }
 0x3b3   : > { %19604 = vst [vmem:[#allocation63_spill] sm:$0xff] %v17979_v6  ;;  %v18001_v6 = vpop.f32.mrf.mxu1  ;;  %v2450_v35 = vadd.f32 %v19631_v56, %v2377_v36  ;;  %v19638_v56 = vld [vmem:[#allocation24_spill] sm:$0xff] }
 0x3b4   : > { %v17983_v3 = vpop.f32.mrf.mxu0  ;;  %19615 = vst [vmem:[#allocation74_spill] sm:$0xff] %v18001_v6  ;;  %v2460_v19 = vadd.f32 %v19632_v26, %v2387_v20  ;;  %v19639_v20 = vld [vmem:[#allocation25_spill] sm:$0xff] }
 0x3b5   : > { %19606 = vst [vmem:[#allocation65_spill] sm:$0xff] %v17983_v3  ;;  %v19622_v3 = vld [vmem:[#allocation15_spill] sm:$0xff]  ;;  %v4668_v26 = vadd.f32 %v19639_v20, %v19638_v56  ;;  %v19649_v56 = vld [vmem:[#allocation38_spill] sm:$0xff] }
 0x3b6   : > { %v17987_v60 = vpop.f32.mrf.mxu0  ;;  %v19651_v20 = vld [vmem:[#allocation42_spill] sm:$0xff] }
 0x3b7   : > { %19608 = vst [vmem:[#allocation67_spill] sm:$0xff] %v17987_v60  ;;  %v2367_v60 = vadd.f32 %v16561_v39, %v1974_v57 }
 0x3b8   : > { %v17991_v43 = vpop.f32.mrf.mxu0 }
 0x3b9   : > { %19610 = vst [vmem:[#allocation69_spill] sm:$0xff] %v17991_v43 }
 0x3ba   : > { %v17995_v15 = vpop.f32.mrf.mxu0 }
 0x3bb   : > { %19612 = vst [vmem:[#allocation71_spill] sm:$0xff] %v17995_v15  ;;  %v18013_v15 = vpop.f32.mrf.mxu1 }
 0x3bc   : > { %v17999_v51 = vpop.f32.mrf.mxu0  ;;  %19617 = vst [vmem:[#allocation76_spill] sm:$0xff] %v18013_v15 }
 0x3bd   : > { %19614 = vst [vmem:[#allocation73_spill] sm:$0xff] %v17999_v51  ;;  %v2357_v51 = vadd.f32 %v16489_v30, %v1964_v17  ;;  %v19624_v30 = vld [vmem:[#allocation6_spill] sm:$0xff]  ;;  %v19625_v17 = vld [vmem:[#allocation7_spill] sm:$0xff]  ;;  %v18035_v55 = vpop.f32.mrf.mxu1 }
 0x3be   : > { %v18011_v43 = vpop.f32.mrf.mxu0  ;;  %v2440_v57 = vadd.f32 %v19625_v17, %v2367_v60  ;;  %19630 = vst [vmem:[#allocation11_spill] sm:$0xff] %v18035_v55  ;;  %v19635_v17 = vld [vmem:[#allocation22_spill] sm:$0xff]  ;;  %v3277_v55 = vadd.f32 %v3254_v14, %v2450_v35  ;;  %v5497_v14 = vadd.f32 %v17811_v4, %v17729_v5  ;;  %v6061_v4 = vadd.f32 %v17821_v22, %v17762_v58  ;;  %v19643_v22 = vld [vmem:[#allocation4_spill] sm:$0xff] }
 0x3bf   : > { %19616 = vst [vmem:[#allocation75_spill] sm:$0xff] %v18011_v43  ;;  %v19621_v43 = vld [vmem:[#allocation13_spill] sm:$0xff]  ;;  %v2430_v39 = vadd.f32 %v19624_v30, %v2357_v51  ;;  %v3859_v51 = vadd.f32 %v17435_v48, %v17370_v16  ;;  %v19634_v30 = vld [vmem:[#allocation20_spill] sm:$0xff]  ;;  %v18047_v61 = vpop.f32.mrf.mxu1  ;;  %v6071_v58 = vadd.f32 %v17885_v54, %v17809_v44  ;;  %v6081_v54 = vadd.f32 %v17939_v9, %v17839_v50  ;;  %v19650_v50 = vld [vmem:[#allocation47_spill] sm:$0xff] }
 0x3c0   : > { %v3264_v15 = vadd.f32 %v19622_v3, %v19621_v43  ;;  %v18027_v6 = vpop.f32.mrf.mxu0  ;;  %v3849_v43 = vadd.f32 %v17333_v2, %v19633_v13  ;;  %v3273_v60 = vadd.f32 %v3244_v38, %v2440_v57  ;;  %v4648_v10 = vadd.f32 %v19635_v17, %v19634_v30  ;;  %v19645_v30 = vld [vmem:[#allocation29_spill] sm:$0xff] }
 0x3c1   : > { %19623 = vst [vmem:[#allocation9_spill] sm:$0xff] %v18027_v6  ;;  %v3269_v3 = vadd.f32 %v3234_v59, %v2430_v39  ;;  %v19637_v6 = vld [vmem:[#allocation23_spill] sm:$0xff]  ;;  %v4678_v2 = vadd.f32 %v17617_v25, %v19640_v32  ;;  %v6057_v32 = vadd.f32 %v17813_v23, %v17734_v7  ;;  %v6063_v7 = vadd.f32 %v17837_v29, %v17776_v52  ;;  %v7777_v23 = vld [vmem:[%s19535_s9] sm:$0x3] }
 0x3c2   : > { %v4658_v18 = vadd.f32 %v19637_v6, %v19636_v42  ;;  %v3281_v36 = vadd.f32 %v3264_v15, %v2460_v19  ;;  %v18053_v13 = vpop.f32.mrf.mxu0  ;;  %v3868_v48 = vadd.f32 %v3839_v8, %v3273_v60  ;;  %v19641_v59 = vld [vmem:[#allocation27_spill] sm:$0xff]  ;;  %v5477_v6 = vadd.f32 %v17652_v63, %v17619_v62  ;;  %v7999_v42 = vld [vmem:[#allocation3 + $0x68] sm:$0xfe] }
 0x3c3   : > { %v3864_v16 = vadd.f32 %v3829_v12, %v3269_v3  ;;  %v5467_v38 = vadd.f32 %v17634_v41, %v19641_v59  ;;  %v3872_v39 = vadd.f32 %v3849_v43, %v3277_v55  ;;  %v5487_v15 = vadd.f32 %v17667_v27, %v17654_v1  ;;  %v18065_v12 = vpop.f32.mrf.mxu1  ;;  %v7749_v1 = vld [vmem:[%s19534_s8] sm:$0x3]  ;;  %v8000_v59 = vld [vmem:[#allocation3 + $0xe8] sm:$0x1] }
 0x3c4   : > { %v3876_v57 = vadd.f32 %v3859_v51, %v3281_v36  ;;  %v4687_v25 = vadd.f32 %v4658_v18, %v3868_v48  ;;  %v6059_v62 = vadd.f32 %v17817_v0, %v17748_v31  ;;  %v18069_v63 = vpop.f32.mrf.mxu0  ;;  %v6067_v0 = vadd.f32 %v17853_v28, %v17787_v49  ;;  %v19642_v43 = vld [vmem:[#allocation28_spill] sm:$0xff]  ;;  %v19648_v18 = vld [vmem:[#allocation31_spill] sm:$0xff] }
 0x3c5   : > { %v4683_v35 = vadd.f32 %v4648_v10, %v3864_v16  ;;  %v4691_v8 = vadd.f32 %v4668_v26, %v3872_v39  ;;  %v6069_v19 = vadd.f32 %v17869_v24, %v17801_v34  ;;  %v6095_v51 = vadd.f32 %v6057_v32, %v19642_v43  ;;  %v18093_v3 = vpop.f32.mrf.mxu1  ;;  %v19647_v10 = vld [vmem:[#allocation5_spill] sm:$0xff]  ;;  %v7998_v48 = vld [vmem:[#allocation3 + $0x78] sm:$0xfe] }
 0x3c6   : > { %v4695_v41 = vadd.f32 %v4678_v2, %v3876_v57  ;;  %v5506_v5 = vadd.f32 %v5477_v6, %v4687_v25  ;;  %v6073_v52 = vadd.f32 %v17901_v47, %v17815_v40  ;;  %v18091_v29 = vrot.slane %v7749_v1, %v19643_v22  ;;  %v18100_v28 = vpop.f32.mrf.mxu0  ;;  %v19644_v47 = vld [vmem:[#allocation45_spill] sm:$0xff]  ;;  %v19657_v25 = vld [vmem:[#allocation40_spill] sm:$0xff]  ;;  %v19658_v32 = vld [vmem:[#allocation51_spill] sm:$0xff] }
 0x3c7   : > { %v5502_v27 = vadd.f32 %v5467_v38, %v4683_v35  ;;  %v5510_v55 = vadd.f32 %v5487_v15, %v4691_v8  ;;  %v6096_v60 = vadd.f32 %v6059_v62, %v17631_v37  ;;  %v6077_v49 = vadd.f32 %v17917_v45, %v17819_v46  ;;  %v19646_v46 = vld [vmem:[#allocation30_spill] sm:$0xff]  ;;  %v18125_v2 = vpop.f32.mrf.mxu1  ;;  %v8001_v16 = vld [vmem:[#allocation3 + $0xc8] sm:$0x1]  ;;  %v19653_v38 = vld [vmem:[#allocation32_spill] sm:$0xff] }
 0x3c8   : > { %v5514_v31 = vadd.f32 %v5497_v14, %v4695_v41  ;;  %v6079_v34 = vadd.f32 %v17932_v21, %v17823_v33  ;;  %v18103_v44 = vrot.slane %v7777_v23, %v19643_v22  ;;  %v6097_v40 = vadd.f32 %v6061_v4, %v17637_v11  ;;  %v19654_v39 = vld [vmem:[#allocation33_spill] sm:$0xff]  ;;  %v19655_v15 = vld [vmem:[#allocation39_spill] sm:$0xff]  ;;  %v18135_v41 = vpop.f32.mrf.mxu0  ;;  %v19659_v62 = vld [vmem:[#allocation34_spill] sm:$0xff] }
 0x3c9   : > { %v6098_v24 = vadd.f32 %v6063_v7, %v5502_v27  ;;  %v6083_v37 = vadd.f32 %v19644_v47, %v17855_v53  ;;  %v6099_v17 = vadd.f32 %v6067_v0, %v19645_v30  ;;  %v6100_v45 = vadd.f32 %v6069_v19, %v19646_v46  ;;  %v19652_v53 = vld [vmem:[#allocation55_spill] sm:$0xff]  ;;  %v19656_v14 = vld [vmem:[#allocation49_spill] sm:$0xff] }
 0x3ca   : > { %v18113_v33 = vrot.slane %v7749_v1, %v19647_v10  ;;  %v18116_v21 = vrot.slane %v7777_v23, %v19647_v10  ;;  %v6101_v11 = vadd.f32 %v6071_v58, %v19648_v18  ;;  %v18119_v36 = vadd.f32 %v6073_v52, %v5506_v5  ;;  %v19660_v5 = vld [vmem:[#allocation41_spill] sm:$0xff]  ;;  %v19662_v23 = vld [vmem:[#allocation43_spill] sm:$0xff]  ;;  %v19665_v18 = vld [vmem:[#allocation44_spill] sm:$0xff] }
 0x3cb   : > { %v6087_v9 = vadd.f32 %v19650_v50, %v19649_v56  ;;  %v6876_v26 = vadd.f32 %v19652_v53, %v19651_v20  ;;  %v6103_v6 = vadd.f32 %v6077_v49, %v19653_v38  ;;  %v18129_v57 = vadd.f32 %v6079_v34, %v19654_v39  ;;  %v19661_v4 = vld [vmem:[#allocation53_spill] sm:$0xff]  ;;  %v19664_v47 = vld [vmem:[#allocation35_spill] sm:$0xff]  ;;  %v18150_v50 = vpop.f32.mrf.mxu1  ;;  %v19668_v20 = vld [vmem:[#allocation36_spill] sm:$0xff] }
 0x3cc   : > { %v6089_v35 = vadd.f32 %v19656_v14, %v19655_v15  ;;  %v6091_v8 = vadd.f32 %v19658_v32, %v19657_v25  ;;  %v6105_v1 = vadd.f32 %v6081_v54, %v19659_v62  ;;  %v18138_v27 = vadd.f32 %v6083_v37, %v5510_v55  ;;  %v19663_v0 = vld [vmem:[#allocation57_spill] sm:$0xff]  ;;  %v19666_v56 = vld [vmem:[#allocation59_spill] sm:$0xff]  ;;  %v19667_v55 = vld [vmem:[#allocation72_spill] sm:$0xff] }
 0x3cd   : > { %v6093_v7 = vadd.f32 %v19661_v4, %v19660_v5  ;;  %v6878_v19 = vadd.f32 %v19663_v0, %v19662_v23  ;;  %v8065_v58 = vrot.slane %v7999_v42, 1  ;;  %v8066_v52 = vrot.slane %v8001_v16, 1  ;;  %v19669_v38 = vld [vmem:[#allocation37_spill] sm:$0xff]  ;;  %v19670_v42 = vld [vmem:[#allocation46_spill] sm:$0xff]  ;;  %v19677_v23 = vld [vmem:[#allocation52_spill] sm:$0xff] }
 0x3ce   : > { %v8062_v49 = vrot.slane %v7998_v48, 1  ;;  %v8063_v34 = vrot.slane %v8000_v59, 1  ;;  %v18145_v30 = vadd.f32 %v6087_v9, %v19664_v47  ;;  %v6914_v46 = vadd.f32 %v6876_v26, %v6095_v51  ;;  %v19671_v16 = vld [vmem:[#allocation61_spill] sm:$0xff]  ;;  %v19672_v59 = vld [vmem:[#allocation48_spill] sm:$0xff]  ;;  %v19673_v9 = vld [vmem:[#allocation63_spill] sm:$0xff] }
 0x3cf   : > { %v6880_v54 = vadd.f32 %v19666_v56, %v19665_v18  ;;  %v18153_v53 = vadd.f32 %v6089_v35, %v19668_v20  ;;  %v18156_v39 = vadd.f32 %v6091_v8, %v19669_v38  ;;  %v6882_v48 = vadd.f32 %v19671_v16, %v19670_v42  ;;  %v19674_v32 = vld [vmem:[#allocation74_spill] sm:$0xff]  ;;  %v19676_v4 = vld [vmem:[#allocation65_spill] sm:$0xff]  ;;  %v19678_v0 = vld [vmem:[#allocation67_spill] sm:$0xff] }
 0x3d0   : > { %v6886_v15 = vadd.f32 %v19673_v9, %v19672_v59  ;;  %v18162_v26 = vadd.f32 %v6093_v7, %v5514_v31  ;;  %v6915_v14 = vadd.f32 %v6878_v19, %v6096_v60  ;;  %v19675_v5 = vld [vmem:[#allocation50_spill] sm:$0xff]  ;;  %v6890_v8 = vadd.f32 %v19678_v0, %v19677_v23  ;;  %v19679_v7 = vld [vmem:[#allocation76_spill] sm:$0xff]  ;;  %v19681_v38 = vld [vmem:[#allocation69_spill] sm:$0xff] }
 0x3d1   : > { %v6888_v35 = vadd.f32 %v19676_v4, %v19675_v5  ;;  %v18170_v47 = vsel %vm1320_vm0, %v8065_v58, %v8066_v52  ;;  %v18173_v18 = vsel %vm1320_vm0, %v8062_v49, %v8063_v34  ;;  %v6916_v56 = vadd.f32 %v6880_v54, %v6097_v40  ;;  %v19680_v20 = vld [vmem:[#allocation54_spill] sm:$0xff]  ;;  %v19682_v16 = vld [vmem:[#allocation56_spill] sm:$0xff]  ;;  %v19683_v59 = vld [vmem:[#allocation71_spill] sm:$0xff] }
 0x3d2   : > { %v6892_v42 = vadd.f32 %v19681_v38, %v19680_v20  ;;  %v6896_v58 = vadd.f32 %v19683_v59, %v19682_v16  ;;  %v19684_v54 = vld [vmem:[#allocation11_spill] sm:$0xff] }
 0x3ea   : > { %v7694_v43 = vpop.f32.mrf.mxu0 }
 0x3eb   : > { %v7695_v37 = vadd.f32 %v7694_v43, %v19667_v55  ;;  %v6917_v55 = vadd.f32 %v6882_v48, %v6098_v24  ;;  %v19688_v48 = vld [vmem:[#allocation75_spill] sm:$0xff] }
 0x3ec   : > { %v7696_v51 = vpop.f32.mrf.mxu0 }
 0x3ed   : > { %v7733_v25 = vadd.f32 %v7695_v37, %v6914_v46  ;;  %v7697_v62 = vadd.f32 %v7696_v51, %v19674_v32  ;;  %v18177_v46 = vpop.f32.mrf.mxu1  ;;  %v6918_v37 = vadd.f32 %v6886_v15, %v6099_v17  ;;  %v6919_v51 = vadd.f32 %v6888_v35, %v6100_v45  ;;  %v19686_v32 = vld [vmem:[#allocation73_spill] sm:$0xff]  ;;  %v19687_v17 = vld [vmem:[#allocation60_spill] sm:$0xff]  ;;  %v19689_v45 = vld [vmem:[#allocation62_spill] sm:$0xff] }
 0x3ee   : > { %v7698_v43 = vpop.f32.mrf.mxu0  ;;  %v6900_v15 = vadd.f32 %v19688_v48, %v19687_v17  ;;  %v19693_v17 = vld [vmem:[#allocation68_spill] sm:$0xff] }
 0x3ef   : > { %v7761_v31 = vmul.f32 %v18091_v29, %v7733_v25  ;;  %v7734_v60 = vadd.f32 %v7697_v62, %v6915_v14  ;;  %v7699_v19 = vadd.f32 %v7698_v43, %v19679_v7  ;;  %v6920_v14 = vadd.f32 %v6890_v8, %v6101_v11  ;;  %v19685_v25 = vld [vmem:[#allocation58_spill] sm:$0xff]  ;;  %v18192_v43 = vpop.f32.mrf.mxu1  ;;  %v19690_v11 = vld [vmem:[#allocation9_spill] sm:$0xff] }
 0x3f0   : > { %v7700_v52 = vpop.f32.mrf.mxu0  ;;  %v6898_v24 = vadd.f32 %v19686_v32, %v19685_v25  ;;  %v6902_v35 = vadd.f32 %v19690_v11, %v19689_v45 }
 0x3f1   : > { %v7789_v49 = vadd.f32 %v18103_v44, %v7761_v31  ;;  %v7762_v40 = vmul.f32 %v18113_v33, %v7734_v60  ;;  %v7735_v34 = vadd.f32 %v7699_v19, %v6916_v56  ;;  %v7701_v9 = vadd.f32 %v7700_v52, %v19684_v54 }
 0x3f2   : > { %v7704_v62 = vpop.f32.mrf.mxu0  ;;  %v6921_v56 = vadd.f32 %v6892_v42, %v18119_v36  ;;  %v6922_v31 = vadd.f32 %v6896_v58, %v6103_v6  ;;  %v6923_v16 = vadd.f32 %v6898_v24, %v18129_v57  ;;  %v19691_v57 = vld [vmem:[#allocation64_spill] sm:$0xff] }
 0x3f3   : > { %v7805_v5 = vmax.f32 %v7789_v49, 0.0  ;;  %v7790_v4 = vadd.f32 %v18116_v21, %v7762_v40  ;;  %v7763_v23 = vmul.f32 %v18091_v29, %v7735_v34  ;;  %v7736_v0 = vadd.f32 %v7701_v9, %v6917_v55  ;;  %v18206_v49 = vpop.f32.mrf.mxu1 }
 0x3f4   : > { %v7705_v8 = vadd.f32 %v7704_v62, %v18047_v61  ;;  %v7706_v60 = vpop.f32.mrf.mxu0  ;;  %v18201_v55 = vadd.f32 %v6900_v15, %v6105_v1  ;;  %v18209_v40 = vadd.f32 %v6902_v35, %v18138_v27  ;;  %v6906_v1 = vadd.f32 %v18053_v13, %v19691_v57 }
 0x3f5   : > { %v7877_v7 = vrot.slane %v7805_v5, 7  ;;  %v7806_v19 = vmax.f32 %v7790_v4, 0.0  ;;  %v7791_v20 = vadd.f32 %v18103_v44, %v7763_v23  ;;  %v7764_v38 = vmul.f32 %v18113_v33, %v7736_v0 }
 0x3f6   : > { %v7737_v59 = vadd.f32 %v7705_v8, %v6918_v37  ;;  %v7707_v36 = vadd.f32 %v7706_v60, %v18065_v12  ;;  %v7708_v6 = vpop.f32.mrf.mxu0  ;;  %v6910_v27 = vadd.f32 %v18100_v28, %v19693_v17  ;;  %v18224_v4 = vadd.f32 %v6906_v1, %v18145_v30 }
 0x3f7   : > { %7910 = vst [vmem:[#allocation3 + $0x10] sm:$0xfe] %v7877_v7  ;;  %7912 = vst [vmem:[#allocation3 + $0xa8] sm:$0x1] %v7877_v7  ;;  %v7878_v42 = vrot.slane %v7806_v19, 7  ;;  %v7807_v58 = vmax.f32 %v7791_v20, 0.0  ;;  %v7792_v61 = vadd.f32 %v18116_v21, %v7764_v38  ;;  %v7709_v52 = vadd.f32 %v7708_v6, %v18093_v3 }
 0x3f8   : > { %v7765_v37 = vmul.f32 %v18091_v29, %v7737_v59  ;;  %v7738_v12 = vadd.f32 %v7707_v36, %v6919_v51  ;;  %v7710_v34 = vpop.f32.mrf.mxu0  ;;  %v19692_v3 = vld [vmem:[#allocation66_spill] sm:$0xff]  ;;  %v18236_v30 = vadd.f32 %v6910_v27, %v18156_v39 }
 0x3f9   : > { %7911 = vst [vmem:[#allocation3 + $0xb0] sm:$0xfe] %v7878_v42  ;;  %7913 = vst [vmem:[#allocation3 + $0x120] sm:$0x1] %v7878_v42  ;;  %v7879_v54 = vrot.slane %v7807_v58, 7  ;;  %v7808_v9 = vmax.f32 %v7792_v61, 0.0  ;;  %v7739_v25 = vadd.f32 %v7709_v52, %v6920_v14  ;;  %v7711_v32 = vadd.f32 %v7710_v34, %v18125_v2  ;;  %v7651_v2 = vpop.f32.mrf.mxu1 }
 0x3fa   : > { %v6908_v24 = vadd.f32 %v18069_v63, %v19692_v3  ;;  %v7793_v48 = vadd.f32 %v18103_v44, %v7765_v37  ;;  %v7766_v13 = vmul.f32 %v18113_v33, %v7738_v12  ;;  %v7714_v15 = vpop.f32.mrf.mxu0  ;;  %v19694_v63 = vld [vmem:[#allocation70_spill] sm:$0xff]  ;;  %v14817_v58 = vld [vmem:[#allocation2 + $0x8] sm:$0xff] }
 0x3fb   : > { %7914 = vst [vmem:[#allocation3 + $0xd0] sm:$0xfe] %v7879_v54  ;;  %7916 = vst [vmem:[#allocation3 + $0x50] sm:$0x1] %v7879_v54  ;;  %v7880_v51 = vrot.slane %v7808_v9, 7  ;;  %v7767_v62 = vmul.f32 %v18091_v29, %v7739_v25  ;;  %v7740_v5 = vadd.f32 %v7711_v32, %v6921_v56  ;;  %v7715_v14 = vadd.f32 %v7714_v15, %v18150_v50 }
 0x3fc   : > { %v6912_v28 = vadd.f32 %v18135_v41, %v19694_v63  ;;  %v7809_v23 = vmax.f32 %v7793_v48, 0.0  ;;  %v7794_v0 = vadd.f32 %v18116_v21, %v7766_v13  ;;  %v7716_v45 = vpop.f32.mrf.mxu0  ;;  %v18233_v8 = vadd.f32 %v6908_v24, %v18153_v53  ;;  %v14461_v25 = vld [vmem:[%s19530_s4 + $0x370] ss:$8 sps:$4 sm:$0xff]  }
 0x3fd   : > { %7915 = vst [vmem:[#allocation3 + $0x20] sm:$0xfe] %v7880_v51  ;;  %7917 = vst [vmem:[#allocation3 + $0x70] sm:$0x1] %v7880_v51  ;;  %v7795_v11 = vadd.f32 %v18103_v44, %v7767_v62  ;;  %v7768_v35 = vmul.f32 %v18113_v33, %v7740_v5  ;;  %v7741_v56 = vadd.f32 %v7715_v14, %v6922_v31  ;;  %v7653_v31 = vpop.f32.mrf.mxu1 }
 0x3fe   : > { %v7717_v50 = vadd.f32 %v7716_v45, %v18177_v46  ;;  %v7881_v41 = vrot.slane %v7809_v23, 7  ;;  %v7810_v60 = vmax.f32 %v7794_v0, 0.0  ;;  %v7718_v7 = vpop.f32.mrf.mxu0  ;;  %v18238_v19 = vld [vmem:[#allocation3 + $0x10] sm:$0xff]  ;;  %v18243_v46 = vadd.f32 %v6912_v28, %v18162_v26  ;;  %v8004_v13 = vld [vmem:[#allocation3 + $0xa8] sm:$0x1] }
 0x3ff   : > { %v7811_v20 = vmax.f32 %v7795_v11, 0.0  ;;  %v7796_v38 = vadd.f32 %v18116_v21, %v7768_v35  ;;  %v7769_v59 = vmul.f32 %v18091_v29, %v7741_v56  ;;  %v7719_v39 = vadd.f32 %v7718_v7, %v18192_v43  ;;  %v8002_v12 = vld [vmem:[#allocation3 + $0x10] sm:$0xfe]  ;;  %v7655_v48 = vpop.f32.mrf.mxu1  ;;  %v14467_v56 = vld [vmem:[%s19530_s4 + $0x360] ss:$8 sps:$4 sm:$0xff]  }
 0x400   : > { %v7742_v36 = vadd.f32 %v7717_v50, %v6923_v16  ;;  %7918 = vst [vmem:[#allocation3] sm:$0xfe] %v7881_v41  ;;  %7920 = vst [vmem:[#allocation3 + $0x128] sm:$0x1] %v7881_v41  ;;  %v7882_v53 = vrot.slane %v7810_v60, 7  ;;  %v7720_v6 = vpop.f32.mrf.mxu0  ;;  %v18246_v42 = vld [vmem:[#allocation3 + $0xb0] sm:$0xff]  ;;  %v7958_v61 = vpack.c.bf16 %v18238_v19, %v14817_v58 }
 0x401   : > { %v8003_v52 = vld [vmem:[#allocation3 + $0xb0] sm:$0xfe]  ;;  %v7883_v57 = vrot.slane %v7811_v20, 7  ;;  %v7812_v1 = vmax.f32 %v7796_v38, 0.0  ;;  %v7797_v16 = vadd.f32 %v18103_v44, %v7769_v59  ;;  %v8005_v26 = vld [vmem:[#allocation3 + $0x120] sm:$0x1]  ;;  %v7743_v34 = vadd.f32 %v7719_v39, %v18201_v55  ;;  %v7657_v7 = vpop.f32.mrf.mxu1 }
 0x402   : > { %v7770_v37 = vmul.f32 %v18113_v33, %v7742_v36  ;;  %7919 = vst [vmem:[#allocation3 + $0x118] sm:$0xfe] %v7882_v53  ;;  %7921 = vst [vmem:[#allocation3 + $0x30] sm:$0x1] %v7882_v53  ;;  %v7721_v43 = vadd.f32 %v7720_v6, %v18206_v49  ;;  %v7724_v54 = vpop.f32.mrf.mxu0  ;;  %v7959_v9 = vpack.c.bf16 %v18246_v42, %v14817_v58  ;;  %v8071_v32 = vrot.slane %v8003_v52, 1  ;;  %v18289_v58 = vld [vmem:[#allocation3 + $0xd0] sm:$0xff] }
 0x403   : > { %7922 = vst [vmem:[#allocation3 + $0xf8] sm:$0xfe] %v7883_v57  ;;  %7924 = vst [vmem:[#allocation3 + $0xa0] sm:$0x1] %v7883_v57  ;;  %v7884_v3 = vrot.slane %v7812_v1, 7  ;;  %v7813_v24 = vmax.f32 %v7797_v16, 0.0  ;;  %v7725_v27 = vadd.f32 %v7724_v54, %v7651_v2  ;;  %v7771_v49 = vmul.f32 %v18091_v29, %v7743_v34 }
 0x404   : > { %v7798_v17 = vadd.f32 %v18116_v21, %v7770_v37  ;;  %v14469_v55 = vld [vmem:[%s19530_s4 + $0x364] ss:$8 sps:$4 sm:$0xff]   ;;  %v7744_v15 = vadd.f32 %v7721_v43, %v18209_v40  ;;  %8592 = vmatprep.mubr.bf16.mxu0 %v7959_v9  ;;  %v7726_v51 = vpop.f32.mrf.mxu0  ;;  %v8072_v62 = vrot.slane %v8005_v26, 1  ;;  %v8068_v5 = vrot.slane %v8002_v12, 1  ;;  %v14464_v11 = vld [vmem:[%s19530_s4 + $0x270] ss:$8 sps:$4 sm:$0xff]  }
 0x405   : > { %7923 = vst [vmem:[#allocation3 + $0xe0] sm:$0xfe] %v7884_v3  ;;  %7925 = vst [vmem:[#allocation3 + $0xf0] sm:$0x1] %v7884_v3  ;;  %v7885_v14 = vrot.slane %v7813_v24, 7  ;;  %v7745_v2 = vadd.f32 %v7725_v27, %v18224_v4  ;;  %v7727_v28 = vadd.f32 %v7726_v51, %v7653_v31  ;;  %8593 = vmatmul.mubr.bf16.vlgmr.msra.gmra.mxu0 %v7958_v61  ;;  %v8069_v35 = vrot.slane %v8004_v13, 1 }
 0x406   : > { %v7814_v63 = vmax.f32 %v7798_v17, 0.0  ;;  %v7799_v23 = vadd.f32 %v18103_v44, %v7771_v49  ;;  %v7772_v0 = vmul.f32 %v18113_v33, %v7744_v15  ;;  %9269 = vmatpush1.bf16.msra.mxu0 %v14461_v25  ;;  %v7728_v45 = vpop.f32.mrf.mxu0  ;;  %v8073_v40 = vsel %vm1320_vm0, %v8071_v32, %v8072_v62  ;;  %v14472_v20 = vld [vmem:[%s19530_s4 + $0x264] ss:$8 sps:$4 sm:$0xff]   ;;  %v14475_v38 = vld [vmem:[%s19530_s4 + $0x354] ss:$8 sps:$4 sm:$0xff]  }
 0x407   : > { %7926 = vst [vmem:[#allocation3 + $0x130] sm:$0xfe] %v7885_v14  ;;  %7928 = vst [vmem:[#allocation3 + $0x28] sm:$0x1] %v7885_v14  ;;  %v7773_v50 = vmul.f32 %v18091_v29, %v7745_v2  ;;  %v7746_v41 = vadd.f32 %v7727_v28, %v18233_v8  ;;  %v7729_v60 = vadd.f32 %v7728_v45, %v7655_v48  ;;  %9270 = vmatprep.subr.bf16.mxu0 %v14469_v55  ;;  %v18284_v8 = vld [vmem:[#allocation3 + $0x20] sm:$0xff] }
 0x408   : > { %v7886_v4 = vrot.slane %v7814_v63, 7  ;;  %v7815_v59 = vmax.f32 %v7799_v23, 0.0  ;;  %v7800_v36 = vadd.f32 %v18116_v21, %v7772_v0  ;;  %v8127_v31 = vpack.c.bf16 %v8073_v40, %v18170_v47  ;;  %v7730_v39 = vpop.f32.mrf.mxu0  ;;  %v14473_v6 = vld [vmem:[%s19530_s4 + $0x350] ss:$8 sps:$4 sm:$0xff]   ;;  %v18291_v61 = vld [vmem:[#allocation3] sm:$0xff] }
 0x409   : > { %v8070_v53 = vsel %vm1320_vm0, %v8068_v5, %v8069_v35  ;;  %v7801_v52 = vadd.f32 %v18103_v44, %v7773_v50  ;;  %v7774_v57 = vmul.f32 %v18113_v33, %v7746_v41  ;;  %v7747_v47 = vadd.f32 %v7729_v60, %v18236_v30  ;;  %v18297_v16 = vld [vmem:[#allocation3 + $0x118] sm:$0xff]  ;;  %v8007_v37 = vld [vmem:[#allocation3 + $0x20] sm:$0xfe]  ;;  %v8009_v26 = vld [vmem:[#allocation3 + $0x70] sm:$0x1] }
 0x40a   : > { %7927 = vst [vmem:[#allocation3 + $0xb8] sm:$0xfe] %v7886_v4  ;;  %7929 = vst [vmem:[#allocation3 + $0x98] sm:$0x1] %v7886_v4  ;;  %v8126_v1 = vpack.c.bf16 %v8070_v53, %v18173_v18  ;;  %v14481_v12 = vld [vmem:[%s19530_s4 + $0x344] ss:$8 sps:$4 sm:$0xff]   ;;  %8359 = vmatprep.mubr.bf16.mxu1 %v8127_v31  ;;  %v7731_v54 = vadd.f32 %v7730_v39, %v7657_v7  ;;  %9271 = vmatpush1.bf16.msra.mxu0 %v14467_v56 }
 0x40b   : > { %v7887_v34 = vrot.slane %v7815_v59, 7  ;;  %v7816_v43 = vmax.f32 %v7800_v36, 0.0  ;;  %v14470_v9 = vld [vmem:[%s19530_s4 + $0x260] ss:$8 sps:$4 sm:$0xff]   ;;  %v7961_v18 = vpack.c.bf16 %v18297_v16, %v18284_v8  ;;  %v8011_v30 = vld [vmem:[#allocation3 + $0x118] sm:$0xfe]  ;;  %v7802_v3 = vadd.f32 %v18116_v21, %v7774_v57  ;;  %9272 = vmatprep.subr.bf16.mxu0 %v14475_v38 }
 0x40c   : > { %v8006_v25 = vld [vmem:[#allocation3 + $0xd0] sm:$0xfe]  ;;  %v7817_v32 = vmax.f32 %v7801_v52, 0.0  ;;  %v7775_v24 = vmul.f32 %v18091_v29, %v7747_v47  ;;  %8360 = vmatmul.mubr.bf16.vlgmr.msra.gmra.mxu1 %v8126_v1  ;;  %v7960_v17 = vpack.c.bf16 %v18291_v61, %v18289_v58  ;;  %v8013_v27 = vld [vmem:[#allocation3 + $0x30] sm:$0x1]  ;;  %v7748_v49 = vadd.f32 %v7731_v54, %v18243_v46  ;;  %v18323_v40 = vld [vmem:[#allocation3 + $0xe0] sm:$0xff] }
 0x40d   : > { %v14478_v48 = vld [vmem:[%s19530_s4 + $0x254] ss:$8 sps:$4 sm:$0xff]   ;;  %v8008_v13 = vld [vmem:[#allocation3 + $0x50] sm:$0x1]  ;;  %7930 = vst [vmem:[#allocation3 + $0x48] sm:$0xfe] %v7887_v34  ;;  %8963 = vmatpush1.bf16.msra.mxu1 %v14464_v11  ;;  %8602 = vmatprep.mubr.bf16.mxu0 %v7961_v18 }
 0x40e   : > { %7932 = vst [vmem:[#allocation3 + $0x88] sm:$0x1] %v7887_v34  ;;  %v7888_v55 = vrot.slane %v7816_v43, 7  ;;  %v8077_v15 = vrot.slane %v8007_v37, 1  ;;  %v8078_v29 = vrot.slane %v8009_v26, 1  ;;  %v7889_v5 = vrot.slane %v7817_v32, 7  ;;  %8964 = vmatprep.subr.bf16.mxu1 %v14472_v20  ;;  %8603 = vmatmul.mubr.bf16.gmra.mxu0 %v7960_v17 }
 0x40f   : > { %v8010_v51 = vld [vmem:[#allocation3] sm:$0xfe]  ;;  %v7818_v14 = vmax.f32 %v7802_v3, 0.0  ;;  %v7803_v63 = vadd.f32 %v18103_v44, %v7775_v24  ;;  %v8083_v2 = vrot.slane %v8011_v30, 1  ;;  %v8012_v28 = vld [vmem:[#allocation3 + $0x128] sm:$0x1]  ;;  %v7776_v46 = vmul.f32 %v18113_v33, %v7748_v49  ;;  %9273 = vmatpush1.bf16.msra.mxu0 %v14473_v6 }
 0x410   : > { %v14479_v62 = vld [vmem:[%s19530_s4 + $0x340] ss:$8 sps:$4 sm:$0xff]   ;;  %7931 = vst [vmem:[#allocation3 + $0x110] sm:$0xfe] %v7888_v55  ;;  %7933 = vst [vmem:[#allocation3 + $0x58] sm:$0x1] %v7888_v55  ;;  %9274 = vmatprep.subr.bf16.mxu0 %v14481_v12  ;;  %v8079_v7 = vsel %vm1320_vm0, %v8077_v15, %v8078_v29 }
 0x411   : > { %v8084_v23 = vrot.slane %v8013_v27, 1  ;;  %v14476_v0 = vld [vmem:[%s19530_s4 + $0x250] ss:$8 sps:$4 sm:$0xff]   ;;  %v8074_v45 = vrot.slane %v8006_v25, 1  ;;  %v14487_v44 = vld [vmem:[%s19530_s4 + $0x334] ss:$8 sps:$4 sm:$0xff]   ;;  %v7804_v60 = vadd.f32 %v18116_v21, %v7776_v46  ;;  %8965 = vmatpush1.bf16.msra.mxu1 %v14470_v9 }
 0x412   : > { %v8015_v11 = vld [vmem:[#allocation3 + $0xe0] sm:$0xfe]  ;;  %7934 = vst [vmem:[#allocation3 + $0x80] sm:$0xfe] %v7889_v5  ;;  %7936 = vst [vmem:[#allocation3 + $0x38] sm:$0x1] %v7889_v5  ;;  %8966 = vmatprep.subr.bf16.mxu1 %v14478_v48 }
 0x413   : > { %v7890_v35 = vrot.slane %v7818_v14, 7  ;;  %v7819_v56 = vmax.f32 %v7803_v63, 0.0  ;;  %v8075_v4 = vrot.slane %v8008_v13, 1  ;;  %v8080_v33 = vrot.slane %v8010_v51, 1  ;;  %v14484_v50 = vld [vmem:[%s19530_s4 + $0x244] ss:$8 sps:$4 sm:$0xff]   ;;  %9275 = vmatpush1.bf16.msra.mxu0 %v14479_v62 }
 0x414   : > { %v8017_v41 = vld [vmem:[#allocation3 + $0xf0] sm:$0x1]  ;;  %v8085_v20 = vsel %vm1320_vm0, %v8083_v2, %v8084_v23  ;;  %v8081_v38 = vrot.slane %v8012_v28, 1  ;;  %v18334_v59 = vld [vmem:[#allocation3 + $0xb8] sm:$0xff]  ;;  %v8018_v47 = vld [vmem:[#allocation3 + $0x130] sm:$0xfe]  ;;  %9276 = vmatprep.subr.bf16.mxu0 %v14487_v44 }
 0x415   : > { %v8019_v36 = vld [vmem:[#allocation3 + $0xb8] sm:$0xfe]  ;;  %v8021_v31 = vld [vmem:[#allocation3 + $0x98] sm:$0x1]  ;;  %7935 = vst [vmem:[#allocation3 + $0xd8] sm:$0xfe] %v7890_v35  ;;  %v8129_v39 = vpack.c.bf16 %v8085_v20, %v8079_v7  ;;  %v8076_v6 = vsel %vm1320_vm0, %v8074_v45, %v8075_v4  ;;  %v7963_v21 = vpack.c.bf16 %v18334_v59, %v18323_v40  ;;  %8967 = vmatpush1.bf16.msra.mxu1 %v14476_v0 }
 0x416   : > { %7937 = vst [vmem:[#allocation3 + $0xc0] sm:$0x1] %v7890_v35  ;;  %v7891_v53 = vrot.slane %v7819_v56, 7  ;;  %v14485_v52 = vld [vmem:[%s19530_s4 + $0x330] ss:$8 sps:$4 sm:$0xff]   ;;  %v7820_v1 = vmax.f32 %v7804_v60, 0.0  ;;  %v8082_v37 = vsel %vm1320_vm0, %v8080_v33, %v8081_v38  ;;  %8968 = vmatprep.subr.bf16.mxu1 %v14484_v50 }
 0x417   : > { %v18342_v57 = vld [vmem:[#allocation3 + $0x130] sm:$0xff]  ;;  %v14482_v26 = vld [vmem:[%s19530_s4 + $0x240] ss:$8 sps:$4 sm:$0xff]   ;;  %v18348_v12 = vld [vmem:[#allocation3 + $0xf8] sm:$0xff]  ;;  %v8089_v34 = vrot.slane %v8015_v11, 1  ;;  %v8090_v43 = vrot.slane %v8017_v41, 1  ;;  %8369 = vmatprep.mubr.bf16.mxu1 %v8129_v39  ;;  %v8128_v9 = vpack.c.bf16 %v8082_v37, %v8076_v6  ;;  %8612 = vmatprep.mubr.bf16.mxu0 %v7963_v21 }
 0x418   : > { %v8020_v54 = vld [vmem:[#allocation3 + $0x28] sm:$0x1]  ;;  %7938 = vst [vmem:[#allocation3 + $0x90] sm:$0xfe] %v7891_v53  ;;  %7940 = vst [vmem:[#allocation3 + $0x18] sm:$0x1] %v7891_v53  ;;  %v7962_v24 = vpack.c.bf16 %v18342_v57, %v18348_v12  ;;  %9277 = vmatpush1.bf16.msra.mxu0 %v14485_v52 }
 0x419   : > { %v8095_v18 = vrot.slane %v8019_v36, 1  ;;  %v8096_v30 = vrot.slane %v8021_v31, 1  ;;  %v8014_v25 = vld [vmem:[#allocation3 + $0xf8] sm:$0xfe]  ;;  %v8016_v32 = vld [vmem:[#allocation3 + $0xa0] sm:$0x1]  ;;  %8370 = vmatmul.mubr.bf16.gmra.mxu1 %v8128_v9  ;;  %v8091_v13 = vsel %vm1320_vm0, %v8089_v34, %v8090_v43 }
 0x41a   : > { %v7892_v3 = vrot.slane %v7820_v1, 7  ;;  %v14490_v17 = vld [vmem:[%s19530_s4 + $0x234] ss:$8 sps:$4 sm:$0xff]   ;;  %v8092_v27 = vrot.slane %v8018_v47, 1  ;;  %v14493_v48 = vld [vmem:[%s19530_s4 + $0x324] ss:$8 sps:$4 sm:$0xff]   ;;  %8613 = vmatmul.mubr.bf16.gmra.mxu0 %v7962_v24  ;;  %8969 = vmatpush1.bf16.msra.mxu1 %v14482_v26 }
 0x41b   : > { %v8097_v55 = vsel %vm1320_vm0, %v8095_v18, %v8096_v30  ;;  %v8093_v49 = vrot.slane %v8020_v54, 1  ;;  %v8023_v15 = vld [vmem:[#allocation3 + $0x110] sm:$0xfe]  ;;  %v8025_v29 = vld [vmem:[#allocation3 + $0x58] sm:$0x1]  ;;  %v8086_v5 = vrot.slane %v8014_v25, 1  ;;  %8970 = vmatprep.subr.bf16.mxu1 %v14490_v17  ;;  %9278 = vmatprep.subr.bf16.mxu0 %v14493_v48  ;;  %v9068_v30 = vpack.c.bf16 %v18284_v8, %v18246_v42 }
 0x41c   : > { %7939 = vst [vmem:[#allocation3 + $0x138] sm:$0xfe] %v7892_v3  ;;  %7941 = vst [vmem:[#allocation3 + $0x8] sm:$0x1] %v7892_v3  ;;  %v8131_v51 = vpack.c.bf16 %v8097_v55, %v8091_v13  ;;  %v14488_v62 = vld [vmem:[%s19530_s4 + $0x230] ss:$8 sps:$4 sm:$0xff]  }
 0x41d   : > { %v8087_v14 = vrot.slane %v8016_v32, 1  ;;  %v14491_v63 = vld [vmem:[%s19530_s4 + $0x320] ss:$8 sps:$4 sm:$0xff]   ;;  %v14499_v2 = vld [vmem:[%s19530_s4 + $0x314] ss:$8 sps:$4 sm:$0xff]   ;;  %v8101_v0 = vrot.slane %v8023_v15, 1  ;;  %v8094_v11 = vsel %vm1320_vm0, %v8092_v27, %v8093_v49 }
 0x41e   : > { %v14496_v28 = vld [vmem:[%s19530_s4 + $0x224] ss:$8 sps:$4 sm:$0xff]   ;;  %v18372_v46 = vld [vmem:[#allocation3 + $0x110] sm:$0xff]  ;;  %v8102_v45 = vrot.slane %v8025_v29, 1  ;;  %8379 = vmatprep.mubr.bf16.mxu1 %v8131_v51  ;;  %v18377_v35 = vld [vmem:[#allocation3 + $0xd8] sm:$0xff]  ;;  %9279 = vmatpush1.bf16.msra.mxu0 %v14491_v63 }
 0x41f   : > { %v18374_v23 = vld [vmem:[#allocation3 + $0x80] sm:$0xff]  ;;  %v8634_v44 = vld [vmem:[#allocation3 + $0x68] sm:$0xfc]  ;;  %v8027_v56 = vld [vmem:[#allocation3 + $0xd8] sm:$0xfe]  ;;  %v7965_v33 = vpack.c.bf16 %v18377_v35, %v18372_v46  ;;  %v8088_v38 = vsel %vm1320_vm0, %v8086_v5, %v8087_v14  ;;  %8971 = vmatpush1.bf16.msra.mxu1 %v14488_v62  ;;  %9280 = vmatprep.subr.bf16.mxu0 %v14499_v2 }
 0x420   : > { %v8029_v4 = vld [vmem:[#allocation3 + $0xc0] sm:$0x1]  ;;  %v14497_v50 = vld [vmem:[%s19530_s4 + $0x310] ss:$8 sps:$4 sm:$0xff]   ;;  %v8107_v41 = vrot.slane %v8027_v56, 1  ;;  %v8130_v39 = vpack.c.bf16 %v8094_v11, %v8088_v38  ;;  %v18385_v6 = vld [vmem:[#allocation3 + $0x48] sm:$0xff]  ;;  %v8103_v21 = vsel %vm1320_vm0, %v8101_v0, %v8102_v45  ;;  %8972 = vmatprep.subr.bf16.mxu1 %v14496_v28 }
 0x421   : > { %v8108_v60 = vrot.slane %v8029_v4, 1  ;;  %v8026_v7 = vld [vmem:[#allocation3 + $0x80] sm:$0xfe]  ;;  %v8028_v20 = vld [vmem:[#allocation3 + $0x38] sm:$0x1]  ;;  %8622 = vmatprep.mubr.bf16.mxu0 %v7965_v33  ;;  %v8700_v37 = vrot.slane %v8634_v44, 2  ;;  %v7964_v34 = vpack.c.bf16 %v18374_v23, %v18385_v6 }
 0x422   : > { %v8636_v36 = vld [vmem:[#allocation3 + $0xc8] sm:$0x3]  ;;  %v8638_v31 = vld [vmem:[#allocation3 + $0xb0] sm:$0xfc]  ;;  %v8640_v53 = vld [vmem:[#allocation3 + $0x120] sm:$0x3]  ;;  %8380 = vmatmul.mubr.bf16.gmra.mxu1 %v8130_v39  ;;  %9281 = vmatpush1.bf16.msra.mxu0 %v14497_v50 }
 0x423   : > { %v8109_v52 = vsel %vm1320_vm0, %v8107_v41, %v8108_v60  ;;  %v8022_v47 = vld [vmem:[#allocation3 + $0x48] sm:$0xfe]  ;;  %v8024_v1 = vld [vmem:[#allocation3 + $0x88] sm:$0x1]  ;;  %v8104_v54 = vrot.slane %v8026_v7, 1  ;;  %v8105_v9 = vrot.slane %v8028_v20, 1  ;;  %8623 = vmatmul.mubr.bf16.gmra.mxu0 %v7964_v34 }
 0x424   : > { %v14494_v26 = vld [vmem:[%s19530_s4 + $0x220] ss:$8 sps:$4 sm:$0xff]   ;;  %v8133_v43 = vpack.c.bf16 %v8109_v52, %v8103_v21  ;;  %v14505_v18 = vld [vmem:[%s19530_s4 + $0x304] ss:$8 sps:$4 sm:$0xff]   ;;  %v14502_v25 = vld [vmem:[%s19530_s4 + $0x214] ss:$8 sps:$4 sm:$0xff]   ;;  %9300 = vmatprep.mubr.bf16.mxu0 %v9068_v30 }
 0x425   : > { %v8701_v32 = vrot.slane %v8636_v36, 2  ;;  %v8706_v3 = vrot.slane %v8638_v31, 2  ;;  %v8707_v24 = vrot.slane %v8640_v53, 2  ;;  %v8098_v17 = vrot.slane %v8022_v47, 1  ;;  %v14503_v48 = vld [vmem:[%s19530_s4 + $0x300] ss:$8 sps:$4 sm:$0xff]   ;;  %8973 = vmatpush1.bf16.msra.mxu1 %v14494_v26  ;;  %9282 = vmatprep.subr.bf16.mxu0 %v14505_v18 }
 0x426   : > { %8389 = vmatprep.mubr.bf16.mxu1 %v8133_v43  ;;  %v8099_v27 = vrot.slane %v8024_v1, 1  ;;  %v14500_v42 = vld [vmem:[%s19530_s4 + $0x210] ss:$8 sps:$4 sm:$0xff]   ;;  %v8106_v8 = vsel %vm1320_vm0, %v8104_v54, %v8105_v9  ;;  %v14511_v13 = vld [vmem:[%s19530_s4 + $0x3f4] ss:$8 sps:$4 sm:$0xff]   ;;  %8974 = vmatprep.subr.bf16.mxu1 %v14502_v25 }
 0x427   : > { %v8702_v55 = vsel %vm2590_vm1, %v8700_v37, %v8701_v32  ;;  %v8708_v49 = vsel %vm2590_vm1, %v8706_v3, %v8707_v24  ;;  %v14508_v15 = vld [vmem:[%s19530_s4 + $0x204] ss:$8 sps:$4 sm:$0xff]   ;;  %9283 = vmatpush1.bf16.msra.mxu0 %v14503_v48  ;;  %v14509_v62 = vld [vmem:[%s19530_s4 + $0x3f0] ss:$8 sps:$4 sm:$0xff]   ;;  %v14506_v14 = vld [vmem:[%s19530_s4 + $0x200] ss:$8 sps:$4 sm:$0xff]  }
 0x428   : > { %v8100_v29 = vsel %vm1320_vm0, %v8098_v17, %v8099_v27  ;;  %v8762_v5 = vpack.c.bf16 %v8708_v49, %v8702_v55  ;;  %9284 = vmatprep.subr.bf16.mxu0 %v14511_v13  ;;  %v14517_v63 = vld [vmem:[%s19530_s4 + $0x3e4] ss:$8 sps:$4 sm:$0xff]   ;;  %v14514_v2 = vld [vmem:[%s19530_s4 + $0x2f4] ss:$8 sps:$4 sm:$0xff]   ;;  %v14515_v28 = vld [vmem:[%s19530_s4 + $0x3e0] ss:$8 sps:$4 sm:$0xff]  }
 0x429   : > { %v8132_v51 = vpack.c.bf16 %v8106_v8, %v8100_v29  ;;  %8975 = vmatpush1.bf16.msra.mxu1 %v14500_v42  ;;  %v14512_v0 = vld [vmem:[%s19530_s4 + $0x2f0] ss:$8 sps:$4 sm:$0xff]   ;;  %v14523_v45 = vld [vmem:[%s19530_s4 + $0x3d4] ss:$8 sps:$4 sm:$0xff]   ;;  %v14520_v44 = vld [vmem:[%s19530_s4 + $0x2e4] ss:$8 sps:$4 sm:$0xff]  }
 0x42a   : > { %8976 = vmatprep.subr.bf16.mxu1 %v14508_v15  ;;  %v14521_v11 = vld [vmem:[%s19530_s4 + $0x3d0] ss:$8 sps:$4 sm:$0xff]   ;;  %v14518_v56 = vld [vmem:[%s19530_s4 + $0x2e0] ss:$8 sps:$4 sm:$0xff]   ;;  %v14529_v4 = vld [vmem:[%s19530_s4 + $0x3c4] ss:$8 sps:$4 sm:$0xff]  }
 0x42b   : > { %8390 = vmatmul.mubr.bf16.gmra.mxu1 %v8132_v51  ;;  %9285 = vmatpush2.bf16.msra.mxu0 %v14509_v62  ;;  %v14526_v33 = vld [vmem:[%s19530_s4 + $0x2d4] ss:$8 sps:$4 sm:$0xff]   ;;  %v14527_v50 = vld [vmem:[%s19530_s4 + $0x3c0] ss:$8 sps:$4 sm:$0xff]   ;;  %v14524_v41 = vld [vmem:[%s19530_s4 + $0x2d0] ss:$8 sps:$4 sm:$0xff]   ;;  %v9067_v51 = vpack.c.bf16 %v18289_v58, %v18238_v19 }
 0x42c   : > { %8994 = vmatprep.mubr.bf16.mxu1 %v8762_v5  ;;  %9286 = vmatprep.subr.bf16.mxu0 %v14517_v63  ;;  %v14535_v60 = vld [vmem:[%s19530_s4 + $0x3b4] ss:$8 sps:$4 sm:$0xff]   ;;  %v14532_v7 = vld [vmem:[%s19530_s4 + $0x2c4] ss:$8 sps:$4 sm:$0xff]   ;;  %v14533_v20 = vld [vmem:[%s19530_s4 + $0x3b0] ss:$8 sps:$4 sm:$0xff]   ;;  %v9070_v5 = vpack.c.bf16 %v18323_v40, %v18297_v16 }
 0x42d   : > { %8977 = vmatpush1.bf16.msra.mxu1 %v14506_v14  ;;  %v14530_v38 = vld [vmem:[%s19530_s4 + $0x2c0] ss:$8 sps:$4 sm:$0xff]   ;;  %v14541_v36 = vld [vmem:[%s19530_s4 + $0x3a4] ss:$8 sps:$4 sm:$0xff]   ;;  %v14538_v31 = vld [vmem:[%s19530_s4 + $0x2b4] ss:$8 sps:$4 sm:$0xff]  }
 0x42e   : > { %8978 = vmatprep.subr.bf16.mxu1 %v14514_v2  ;;  %v14539_v53 = vld [vmem:[%s19530_s4 + $0x3a0] ss:$8 sps:$4 sm:$0xff]   ;;  %v14536_v39 = vld [vmem:[%s19530_s4 + $0x2b0] ss:$8 sps:$4 sm:$0xff]   ;;  %v14547_v21 = vld [vmem:[%s19530_s4 + $0x394] ss:$8 sps:$4 sm:$0xff]  }
 0x42f   : > { %9287 = vmatpush2.bf16.msra.mxu0 %v14515_v28  ;;  %v14544_v52 = vld [vmem:[%s19530_s4 + $0x2a4] ss:$8 sps:$4 sm:$0xff]   ;;  %v14545_v47 = vld [vmem:[%s19530_s4 + $0x390] ss:$8 sps:$4 sm:$0xff]   ;;  %v14542_v1 = vld [vmem:[%s19530_s4 + $0x2a0] ss:$8 sps:$4 sm:$0xff]  }
 0x430   : > { %9288 = vmatprep.subr.bf16.mxu0 %v14523_v45  ;;  %v14553_v37 = vld [vmem:[%s19530_s4 + $0x384] ss:$8 sps:$4 sm:$0xff]   ;;  %v14550_v26 = vld [vmem:[%s19530_s4 + $0x294] ss:$8 sps:$4 sm:$0xff]   ;;  %v14548_v34 = vld [vmem:[%s19530_s4 + $0x290] ss:$8 sps:$4 sm:$0xff]  }
 0x431   : > { %8979 = vmatpush2.bf16.msra.mxu1 %v14512_v0  ;;  %v8633_v43 = vld [vmem:[#allocation3 + $0x78] sm:$0xfc]  ;;  %v8635_v54 = vld [vmem:[#allocation3 + $0xe8] sm:$0x3]  ;;  %v8637_v18 = vld [vmem:[#allocation3 + $0x10] sm:$0xfc] }
 0x432   : > { %8980 = vmatprep.subr.bf16.mxu1 %v14520_v44  ;;  %v14551_v9 = vld [vmem:[%s19530_s4 + $0x380] ss:$8 sps:$4 sm:$0xff]   ;;  %v14559_v25 = vld [vmem:[%s19530_s4 + $0x574] ss:$8 sps:$4 sm:$0xff]   ;;  %v8648_v3 = vld [vmem:[#allocation3 + $0x30] sm:$0x3] }
 0x433   : > { %9289 = vmatpush2.bf16.msra.mxu0 %v14521_v11  ;;  %v8639_v30 = vld [vmem:[#allocation3 + $0xa8] sm:$0x3]  ;;  %v8646_v32 = vld [vmem:[#allocation3 + $0x118] sm:$0xfc]  ;;  %v14556_v24 = vld [vmem:[%s19530_s4 + $0x284] ss:$8 sps:$4 sm:$0xff]  }
 0x434   : > { %9290 = vmatprep.subr.bf16.mxu0 %v14529_v4  ;;  %v8697_v17 = vrot.slane %v8633_v43, 2  ;;  %v8698_v27 = vrot.slane %v8635_v54, 2  ;;  %v8703_v48 = vrot.slane %v8637_v18, 2  ;;  %v8704_v42 = vrot.slane %v8639_v30, 2  ;;  %v8642_v8 = vld [vmem:[#allocation3 + $0x20] sm:$0xfc] }
 0x435   : > { %8981 = vmatpush2.bf16.msra.mxu1 %v14518_v56  ;;  %v8644_v13 = vld [vmem:[#allocation3 + $0x70] sm:$0x3]  ;;  %v8718_v49 = vrot.slane %v8646_v32, 2  ;;  %v8719_v15 = vrot.slane %v8648_v3, 2  ;;  %v14554_v29 = vld [vmem:[%s19530_s4 + $0x280] ss:$8 sps:$4 sm:$0xff]  }
 0x436   : > { %8982 = vmatprep.subr.bf16.mxu1 %v14526_v33  ;;  %v14557_v55 = vld [vmem:[%s19530_s4 + $0x570] ss:$8 sps:$4 sm:$0xff]   ;;  %v14565_v62 = vld [vmem:[%s19530_s4 + $0x564] ss:$8 sps:$4 sm:$0xff]   ;;  %v14562_v14 = vld [vmem:[%s19530_s4 + $0x474] ss:$8 sps:$4 sm:$0xff]   ;;  %v8699_v28 = vsel %vm2590_vm1, %v8697_v17, %v8698_v27  ;;  %v8705_v19 = vsel %vm2590_vm1, %v8703_v48, %v8704_v42 }
 0x437   : > { %9291 = vmatpush2.bf16.msra.mxu0 %v14527_v50  ;;  %v8712_v63 = vrot.slane %v8642_v8, 2  ;;  %v8713_v2 = vrot.slane %v8644_v13, 2  ;;  %v14560_v58 = vld [vmem:[%s19530_s4 + $0x470] ss:$8 sps:$4 sm:$0xff]   ;;  %v8720_v0 = vsel %vm2590_vm1, %v8718_v49, %v8719_v15  ;;  %v14563_v16 = vld [vmem:[%s19530_s4 + $0x560] ss:$8 sps:$4 sm:$0xff]   ;;  %v8761_v4 = vpack.c.bf16 %v8705_v19, %v8699_v28 }
 0x438   : > { %9292 = vmatprep.subr.bf16.mxu0 %v14535_v60  ;;  %v8645_v40 = vld [vmem:[#allocation3] sm:$0xfc]  ;;  %v8647_v45 = vld [vmem:[#allocation3 + $0x128] sm:$0x3]  ;;  %v8654_v11 = vld [vmem:[#allocation3 + $0xb8] sm:$0xfc]  ;;  %v9071_v19 = vpack.c.bf16 %v18385_v6, %v18342_v57 }
 0x439   : > { %8983 = vmatpush2.bf16.msra.mxu1 %v14524_v41  ;;  %v14568_v44 = vld [vmem:[%s19530_s4 + $0x464] ss:$8 sps:$4 sm:$0xff]   ;;  %v8656_v56 = vld [vmem:[#allocation3 + $0x98] sm:$0x3]  ;;  %v8714_v33 = vsel %vm2590_vm1, %v8712_v63, %v8713_v2  ;;  %v14571_v50 = vld [vmem:[%s19530_s4 + $0x554] ss:$8 sps:$4 sm:$0xff]  }
 0x43a   : > { %8984 = vmatprep.subr.bf16.mxu1 %v14532_v7  ;;  %v8641_v41 = vld [vmem:[#allocation3 + $0xd0] sm:$0xfc]  ;;  %v8643_v60 = vld [vmem:[#allocation3 + $0x50] sm:$0x3]  ;;  %v8764_v7 = vpack.c.bf16 %v8720_v0, %v8714_v33  ;;  %v14575_v18 = vld [vmem:[%s19530_s4 + $0x540] ss:$8 sps:$4 sm:$0xff]  }
 0x43b   : > { %9293 = vmatpush2.bf16.msra.mxu0 %v14533_v20  ;;  %v8715_v20 = vrot.slane %v8645_v40, 2  ;;  %v14574_v43 = vld [vmem:[%s19530_s4 + $0x454] ss:$8 sps:$4 sm:$0xff]   ;;  %v8664_v17 = vld [vmem:[#allocation3 + $0xc0] sm:$0x3] }
 0x43c   : > { %9294 = vmatprep.subr.bf16.mxu0 %v14541_v36  ;;  %v8650_v36 = vld [vmem:[#allocation3 + $0xe0] sm:$0xfc]  ;;  %v8653_v30 = vld [vmem:[#allocation3 + $0x130] sm:$0xfc]  ;;  %v8649_v8 = vld [vmem:[#allocation3 + $0xf8] sm:$0xfc] }
 0x43d   : > { %8985 = vmatpush2.bf16.msra.mxu1 %v14530_v38  ;;  %v8716_v38 = vrot.slane %v8647_v45, 2  ;;  %v8724_v54 = vrot.slane %v8650_v36, 2  ;;  %v14583_v3 = vld [vmem:[%s19530_s4 + $0x534] ss:$8 sps:$4 sm:$0xff]   ;;  %v14581_v42 = vld [vmem:[%s19530_s4 + $0x530] ss:$8 sps:$4 sm:$0xff]  }
 0x43e   : > { %8986 = vmatprep.subr.bf16.mxu1 %v14538_v31  ;;  %v8652_v31 = vld [vmem:[#allocation3 + $0xf0] sm:$0x3]  ;;  %v8651_v13 = vld [vmem:[#allocation3 + $0xa0] sm:$0x3]  ;;  %v8743_v63 = vrot.slane %v8664_v17, 2 }
 0x43f   : > { %9295 = vmatpush2.bf16.msra.mxu0 %v14539_v53  ;;  %v14569_v53 = vld [vmem:[%s19530_s4 + $0x550] ss:$8 sps:$4 sm:$0xff]   ;;  %v14578_v15 = vld [vmem:[%s19530_s4 + $0x440] ss:$8 sps:$4 sm:$0xff]   ;;  %v8722_v0 = vrot.slane %v8651_v13, 2 }
 0x440   : > { %9296 = vmatprep.subr.bf16.mxu0 %v14547_v21  ;;  %v8731_v21 = vrot.slane %v8656_v56, 2  ;;  %v9780_v2 = vld [vmem:[#allocation3 + $0x20] sm:$0xfc]  ;;  %v9782_v28 = vld [vmem:[#allocation3 + $0x70] sm:$0x3] }
 0x441   : > { %8987 = vmatpush2.bf16.msra.mxu1 %v14536_v39  ;;  %v8730_v39 = vrot.slane %v8654_v11, 2  ;;  %v14589_v40 = vld [vmem:[%s19530_s4 + $0x524] ss:$8 sps:$4 sm:$0xff]   ;;  %v9776_v56 = vld [vmem:[#allocation3 + $0xb0] sm:$0xfc] }
 0x442   : > { %8988 = vmatprep.subr.bf16.mxu1 %v14544_v52  ;;  %v14566_v52 = vld [vmem:[%s19530_s4 + $0x460] ss:$8 sps:$4 sm:$0xff]   ;;  %v14584_v6 = vld [vmem:[%s19530_s4 + $0x430] ss:$8 sps:$4 sm:$0xff]   ;;  %v14601_v17 = vld [vmem:[%s19530_s4 + $0x504] ss:$8 sps:$4 sm:$0xff]  }
 0x443   : > { %9297 = vmatpush2.bf16.msra.mxu0 %v14545_v47  ;;  %v9069_v47 = vpack.c.bf16 %v18348_v12, %v18291_v61  ;;  %v8717_v61 = vsel %vm2590_vm1, %v8715_v20, %v8716_v38  ;;  %v14572_v12 = vld [vmem:[%s19530_s4 + $0x450] ss:$8 sps:$4 sm:$0xff]   ;;  %v14587_v33 = vld [vmem:[%s19530_s4 + $0x520] ss:$8 sps:$4 sm:$0xff]  }
 0x444   : > { %9298 = vmatprep.subr.bf16.mxu0 %v14553_v37  ;;  %v8710_v37 = vrot.slane %v8643_v60, 2  ;;  %v14592_v60 = vld [vmem:[%s19530_s4 + $0x424] ss:$8 sps:$4 sm:$0xff]   ;;  %v8663_v38 = vld [vmem:[#allocation3 + $0x38] sm:$0x3] }
 0x445   : > { %8989 = vmatpush2.bf16.msra.mxu1 %v14542_v1  ;;  %v8709_v1 = vrot.slane %v8641_v41, 2  ;;  %v9849_v41 = vrot.slane %v9782_v28, 2  ;;  %v8661_v20 = vld [vmem:[#allocation3 + $0x80] sm:$0xfc] }
 0x446   : > { %8990 = vmatprep.subr.bf16.mxu1 %v14550_v26  ;;  %v14577_v26 = vld [vmem:[%s19530_s4 + $0x544] ss:$8 sps:$4 sm:$0xff]  }
 0x447   : > { %9299 = vmatpush2.bf16.msra.mxu0 %v14551_v9  ;;  %v8725_v9 = vrot.slane %v8652_v31, 2  ;;  %v8711_v32 = vsel %vm2590_vm1, %v8709_v1, %v8710_v37  ;;  %v9842_v31 = vrot.slane %v9776_v56, 2  ;;  %v9065_v1 = vld [vmem:[#allocation3 + $0x90] sm:$0xff]  ;;  %v8657_v37 = vld [vmem:[#allocation3 + $0x48] sm:$0xfc] }
 0x448   : > { %10104 = vmatprep.subr.bf16.mxu0 %v14559_v25  ;;  %v8655_v25 = vld [vmem:[#allocation3 + $0x28] sm:$0x3]  ;;  %v8763_v27 = vpack.c.bf16 %v8717_v61, %v8711_v32  ;;  %v9358_v61 = vld [vmem:[#allocation3 + $0xb0] sm:$0xfe]  ;;  %v14613_v28 = vld [vmem:[%s19530_s4 + $0x5e4] ss:$8 sps:$4 sm:$0xff]  }
 0x449   : > { %8991 = vmatpush2.bf16.msra.mxu1 %v14548_v34  ;;  %v9072_v34 = vpack.c.bf16 %v18372_v46, %v18334_v59  ;;  %v8732_v59 = vsel %vm2590_vm1, %v8730_v39, %v8731_v21  ;;  %v14580_v46 = vld [vmem:[%s19530_s4 + $0x444] ss:$8 sps:$4 sm:$0xff]   ;;  %v8726_v48 = vsel %vm2590_vm1, %v8724_v54, %v8725_v9  ;;  %v9364_v21 = vld [vmem:[#allocation3 + $0x70] sm:$0x1]  ;;  %v8739_v54 = vrot.slane %v8661_v20, 2 }
 0x44a   : > { %8992 = vmatprep.subr.bf16.mxu1 %v14556_v24  ;;  %9301 = vmatmul.mubr.bf16.vlgmr.msra.gmra.mxu0 %v9067_v51  ;;  %v8662_v24 = vld [vmem:[#allocation3 + $0xd8] sm:$0xfc]  ;;  %v8766_v49 = vpack.c.bf16 %v8732_v59, %v8726_v48  ;;  %v8727_v51 = vrot.slane %v8653_v30, 2  ;;  %v9362_v39 = vld [vmem:[#allocation3 + $0x20] sm:$0xfe]  ;;  %v8740_v9 = vrot.slane %v8663_v38, 2 }
 0x44b   : > { %9310 = vmatprep.mubr.bf16.mxu0 %v9070_v5  ;;  %10105 = vmatpush1.bf16.msra.mxu0 %v14557_v55  ;;  %v8658_v55 = vld [vmem:[#allocation3 + $0x110] sm:$0xfc]  ;;  %v8660_v5 = vld [vmem:[#allocation3 + $0x58] sm:$0x3]  ;;  %v9430_v59 = vrot.slane %v9362_v39, 1 }
 0x44c   : > { %10106 = vmatprep.subr.bf16.mxu0 %v14565_v62  ;;  %v8728_v62 = vrot.slane %v8655_v25, 2  ;;  %v8737_v11 = vrot.slane %v8660_v5, 2  ;;  %v14590_v30 = vld [vmem:[%s19530_s4 + $0x420] ss:$8 sps:$4 sm:$0xff]   ;;  %v9073_v25 = vpack.c.bf16 %v9065_v1, %v18374_v23  ;;  %v14598_v48 = vld [vmem:[%s19530_s4 + $0x414] ss:$8 sps:$4 sm:$0xff]   ;;  %v8741_v23 = vsel %vm2590_vm1, %v8739_v54, %v8740_v9 }
 0x44d   : > { %8993 = vmatpush2.bf16.msra.mxu1 %v14554_v29  ;;  %v9066_v29 = vld [vmem:[#allocation3 + $0x138] sm:$0xff]  ;;  %v14635_v20 = vld [vmem:[%s19530_s4 + $0x5a0] ss:$8 sps:$4 sm:$0xff]   ;;  %v18706_v38 = vld [vmem:[#allocation3 + $0x10] sm:$0xfc] }
 0x44e   : > { %9686 = vmatprep.subr.bf16.mxu1 %v14562_v14  ;;  %v8742_v14 = vrot.slane %v8662_v24, 2  ;;  %v9074_v45 = vpack.c.bf16 %v9066_v29, %v18377_v35  ;;  %v8729_v57 = vsel %vm2590_vm1, %v8727_v51, %v8728_v62  ;;  %v14604_v62 = vld [vmem:[%s19530_s4 + $0x404] ss:$8 sps:$4 sm:$0xff]   ;;  %v14607_v5 = vld [vmem:[%s19530_s4 + $0x5f4] ss:$8 sps:$4 sm:$0xff]  }
 0x44f   : > { %10107 = vmatpush1.bf16.msra.mxu0 %v14563_v16  ;;  %v14586_v16 = vld [vmem:[%s19530_s4 + $0x434] ss:$8 sps:$4 sm:$0xff]   ;;  %v9781_v39 = vld [vmem:[#allocation3 + $0x50] sm:$0x3]  ;;  %v14649_v1 = vld [vmem:[%s19530_s4 + $0x584] ss:$8 sps:$4 sm:$0xff]  }
 0x450   : > { %8995 = vmatmul.mubr.bf16.vlgmr.msra.gmra.mxu1 %v8761_v4  ;;  %10108 = vmatprep.subr.bf16.mxu0 %v14571_v50  ;;  %v9778_v4 = vld [vmem:[#allocation3 + $0x120] sm:$0x3]  ;;  %v9848_v50 = vrot.slane %v9780_v2, 2  ;;  %v8744_v35 = vsel %vm2590_vm1, %v8742_v14, %v8743_v63  ;;  %v14605_v63 = vld [vmem:[%s19530_s4 + $0x5f0] ss:$8 sps:$4 sm:$0xff]   ;;  %v9846_v54 = vrot.slane %v9781_v39, 2 }
 0x451   : > { %9004 = vmatprep.mubr.bf16.mxu1 %v8764_v7  ;;  %9687 = vmatpush1.bf16.msra.mxu1 %v14560_v58  ;;  %v8721_v58 = vrot.slane %v8649_v8, 2  ;;  %v14595_v7 = vld [vmem:[%s19530_s4 + $0x514] ss:$8 sps:$4 sm:$0xff]   ;;  %v14602_v2 = vld [vmem:[%s19530_s4 + $0x400] ss:$8 sps:$4 sm:$0xff]  }
 0x452   : > { %9688 = vmatprep.subr.bf16.mxu1 %v14568_v44  ;;  %9311 = vmatmul.mubr.bf16.gmra.mxu0 %v9069_v47  ;;  %v8736_v44 = vrot.slane %v8658_v55, 2  ;;  %v14599_v55 = vld [vmem:[%s19530_s4 + $0x500] ss:$8 sps:$4 sm:$0xff]   ;;  %v14622_v56 = vld [vmem:[%s19530_s4 + $0x4d4] ss:$8 sps:$4 sm:$0xff]  }
 0x453   : > { %9320 = vmatprep.mubr.bf16.mxu0 %v9072_v34  ;;  %10109 = vmatpush1.bf16.msra.mxu0 %v14569_v53  ;;  %v8723_v36 = vsel %vm2590_vm1, %v8721_v58, %v8722_v0  ;;  %v9843_v53 = vrot.slane %v9778_v4, 2  ;;  %v14611_v58 = vld [vmem:[%s19530_s4 + $0x5e0] ss:$8 sps:$4 sm:$0xff]   ;;  %v14608_v0 = vld [vmem:[%s19530_s4 + $0x4f0] ss:$8 sps:$4 sm:$0xff]  }
 0x454   : > { %10110 = vmatprep.subr.bf16.mxu0 %v14577_v26  ;;  %v8738_v47 = vsel %vm2590_vm1, %v8736_v44, %v8737_v11  ;;  %v8659_v26 = vld [vmem:[#allocation3 + $0x88] sm:$0x3]  ;;  %v14625_v11 = vld [vmem:[%s19530_s4 + $0x5c4] ss:$8 sps:$4 sm:$0xff]   ;;  %v9371_v39 = vld [vmem:[#allocation3 + $0xa0] sm:$0x1] }
 0x455   : > { %9689 = vmatpush1.bf16.msra.mxu1 %v14566_v52  ;;  %v8765_v52 = vpack.c.bf16 %v8729_v57, %v8723_v36  ;;  %v8768_v34 = vpack.c.bf16 %v8744_v35, %v8738_v47  ;;  %v9844_v32 = vsel %vm2590_vm1, %v9842_v31, %v9843_v53  ;;  %v8734_v24 = vrot.slane %v8659_v26, 2  ;;  %v14614_v44 = vld [vmem:[%s19530_s4 + $0x4e0] ss:$8 sps:$4 sm:$0xff]   ;;  %v14620_v57 = vld [vmem:[%s19530_s4 + $0x4d0] ss:$8 sps:$4 sm:$0xff]  }
 0x456   : > { %9690 = vmatprep.subr.bf16.mxu1 %v14574_v43  ;;  %v9850_v43 = vsel %vm2590_vm1, %v9848_v50, %v9849_v41  ;;  %v14623_v4 = vld [vmem:[%s19530_s4 + $0x5c0] ss:$8 sps:$4 sm:$0xff]   ;;  %v14629_v50 = vld [vmem:[%s19530_s4 + $0x5b0] ss:$8 sps:$4 sm:$0xff]   ;;  %v14637_v35 = vld [vmem:[%s19530_s4 + $0x5a4] ss:$8 sps:$4 sm:$0xff]  }
 0x457   : > { %10111 = vmatpush1.bf16.msra.mxu0 %v14575_v18  ;;  %v14593_v18 = vld [vmem:[%s19530_s4 + $0x510] ss:$8 sps:$4 sm:$0xff]   ;;  %v14626_v41 = vld [vmem:[%s19530_s4 + $0x4c0] ss:$8 sps:$4 sm:$0xff]   ;;  %v14643_v31 = vld [vmem:[%s19530_s4 + $0x594] ss:$8 sps:$4 sm:$0xff]  }
 0x458   : > { %9005 = vmatmul.mubr.bf16.gmra.mxu1 %v8763_v27  ;;  %10112 = vmatprep.subr.bf16.mxu0 %v14583_v3  ;;  %v8733_v3 = vrot.slane %v8657_v37, 2  ;;  %v9904_v27 = vpack.c.bf16 %v9850_v43, %v9844_v32  ;;  %v18708_v36 = vld [vmem:[#allocation3 + $0xa8] sm:$0x3]  ;;  %v9779_v53 = vld [vmem:[#allocation3 + $0xd0] sm:$0xfc]  ;;  %v9839_v37 = vrot.slane %v18706_v38, 2 }
 0x459   : > { %9014 = vmatprep.mubr.bf16.mxu1 %v8766_v49  ;;  %9691 = vmatpush1.bf16.msra.mxu1 %v14572_v12  ;;  %v9360_v12 = vld [vmem:[#allocation3 + $0x120] sm:$0x1]  ;;  %v14641_v47 = vld [vmem:[%s19530_s4 + $0x590] ss:$8 sps:$4 sm:$0xff]   ;;  %v9840_v26 = vrot.slane %v18708_v36, 2  ;;  %v9845_v43 = vrot.slane %v9779_v53, 2 }
 0x45a   : > { %9692 = vmatprep.subr.bf16.mxu1 %v14580_v46  ;;  %9321 = vmatmul.mubr.bf16.gmra.mxu0 %v9071_v19  ;;  %v9431_v46 = vrot.slane %v9364_v21, 1  ;;  %v9425_v8 = vrot.slane %v9360_v12, 1  ;;  %v8735_v49 = vsel %vm2590_vm1, %v8733_v3, %v8734_v24  ;;  %v14610_v19 = vld [vmem:[%s19530_s4 + $0x4f4] ss:$8 sps:$4 sm:$0xff]   ;;  %v14640_v21 = vld [vmem:[%s19530_s4 + $0x4a4] ss:$8 sps:$4 sm:$0xff]  }
 0x45b   : > { %9330 = vmatprep.mubr.bf16.mxu0 %v9074_v45  ;;  %10113 = vmatpush1.bf16.msra.mxu0 %v14581_v42  ;;  %v9424_v42 = vrot.slane %v9358_v61, 1  ;;  %v8767_v29 = vpack.c.bf16 %v8741_v23, %v8735_v49  ;;  %v14617_v45 = vld [vmem:[%s19530_s4 + $0x5d0] ss:$8 sps:$4 sm:$0xff]   ;;  %v9788_v9 = vld [vmem:[#allocation3 + $0xe0] sm:$0xfc] }
 0x45c   : > { %10114 = vmatprep.subr.bf16.mxu0 %v14589_v40  ;;  %v9432_v13 = vsel %vm1320_vm0, %v9430_v59, %v9431_v46  ;;  %v14616_v40 = vld [vmem:[%s19530_s4 + $0x4e4] ss:$8 sps:$4 sm:$0xff]   ;;  %v9790_v61 = vld [vmem:[#allocation3 + $0xf0] sm:$0x3]  ;;  %v9784_v12 = vld [vmem:[#allocation3 + $0x118] sm:$0xfc] }
 0x45d   : > { %9693 = vmatpush1.bf16.msra.mxu1 %v14578_v15  ;;  %v14596_v15 = vld [vmem:[%s19530_s4 + $0x410] ss:$8 sps:$4 sm:$0xff]   ;;  %v9426_v51 = vsel %vm1320_vm0, %v9424_v42, %v9425_v8  ;;  %v14647_v46 = vld [vmem:[%s19530_s4 + $0x580] ss:$8 sps:$4 sm:$0xff]   ;;  %v9860_v24 = vrot.slane %v9788_v9, 2  ;;  %v9854_v8 = vrot.slane %v9784_v12, 2 }
 0x45e   : > { %9694 = vmatprep.subr.bf16.mxu1 %v14586_v16  ;;  %v9486_v14 = vpack.c.bf16 %v9432_v13, %v9426_v51  ;;  %v14619_v16 = vld [vmem:[%s19530_s4 + $0x5d4] ss:$8 sps:$4 sm:$0xff]   ;;  %v9363_v32 = vld [vmem:[#allocation3 + $0x50] sm:$0x1]  ;;  %v14652_v42 = vld [vmem:[%s19530_s4 + $0x484] ss:$8 sps:$4 sm:$0xff]  }
 0x45f   : > { %10115 = vmatpush1.bf16.msra.mxu0 %v14587_v33  ;;  %v14628_v33 = vld [vmem:[%s19530_s4 + $0x4c4] ss:$8 sps:$4 sm:$0xff]   ;;  %v18730_v59 = vld [vmem:[#allocation3 + $0x10] sm:$0xfe]  ;;  %v14659_v38 = vld [vmem:[%s19530_s4 + $0x760] ss:$8 sps:$4 sm:$0xff]  }
 0x460   : > { %9015 = vmatmul.mubr.bf16.gmra.mxu1 %v8765_v52  ;;  %10116 = vmatprep.subr.bf16.mxu0 %v14595_v7  ;;  %v14632_v7 = vld [vmem:[%s19530_s4 + $0x4b0] ss:$8 sps:$4 sm:$0xff]   ;;  %v14638_v52 = vld [vmem:[%s19530_s4 + $0x4a0] ss:$8 sps:$4 sm:$0xff]   ;;  %v14655_v49 = vld [vmem:[%s19530_s4 + $0x774] ss:$8 sps:$4 sm:$0xff]  }
 0x461   : > { %9024 = vmatprep.mubr.bf16.mxu1 %v8768_v34  ;;  %9695 = vmatpush1.bf16.msra.mxu1 %v14584_v6  ;;  %v14631_v6 = vld [vmem:[%s19530_s4 + $0x5b4] ss:$8 sps:$4 sm:$0xff]   ;;  %v14644_v3 = vld [vmem:[%s19530_s4 + $0x490] ss:$8 sps:$4 sm:$0xff]   ;;  %v9370_v13 = vld [vmem:[#allocation3 + $0xe0] sm:$0xfe] }
 0x462   : > { %9696 = vmatprep.subr.bf16.mxu1 %v14592_v60  ;;  %9331 = vmatmul.mubr.bf16.gmra.mxu0 %v9073_v25  ;;  %v14634_v60 = vld [vmem:[%s19530_s4 + $0x4b4] ss:$8 sps:$4 sm:$0xff]  }
 0x463   : > { %10117 = vmatpush1.bf16.msra.mxu0 %v14593_v18  ;;  %10136 = vmatprep.mubr.bf16.mxu0 %v9904_v27  ;;  %v14646_v34 = vld [vmem:[%s19530_s4 + $0x494] ss:$8 sps:$4 sm:$0xff]   ;;  %v9786_v18 = vld [vmem:[#allocation3 + $0x30] sm:$0x3] }
 0x464   : > { %10118 = vmatprep.subr.bf16.mxu0 %v14601_v17  ;;  %v9361_v25 = vld [vmem:[#allocation3 + $0xd0] sm:$0xfe]  ;;  %v9861_v17 = vrot.slane %v9790_v61, 2  ;;  %v18740_v27 = vld [vmem:[#allocation3 + $0x118] sm:$0xfe]  ;;  %v9855_v23 = vrot.slane %v9786_v18, 2 }
 0x465   : > { %9697 = vmatpush1.bf16.msra.mxu1 %v14590_v30  ;;  %v18735_v30 = vld [vmem:[#allocation3 + $0xa8] sm:$0x1]  ;;  %v9427_v51 = vrot.slane %v9361_v25, 1  ;;  %v9369_v53 = vld [vmem:[#allocation3 + $0xf8] sm:$0xfe] }
 0x466   : > { %9698 = vmatprep.subr.bf16.mxu1 %v14598_v48  ;;  %v18742_v48 = vld [vmem:[#allocation3 + $0x30] sm:$0x1]  ;;  %v14667_v9 = vld [vmem:[%s19530_s4 + $0x754] ss:$8 sps:$4 sm:$0xff]   ;;  %v9439_v25 = vrot.slane %v9369_v53, 1 }
 0x467   : > { %10119 = vmatpush1.bf16.msra.mxu0 %v14599_v55  ;;  %v9372_v55 = vld [vmem:[#allocation3 + $0xf0] sm:$0x1]  ;;  %v18785_v18 = vld [vmem:[#allocation3 + $0xb8] sm:$0xfe] }
 0x468   : > { %9025 = vmatmul.mubr.bf16.gmra.mxu1 %v8767_v29  ;;  %10120 = vmatprep.subr.bf16.mxu0 %v14607_v5  ;;  %v9422_v29 = vrot.slane %v18735_v30, 1  ;;  %v9847_v5 = vsel %vm2590_vm1, %v9845_v43, %v9846_v54  ;;  %v14664_v54 = vld [vmem:[%s19530_s4 + $0x664] ss:$8 sps:$4 sm:$0xff]  }
 0x469   : > { %9699 = vmatpush1.bf16.msra.mxu1 %v14596_v15  ;;  %9718 = vmatprep.mubr.bf16.mxu1 %v9486_v14  ;;  %v9421_v15 = vrot.slane %v18730_v59, 1  ;;  %v14653_v14 = vld [vmem:[%s19530_s4 + $0x770] ss:$8 sps:$4 sm:$0xff]  }
 0x46a   : > { %9700 = vmatprep.subr.bf16.mxu1 %v14604_v62  ;;  %v9428_v62 = vrot.slane %v9363_v32, 1  ;;  %v18787_v59 = vld [vmem:[#allocation3 + $0x98] sm:$0x1]  ;;  %v9440_v32 = vrot.slane %v9371_v39, 1 }
 0x46b   : > { %10121 = vmatpush2.bf16.msra.mxu0 %v14605_v63  ;;  %v9436_v63 = vrot.slane %v18740_v27, 1  ;;  %v9423_v43 = vsel %vm1320_vm0, %v9421_v15, %v9422_v29  ;;  %v9448_v29 = vrot.slane %v18785_v18, 1 }
 0x46c   : > { %10122 = vmatprep.subr.bf16.mxu0 %v14613_v28  ;;  %v9787_v28 = vld [vmem:[#allocation3 + $0xf8] sm:$0xfc] }
 0x46d   : > { %9701 = vmatpush1.bf16.msra.mxu1 %v14602_v2  ;;  %v9437_v2 = vrot.slane %v18742_v48, 1  ;;  %v14665_v48 = vld [vmem:[%s19530_s4 + $0x750] ss:$8 sps:$4 sm:$0xff]  }
 0x46e   : > { %9702 = vmatprep.subr.bf16.mxu1 %v14610_v19  ;;  %v9789_v19 = vld [vmem:[#allocation3 + $0xa0] sm:$0x3] }
 0x46f   : > { %10123 = vmatpush2.bf16.msra.mxu0 %v14611_v58  ;;  %v14650_v58 = vld [vmem:[%s19530_s4 + $0x480] ss:$8 sps:$4 sm:$0xff]  }
 0x470   : > { %10124 = vmatprep.subr.bf16.mxu0 %v14619_v16  ;;  %v9442_v16 = vrot.slane %v9370_v13, 1  ;;  %v9797_v13 = vld [vmem:[#allocation3 + $0x88] sm:$0x3] }
 0x471   : > { %9703 = vmatpush2.bf16.msra.mxu1 %v14608_v0  ;;  %v9862_v0 = vsel %vm2590_vm1, %v9860_v24, %v9861_v17  ;;  %v9380_v24 = vld [vmem:[#allocation3 + $0x58] sm:$0x1] }
 0x472   : > { %9704 = vmatprep.subr.bf16.mxu1 %v14616_v40  ;;  %v9443_v40 = vrot.slane %v9372_v55, 1  ;;  %v14662_v55 = vld [vmem:[%s19530_s4 + $0x660] ss:$8 sps:$4 sm:$0xff]  }
 0x473   : > { %10125 = vmatpush2.bf16.msra.mxu0 %v14617_v45  ;;  %v9783_v45 = vld [vmem:[#allocation3] sm:$0xfc] }
 0x474   : > { %10126 = vmatprep.subr.bf16.mxu0 %v14625_v11  ;;  %v9841_v11 = vsel %vm2590_vm1, %v9839_v37, %v9840_v26  ;;  %v9851_v36 = vrot.slane %v9783_v45, 2  ;;  %v9365_v26 = vld [vmem:[#allocation3] sm:$0xfe] }
 0x475   : > { %9705 = vmatpush2.bf16.msra.mxu1 %v14614_v44  ;;  %v9785_v44 = vld [vmem:[#allocation3 + $0x128] sm:$0x3] }
 0x476   : > { %9706 = vmatprep.subr.bf16.mxu1 %v14622_v56  ;;  %v14658_v56 = vld [vmem:[%s19530_s4 + $0x674] ss:$8 sps:$4 sm:$0xff]  }
 0x477   : > { %10127 = vmatpush2.bf16.msra.mxu0 %v14623_v4  ;;  %v14661_v4 = vld [vmem:[%s19530_s4 + $0x764] ss:$8 sps:$4 sm:$0xff]  }
 0x478   : > { %10128 = vmatprep.subr.bf16.mxu0 %v14631_v6  ;;  %v9798_v6 = vld [vmem:[#allocation3 + $0x58] sm:$0x3] }
 0x479   : > { %9707 = vmatpush2.bf16.msra.mxu1 %v14620_v57  ;;  %v9796_v57 = vld [vmem:[#allocation3 + $0x110] sm:$0xfc]  ;;  %v9873_v37 = vrot.slane %v9798_v6, 2 }
 0x47a   : > { %9708 = vmatprep.subr.bf16.mxu1 %v14628_v33  ;;  %v9903_v33 = vpack.c.bf16 %v9847_v5, %v9841_v11  ;;  %v9806_v5 = vld [vmem:[#allocation3 + $0x8] sm:$0x3]  ;;  %v9800_v11 = vld [vmem:[#allocation3 + $0xd8] sm:$0xfc] }
 0x47b   : > { %10129 = vmatpush2.bf16.msra.mxu0 %v14629_v50  ;;  %v9856_v50 = vsel %vm2590_vm1, %v9854_v8, %v9855_v23  ;;  %v9795_v23 = vld [vmem:[#allocation3 + $0x48] sm:$0xfc] }
 0x47c   : > { %10130 = vmatprep.subr.bf16.mxu0 %v14637_v35  ;;  %v9858_v35 = vrot.slane %v9789_v19, 2  ;;  %v14673_v19 = vld [vmem:[%s19530_s4 + $0x744] ss:$8 sps:$4 sm:$0xff]   ;;  %v9869_v45 = vrot.slane %v9795_v23, 2  ;;  %v10505_v23 = vld [vmem:[#allocation3 + $0x118] sm:$0xfe] }
 0x47d   : > { %9709 = vmatpush2.bf16.msra.mxu1 %v14626_v41  ;;  %v9857_v41 = vrot.slane %v9787_v28, 2  ;;  %v9455_v28 = vrot.slane %v9380_v24, 1  ;;  %v9803_v24 = vld [vmem:[#allocation3 + $0x90] sm:$0xfc] }
 0x47e   : > { %9710 = vmatprep.subr.bf16.mxu1 %v14634_v60  ;;  %v9792_v60 = vld [vmem:[#allocation3 + $0xb8] sm:$0xfc] }
 0x47f   : > { %10131 = vmatpush2.bf16.msra.mxu0 %v14635_v20  ;;  %v9906_v20 = vpack.c.bf16 %v9862_v0, %v9856_v50  ;;  %v9866_v61 = vrot.slane %v9792_v60, 2  ;;  %v9859_v30 = vsel %vm2590_vm1, %v9857_v41, %v9858_v35  ;;  %v18812_v50 = vld [vmem:[#allocation3 + $0x130] sm:$0xfe]  ;;  %v18818_v60 = vld [vmem:[#allocation3 + $0x28] sm:$0x1] }
 0x480   : > { %10132 = vmatprep.subr.bf16.mxu0 %v14643_v31  ;;  %v9852_v31 = vrot.slane %v9785_v44, 2  ;;  %v9870_v44 = vrot.slane %v9797_v13, 2  ;;  %v14668_v35 = vld [vmem:[%s19530_s4 + $0x650] ss:$8 sps:$4 sm:$0xff]  }
 0x481   : > { %9711 = vmatpush2.bf16.msra.mxu1 %v14632_v7  ;;  %v9794_v7 = vld [vmem:[#allocation3 + $0x98] sm:$0x3]  ;;  %v10507_v13 = vld [vmem:[#allocation3 + $0x30] sm:$0x1] }
 0x482   : > { %9712 = vmatprep.subr.bf16.mxu1 %v14640_v21  ;;  %v9429_v21 = vsel %vm1320_vm0, %v9427_v51, %v9428_v62  ;;  %v9867_v12 = vrot.slane %v9794_v7, 2  ;;  %v9449_v51 = vrot.slane %v18787_v59, 1  ;;  %v9804_v62 = vld [vmem:[#allocation3 + $0x138] sm:$0xfc]  ;;  %v9377_v7 = vld [vmem:[#allocation3 + $0x48] sm:$0xfe] }
 0x483   : > { %10133 = vmatpush2.bf16.msra.mxu0 %v14641_v47  ;;  %v9444_v47 = vsel %vm1320_vm0, %v9442_v16, %v9443_v40  ;;  %v9485_v17 = vpack.c.bf16 %v9429_v21, %v9423_v43  ;;  %v9441_v16 = vsel %vm1320_vm0, %v9439_v25, %v9440_v32  ;;  %v9793_v40 = vld [vmem:[#allocation3 + $0x28] sm:$0x3]  ;;  %v9884_v6 = vrot.slane %v9804_v62, 2  ;;  %v18824_v21 = vld [vmem:[#allocation3 + $0xd8] sm:$0xfe] }
 0x484   : > { %10134 = vmatprep.subr.bf16.mxu0 %v14649_v1  ;;  %v9872_v1 = vrot.slane %v9796_v57, 2  ;;  %v9868_v0 = vsel %vm2590_vm1, %v9866_v61, %v9867_v12  ;;  %v9802_v57 = vld [vmem:[#allocation3 + $0xc0] sm:$0x3]  ;;  %v9864_v39 = vrot.slane %v9793_v40, 2  ;;  %v9388_v43 = vld [vmem:[#allocation3 + $0x8] sm:$0x1] }
 0x485   : > { %9713 = vmatpush2.bf16.msra.mxu1 %v14638_v52  ;;  %v14656_v52 = vld [vmem:[%s19530_s4 + $0x670] ss:$8 sps:$4 sm:$0xff]   ;;  %v9445_v61 = vrot.slane %v18812_v50, 1  ;;  %v9446_v12 = vrot.slane %v18818_v60, 1  ;;  %v9451_v18 = vrot.slane %v9377_v7, 1  ;;  %v9460_v32 = vrot.slane %v18824_v21, 1 }
 0x486   : > { %9714 = vmatprep.subr.bf16.mxu1 %v14646_v34  ;;  %v9367_v34 = vld [vmem:[#allocation3 + $0x128] sm:$0x1]  ;;  %v9874_v15 = vsel %vm2590_vm1, %v9872_v1, %v9873_v37  ;;  %v9871_v1 = vsel %vm2590_vm1, %v9869_v45, %v9870_v44  ;;  %v9878_v37 = vrot.slane %v9800_v11, 2  ;;  %v9385_v44 = vld [vmem:[#allocation3 + $0x90] sm:$0xfe] }
 0x487   : > { %10135 = vmatpush2.bf16.msra.mxu0 %v14647_v46  ;;  %v9438_v46 = vsel %vm1320_vm0, %v9436_v63, %v9437_v2  ;;  %v9434_v8 = vrot.slane %v9367_v34, 1  ;;  %v14670_v63 = vld [vmem:[%s19530_s4 + $0x654] ss:$8 sps:$4 sm:$0xff]   ;;  %v9387_v11 = vld [vmem:[#allocation3 + $0x18] sm:$0x1] }
 0x488   : > { %10829 = vmatprep.subr.bf16.mxu0 %v14655_v49  ;;  %v9488_v27 = vpack.c.bf16 %v9444_v47, %v9438_v46  ;;  %v9853_v49 = vsel %vm2590_vm1, %v9851_v36, %v9852_v31  ;;  %v14676_v31 = vld [vmem:[%s19530_s4 + $0x644] ss:$8 sps:$4 sm:$0xff]   ;;  %v9450_v47 = vsel %vm1320_vm0, %v9448_v29, %v9449_v51  ;;  %v9386_v34 = vld [vmem:[#allocation3 + $0x138] sm:$0xfe] }
 0x489   : > { %9715 = vmatpush2.bf16.msra.mxu1 %v14644_v3  ;;  %v9378_v3 = vld [vmem:[#allocation3 + $0x110] sm:$0xfe]  ;;  %v9799_v29 = vld [vmem:[#allocation3 + $0x80] sm:$0xfc]  ;;  %v9801_v51 = vld [vmem:[#allocation3 + $0x38] sm:$0x3] }
 0x48a   : > { %9716 = vmatprep.subr.bf16.mxu1 %v14652_v42  ;;  %10137 = vmatmul.mubr.bf16.vlgmr.msra.gmra.mxu0 %v9903_v33  ;;  %v9433_v42 = vrot.slane %v9365_v26, 1  ;;  %v9454_v2 = vrot.slane %v9378_v3, 1  ;;  %v9885_v33 = vrot.slane %v9806_v5, 2  ;;  %v9879_v26 = vrot.slane %v9802_v57, 2  ;;  %v14688_v57 = vld [vmem:[%s19530_s4 + $0x624] ss:$8 sps:$4 sm:$0xff]  }
 0x48b   : > { %10146 = vmatprep.mubr.bf16.mxu0 %v9906_v20  ;;  %10830 = vmatpush1.bf16.msra.mxu0 %v14653_v14  ;;  %v9905_v14 = vpack.c.bf16 %v9859_v30, %v9853_v49  ;;  %v9379_v20 = vld [vmem:[#allocation3 + $0x88] sm:$0x1]  ;;  %v9881_v5 = vrot.slane %v9803_v24, 2  ;;  %v9875_v40 = vrot.slane %v9799_v29, 2  ;;  %v9876_v45 = vrot.slane %v9801_v51, 2 }
 0x48c   : > { %10831 = vmatprep.subr.bf16.mxu0 %v14661_v4  ;;  %v14671_v4 = vld [vmem:[%s19530_s4 + $0x740] ss:$8 sps:$4 sm:$0xff]   ;;  %v9435_v41 = vsel %vm1320_vm0, %v9433_v42, %v9434_v8  ;;  %v9456_v36 = vsel %vm1320_vm0, %v9454_v2, %v9455_v28  ;;  %v9452_v59 = vrot.slane %v9379_v20, 1  ;;  %v9886_v25 = vsel %vm2590_vm1, %v9884_v6, %v9885_v33  ;;  %v10503_v2 = vld [vmem:[#allocation3 + $0x70] sm:$0x1] }
 0x48d   : > { %9717 = vmatpush2.bf16.msra.mxu1 %v14650_v58  ;;  %v9791_v58 = vld [vmem:[#allocation3 + $0x130] sm:$0xfc]  ;;  %v9490_v46 = vpack.c.bf16 %v9456_v36, %v9450_v47  ;;  %v14674_v30 = vld [vmem:[%s19530_s4 + $0x640] ss:$8 sps:$4 sm:$0xff]   ;;  %v9466_v42 = vrot.slane %v9386_v34, 1  ;;  %v9467_v8 = vrot.slane %v9388_v43, 1  ;;  %v9880_v49 = vsel %vm2590_vm1, %v9878_v37, %v9879_v26 }
 0x48e   : > { %10411 = vmatprep.subr.bf16.mxu1 %v14658_v56  ;;  %v9908_v56 = vpack.c.bf16 %v9874_v15, %v9868_v0  ;;  %v9863_v53 = vrot.slane %v9791_v58, 2  ;;  %v14685_v15 = vld [vmem:[%s19530_s4 + $0x724] ss:$8 sps:$4 sm:$0xff]   ;;  %v9910_v62 = vpack.c.bf16 %v9886_v25, %v9880_v49  ;;  %v9453_v28 = vsel %vm1320_vm0, %v9451_v18, %v9452_v59  ;;  %v14691_v60 = vld [vmem:[%s19530_s4 + $0x714] ss:$8 sps:$4 sm:$0xff]  }
 0x48f   : > { %10832 = vmatpush1.bf16.msra.mxu0 %v14659_v38  ;;  %v9487_v38 = vpack.c.bf16 %v9441_v16, %v9435_v41  ;;  %v10573_v58 = vrot.slane %v10505_v23, 1  ;;  %v10574_v0 = vrot.slane %v10507_v13, 1  ;;  %v9468_v16 = vsel %vm1320_vm0, %v9466_v42, %v9467_v8  ;;  %v9381_v7 = vld [vmem:[#allocation3 + $0x80] sm:$0xfe]  ;;  %v9383_v20 = vld [vmem:[#allocation3 + $0x38] sm:$0x1] }
 0x490   : > { %9719 = vmatmul.mubr.bf16.vlgmr.msra.gmra.mxu1 %v9485_v17  ;;  %10833 = vmatprep.subr.bf16.mxu0 %v14667_v9  ;;  %v14679_v9 = vld [vmem:[%s19530_s4 + $0x734] ss:$8 sps:$4 sm:$0xff]   ;;  %v9805_v17 = vld [vmem:[#allocation3 + $0x18] sm:$0x3]  ;;  %v10568_v33 = vrot.slane %v10503_v2, 1  ;;  %v9457_v37 = vrot.slane %v9381_v7, 1 }
 0x491   : > { %9728 = vmatprep.mubr.bf16.mxu1 %v9488_v27  ;;  %10412 = vmatpush1.bf16.msra.mxu1 %v14656_v52  ;;  %v18826_v52 = vld [vmem:[#allocation3 + $0xc0] sm:$0x1]  ;;  %v9865_v27 = vsel %vm2590_vm1, %v9863_v53, %v9864_v39  ;;  %v10575_v36 = vsel %vm1320_vm0, %v10573_v58, %v10574_v0  ;;  %v9464_v53 = vrot.slane %v9387_v11, 1  ;;  %v9877_v39 = vsel %vm2590_vm1, %v9875_v40, %v9876_v45  ;;  %v14689_v21 = vld [vmem:[%s19530_s4 + $0x710] ss:$8 sps:$4 sm:$0xff]  }
 0x492   : > { %10413 = vmatprep.subr.bf16.mxu1 %v14664_v54  ;;  %10147 = vmatmul.mubr.bf16.gmra.mxu0 %v9905_v14  ;;  %v14677_v54 = vld [vmem:[%s19530_s4 + $0x730] ss:$8 sps:$4 sm:$0xff]   ;;  %v9461_v3 = vrot.slane %v18826_v52, 1  ;;  %v9882_v14 = vrot.slane %v9805_v17, 2  ;;  %v14686_v52 = vld [vmem:[%s19530_s4 + $0x620] ss:$8 sps:$4 sm:$0xff]  }
 0x493   : > { %10156 = vmatprep.mubr.bf16.mxu0 %v9908_v56  ;;  %10834 = vmatpush1.bf16.msra.mxu0 %v14665_v48  ;;  %v14682_v48 = vld [vmem:[%s19530_s4 + $0x634] ss:$8 sps:$4 sm:$0xff]   ;;  %v9447_v56 = vsel %vm1320_vm0, %v9445_v61, %v9446_v12  ;;  %v9458_v26 = vrot.slane %v9383_v20, 1  ;;  %v14697_v34 = vld [vmem:[%s19530_s4 + $0x704] ss:$8 sps:$4 sm:$0xff]  }
 0x494   : > { %10835 = vmatprep.subr.bf16.mxu0 %v14673_v19  ;;  %v14683_v19 = vld [vmem:[%s19530_s4 + $0x720] ss:$8 sps:$4 sm:$0xff]   ;;  %v9489_v50 = vpack.c.bf16 %v9453_v28, %v9447_v56  ;;  %v9462_v41 = vsel %vm1320_vm0, %v9460_v32, %v9461_v3  ;;  %v10197_v61 = vld [vmem:[#allocation3 + $0x118] sm:$0xff]  ;;  %v14700_v25 = vld [vmem:[%s19530_s4 + $0x604] ss:$8 sps:$4 sm:$0xff]  }
 0x495   : > { %10414 = vmatpush1.bf16.msra.mxu1 %v14662_v55  ;;  %v9907_v55 = vpack.c.bf16 %v9871_v1, %v9865_v27  ;;  %v14695_v12 = vld [vmem:[%s19530_s4 + $0x700] ss:$8 sps:$4 sm:$0xff]   ;;  %v9459_v18 = vsel %vm1320_vm0, %v9457_v37, %v9458_v26  ;;  %v14692_v59 = vld [vmem:[%s19530_s4 + $0x610] ss:$8 sps:$4 sm:$0xff]   ;;  %v14703_v32 = vld [vmem:[%s19530_s4 + $0x7f4] ss:$8 sps:$4 sm:$0xff]  }
 0x496   : > { %10415 = vmatprep.subr.bf16.mxu1 %v14670_v63  ;;  %v10501_v63 = vld [vmem:[#allocation3 + $0x20] sm:$0xfe]  ;;  %v14701_v24 = vld [vmem:[%s19530_s4 + $0x7f0] ss:$8 sps:$4 sm:$0xff]   ;;  %v14715_v23 = vld [vmem:[%s19530_s4 + $0x7d4] ss:$8 sps:$4 sm:$0xff]  }
 0x497   : > { %10836 = vmatpush1.bf16.msra.mxu0 %v14671_v4  ;;  %v14680_v4 = vld [vmem:[%s19530_s4 + $0x630] ss:$8 sps:$4 sm:$0xff]   ;;  %v10567_v6 = vrot.slane %v10501_v63, 1  ;;  %v14698_v17 = vld [vmem:[%s19530_s4 + $0x600] ss:$8 sps:$4 sm:$0xff]  }
 0x498   : > { %9729 = vmatmul.mubr.bf16.gmra.mxu1 %v9487_v38  ;;  %10837 = vmatprep.subr.bf16.mxu0 %v14679_v9  ;;  %v9492_v38 = vpack.c.bf16 %v9468_v16, %v9462_v41  ;;  %v14709_v27 = vld [vmem:[%s19530_s4 + $0x7e4] ss:$8 sps:$4 sm:$0xff]   ;;  %v14707_v42 = vld [vmem:[%s19530_s4 + $0x7e0] ss:$8 sps:$4 sm:$0xff]   ;;  %v14704_v8 = vld [vmem:[%s19530_s4 + $0x6f0] ss:$8 sps:$4 sm:$0xff]  }
 0x499   : > { %9738 = vmatprep.mubr.bf16.mxu1 %v9490_v46  ;;  %10416 = vmatpush1.bf16.msra.mxu1 %v14668_v35  ;;  %v9883_v35 = vsel %vm2590_vm1, %v9881_v5, %v9882_v14  ;;  %v10569_v1 = vsel %vm1320_vm0, %v10567_v6, %v10568_v33  ;;  %v14712_v13 = vld [vmem:[%s19530_s4 + $0x6e4] ss:$8 sps:$4 sm:$0xff]   ;;  %v14710_v49 = vld [vmem:[%s19530_s4 + $0x6e0] ss:$8 sps:$4 sm:$0xff]   ;;  %v14718_v29 = vld [vmem:[%s19530_s4 + $0x6d4] ss:$8 sps:$4 sm:$0xff]  }
 0x49a   : > { %10417 = vmatprep.subr.bf16.mxu1 %v14676_v31  ;;  %10157 = vmatmul.mubr.bf16.gmra.mxu0 %v9907_v55  ;;  %v9463_v31 = vrot.slane %v9385_v44, 1  ;;  %v9909_v47 = vpack.c.bf16 %v9883_v35, %v9877_v39  ;;  %v10629_v43 = vpack.c.bf16 %v10575_v36, %v10569_v1  ;;  %v14713_v55 = vld [vmem:[%s19530_s4 + $0x7d0] ss:$8 sps:$4 sm:$0xff]   ;;  %v14719_v51 = vld [vmem:[%s19530_s4 + $0x7c0] ss:$8 sps:$4 sm:$0xff]  }
 0x49b   : > { %10166 = vmatprep.mubr.bf16.mxu0 %v9910_v62  ;;  %10838 = vmatpush1.bf16.msra.mxu0 %v14677_v54  ;;  %v14694_v54 = vld [vmem:[%s19530_s4 + $0x614] ss:$8 sps:$4 sm:$0xff]   ;;  %v14716_v62 = vld [vmem:[%s19530_s4 + $0x6d0] ss:$8 sps:$4 sm:$0xff]   ;;  %v14724_v14 = vld [vmem:[%s19530_s4 + $0x6c4] ss:$8 sps:$4 sm:$0xff]  }
 0x49c   : > { %10839 = vmatprep.subr.bf16.mxu0 %v14685_v15  ;;  %v9465_v9 = vsel %vm1320_vm0, %v9463_v31, %v9464_v53  ;;  %v14721_v15 = vld [vmem:[%s19530_s4 + $0x7c4] ss:$8 sps:$4 sm:$0xff]   ;;  %v14727_v5 = vld [vmem:[%s19530_s4 + $0x7b4] ss:$8 sps:$4 sm:$0xff]   ;;  %v14725_v63 = vld [vmem:[%s19530_s4 + $0x7b0] ss:$8 sps:$4 sm:$0xff]  }
 0x49d   : > { %10418 = vmatpush1.bf16.msra.mxu1 %v14674_v30  ;;  %v9491_v46 = vpack.c.bf16 %v9465_v9, %v9459_v18  ;;  %v10195_v30 = vld [vmem:[#allocation3 + $0x20] sm:$0xff]  ;;  %v14728_v0 = vld [vmem:[%s19530_s4 + $0x6b0] ss:$8 sps:$4 sm:$0xff]   ;;  %v14739_v16 = vld [vmem:[%s19530_s4 + $0x794] ss:$8 sps:$4 sm:$0xff]  }
 0x49e   : > { %10419 = vmatprep.subr.bf16.mxu1 %v14682_v48  ;;  %v10211_v3 = vpack.c.bf16 %v10197_v61, %v10195_v30  ;;  %v14706_v48 = vld [vmem:[%s19530_s4 + $0x6f4] ss:$8 sps:$4 sm:$0xff]   ;;  %v14722_v2 = vld [vmem:[%s19530_s4 + $0x6c0] ss:$8 sps:$4 sm:$0xff]   ;;  %v14733_v28 = vld [vmem:[%s19530_s4 + $0x7a4] ss:$8 sps:$4 sm:$0xff]  }
 0x49f   : > { %10840 = vmatpush1.bf16.msra.mxu0 %v14683_v19  ;;  %v14730_v19 = vld [vmem:[%s19530_s4 + $0x6b4] ss:$8 sps:$4 sm:$0xff]   ;;  %v14731_v58 = vld [vmem:[%s19530_s4 + $0x7a0] ss:$8 sps:$4 sm:$0xff]   ;;  %v14736_v40 = vld [vmem:[%s19530_s4 + $0x6a4] ss:$8 sps:$4 sm:$0xff]  }
 0x4a0   : > { %9739 = vmatmul.mubr.bf16.gmra.mxu1 %v9489_v50  ;;  %10841 = vmatprep.subr.bf16.mxu0 %v14691_v60  ;;  %v14734_v45 = vld [vmem:[%s19530_s4 + $0x6a0] ss:$8 sps:$4 sm:$0xff]   ;;  %v14737_v44 = vld [vmem:[%s19530_s4 + $0x790] ss:$8 sps:$4 sm:$0xff]   ;;  %v14745_v33 = vld [vmem:[%s19530_s4 + $0x784] ss:$8 sps:$4 sm:$0xff]  }
 0x4a1   : > { %9748 = vmatprep.mubr.bf16.mxu1 %v9492_v38  ;;  %10420 = vmatpush1.bf16.msra.mxu1 %v14680_v4  ;;  %v10504_v11 = vld [vmem:[#allocation3] sm:$0xfe]  ;;  %v10506_v56 = vld [vmem:[#allocation3 + $0x128] sm:$0x1]  ;;  %v14742_v4 = vld [vmem:[%s19530_s4 + $0x694] ss:$8 sps:$4 sm:$0xff]  }
 0x4a2   : > { %10421 = vmatprep.subr.bf16.mxu1 %v14688_v57  ;;  %10167 = vmatmul.mubr.bf16.gmra.mxu0 %v9909_v47  ;;  %v10513_v57 = vld [vmem:[#allocation3 + $0xb8] sm:$0xfe]  ;;  %v10515_v6 = vld [vmem:[#allocation3 + $0x98] sm:$0x1]  ;;  %v10500_v50 = vld [vmem:[#allocation3 + $0xd0] sm:$0xfe] }
 0x4a3   : > { %10842 = vmatpush1.bf16.msra.mxu0 %v14689_v21  ;;  %10861 = vmatprep.mubr.bf16.mxu0 %v10629_v43  ;;  %v10502_v41 = vld [vmem:[#allocation3 + $0x50] sm:$0x1]  ;;  %v10570_v35 = vrot.slane %v10504_v11, 1  ;;  %v10571_v60 = vrot.slane %v10506_v56, 1  ;;  %v10509_v7 = vld [vmem:[#allocation3 + $0xe0] sm:$0xfe] }
 0x4a4   : > { %10843 = vmatprep.subr.bf16.mxu0 %v14697_v34  ;;  %v10511_v20 = vld [vmem:[#allocation3 + $0xf0] sm:$0x1]  ;;  %v10585_v38 = vrot.slane %v10513_v57, 1  ;;  %v10586_v36 = vrot.slane %v10515_v6, 1  ;;  %v14743_v31 = vld [vmem:[%s19530_s4 + $0x780] ss:$8 sps:$4 sm:$0xff]  }
 0x4a5   : > { %10422 = vmatpush1.bf16.msra.mxu1 %v14686_v52  ;;  %v10564_v53 = vrot.slane %v10500_v50, 1  ;;  %v10565_v39 = vrot.slane %v10502_v41, 1  ;;  %v14740_v21 = vld [vmem:[%s19530_s4 + $0x690] ss:$8 sps:$4 sm:$0xff]   ;;  %v10579_v52 = vrot.slane %v10509_v7, 1  ;;  %v10580_v47 = vrot.slane %v10511_v20, 1 }
 0x4a6   : > { %10423 = vmatprep.subr.bf16.mxu1 %v14694_v54  ;;  %v14748_v1 = vld [vmem:[%s19530_s4 + $0x684] ss:$8 sps:$4 sm:$0xff]   ;;  %v10572_v37 = vsel %vm1320_vm0, %v10570_v35, %v10571_v60  ;;  %v10512_v26 = vld [vmem:[#allocation3 + $0x130] sm:$0xfe]  ;;  %v10514_v34 = vld [vmem:[#allocation3 + $0x28] sm:$0x1]  ;;  %v10587_v43 = vsel %vm1320_vm0, %v10585_v38, %v10586_v36 }
 0x4a7   : > { %10844 = vmatpush1.bf16.msra.mxu0 %v14695_v12  ;;  %v10521_v54 = vld [vmem:[#allocation3 + $0xd8] sm:$0xfe]  ;;  %v10523_v9 = vld [vmem:[#allocation3 + $0xc0] sm:$0x1]  ;;  %v10566_v12 = vsel %vm1320_vm0, %v10564_v53, %v10565_v39  ;;  %v10581_v30 = vsel %vm1320_vm0, %v10579_v52, %v10580_v47  ;;  %v10527_v11 = vld [vmem:[#allocation3 + $0x8] sm:$0x1] }
 0x4a8   : > { %9749 = vmatmul.mubr.bf16.gmra.mxu1 %v9491_v46  ;;  %10845 = vmatprep.subr.bf16.mxu0 %v14703_v32  ;;  %v14746_v61 = vld [vmem:[%s19530_s4 + $0x680] ss:$8 sps:$4 sm:$0xff]   ;;  %v10508_v18 = vld [vmem:[#allocation3 + $0xf8] sm:$0xfe]  ;;  %v10628_v46 = vpack.c.bf16 %v10572_v37, %v10566_v12  ;;  %v10583_v32 = vrot.slane %v10514_v34, 1  ;;  %v10604_v52 = vrot.slane %v10527_v11, 1 }
 0x4a9   : > { %10424 = vmatpush1.bf16.msra.mxu1 %v14692_v59  ;;  %10443 = vmatprep.mubr.bf16.mxu1 %v10211_v3  ;;  %v10510_v59 = vld [vmem:[#allocation3 + $0xa0] sm:$0x1]  ;;  %v10517_v3 = vld [vmem:[#allocation3 + $0x110] sm:$0xfe]  ;;  %v10529_v56 = vld [vmem:[#allocation3 + $0x60] sm:$0xfe] }
 0x4aa   : > { %10425 = vmatprep.subr.bf16.mxu1 %v14700_v25  ;;  %v10582_v25 = vrot.slane %v10512_v26, 1  ;;  %v10516_v7 = vld [vmem:[#allocation3 + $0x48] sm:$0xfe]  ;;  %v10518_v20 = vld [vmem:[#allocation3 + $0x88] sm:$0x1]  ;;  %v10609_v47 = vrot.slane %v10529_v56, 1 }
 0x4ab   : > { %10846 = vmatpush2.bf16.msra.mxu0 %v14701_v24  ;;  %v10519_v24 = vld [vmem:[#allocation3 + $0x58] sm:$0x1]  ;;  %v14757_v39 = vld [vmem:[%s19530_s4 + $0x854] ss:$8 sps:$4 sm:$0xff]  }
 0x4ac   : > { %10847 = vmatprep.subr.bf16.mxu0 %v14709_v27  ;;  %v10631_v27 = vpack.c.bf16 %v10587_v43, %v10581_v30  ;;  %v10200_v26 = vld [vmem:[#allocation3 + $0x130] sm:$0xff] }
 0x4ad   : > { %10426 = vmatpush1.bf16.msra.mxu1 %v14698_v17 }
 0x4ae   : > { %10427 = vmatprep.subr.bf16.mxu1 %v14706_v48  ;;  %v14751_v48 = vld [vmem:[%s19530_s4 + $0x874] ss:$8 sps:$4 sm:$0xff]  }
 0x4af   : > { %10848 = vmatpush2.bf16.msra.mxu0 %v14707_v42  ;;  %v10597_v42 = vrot.slane %v10521_v54, 1  ;;  %v10205_v54 = vld [vmem:[#allocation3 + $0xd8] sm:$0xff] }
 0x4b0   : > { %10849 = vmatprep.subr.bf16.mxu0 %v14715_v23  ;;  %v10196_v23 = vld [vmem:[#allocation3] sm:$0xff] }
 0x4b1   : > { %10428 = vmatpush2.bf16.msra.mxu1 %v14704_v8  ;;  %v10598_v8 = vrot.slane %v10523_v9, 1  ;;  %v10588_v9 = vrot.slane %v10516_v7, 1 }
 0x4b2   : > { %10429 = vmatprep.subr.bf16.mxu1 %v14712_v13  ;;  %v10576_v13 = vrot.slane %v10508_v18, 1  ;;  %v10198_v18 = vld [vmem:[#allocation3 + $0xf8] sm:$0xff] }
 0x4b3   : > { %10850 = vmatpush2.bf16.msra.mxu0 %v14713_v55  ;;  %v10577_v55 = vrot.slane %v10510_v59, 1  ;;  %v14755_v59 = vld [vmem:[%s19530_s4 + $0x850] ss:$8 sps:$4 sm:$0xff]   ;;  %v10212_v30 = vpack.c.bf16 %v10200_v26, %v10198_v18 }
 0x4b4   : > { %10851 = vmatprep.subr.bf16.mxu0 %v14721_v15  ;;  %v10194_v15 = vld [vmem:[#allocation3 + $0xd0] sm:$0xff] }
 0x4b5   : > { %10430 = vmatpush2.bf16.msra.mxu1 %v14710_v49 }
 0x4b6   : > { %10431 = vmatprep.subr.bf16.mxu1 %v14718_v29  ;;  %v10201_v29 = vld [vmem:[#allocation3 + $0xb8] sm:$0xff] }
 0x4b7   : > { %10852 = vmatpush2.bf16.msra.mxu0 %v14719_v51  ;;  %v10591_v51 = vrot.slane %v10517_v3, 1  ;;  %v14760_v3 = vld [vmem:[%s19530_s4 + $0x844] ss:$8 sps:$4 sm:$0xff]  }
 0x4b8   : > { %10853 = vmatprep.subr.bf16.mxu0 %v14727_v5  ;;  %v14749_v5 = vld [vmem:[%s19530_s4 + $0x870] ss:$8 sps:$4 sm:$0xff]  }
 0x4b9   : > { %10432 = vmatpush2.bf16.msra.mxu1 %v14716_v62  ;;  %v10592_v62 = vrot.slane %v10519_v24, 1 }
 0x4ba   : > { %10433 = vmatprep.subr.bf16.mxu1 %v14724_v14  ;;  %v10199_v14 = vld [vmem:[#allocation3 + $0xe0] sm:$0xff] }
 0x4bb   : > { %10854 = vmatpush2.bf16.msra.mxu0 %v14725_v63  ;;  %v14754_v63 = vld [vmem:[%s19530_s4 + $0x864] ss:$8 sps:$4 sm:$0xff]   ;;  %v10593_v41 = vsel %vm1320_vm0, %v10591_v51, %v10592_v62 }
 0x4bc   : > { %10855 = vmatprep.subr.bf16.mxu0 %v14733_v28  ;;  %v10210_v28 = vpack.c.bf16 %v10196_v23, %v10194_v15  ;;  %v10526_v23 = vld [vmem:[#allocation3 + $0x18] sm:$0x1] }
 0x4bd   : > { %10434 = vmatpush2.bf16.msra.mxu1 %v14722_v2  ;;  %v10584_v2 = vsel %vm1320_vm0, %v10582_v25, %v10583_v32  ;;  %v10203_v25 = vld [vmem:[#allocation3 + $0x110] sm:$0xff] }
 0x4be   : > { %10435 = vmatprep.subr.bf16.mxu1 %v14730_v19 }
 0x4bf   : > { %10856 = vmatpush2.bf16.msra.mxu0 %v14731_v58  ;;  %v10599_v58 = vsel %vm1320_vm0, %v10597_v42, %v10598_v8  ;;  %v10215_v8 = vpack.c.bf16 %v10205_v54, %v10203_v25 }
 0x4c0   : > { %10857 = vmatprep.subr.bf16.mxu0 %v14739_v16  ;;  %v10522_v16 = vld [vmem:[#allocation3 + $0x38] sm:$0x1]  ;;  %v10633_v60 = vpack.c.bf16 %v10599_v58, %v10593_v41  ;;  %v14766_v41 = vld [vmem:[%s19530_s4 + $0x824] ss:$8 sps:$4 sm:$0xff]  }
 0x4c1   : > { %10436 = vmatpush2.bf16.msra.mxu1 %v14728_v0  ;;  %v10520_v0 = vld [vmem:[#allocation3 + $0x80] sm:$0xfe]  ;;  %v10595_v36 = vrot.slane %v10522_v16, 1 }
 0x4c2   : > { %10437 = vmatprep.subr.bf16.mxu1 %v14736_v40  ;;  %v10525_v40 = vld [vmem:[#allocation3 + $0x138] sm:$0xfe]  ;;  %v10594_v38 = vrot.slane %v10520_v0, 1  ;;  %v10204_v16 = vld [vmem:[#allocation3 + $0x80] sm:$0xff] }
 0x4c3   : > { %10858 = vmatpush2.bf16.msra.mxu0 %v14737_v44  ;;  %v10578_v44 = vsel %vm1320_vm0, %v10576_v13, %v10577_v55  ;;  %v10528_v13 = vld [vmem:[#allocation3 + $0x40] sm:$0xfe]  ;;  %v10530_v55 = vld [vmem:[#allocation3 + $0x100] sm:$0x1] }
 0x4c4   : > { %10859 = vmatprep.subr.bf16.mxu0 %v14745_v33  ;;  %v14752_v33 = vld [vmem:[%s19530_s4 + $0x860] ss:$8 sps:$4 sm:$0xff]   ;;  %v10630_v50 = vpack.c.bf16 %v10584_v2, %v10578_v44  ;;  %v10596_v24 = vsel %vm1320_vm0, %v10594_v38, %v10595_v36  ;;  %v10601_v2 = vrot.slane %v10526_v23, 1  ;;  %v10207_v44 = vld [vmem:[#allocation3 + $0x138] sm:$0xff] }
 0x4c5   : > { %10438 = vmatpush2.bf16.msra.mxu1 %v14734_v45  ;;  %v8594_v17 = vpop.f32.mrf.mxu0  ;;  %v10213_v45 = vpack.c.bf16 %v10201_v29, %v10199_v14  ;;  %v14758_v29 = vld [vmem:[%s19530_s4 + $0x840] ss:$8 sps:$4 sm:$0xff]   ;;  %v14763_v14 = vld [vmem:[%s19530_s4 + $0x834] ss:$8 sps:$4 sm:$0xff]  }
 0x4c6   : > { %10439 = vmatprep.subr.bf16.mxu1 %v14742_v4  ;;  %v10531_v4 = vld [vmem:[#allocation3 + $0x108] sm:$0x1] }
 0x4c7   : > { %10860 = vmatpush2.bf16.msra.mxu0 %v14743_v31  ;;  %v8596_v49 = vpop.f32.mrf.mxu0  ;;  %v14818_v38 = vld [vmem:[#allocation2 + $0x8] sm:$0xff] }
 0x4c8   : > { %v10217_v36 = vpack.c.bf16 %v14818_v38, %v10207_v44 }
 0x4c9   : > { %10440 = vmatpush2.bf16.msra.mxu1 %v14740_v21  ;;  %v8598_v19 = vpop.f32.mrf.mxu0  ;;  %v10603_v21 = vrot.slane %v10525_v40, 1 }
 0x4ca   : > { %10441 = vmatprep.subr.bf16.mxu1 %v14748_v1  ;;  %10862 = vmatmul.mubr.bf16.vlgmr.msra.gmra.mxu0 %v10628_v46  ;;  %v10610_v1 = vrot.slane %v10531_v4, 1  ;;  %v14761_v4 = vld [vmem:[%s19530_s4 + $0x830] ss:$8 sps:$4 sm:$0xff]  }
 0x4cb   : > { %10871 = vmatprep.mubr.bf16.mxu0 %v10631_v27  ;;  %v8600_v6 = vpop.f32.mrf.mxu0 }
 0x4cc   : > { %v8361_v57 = vpop.f32.mrf.mxu1  ;;  %v10611_v27 = vsel %vm1320_vm0, %v10609_v47, %v10610_v1 }
 0x4cd   : > { %10442 = vmatpush2.bf16.msra.mxu1 %v14746_v61  ;;  %v19014_v35 = vadd.f32 %v8594_v17, %v8361_v57  ;;  %v10589_v61 = vrot.slane %v10518_v20, 1  ;;  %v10605_v17 = vsel %vm1320_vm0, %v10603_v21, %v10604_v52  ;;  %v10923_v57 = vld [vmem:[#allocation3 + $0x118] sm:$0xfc] }
 0x4ce   : > { %11247 = vmatprep.subr.bf16.mxu1 %v14751_v48  ;;  %v8363_v31 = vpop.f32.mrf.mxu1  ;;  %v8604_v53 = vpop.f32.mrf.mxu0  ;;  %v10524_v48 = vld [vmem:[#allocation3 + $0x90] sm:$0xfe]  ;;  %v10635_v62 = vpack.c.bf16 %v10611_v27, %v10605_v17  ;;  %v10991_v52 = vrot.slane %v10923_v57, 2 }
 0x4cf   : > { %v19019_v37 = vadd.f32 %v8596_v49, %v8363_v31  ;;  %v10590_v15 = vsel %vm1320_vm0, %v10588_v9, %v10589_v61  ;;  %v14769_v9 = vld [vmem:[%s19530_s4 + $0x814] ss:$8 sps:$4 sm:$0xff]   ;;  %v14779_v57 = vld [vmem:[%s19530_s4 + $0x8d0] ss:$8 sps:$4 sm:$0xff]  }
 0x4d0   : > { %10444 = vmatmul.mubr.bf16.vlgmr.msra.gmra.mxu1 %v10210_v28  ;;  %v8365_v34 = vpop.f32.mrf.mxu1  ;;  %v8606_v43 = vpop.f32.mrf.mxu0  ;;  %v10632_v51 = vpack.c.bf16 %v10596_v24, %v10590_v15  ;;  %v10606_v28 = vrot.slane %v10528_v13, 1  ;;  %v14767_v24 = vld [vmem:[%s19530_s4 + $0x810] ss:$8 sps:$4 sm:$0xff]  }
 0x4d1   : > { %10453 = vmatprep.mubr.bf16.mxu1 %v10213_v45  ;;  %11248 = vmatpush1.bf16.msra.mxu1 %v14749_v5  ;;  %v19021_v12 = vadd.f32 %v8598_v19, %v8365_v34  ;;  %v10607_v19 = vrot.slane %v10530_v55, 1  ;;  %v10202_v45 = vld [vmem:[#allocation3 + $0x48] sm:$0xff] }
 0x4d2   : > { %11249 = vmatprep.subr.bf16.mxu1 %v14754_v63  ;;  %10872 = vmatmul.mubr.bf16.gmra.mxu0 %v10630_v50  ;;  %v8367_v46 = vpop.f32.mrf.mxu1  ;;  %v8608_v32 = vpop.f32.mrf.mxu0  ;;  %v10600_v63 = vrot.slane %v10524_v48, 1  ;;  %v10214_v50 = vpack.c.bf16 %v10204_v16, %v10202_v45  ;;  %v14764_v34 = vld [vmem:[%s19530_s4 + $0x820] ss:$8 sps:$4 sm:$0xff]  }
 0x4d3   : > { %10881 = vmatprep.mubr.bf16.mxu0 %v10633_v60  ;;  %v19032_v42 = vadd.f32 %v8600_v6, %v8367_v46  ;;  %v10925_v6 = vld [vmem:[#allocation3 + $0x30] sm:$0x3]  ;;  %v10608_v7 = vsel %vm1320_vm0, %v10606_v28, %v10607_v19 }
 0x4d4   : > { %v8610_v49 = vpop.f32.mrf.mxu0  ;;  %v10602_v60 = vsel %vm1320_vm0, %v10600_v63, %v10601_v2  ;;  %v10992_v47 = vrot.slane %v10925_v6, 2  ;;  %v10206_v46 = vld [vmem:[#allocation3 + $0x90] sm:$0xff]  ;;  %v14784_v6 = vld [vmem:[%s19530_s4 + $0x8c4] ss:$8 sps:$4 sm:$0xff]  }
 0x4d5   : > { %11250 = vmatpush1.bf16.msra.mxu1 %v14752_v33  ;;  %v10216_v27 = vpack.c.bf16 %v14818_v38, %v10206_v46  ;;  %v14773_v28 = vld [vmem:[%s19530_s4 + $0x8f0] ss:$8 sps:$4 sm:$0xff]   ;;  %v14793_v38 = vld [vmem:[%s19530_s4 + $0x894] ss:$8 sps:$4 sm:$0xff]   ;;  %v14794_v46 = vld [vmem:[%s19530_s4 + $0x880] ss:$8 sps:$4 sm:$0xff]  }
 0x4d6   : > { %11251 = vmatprep.subr.bf16.mxu1 %v14757_v39  ;;  %v10921_v39 = vld [vmem:[#allocation3 + $0x70] sm:$0x3] }
 0x4d7   : > { %v10986_v18 = vrot.slane %v10921_v39, 2  ;;  %v10931_v39 = vld [vmem:[#allocation3 + $0xb8] sm:$0xfc] }
 0x4d8   : > { %10454 = vmatmul.mubr.bf16.gmra.mxu1 %v10212_v30 }
 0x4d9   : > { %10463 = vmatprep.mubr.bf16.mxu1 %v10215_v8  ;;  %11252 = vmatpush1.bf16.msra.mxu1 %v14755_v59  ;;  %v8371_v5 = vpop.f32.mrf.mxu1  ;;  %v14772_v8 = vld [vmem:[%s19530_s4 + $0x804] ss:$8 sps:$4 sm:$0xff]  }
 0x4da   : > { %11253 = vmatprep.subr.bf16.mxu1 %v14760_v3  ;;  %v19041_v58 = vadd.f32 %v8604_v53, %v8371_v5  ;;  %10882 = vmatmul.mubr.bf16.gmra.mxu0 %v10632_v51  ;;  %v8614_v0 = vpop.f32.mrf.mxu0  ;;  %v10919_v53 = vld [vmem:[#allocation3 + $0x20] sm:$0xfc] }
 0x4db   : > { %v8373_v40 = vpop.f32.mrf.mxu1  ;;  %10891 = vmatprep.mubr.bf16.mxu0 %v10635_v62  ;;  %v10985_v61 = vrot.slane %v10919_v53, 2  ;;  %v14775_v62 = vld [vmem:[%s19530_s4 + $0x8f4] ss:$8 sps:$4 sm:$0xff]   ;;  %v14791_v53 = vld [vmem:[%s19530_s4 + $0x890] ss:$8 sps:$4 sm:$0xff]  }
 0x4dc   : > { %v19043_v11 = vadd.f32 %v8606_v43, %v8373_v40  ;;  %v8616_v56 = vpop.f32.mrf.mxu0  ;;  %v10634_v43 = vpack.c.bf16 %v10608_v7, %v10602_v60  ;;  %v14790_v60 = vld [vmem:[%s19530_s4 + $0x8a4] ss:$8 sps:$4 sm:$0xff]   ;;  %v14788_v7 = vld [vmem:[%s19530_s4 + $0x8a0] ss:$8 sps:$4 sm:$0xff]  }
 0x4dd   : > { %11254 = vmatpush1.bf16.msra.mxu1 %v14758_v29  ;;  %v8375_v33 = vpop.f32.mrf.mxu1  ;;  %v10987_v48 = vsel %vm2590_vm1, %v10985_v61, %v10986_v18  ;;  %v14770_v29 = vld [vmem:[%s19530_s4 + $0x800] ss:$8 sps:$4 sm:$0xff]   ;;  %v11003_v61 = vrot.slane %v10931_v39, 2 }
 0x4de   : > { %11255 = vmatprep.subr.bf16.mxu1 %v14763_v14  ;;  %v19053_v20 = vadd.f32 %v8608_v32, %v8375_v33  ;;  %v8618_v31 = vpop.f32.mrf.mxu0  ;;  %v10993_v32 = vsel %vm2590_vm1, %v10991_v52, %v10992_v47  ;;  %v14782_v33 = vld [vmem:[%s19530_s4 + $0x8c0] ss:$8 sps:$4 sm:$0xff]   ;;  %v14796_v52 = vld [vmem:[%s19530_s4 + $0x884] ss:$8 sps:$4 sm:$0xff]   ;;  %v10918_v47 = vld [vmem:[#allocation3 + $0xd0] sm:$0xfc] }
 0x4df   : > { %v8377_v21 = vpop.f32.mrf.mxu1  ;;  %v11047_v13 = vpack.c.bf16 %v10993_v32, %v10987_v48 }
 0x4e0   : > { %10464 = vmatmul.mubr.bf16.gmra.mxu1 %v10214_v50  ;;  %v19055_v1 = vadd.f32 %v8610_v49, %v8377_v21  ;;  %v8620_v26 = vpop.f32.mrf.mxu0  ;;  %v14787_v50 = vld [vmem:[%s19530_s4 + $0x8b4] ss:$8 sps:$4 sm:$0xff]   ;;  %v10933_v21 = vld [vmem:[#allocation3 + $0x98] sm:$0x3] }
 0x4e1   : > { %10473 = vmatprep.mubr.bf16.mxu1 %v10217_v36  ;;  %11256 = vmatpush1.bf16.msra.mxu1 %v14761_v4  ;;  %v14781_v4 = vld [vmem:[%s19530_s4 + $0x8d4] ss:$8 sps:$4 sm:$0xff]   ;;  %v10922_v36 = vld [vmem:[#allocation3] sm:$0xfc]  ;;  %v11004_v18 = vrot.slane %v10933_v21, 2 }
 0x4e2   : > { %v8381_v54 = vpop.f32.mrf.mxu1  ;;  %11257 = vmatprep.subr.bf16.mxu1 %v14766_v41  ;;  %10892 = vmatmul.mubr.bf16.gmra.mxu0 %v10634_v43  ;;  %v14785_v41 = vld [vmem:[%s19530_s4 + $0x8b0] ss:$8 sps:$4 sm:$0xff]  }
 0x4e3   : > { %v19063_v59 = vadd.f32 %v8614_v0, %v8381_v54  ;;  %v8624_v25 = vpop.f32.mrf.mxu0  ;;  %v14778_v0 = vld [vmem:[%s19530_s4 + $0x8e4] ss:$8 sps:$4 sm:$0xff]   ;;  %v11005_v48 = vsel %vm2590_vm1, %v11003_v61, %v11004_v18 }
 0x4e4   : > { %v8383_v30 = vpop.f32.mrf.mxu1  ;;  %v10927_v54 = vld [vmem:[#allocation3 + $0xe0] sm:$0xfc] }
 0x4e5   : > { %v19066_v3 = vadd.f32 %v8616_v56, %v8383_v30  ;;  %11258 = vmatpush1.bf16.msra.mxu1 %v14764_v34  ;;  %v8626_v49 = vpop.f32.mrf.mxu0  ;;  %v14776_v56 = vld [vmem:[%s19530_s4 + $0x8e0] ss:$8 sps:$4 sm:$0xff]   ;;  %v10988_v34 = vrot.slane %v10922_v36, 2  ;;  %v10982_v30 = vrot.slane %v10918_v47, 2  ;;  %v10997_v32 = vrot.slane %v10927_v54, 2 }
 0x4e6   : > { %v8385_v17 = vpop.f32.mrf.mxu1  ;;  %11259 = vmatprep.subr.bf16.mxu1 %v14769_v9  ;;  %v10929_v9 = vld [vmem:[#allocation3 + $0xf0] sm:$0x3]  ;;  %v10940_v47 = vld [vmem:[#allocation3 + $0x38] sm:$0x3]  ;;  %v10947_v54 = vld [vmem:[#allocation3 + $0x60] sm:$0xfc] }
 0x4e7   : > { %v19075_v23 = vadd.f32 %v8618_v31, %v8385_v17  ;;  %v8628_v14 = vpop.f32.mrf.mxu0  ;;  %v10924_v31 = vld [vmem:[#allocation3 + $0x128] sm:$0x3] }
 0x4e8   : > { %v8387_v55 = vpop.f32.mrf.mxu1  ;;  %10474 = vmatmul.mubr.bf16.gmra.mxu1 %v10216_v27  ;;  %v10989_v43 = vrot.slane %v10924_v31, 2 }
 0x4e9   : > { %v19077_v15 = vadd.f32 %v8620_v26, %v8387_v55  ;;  %11260 = vmatpush1.bf16.msra.mxu1 %v14767_v24  ;;  %11279 = vmatprep.mubr.bf16.mxu1 %v11047_v13  ;;  %v8630_v40 = vpop.f32.mrf.mxu0  ;;  %v10920_v26 = vld [vmem:[#allocation3 + $0x50] sm:$0x3]  ;;  %v10998_v24 = vrot.slane %v10929_v9, 2  ;;  %v10932_v13 = vld [vmem:[#allocation3 + $0x28] sm:$0x3] }
 0x4ea   : > { %11261 = vmatprep.subr.bf16.mxu1 %v14772_v8  ;;  %v10990_v27 = vsel %vm2590_vm1, %v10988_v34, %v10989_v43  ;;  %v10930_v8 = vld [vmem:[#allocation3 + $0x130] sm:$0xfc]  ;;  %v10945_v43 = vld [vmem:[#allocation3 + $0x8] sm:$0x3] }
 0x4eb   : > { %v8391_v51 = vpop.f32.mrf.mxu1  ;;  %v10949_v9 = vld [vmem:[#allocation3 + $0x108] sm:$0x3] }
 0x4ec   : > { %v19085_v5 = vadd.f32 %v8624_v25, %v8391_v51  ;;  %v10983_v25 = vrot.slane %v10920_v26, 2 }
 0x4ed   : > { %v8393_v63 = vpop.f32.mrf.mxu1  ;;  %11262 = vmatpush1.bf16.msra.mxu1 %v14770_v29  ;;  %v10941_v29 = vld [vmem:[#allocation3 + $0xc0] sm:$0x3] }
 0x4ee   : > { %v19087_v2 = vadd.f32 %v8626_v49, %v8393_v63  ;;  %11263 = vmatprep.subr.bf16.mxu1 %v14775_v62  ;;  %v10984_v55 = vsel %vm2590_vm1, %v10982_v30, %v10983_v25  ;;  %v10939_v49 = vld [vmem:[#allocation3 + $0xd8] sm:$0xfc]  ;;  %v10934_v30 = vld [vmem:[#allocation3 + $0x48] sm:$0xfc]  ;;  %v10936_v25 = vld [vmem:[#allocation3 + $0x88] sm:$0x3] }
 0x4ef   : > { %v8395_v19 = vpop.f32.mrf.mxu1  ;;  %v11046_v62 = vpack.c.bf16 %v10990_v27, %v10984_v55  ;;  %v10926_v63 = vld [vmem:[#allocation3 + $0xf8] sm:$0xfc]  ;;  %v11027_v55 = vrot.slane %v10947_v54, 2 }
 0x4f0   : > { %v19095_v16 = vadd.f32 %v8628_v14, %v8395_v19  ;;  %v10999_v14 = vsel %vm2590_vm1, %v10997_v32, %v10998_v24 }
 0x4f1   : > { %v8397_v45 = vpop.f32.mrf.mxu1  ;;  %11264 = vmatpush2.bf16.msra.mxu1 %v14773_v28  ;;  %v10928_v28 = vld [vmem:[#allocation3 + $0xa0] sm:$0x3]  ;;  %v11049_v19 = vpack.c.bf16 %v11005_v48, %v10999_v14  ;;  %v11007_v14 = vrot.slane %v10936_v25, 2 }
 0x4f2   : > { %v19097_v44 = vadd.f32 %v8630_v40, %v8397_v45  ;;  %11265 = vmatprep.subr.bf16.mxu1 %v14778_v0  ;;  %v11000_v0 = vrot.slane %v10930_v8, 2  ;;  %v11001_v40 = vrot.slane %v10932_v13, 2  ;;  %v10935_v45 = vld [vmem:[#allocation3 + $0x110] sm:$0xfc]  ;;  %v11022_v13 = vrot.slane %v10945_v43, 2 }
 0x4f5   : > { %11266 = vmatpush2.bf16.msra.mxu1 %v14776_v56  ;;  %v10937_v56 = vld [vmem:[#allocation3 + $0x58] sm:$0x3] }
 0x4f6   : > { %11267 = vmatprep.subr.bf16.mxu1 %v14781_v4  ;;  %v11010_v36 = vrot.slane %v10937_v56, 2 }
 0x4f9   : > { %11268 = vmatpush2.bf16.msra.mxu1 %v14779_v57  ;;  %v11015_v57 = vrot.slane %v10939_v49, 2  ;;  %v11028_v49 = vrot.slane %v10949_v9, 2 }
 0x4fa   : > { %11269 = vmatprep.subr.bf16.mxu1 %v14784_v6  ;;  %v11016_v6 = vrot.slane %v10941_v29, 2 }
 0x4fc   : > { %v11017_v21 = vsel %vm2590_vm1, %v11015_v57, %v11016_v6  ;;  %v11029_v57 = vsel %vm2590_vm1, %v11027_v55, %v11028_v49  ;;  %v10948_v6 = vld [vmem:[#allocation3 + $0x100] sm:$0x3] }
 0x4fd   : > { %11270 = vmatpush2.bf16.msra.mxu1 %v14782_v33 }
 0x4fe   : > { %11271 = vmatprep.subr.bf16.mxu1 %v14787_v50  ;;  %v10994_v50 = vrot.slane %v10926_v63, 2 }
 0x501   : > { %11272 = vmatpush2.bf16.msra.mxu1 %v14785_v41  ;;  %v10995_v41 = vrot.slane %v10928_v28, 2 }
 0x502   : > { %11273 = vmatprep.subr.bf16.mxu1 %v14790_v60 }
 0x503   : > { %v10996_v34 = vsel %vm2590_vm1, %v10994_v50, %v10995_v41 }
 0x505   : > { %11274 = vmatpush2.bf16.msra.mxu1 %v14788_v7 }
 0x506   : > { %11275 = vmatprep.subr.bf16.mxu1 %v14793_v38  ;;  %v11009_v38 = vrot.slane %v10935_v45, 2 }
 0x509   : > { %11276 = vmatpush2.bf16.msra.mxu1 %v14791_v53  ;;  %v11002_v53 = vsel %vm2590_vm1, %v11000_v0, %v11001_v40  ;;  %v10942_v0 = vld [vmem:[#allocation3 + $0x90] sm:$0xfc]  ;;  %v10944_v40 = vld [vmem:[#allocation3 + $0x18] sm:$0x3] }
 0x50a   : > { %11277 = vmatprep.subr.bf16.mxu1 %v14796_v52  ;;  %v19138_v17 = vpop.f32.mrf.mxu0  ;;  %v10938_v52 = vld [vmem:[#allocation3 + $0x80] sm:$0xfc]  ;;  %v11048_v18 = vpack.c.bf16 %v11002_v53, %v10996_v34 }
 0x50b   : > { %v11012_v27 = vrot.slane %v10938_v52, 2  ;;  %v11025_v52 = vrot.slane %v10948_v6, 2  ;;  %v14807_v6 = vld [vmem:[%s19531_s5 + $0x50] sm:$0xff]  }
 0x50c   : > { %v19143_v51 = vpop.f32.mrf.mxu0 }
 0x50d   : > { %11278 = vmatpush2.bf16.msra.mxu1 %v14794_v46  ;;  %v11011_v46 = vsel %vm2590_vm1, %v11009_v38, %v11010_v36  ;;  %v11018_v38 = vrot.slane %v10942_v0, 2  ;;  %v11019_v36 = vrot.slane %v10944_v40, 2 }
 0x50e   : > { %v19149_v60 = vpop.f32.mrf.mxu0  ;;  %v11051_v24 = vpack.c.bf16 %v11017_v21, %v11011_v46 }
 0x50f   : > { %v11020_v43 = vsel %vm2590_vm1, %v11018_v38, %v11019_v36  ;;  %v14811_v36 = vld [vmem:[%s19531_s5 + $0x40] sm:$0xff]  }
 0x510   : > { %v8996_v4 = vpop.f32.mrf.mxu1  ;;  %11280 = vmatmul.mubr.bf16.vlgmr.msra.gmra.mxu1 %v11046_v62  ;;  %v19160_v61 = vpop.f32.mrf.mxu0  ;;  %v11006_v62 = vrot.slane %v10934_v30, 2 }
 0x511   : > { %v19147_v33 = vadd.f32 %v8996_v4, %v19014_v35  ;;  %11289 = vmatprep.mubr.bf16.mxu1 %v11049_v19  ;;  %v10943_v35 = vld [vmem:[#allocation3 + $0x138] sm:$0xfc] }
 0x512   : > { %v8998_v7 = vpop.f32.mrf.mxu1  ;;  %v11021_v8 = vrot.slane %v10943_v35, 2  ;;  %v9312_v63 = vpop.f32.mrf.mxu0  ;;  %v11008_v41 = vsel %vm2590_vm1, %v11006_v62, %v11007_v14 }
 0x513   : > { %v19152_v31 = vadd.f32 %v8998_v7, %v19019_v37 }
 0x514   : > { %v9000_v39 = vpop.f32.mrf.mxu1  ;;  %v11023_v4 = vsel %vm2590_vm1, %v11021_v8, %v11022_v13  ;;  %v14803_v8 = vld [vmem:[%s19531_s5 + $0x60] sm:$0xff]   ;;  %v19232_v55 = vpop.f32.mrf.mxu0 }
 0x515   : > { %v19157_v26 = vadd.f32 %v9000_v39, %v19021_v12  ;;  %v11013_v12 = vrot.slane %v10940_v47, 2  ;;  %v11053_v39 = vpack.c.bf16 %v11029_v57, %v11023_v4  ;;  %v14804_v13 = vld [vmem:[%s19531_s5 + $0x20] sm:$0xff]   ;;  %v14805_v4 = vld [vmem:[%s19531_s5 + $0x58] sm:$0xff]  }
 0x516   : > { %v9002_v37 = vpop.f32.mrf.mxu1  ;;  %v19234_v49 = vpop.f32.mrf.mxu0  ;;  %v14806_v57 = vld [vmem:[%s19531_s5 + $0x18] sm:$0xff]  }
 0x517   : > { %v19164_v32 = vadd.f32 %v9002_v37, %v19032_v42  ;;  %v11014_v42 = vsel %vm2590_vm1, %v11012_v27, %v11013_v12 }
 0x518   : > { %v9006_v48 = vpop.f32.mrf.mxu1  ;;  %11290 = vmatmul.mubr.bf16.gmra.mxu1 %v11048_v18  ;;  %v11050_v7 = vpack.c.bf16 %v11014_v42, %v11008_v41 }
 0x519   : > { %v9039_v29 = vadd.f32 %v9006_v48, %v19041_v58  ;;  %11299 = vmatprep.mubr.bf16.mxu1 %v11051_v24  ;;  %v10946_v58 = vld [vmem:[#allocation3 + $0x40] sm:$0xfc]  ;;  %v14802_v48 = vld [vmem:[%s19531_s5 + $0x28] sm:$0xff]  }
 0x51a   : > { %v9008_v28 = vpop.f32.mrf.mxu1  ;;  %v11024_v21 = vrot.slane %v10946_v58, 2 }
 0x51b   : > { %v19168_v19 = vadd.f32 %v9008_v28, %v19043_v11  ;;  %v19171_v45 = vadd.f32 %v9312_v63, %v9039_v29  ;;  %v19236_v29 = vpop.f32.mrf.mxu0 }
 0x51c   : > { %v9010_v56 = vpop.f32.mrf.mxu1  ;;  %v11026_v54 = vsel %vm2590_vm1, %v11024_v21, %v11025_v52 }
 0x51d   : > { %v19176_v50 = vadd.f32 %v9010_v56, %v19053_v20  ;;  %v11052_v18 = vpack.c.bf16 %v11026_v54, %v11020_v43  ;;  %v19242_v63 = vpop.f32.mrf.mxu0 }
 0x51e   : > { %v9012_v11 = vpop.f32.mrf.mxu1 }
 0x51f   : > { %v19180_v53 = vadd.f32 %v9012_v11, %v19055_v1  ;;  %v19248_v0 = vpop.f32.mrf.mxu0  ;;  %v14809_v11 = vld [vmem:[%s19531_s5 + $0x48] sm:$0xff]  }
 0x520   : > { %v9016_v47 = vpop.f32.mrf.mxu1  ;;  %11300 = vmatmul.mubr.bf16.gmra.mxu1 %v11050_v7  ;;  %v14810_v7 = vld [vmem:[%s19531_s5 + $0x8] sm:$0xff]  }
 0x521   : > { %v19183_v35 = vadd.f32 %v9016_v47, %v19063_v59  ;;  %11309 = vmatprep.mubr.bf16.mxu1 %v11053_v39  ;;  %v19259_v58 = vpop.f32.mrf.mxu0  ;;  %v14812_v39 = vld [vmem:[%s19531_s5] sm:$0xff]  }
 0x522   : > { %v9018_v20 = vpop.f32.mrf.mxu1 }
 0x523   : > { %v19186_v34 = vadd.f32 %v9018_v20, %v19066_v3  ;;  %v19267_v41 = vpop.f32.mrf.mxu0 }
 0x524   : > { %v9020_v9 = vpop.f32.mrf.mxu1 }
 0x525   : > { %v19191_v1 = vadd.f32 %v9020_v9, %v19075_v23  ;;  %v19275_v38 = vpop.f32.mrf.mxu0 }
 0x526   : > { %v9022_v37 = vpop.f32.mrf.mxu1 }
 0x527   : > { %v19194_v46 = vadd.f32 %v9022_v37, %v19077_v15  ;;  %v14797_v15 = vld [vmem:[%s19531_s5 + $0x78] sm:$0xff]   ;;  %v19283_v21 = vpop.f32.mrf.mxu0 }
 0x528   : > { %v9026_v59 = vpop.f32.mrf.mxu1  ;;  %11310 = vmatmul.mubr.bf16.gmra.mxu1 %v11052_v18  ;;  %13388 = vmatprep.subr.bf16.mxu0 %v14797_v15 }
 0x529   : > { %v19197_v30 = vadd.f32 %v9026_v59, %v19085_v5  ;;  %v14798_v5 = vld [vmem:[%s19531_s5 + $0x38] sm:$0xff]   ;;  %13428 = vmatprep.subr.bf16.mxu1 %v14797_v15  ;;  %v19287_v47 = vpop.f32.mrf.mxu0 }
 0x52a   : > { %v9028_v3 = vpop.f32.mrf.mxu1  ;;  %13389 = vmatpush3.bf16.msra.mxu0 %v14798_v5  ;;  %13436 = vmatpush3.bf16.msra.mxu1 %v14798_v5 }
 0x52b   : > { %v19200_v25 = vadd.f32 %v9028_v3, %v19087_v2  ;;  %v14799_v2 = vld [vmem:[%s19531_s5 + $0x70] sm:$0xff]   ;;  %v19291_v43 = vpop.f32.mrf.mxu0 }
 0x52c   : > { %v9030_v24 = vpop.f32.mrf.mxu1  ;;  %13390 = vmatprep.subr.bf16.mxu0 %v14799_v2  ;;  %13429 = vmatprep.subr.bf16.mxu1 %v14799_v2  ;;  %19696 = vst [vmem:[#allocation13_spill] sm:$0xff] %v19291_v43 }
 0x52d   : > { %v19203_v27 = vadd.f32 %v9030_v24, %v19095_v16  ;;  %v14800_v16 = vld [vmem:[%s19531_s5 + $0x30] sm:$0xff]  }
 0x52e   : > { %v9032_v23 = vpop.f32.mrf.mxu1  ;;  %13391 = vmatpush3.bf16.msra.mxu0 %v14800_v16  ;;  %13437 = vmatpush3.bf16.msra.mxu1 %v14800_v16 }
 0x52f   : > { %v19206_v12 = vadd.f32 %v9032_v23, %v19097_v44  ;;  %v14801_v44 = vld [vmem:[%s19531_s5 + $0x68] sm:$0xff]  }
 0x530   : > { %13392 = vmatprep.subr.bf16.mxu0 %v14801_v44  ;;  %13430 = vmatprep.subr.bf16.mxu1 %v14801_v44 }
 0x531   : > { %19695 = vst [vmem:[#allocation12_spill] sm:$0xff] %v19206_v12 }
 0x532   : > { %13393 = vmatpush3.bf16.msra.mxu0 %v14802_v48  ;;  %13438 = vmatpush3.bf16.msra.mxu1 %v14802_v48 }
 0x533   : > { %13394 = vmatprep.subr.bf16.mxu0 %v14803_v8  ;;  %13431 = vmatprep.subr.bf16.mxu1 %v14803_v8 }
 0x536   : > { %13395 = vmatpush3.bf16.msra.mxu0 %v14804_v13  ;;  %13439 = vmatpush3.bf16.msra.mxu1 %v14804_v13 }
 0x537   : > { %13396 = vmatprep.subr.bf16.mxu0 %v14805_v4  ;;  %13432 = vmatprep.subr.bf16.mxu1 %v14805_v4 }
 0x53a   : > { %13397 = vmatpush3.bf16.msra.mxu0 %v14806_v57  ;;  %13440 = vmatpush3.bf16.msra.mxu1 %v14806_v57 }
 0x53b   : > { %13398 = vmatprep.subr.bf16.mxu0 %v14807_v6  ;;  %13433 = vmatprep.subr.bf16.mxu1 %v14807_v6 }
 0x54a   : > { %v10138_v9 = vpop.f32.mrf.mxu0 }
 0x54c   : > { %v10140_v18 = vpop.f32.mrf.mxu0 }
 0x54e   : > { %v10142_v3 = vpop.f32.mrf.mxu0 }
 0x550   : > { %v19238_v62 = vpop.f32.mrf.mxu1  ;;  %v19301_v23 = vpop.f32.mrf.mxu0 }
 0x552   : > { %v19240_v14 = vpop.f32.mrf.mxu1  ;;  %v19305_v5 = vpop.f32.mrf.mxu0 }
 0x554   : > { %v19244_v28 = vpop.f32.mrf.mxu1  ;;  %v19309_v16 = vpop.f32.mrf.mxu0 }
 0x556   : > { %v19246_v42 = vpop.f32.mrf.mxu1  ;;  %v19313_v48 = vpop.f32.mrf.mxu0 }
 0x557   : > { %19701 = vst [vmem:[#allocation17_spill] sm:$0xff] %v19313_v48 }
 0x558   : > { %v9730_v40 = vpop.f32.mrf.mxu1  ;;  %v19317_v13 = vpop.f32.mrf.mxu0 }
 0x559   : > { %v19251_v56 = vadd.f32 %v9730_v40, %v19171_v45  ;;  %v14808_v45 = vld [vmem:[%s19531_s5 + $0x10] sm:$0xff]   ;;  %19703 = vst [vmem:[#allocation18_spill] sm:$0xff] %v19317_v13 }
 0x55a   : > { %13399 = vmatpush3.bf16.msra.mxu0 %v14808_v45  ;;  %13441 = vmatpush3.bf16.msra.mxu1 %v14808_v45  ;;  %v19285_v52 = vpop.f32.mrf.mxu1  ;;  %v19321_v4 = vpop.f32.mrf.mxu0 }
 0x55b   : > { %13400 = vmatprep.subr.bf16.mxu0 %v14809_v11  ;;  %13434 = vmatprep.subr.bf16.mxu1 %v14809_v11  ;;  %19705 = vst [vmem:[#allocation10_spill] sm:$0xff] %v19321_v4 }
 0x55c   : > { %v19289_v20 = vpop.f32.mrf.mxu1  ;;  %v19323_v6 = vpop.f32.mrf.mxu0 }
 0x55d   : > { %19706 = vst [vmem:[#allocation19_spill] sm:$0xff] %v19323_v6 }
 0x55e   : > { %13401 = vmatpush3.bf16.msra.mxu0 %v14810_v7  ;;  %13442 = vmatpush3.bf16.msra.mxu1 %v14810_v7  ;;  %v19293_v54 = vpop.f32.mrf.mxu1  ;;  %v19325_v11 = vpop.f32.mrf.mxu0 }
 0x55f   : > { %13402 = vmatprep.subr.bf16.mxu0 %v14811_v36  ;;  %13435 = vmatprep.subr.bf16.mxu1 %v14811_v36  ;;  %19707 = vst [vmem:[#allocation20_spill] sm:$0xff] %v19325_v11 }
 0x560   : > { %v19295_v37 = vpop.f32.mrf.mxu1  ;;  %v19327_v36 = vpop.f32.mrf.mxu0 }
 0x561   : > { %19708 = vst [vmem:[#allocation22_spill] sm:$0xff] %v19327_v36 }
 0x562   : > { %13403 = vmatpush3.bf16.msra.mxu0 %v14812_v39  ;;  %13443 = vmatpush3.bf16.msra.mxu1 %v14812_v39  ;;  %v19297_v59 = vpop.f32.mrf.mxu1 }
 0x564   : > { %v19299_v24 = vpop.f32.mrf.mxu1 }
 0x565   : > { %19697 = vst [vmem:[#allocation15_spill] sm:$0xff] %v19299_v24 }
 0x566   : > { %v19303_v15 = vpop.f32.mrf.mxu1 }
 0x567   : > { %19698 = vst [vmem:[#allocation6_spill] sm:$0xff] %v19303_v15 }
 0x568   : > { %v19307_v2 = vpop.f32.mrf.mxu1 }
 0x569   : > { %19699 = vst [vmem:[#allocation7_spill] sm:$0xff] %v19307_v2 }
 0x56a   : > { %v19311_v44 = vpop.f32.mrf.mxu1 }
 0x56b   : > { %19700 = vst [vmem:[#allocation14_spill] sm:$0xff] %v19311_v44  ;;  %v19329_v44 = vpop.f32.mrf.mxu0 }
 0x56c   : > { %v19315_v8 = vpop.f32.mrf.mxu1  ;;  %19709 = vst [vmem:[#allocation21_spill] sm:$0xff] %v19329_v44 }
 0x56d   : > { %19702 = vst [vmem:[#allocation16_spill] sm:$0xff] %v19315_v8  ;;  %v19333_v8 = vpop.f32.mrf.mxu0 }
 0x56e   : > { %v19319_v40 = vpop.f32.mrf.mxu1  ;;  %19710 = vst [vmem:[#allocation23_spill] sm:$0xff] %v19333_v8 }
 0x56f   : > { %19704 = vst [vmem:[#allocation8_spill] sm:$0xff] %v19319_v40  ;;  %v19337_v40 = vpop.f32.mrf.mxu0 }
 0x570   : > { %19712 = vst [vmem:[#allocation25_spill] sm:$0xff] %v19337_v40 }
 0x571   : > { %v19341_v6 = vpop.f32.mrf.mxu0 }
 0x572   : > { %19714 = vst [vmem:[#allocation27_spill] sm:$0xff] %v19341_v6  ;;  %v9341_v6 = vadd.f32 %v19138_v17, %v19147_v33  ;;  %v9344_v17 = vadd.f32 %v19160_v61, %v19164_v32  ;;  %v9348_v61 = vadd.f32 %v19236_v29, %v19180_v53  ;;  %v9349_v32 = vadd.f32 %v19242_v63, %v19183_v35 }
 0x573   : > { %v9352_v53 = vadd.f32 %v19267_v41, %v19194_v46 }
 0x58a   : > { %v10863_v11 = vpop.f32.mrf.mxu0 }
 0x58c   : > { %v10865_v36 = vpop.f32.mrf.mxu0 }
 0x58e   : > { %v10867_v44 = vpop.f32.mrf.mxu0 }
 0x590   : > { %v10445_v57 = vpop.f32.mrf.mxu1  ;;  %v19351_v8 = vpop.f32.mrf.mxu0 }
 0x592   : > { %v10447_v45 = vpop.f32.mrf.mxu1  ;;  %v19355_v40 = vpop.f32.mrf.mxu0 }
 0x593   : > { %19720 = vst [vmem:[#allocation5_spill] sm:$0xff] %v19355_v40 }
 0x594   : > { %v10449_v7 = vpop.f32.mrf.mxu1 }
 0x596   : > { %v10451_v39 = vpop.f32.mrf.mxu1 }
 0x598   : > { %v19331_v2 = vpop.f32.mrf.mxu1 }
 0x59a   : > { %v19335_v15 = vpop.f32.mrf.mxu1 }
 0x59b   : > { %19711 = vst [vmem:[#allocation24_spill] sm:$0xff] %v19335_v15 }
 0x59c   : > { %v19339_v4 = vpop.f32.mrf.mxu1 }
 0x59d   : > { %19713 = vst [vmem:[#allocation26_spill] sm:$0xff] %v19339_v4 }
 0x59e   : > { %v19343_v13 = vpop.f32.mrf.mxu1 }
 0x59f   : > { %19715 = vst [vmem:[#allocation28_spill] sm:$0xff] %v19343_v13  ;;  %v19361_v13 = vpop.f32.mrf.mxu0 }
 0x5a0   : > { %v19345_v48 = vpop.f32.mrf.mxu1  ;;  %19722 = vst [vmem:[#allocation38_spill] sm:$0xff] %v19361_v13 }
 0x5a1   : > { %19716 = vst [vmem:[#allocation4_spill] sm:$0xff] %v19345_v48  ;;  %v9759_v48 = vadd.f32 %v19238_v62, %v9341_v6  ;;  %v19371_v40 = vpop.f32.mrf.mxu0  ;;  %v9762_v62 = vadd.f32 %v19246_v42, %v9344_v17  ;;  %v19727_v17 = vld [vmem:[#allocation17_spill] sm:$0xff] }
 0x5a2   : > { %v19347_v24 = vpop.f32.mrf.mxu1 }
 0x5a3   : > { %19717 = vst [vmem:[#allocation45_spill] sm:$0xff] %v19347_v24  ;;  %v9342_v24 = vadd.f32 %v19143_v51, %v19152_v31  ;;  %v10177_v33 = vadd.f32 %v10138_v9, %v9759_v48  ;;  %v19379_v6 = vpop.f32.mrf.mxu0  ;;  %v10180_v29 = vadd.f32 %v19301_v23, %v9762_v62  ;;  %v19729_v62 = vld [vmem:[#allocation10_spill] sm:$0xff] }
 0x5a4   : > { %v19349_v43 = vpop.f32.mrf.mxu1 }
 0x5a5   : > { %19718 = vst [vmem:[#allocation29_spill] sm:$0xff] %v19349_v43  ;;  %v9760_v43 = vadd.f32 %v19240_v14, %v9342_v24  ;;  %v10484_v51 = vadd.f32 %v10445_v57, %v10177_v33  ;;  %v9346_v14 = vadd.f32 %v19232_v55, %v19168_v19  ;;  %v9351_v55 = vadd.f32 %v19259_v58, %v19191_v1  ;;  %v19405_v63 = vpop.f32.mrf.mxu0 }
 0x5a6   : > { %v19353_v15 = vpop.f32.mrf.mxu1  ;;  %v9354_v1 = vadd.f32 %v19283_v21, %v19200_v25  ;;  %v10487_v41 = vadd.f32 %v10451_v39, %v10180_v29  ;;  %v19726_v39 = vld [vmem:[#allocation15_spill] sm:$0xff] }
 0x5a7   : > { %19719 = vst [vmem:[#allocation30_spill] sm:$0xff] %v19353_v15  ;;  %v9343_v15 = vadd.f32 %v19149_v60, %v19157_v26  ;;  %v10178_v31 = vadd.f32 %v10140_v18, %v9760_v43  ;;  %v9347_v60 = vadd.f32 %v19234_v49, %v19176_v50  ;;  %v11336_v26 = vld [vmem:[%s19536_s10] sm:$0x3]  ;;  %v9764_v19 = vadd.f32 %v19285_v52, %v9346_v14 }
 0x5a8   : > { %v19357_v4 = vpop.f32.mrf.mxu1  ;;  %v11364_v43 = vld [vmem:[%s19537_s11] sm:$0x3]  ;;  %v9350_v50 = vadd.f32 %v19248_v0, %v19186_v34  ;;  %v10902_v9 = vadd.f32 %v10863_v11, %v10484_v51  ;;  %v19408_v18 = vrot.slane %v11336_v26, %v19643_v22  ;;  %v9353_v34 = vadd.f32 %v19275_v38, %v19197_v30 }
 0x5a9   : > { %19721 = vst [vmem:[#allocation31_spill] sm:$0xff] %v19357_v4  ;;  %v9761_v4 = vadd.f32 %v19244_v28, %v9343_v15  ;;  %v10485_v28 = vadd.f32 %v10447_v45, %v10178_v31  ;;  %v19415_v46 = vrot.slane %v11364_v43, %v19643_v22  ;;  %v19418_v58 = vrot.slane %v11336_v26, %v19647_v10  ;;  %v19427_v15 = vpop.f32.mrf.mxu0 }
 0x5aa   : > { %v19366_v12 = vpop.f32.mrf.mxu1  ;;  %v10181_v52 = vadd.f32 %v19305_v5, %v19251_v56  ;;  %v9765_v23 = vadd.f32 %v19289_v20, %v9347_v60  ;;  %v9766_v30 = vadd.f32 %v19293_v54, %v9348_v61  ;;  %v9767_v38 = vadd.f32 %v19295_v37, %v9349_v32  ;;  %v19723_v5 = vld [vmem:[#allocation12_spill] sm:$0xff]  ;;  %v19724_v54 = vld [vmem:[#allocation13_spill] sm:$0xff] }
 0x5ab   : > { %v10179_v42 = vadd.f32 %v10142_v3, %v9761_v4  ;;  %v10903_v24 = vadd.f32 %v10865_v36, %v10485_v28  ;;  %v10182_v25 = vadd.f32 %v19309_v16, %v9764_v19  ;;  %v9768_v56 = vadd.f32 %v19297_v59, %v9350_v50  ;;  %v19725_v37 = vld [vmem:[#allocation24_spill] sm:$0xff]  ;;  %v10887_v14 = vpop.f32.mrf.mxu0  ;;  %v19731_v28 = vld [vmem:[#allocation26_spill] sm:$0xff]  ;;  %v19733_v19 = vld [vmem:[#allocation19_spill] sm:$0xff] }
 0x5ac   : > { %v19376_v13 = vpop.f32.mrf.mxu1  ;;  %v10488_v22 = vadd.f32 %v19331_v2, %v10181_v52  ;;  %v9355_v20 = vadd.f32 %v19287_v47, %v19203_v27  ;;  %v19435_v45 = vadd.f32 %v19724_v54, %v19723_v5  ;;  %v9769_v59 = vadd.f32 %v19726_v39, %v9351_v55  ;;  %v19728_v27 = vld [vmem:[#allocation18_spill] sm:$0xff] }
 0x5ad   : > { %v10486_v35 = vadd.f32 %v10449_v7, %v10179_v42  ;;  %v10489_v16 = vadd.f32 %v19725_v37, %v10182_v25  ;;  %v19440_v7 = vrot.slane %v11364_v43, %v19647_v10  ;;  %v10183_v33 = vadd.f32 %v19727_v17, %v9765_v23  ;;  %v19730_v10 = vld [vmem:[#allocation5_spill] sm:$0xff]  ;;  %v19736_v23 = vld [vmem:[#allocation7_spill] sm:$0xff]  ;;  %v19739_v37 = vld [vmem:[#allocation14_spill] sm:$0xff] }
 0x5ae   : > { %v19402_v49 = vpop.f32.mrf.mxu1  ;;  %v10184_v47 = vadd.f32 %v19728_v27, %v9766_v30  ;;  %v10185_v51 = vadd.f32 %v19729_v62, %v9767_v38  ;;  %v10906_v32 = vadd.f32 %v19730_v10, %v10488_v22  ;;  %v10186_v50 = vadd.f32 %v19733_v19, %v9768_v56  ;;  %v19737_v38 = vld [vmem:[#allocation4_spill] sm:$0xff] }
 0x5af   : > { %v10904_v57 = vadd.f32 %v10867_v44, %v10486_v35  ;;  %v10905_v44 = vadd.f32 %v19351_v8, %v10487_v41  ;;  %v10490_v42 = vadd.f32 %v19731_v28, %v10183_v33  ;;  %v19732_v8 = vld [vmem:[#allocation28_spill] sm:$0xff]  ;;  %v19734_v35 = vld [vmem:[#allocation38_spill] sm:$0xff]  ;;  %v9771_v30 = vadd.f32 %v19736_v23, %v9353_v34  ;;  %v19741_v33 = vld [vmem:[#allocation29_spill] sm:$0xff] }
 0x5b0   : > { %v10491_v43 = vadd.f32 %v19732_v8, %v10184_v47  ;;  %v10907_v29 = vadd.f32 %v19734_v35, %v10489_v16  ;;  %v10492_v25 = vadd.f32 %v19737_v38, %v10185_v51  ;;  %v9772_v16 = vadd.f32 %v19739_v37, %v9354_v1  ;;  %v19742_v47 = vld [vmem:[#allocation22_spill] sm:$0xff] }
 0x5b2   : > { %v10909_v34 = vadd.f32 %v19379_v6, %v10491_v43  ;;  %v10910_v10 = vadd.f32 %v19405_v63, %v10492_v25  ;;  %v19747_v63 = vld [vmem:[#allocation8_spill] sm:$0xff] }
 0x5d0   : > { %v11281_v0 = vpop.f32.mrf.mxu1 }
 0x5d1   : > { %v11320_v3 = vadd.f32 %v11281_v0, %v10902_v9 }
 0x5d2   : > { %v11283_v21 = vpop.f32.mrf.mxu1 }
 0x5d3   : > { %v11348_v48 = vmul.f32 %v19408_v18, %v11320_v3  ;;  %v11321_v4 = vadd.f32 %v11283_v21, %v10903_v24  ;;  %v19735_v3 = vld [vmem:[#allocation6_spill] sm:$0xff]  ;;  %v19738_v21 = vld [vmem:[#allocation20_spill] sm:$0xff] }
 0x5d4   : > { %v11285_v11 = vpop.f32.mrf.mxu1  ;;  %v9770_v24 = vadd.f32 %v19735_v3, %v9352_v53  ;;  %v10187_v22 = vadd.f32 %v19738_v21, %v9769_v59 }
 0x5d5   : > { %v11349_v2 = vmul.f32 %v19418_v58, %v11321_v4  ;;  %v11322_v36 = vadd.f32 %v11285_v11, %v10904_v57  ;;  %v11376_v60 = vadd.f32 %v19415_v46, %v11348_v48  ;;  %v10889_v4 = vpop.f32.mrf.mxu0 }
 0x5d6   : > { %v11287_v31 = vpop.f32.mrf.mxu1  ;;  %v10494_v27 = vadd.f32 %v19741_v33, %v10187_v22  ;;  %v10188_v62 = vadd.f32 %v19742_v47, %v9770_v24 }
 0x5d7   : > { %v11350_v26 = vmul.f32 %v19408_v18, %v11322_v36  ;;  %v11323_v61 = vadd.f32 %v11287_v31, %v10905_v44  ;;  %v11377_v9 = vadd.f32 %v19440_v7, %v11349_v2  ;;  %v11392_v57 = vmax.f32 %v11376_v60, 0.0  ;;  %v19740_v36 = vld [vmem:[#allocation45_spill] sm:$0xff]  ;;  %v10893_v60 = vpop.f32.mrf.mxu0 }
 0x5d8   : > { %v11291_v55 = vpop.f32.mrf.mxu1  ;;  %v10908_v2 = vadd.f32 %v19371_v40, %v10490_v42  ;;  %v10493_v44 = vadd.f32 %v19740_v36, %v10186_v50  ;;  %v19745_v42 = vld [vmem:[#allocation23_spill] sm:$0xff]  ;;  %v10912_v24 = vadd.f32 %v10887_v14, %v10494_v27 }
 0x5d9   : > { %v11378_v0 = vadd.f32 %v19415_v46, %v11350_v26  ;;  %v11351_v41 = vmul.f32 %v19418_v58, %v11323_v61  ;;  %v11324_v52 = vadd.f32 %v11291_v55, %v10906_v32  ;;  %v11393_v39 = vmax.f32 %v11377_v9, 0.0  ;;  %v19743_v26 = vld [vmem:[#allocation21_spill] sm:$0xff]  ;;  %v19744_v32 = vld [vmem:[#allocation16_spill] sm:$0xff]  ;;  %v19746_v55 = vld [vmem:[#allocation30_spill] sm:$0xff]  ;;  %v10895_v23 = vpop.f32.mrf.mxu0 }
 0x5da   : > { %v11293_v48 = vpop.f32.mrf.mxu1  ;;  %v10189_v61 = vadd.f32 %v19743_v26, %v9771_v30  ;;  %v9773_v28 = vadd.f32 %v19744_v32, %v9355_v20  ;;  %v10190_v8 = vadd.f32 %v19745_v42, %v9772_v16  ;;  %v10495_v35 = vadd.f32 %v19746_v55, %v10188_v62  ;;  %v19748_v30 = vld [vmem:[#allocation31_spill] sm:$0xff]  ;;  %v19749_v16 = vld [vmem:[#allocation25_spill] sm:$0xff] }
 0x5db   : > { %v11394_v56 = vmax.f32 %v11378_v0, 0.0  ;;  %v11379_v5 = vadd.f32 %v19440_v7, %v11351_v41  ;;  %v11325_v54 = vadd.f32 %v11293_v48, %v10907_v29  ;;  %v11352_v11 = vmul.f32 %v19408_v18, %v11324_v52 }
 0x5dc   : > { %v11295_v53 = vpop.f32.mrf.mxu1  ;;  %v10911_v0 = vadd.f32 %v19427_v15, %v10493_v44  ;;  %v9774_v41 = vadd.f32 %v19747_v63, %v19435_v45  ;;  %v10496_v38 = vadd.f32 %v19748_v30, %v10189_v61  ;;  %v10497_v15 = vadd.f32 %v19366_v12, %v10190_v8  ;;  %v10897_v44 = vpop.f32.mrf.mxu0 }
 0x5dd   : > { %v11408_v59 = vpack.c.bf16 %v11394_v56, %v11392_v57  ;;  %v11395_v17 = vmax.f32 %v11379_v5, 0.0  ;;  %v11353_v51 = vmul.f32 %v19418_v58, %v11325_v54  ;;  %v11326_v31 = vadd.f32 %v11295_v53, %v10908_v2 }
 0x5de   : > { %v11297_v1 = vpop.f32.mrf.mxu1  ;;  %v11380_v43 = vadd.f32 %v19415_v46, %v11352_v11  ;;  %v10913_v37 = vadd.f32 %v10889_v4, %v10495_v35  ;;  %v10191_v14 = vadd.f32 %v19749_v16, %v9773_v28  ;;  %v19750_v11 = vld [vmem:[#allocation27_spill] sm:$0xff]  ;;  %v10915_v62 = vadd.f32 %v10895_v23, %v10497_v15 }
 0x5df   : > { %v11327_v40 = vadd.f32 %v11297_v1, %v10909_v34  ;;  %v11409_v6 = vpack.c.bf16 %v11395_v17, %v11393_v39  ;;  %v11354_v19 = vmul.f32 %v19408_v18, %v11326_v31  ;;  %v11381_v20 = vadd.f32 %v19440_v7, %v11353_v51 }
 0x5e0   : > { %v11301_v50 = vpop.f32.mrf.mxu1  ;;  %v11396_v48 = vmax.f32 %v11380_v43, 0.0  ;;  %v10192_v2 = vadd.f32 %v19750_v11, %v9774_v41  ;;  %v10914_v17 = vadd.f32 %v10893_v60, %v10496_v38  ;;  %v10498_v33 = vadd.f32 %v19376_v13, %v10191_v14 }
 0x5e1   : > { %v11355_v29 = vmul.f32 %v19418_v58, %v11327_v40  ;;  %v11328_v9 = vadd.f32 %v11301_v50, %v10910_v10  ;;  %11583 = vmatprep.mubr.bf16.mxu0 %v11409_v6  ;;  %v11382_v52 = vadd.f32 %v19415_v46, %v11354_v19  ;;  %v11397_v53 = vmax.f32 %v11381_v20, 0.0  ;;  %v10899_v40 = vpop.f32.mrf.mxu0 }
 0x5e2   : > { %v11303_v3 = vpop.f32.mrf.mxu1  ;;  %11584 = vmatmul.mubr.bf16.vlgmr.msra.gmra.mxu0 %v11408_v59  ;;  %v10499_v27 = vadd.f32 %v19402_v49, %v10192_v2  ;;  %v10916_v32 = vadd.f32 %v10897_v44, %v10498_v33 }
 0x5e3   : > { %v11383_v25 = vadd.f32 %v19440_v7, %v11355_v29  ;;  %v11356_v21 = vmul.f32 %v19408_v18, %v11328_v9  ;;  %v11329_v22 = vadd.f32 %v11303_v3, %v10911_v0  ;;  %v11398_v57 = vmax.f32 %v11382_v52, 0.0 }
 0x5e4   : > { %v11305_v45 = vpop.f32.mrf.mxu1  ;;  %v10917_v42 = vadd.f32 %v10899_v40, %v10499_v27 }
 0x5e5   : > { %v11399_v56 = vmax.f32 %v11383_v25, 0.0  ;;  %v11357_v5 = vmul.f32 %v19418_v58, %v11329_v22  ;;  %v11330_v54 = vadd.f32 %v11305_v45, %v10912_v24  ;;  %v11410_v34 = vpack.c.bf16 %v11398_v57, %v11396_v48 }
 0x5e6   : > { %v11307_v36 = vpop.f32.mrf.mxu1  ;;  %v11384_v39 = vadd.f32 %v19415_v46, %v11356_v21 }
 0x5e7   : > { %v11358_v12 = vmul.f32 %v19408_v18, %v11330_v54  ;;  %v11331_v59 = vadd.f32 %v11307_v36, %v10913_v37  ;;  %v11411_v4 = vpack.c.bf16 %v11399_v56, %v11397_v53  ;;  %v11385_v51 = vadd.f32 %v19440_v7, %v11357_v5 }
 0x5e8   : > { %v11311_v47 = vpop.f32.mrf.mxu1  ;;  %v11400_v10 = vmax.f32 %v11384_v39, 0.0 }
 0x5e9   : > { %v11386_v31 = vadd.f32 %v19415_v46, %v11358_v12  ;;  %v11359_v1 = vmul.f32 %v19418_v58, %v11331_v59  ;;  %v11332_v26 = vadd.f32 %v11311_v47, %v10914_v17  ;;  %11591 = vmatprep.mubr.bf16.mxu0 %v11411_v4  ;;  %v11401_v8 = vmax.f32 %v11385_v51, 0.0 }
 0x5ea   : > { %v11313_v61 = vpop.f32.mrf.mxu1  ;;  %11592 = vmatmul.mubr.bf16.gmra.mxu0 %v11410_v34 }
 0x5eb   : > { %v11402_v6 = vmax.f32 %v11386_v31, 0.0  ;;  %v11387_v60 = vadd.f32 %v19440_v7, %v11359_v1  ;;  %v11333_v13 = vadd.f32 %v11313_v61, %v10915_v62  ;;  %v11360_v49 = vmul.f32 %v19408_v18, %v11332_v26 }
 0x5ec   : > { %v11315_v28 = vpop.f32.mrf.mxu1 }
 0x5ed   : > { %v11412_v43 = vpack.c.bf16 %v11402_v6, %v11400_v10  ;;  %v11403_v19 = vmax.f32 %v11387_v60, 0.0  ;;  %v11361_v50 = vmul.f32 %v19418_v58, %v11333_v13  ;;  %v11334_v55 = vadd.f32 %v11315_v28, %v10916_v32 }
 0x5ee   : > { %v11317_v35 = vpop.f32.mrf.mxu1  ;;  %v11388_v0 = vadd.f32 %v19415_v46, %v11360_v49 }
 0x5ef   : > { %v11335_v29 = vadd.f32 %v11317_v35, %v10917_v42  ;;  %v11413_v9 = vpack.c.bf16 %v11403_v19, %v11401_v8  ;;  %v11362_v63 = vmul.f32 %v19408_v18, %v11334_v55  ;;  %v11389_v41 = vadd.f32 %v19440_v7, %v11361_v50 }
 0x5f0   : > { %v11404_v24 = vmax.f32 %v11388_v0, 0.0 }
 0x5f1   : > { %v11363_v20 = vmul.f32 %v19418_v58, %v11335_v29  ;;  %11599 = vmatprep.mubr.bf16.mxu1 %v11413_v9  ;;  %v11390_v52 = vadd.f32 %v19415_v46, %v11362_v63  ;;  %v11405_v30 = vmax.f32 %v11389_v41, 0.0  ;;  %v13366_v58 = vld [vmem:[%s19538_s12] ss:$0 sm:$0xff] }
 0x5f2   : > { %11600 = vmatmul.mubr.bf16.vlgmr.msra.gmra.mxu1 %v11412_v43 }
 0x5f3   : > { %v11391_v3 = vadd.f32 %v19440_v7, %v11363_v20  ;;  %v11406_v23 = vmax.f32 %v11390_v52, 0.0 }
 0x5f5   : > { %v11407_v38 = vmax.f32 %v11391_v3, 0.0  ;;  %v11414_v25 = vpack.c.bf16 %v11406_v23, %v11404_v24 }
 0x5f7   : > { %v11415_v21 = vpack.c.bf16 %v11407_v38, %v11405_v30 }
 0x5f9   : > { %11607 = vmatprep.mubr.bf16.mxu1 %v11415_v21 }
 0x5fa   : > { %11608 = vmatmul.mubr.bf16.gmra.mxu1 %v11414_v25 }
 0x6a2   : > { %v13404_v18 = vpop.f32.mrf.mxu0 }
 0x6a4   : > { %v13405_v22 = vpop.f32.mrf.mxu0 }
 0x6a5   : > { %v13406_v15 = vadd.f32 %v13405_v22, %v13404_v18 }
 0x6a6   : > { %v13407_v46 = vpop.f32.mrf.mxu0 }
 0x6a7   : > { %v11586_v7 = vadd.f32 %v13406_v15, %v13366_v58 }
 0x6a8   : > { %v13408_v48 = vpop.f32.mrf.mxu0 }
 0x6a9   : > { %11616 = vst [vmem:[%s19513_s27] sm:$0xff] %v11586_v7  ;;  %v13409_v57 = vadd.f32 %v13408_v48, %v13407_v46 }
 0x6aa   : > { %v13410_v56 = vpop.f32.mrf.mxu0 }
 0x6ab   : > { %v11589_v45 = vadd.f32 %v13409_v57, %v13366_v58 }
 0x6ac   : > { %v13411_v5 = vpop.f32.mrf.mxu0 }
 0x6ad   : > { %11617 = vst [vmem:[%s19513_s27 + $0x8] sm:$0xff] %v11589_v45  ;;  %v13412_v54 = vadd.f32 %v13411_v5, %v13410_v56 }
 0x6ae   : > { %v13413_v37 = vpop.f32.mrf.mxu0 }
 0x6af   : > { %v11594_v16 = vadd.f32 %v13412_v54, %v13366_v58 }
 0x6b0   : > { %v13414_v14 = vpop.f32.mrf.mxu0 }
 0x6b1   : > { %11618 = vst [vmem:[%s19513_s27 + $0x10] sm:$0xff] %v11594_v16  ;;  %v13415_v11 = vadd.f32 %v13414_v14, %v13413_v37 }
 0x6b2   : > { %v13416_v2 = vpop.f32.mrf.mxu1 }
 0x6b3   : > { %v11597_v53 = vadd.f32 %v13415_v11, %v13366_v58 }
 0x6b4   : > { %v13417_v34 = vpop.f32.mrf.mxu1 }
 0x6b5   : > { %v13418_v36 = vadd.f32 %v13417_v34, %v13416_v2  ;;  %11619 = vst [vmem:[%s19513_s27 + $0x18] sm:$0xff] %v11597_v53 }
 0x6b6   : > { %v13419_v44 = vpop.f32.mrf.mxu1 }
 0x6b7   : > { %v11602_v39 = vadd.f32 %v13418_v36, %v13366_v58 }
 0x6b8   : > { %v13420_v12 = vpop.f32.mrf.mxu1 }
 0x6b9   : > { %11620 = vst [vmem:[%s19513_s27 + $0x20] sm:$0xff] %v11602_v39  ;;  %v13421_v59 = vadd.f32 %v13420_v12, %v13419_v44 }
 0x6ba   : > { %v13422_v17 = vpop.f32.mrf.mxu1 }
 0x6bb   : > { %v11605_v33 = vadd.f32 %v13421_v59, %v13366_v58 }
 0x6bc   : > { %v13423_v27 = vpop.f32.mrf.mxu1 }
 0x6bd   : > { %11621 = vst [vmem:[%s19513_s27 + $0x28] sm:$0xff] %v11605_v33  ;;  %v13424_v47 = vadd.f32 %v13423_v27, %v13422_v17 }
 0x6be   : > { %v13425_v4 = vpop.f32.mrf.mxu1 }
 0x6bf   : > { %v11610_v62 = vadd.f32 %v13424_v47, %v13366_v58 }
 0x6c0   : > { %v13426_v51 = vpop.f32.mrf.mxu1 }
 0x6c1   : > { %11622 = vst [vmem:[%s19513_s27 + $0x30] sm:$0xff] %v11610_v62  ;;  %v13427_v31 = vadd.f32 %v13426_v51, %v13425_v4 }
 0x6c3   : > { %v11613_v1 = vadd.f32 %v13427_v31, %v13366_v58 }
 0x6c5   : > { %11623 = vst [vmem:[%s19513_s27 + $0x38] sm:$0xff] %v11613_v1 }
 0x6c6 PF: > { %s23_s25 = sadd.s32 1, %s14825_s25  }
 0x6c7   : > { %p20_p4 = scmp.ge.s32.totalorder %s23_s25, 4  }
 0x6c9   :  { %22 = sbr.rel (!%p20_p4) target bundleno = 1 (0x1), region = 125 }

</bundles_post_ra>
